<compile_context>
chip_gen: v7x
topology: tpu7x:2x2x1
jax: 0.10.0
libtpu: 0.0.40
codegen_flags: <defaults>
</compile_context>

<pallas_src>
import functools

import jax
import jax.numpy as jnp
from jax.experimental import pallas as pl
from jax.experimental.pallas import tpu as pltpu

_FEAT_RAW = 7 * 7 * 64          # 3136 real features after conv3
_FEAT_PAD = _FEAT_RAW + 64      # 3200 = 25*128, lane-aligned feat width

_MOSAIC_PARAMS = dict(dimension_semantics=("parallel",),
                      vmem_limit_bytes=32 * 1024 * 1024)


# ----------------------------- Pallas kernels ------------------------------ #

def _matmul_bias_relu_kernel(x_ref, w_ref, b_ref, o_ref):
    # bf16 operands -> MXU, f32 accumulate; bias + ReLU in f32; store bf16.
    acc = jnp.dot(x_ref[...], w_ref[...], preferred_element_type=jnp.float32)
    acc = jnp.maximum(acc + b_ref[...], 0.0)
    o_ref[...] = acc.astype(o_ref.dtype)


def _conv3_feat_kernel(x_ref, w_ref, b_ref, o_ref):
    """Fused conv3: in-kernel 3x3/stride-1 im2col + matmul + bias + ReLU.

    x_ref: (tb, 9, 9, 64) bf16   conv2 output tile (NHWC)
    w_ref: (576, 64)      bf16   conv3 weight, rows ordered (kh, kw, cin)
    b_ref: (1, 64)        f32
    o_ref: (tb, 50, 64)   bf16   rows 0..48 = (h*7 + w), row 49 = zero pad
    """
    x = x_ref[...]
    tb = x.shape[0]
    pieces = [x[:, i:i + 7, j:j + 7, :] for i in range(3) for j in range(3)]
    patches = jnp.concatenate(pieces, axis=-1)           # (tb, 7, 7, 576)
    cols = patches.reshape(tb * 49, 576)
    y = jnp.dot(cols, w_ref[...], preferred_element_type=jnp.float32)
    y = jnp.maximum(y + b_ref[...], 0.0)
    o_ref[:, 0:49, :] = y.reshape(tb, 49, 64).astype(o_ref.dtype)
    o_ref[:, 49:50, :] = jnp.zeros((tb, 1, 64), o_ref.dtype)


def _head_kernel(x_ref, w1_ref, b1_ref, wh_ref, bh_ref, o_ref, *, n_actions):
    """Fused linear1+ReLU + [value|policy] matmul + masked log-softmax.

    Writes one lane-dense (tb, 128) f32 block:
      col 0         = value
      cols 1..A     = log-softmax(policy logits)
      cols A+1..127 = zeros (padded weight columns)
    """
    h = jnp.dot(x_ref[...], w1_ref[...], preferred_element_type=jnp.float32)
    h = jnp.maximum(h + b1_ref[...], 0.0)
    z = jnp.dot(h.astype(jnp.bfloat16), wh_ref[...],
                preferred_element_type=jnp.float32) + bh_ref[...]
    col = jax.lax.broadcasted_iota(jnp.int32, z.shape, 1)
    is_pol = (col >= 1) & (col <= n_actions)
    zp = jnp.where(is_pol, z, jnp.float32(-1e30))
    m = jnp.max(zp, axis=1, keepdims=True)
    s = jnp.sum(jnp.exp(zp - m), axis=1, keepdims=True)
    logp = (z - m) - jnp.log(s)
    o_ref[...] = jnp.where(is_pol, logp, jnp.where(col == 0, z, 0.0))


# ----------------------------- Pallas wrappers ------------------------------ #

def pallas_matmul_bias_relu(x, w, b, *, tile_m):
    """y = relu(x @ w + b), M-tiled.  x/w bf16, b f32 (1, N); y bf16."""
    M, K = x.shape
    N = w.shape[1]
    tm = min(tile_m, M)            # tile_m is a multiple of 8, or tm == M
    return pl.pallas_call(
        _matmul_bias_relu_kernel,
        out_shape=jax.ShapeDtypeStruct((M, N), jnp.bfloat16),
        grid_spec=pltpu.PrefetchScalarGridSpec(
            num_scalar_prefetch=0,
            grid=(pl.cdiv(M, tm),),
            in_specs=[pl.BlockSpec((tm, K), lambda i: (i, 0)),
                      pl.BlockSpec((K, N), lambda i: (0, 0)),
                      pl.BlockSpec((1, N), lambda i: (0, 0))],
            out_specs=pl.BlockSpec((tm, N), lambda i: (i, 0)),
        ),
        compiler_params=pltpu.CompilerParams(**_MOSAIC_PARAMS),
    )(x, w, b)


def pallas_conv3_feat(x_nhwc, w2d, b, *, tile_b=32):
    """Fused conv3 (in-kernel im2col) -> (B, 3200) bf16 NHWC-flattened feat."""
    B = x_nhwc.shape[0]
    tb = min(tile_b, B)
    out = pl.pallas_call(
        _conv3_feat_kernel,
        out_shape=jax.ShapeDtypeStruct((B, 50, 64), jnp.bfloat16),
        grid_spec=pltpu.PrefetchScalarGridSpec(
            num_scalar_prefetch=0,
            grid=(pl.cdiv(B, tb),),
            in_specs=[pl.BlockSpec((tb, 9, 9, 64), lambda i: (i, 0, 0, 0)),
                      pl.BlockSpec((576, 64), lambda i: (0, 0)),
                      pl.BlockSpec((1, 64), lambda i: (0, 0))],
            out_specs=pl.BlockSpec((tb, 50, 64), lambda i: (i, 0, 0)),
        ),
        compiler_params=pltpu.CompilerParams(**_MOSAIC_PARAMS),
    )(x_nhwc, w2d, b)
    return out.reshape(B, _FEAT_PAD)


def pallas_heads(feat, w1, b1, wh, bh, *, n_actions, tile_b=256):
    """B-tiled fused linear1+ReLU, value, policy + log-softmax (one launch)."""
    B, Kf = feat.shape
    H = w1.shape[1]
    NH = wh.shape[1]
    tb = min(tile_b, B)
    return pl.pallas_call(
        functools.partial(_head_kernel, n_actions=n_actions),
        out_shape=jax.ShapeDtypeStruct((B, NH), jnp.float32),
        grid_spec=pltpu.PrefetchScalarGridSpec(
            num_scalar_prefetch=0,
            grid=(pl.cdiv(B, tb),),
            in_specs=[pl.BlockSpec((tb, Kf), lambda i: (i, 0)),
                      pl.BlockSpec((Kf, H), lambda i: (0, 0)),
                      pl.BlockSpec((1, H), lambda i: (0, 0)),
                      pl.BlockSpec((H, NH), lambda i: (0, 0)),
                      pl.BlockSpec((1, NH), lambda i: (0, 0))],
            out_specs=pl.BlockSpec((tb, NH), lambda i: (i, 0)),
        ),
        compiler_params=pltpu.CompilerParams(**_MOSAIC_PARAMS),
    )(feat, w1, b1, wh, bh)


# ------------------------------- conv glue --------------------------------- #

def _im2col(x, K, S):
    # x: (B, H, W, C) -> cols (B*Ho*Wo, K*K*C) with patch order (kh, kw, cin)
    B, H, W, C = x.shape
    Ho = (H - K) // S + 1
    Wo = (W - K) // S + 1
    cols = []
    for i in range(K):
        for j in range(K):
            cols.append(x[:, i:i + S * Ho:S, j:j + S * Wo:S, :])
    p = jnp.stack(cols, axis=3)                    # (B, Ho, Wo, K*K, C)
    return p.reshape(B * Ho * Wo, K * K * C), (B, Ho, Wo)


def conv2d_relu(x_nhwc, w2d, b, *, ksize, stride, tile_m):
    # TODO(synk): fuse the strided im2col for conv1/conv2 into the Pallas
    # kernel to remove the expanded-cols HBM round trip (conv3 is already fused).
    cols, (B, Ho, Wo) = _im2col(x_nhwc, ksize, stride)
    y = pallas_matmul_bias_relu(cols, w2d, b, tile_m=tile_m)
    return y.reshape(B, Ho, Wo, w2d.shape[1])


def conv3_feat_fallback(x_nhwc, w2d, b):
    # XLA-side im2col path; only used if the fused conv3 kernel does not lower.
    cols, (B, _, _) = _im2col(x_nhwc, 3, 1)                    # (B*49, 576)
    y = pallas_matmul_bias_relu(cols, w2d, b, tile_m=1568)     # (B*49, 64)
    feat = y.reshape(B, _FEAT_RAW)
    return jnp.pad(feat, ((0, 0), (0, _FEAT_PAD - _FEAT_RAW)))


def fused_conv3_supported():
    """One-time compile probe of the fused conv3 kernel (portability guard)."""
    try:
        x = jnp.zeros((2, 9, 9, 64), jnp.bfloat16)
        w = jnp.zeros((576, 64), jnp.bfloat16)
        b = jnp.zeros((1, 64), jnp.float32)
        jax.block_until_ready(pallas_conv3_feat(x, w, b))
        return True
    except Exception:
        return False


# ------------------------------ model wrapper ------------------------------ #

def init_params(key, n_stack, n_actions):
    def uni(k, shape, fan_in):
        bound = 1.0 / jnp.sqrt(jnp.float32(fan_in))
        return jax.random.uniform(k, shape, jnp.float32, -bound, bound)

    ks = jax.random.split(key, 12)
    p = {}
    p["conv1_w"] = uni(ks[0], (32, n_stack, 8, 8), n_stack * 8 * 8)
    p["conv1_b"] = uni(ks[1], (32,), n_stack * 8 * 8)
    p["conv2_w"] = uni(ks[2], (64, 32, 4, 4), 32 * 4 * 4)
    p["conv2_b"] = uni(ks[3], (64,), 32 * 4 * 4)
    p["conv3_w"] = uni(ks[4], (64, 64, 3, 3), 64 * 3 * 3)
    p["conv3_b"] = uni(ks[5], (64,), 64 * 3 * 3)
    p["lin1_w"] = uni(ks[6], (7 * 7 * 64, 512), 7 * 7 * 64)
    p["lin1_b"] = uni(ks[7], (512,), 7 * 7 * 64)
    p["val_w"] = uni(ks[8], (512, 1), 512)
    p["val_b"] = uni(ks[9], (1,), 512)
    p["pol_w"] = uni(ks[10], (512, n_actions), 512)
    p["pol_b"] = uni(ks[11], (n_actions,), 512)
    return p


def prepare_params(p, n_actions):
    """One-time weight relayout: done ONCE, outside the jitted forward."""
    def conv_w2d(w_oihw):
        Cout, Cin, K, _ = w_oihw.shape
        return (jnp.transpose(w_oihw, (2, 3, 1, 0))
                .reshape(K * K * Cin, Cout).astype(jnp.bfloat16))

    kp = {}
    kp["conv1_w2d"] = conv_w2d(p["conv1_w"])
    kp["conv1_b"] = p["conv1_b"].reshape(1, -1).astype(jnp.float32)
    kp["conv2_w2d"] = conv_w2d(p["conv2_w"])
    kp["conv2_b"] = p["conv2_b"].reshape(1, -1).astype(jnp.float32)
    kp["conv3_w2d"] = conv_w2d(p["conv3_w"])
    kp["conv3_b"] = p["conv3_b"].reshape(1, -1).astype(jnp.float32)

    # lin1: permute rows to NHWC (h, w, c) flatten order (PyTorch flattens NCHW
    # as c*49 + h*7 + w) and zero-pad 3136 -> 3200 (lane-aligned feat width).
    nchw_idx = jnp.arange(_FEAT_RAW).reshape(64, 7, 7)
    perm = jnp.transpose(nchw_idx, (1, 2, 0)).reshape(-1)
    lin1 = p["lin1_w"][perm, :]
    lin1 = jnp.pad(lin1, ((0, _FEAT_PAD - _FEAT_RAW), (0, 0)))
    kp["lin1_w"] = lin1.astype(jnp.bfloat16)
    kp["lin1_b"] = p["lin1_b"].reshape(1, -1).astype(jnp.float32)

    # Value + policy heads concatenated and zero-padded to one lane-dense
    # 128-wide output: col 0 = value, cols 1..A = policy logits.
    nh = 1 + n_actions
    nh_pad = max(128, ((nh + 127) // 128) * 128)
    head_w = jnp.concatenate([p["val_w"], p["pol_w"]], axis=1)
    kp["head_w"] = jnp.pad(head_w, ((0, 0), (0, nh_pad - nh))).astype(jnp.bfloat16)
    head_b = jnp.concatenate([p["val_b"], p["pol_b"]]).reshape(1, -1)
    kp["head_b"] = jnp.pad(head_b, ((0, 0), (0, nh_pad - nh))).astype(jnp.float32)
    return kp


def model_forward(kp, x_nchw, *, n_actions, use_fused_conv3):
    # NCHW (PyTorch) -> NHWC bf16 for conv compute (MXU operands).
    x = jnp.transpose(x_nchw, (0, 2, 3, 1)).astype(jnp.bfloat16)
    x = conv2d_relu(x, kp["conv1_w2d"], kp["conv1_b"], ksize=8, stride=4,
                    tile_m=1600)                                # (B, 20, 20, 32)
    x = conv2d_relu(x, kp["conv2_w2d"], kp["conv2_b"], ksize=4, stride=2,
                    tile_m=1296)                                # (B, 9, 9, 64)
    if use_fused_conv3:
        feat = pallas_conv3_feat(x, kp["conv3_w2d"], kp["conv3_b"])   # (B, 3200)
    else:
        feat = conv3_feat_fallback(x, kp["conv3_w2d"], kp["conv3_b"])
    out = pallas_heads(feat, kp["lin1_w"], kp["lin1_b"],
                       kp["head_w"], kp["head_b"], n_actions=n_actions)
    value_out = out[:, 0:1]
    policy_out = out[:, 1:1 + n_actions]
    return value_out, policy_out


# ---------------------------------- main ----------------------------------- #

if __name__ == "__main__":
    n_stack, n_actions, batch = 4, 4, 2
    key = jax.random.PRNGKey(0)
    pkey, xkey = jax.random.split(key)

    params = init_params(pkey, n_stack, n_actions)
    kparams = prepare_params(params, n_actions)    # one-time weight relayout
    # 84x84 spatial input is required by the 7*7*64 -> 512 linear layer.
    x = jax.random.normal(xkey, (batch, n_stack, 84, 84), dtype=jnp.float32)

    use_fused = fused_conv3_supported()
    fwd = jax.jit(functools.partial(model_forward, n_actions=n_actions,
                                    use_fused_conv3=use_fused))
    value, policy = fwd(kparams, x)
    jax.block_until_ready((value, policy))

    assert value.shape == (batch, 1)
    assert policy.shape == (batch, n_actions)
    # log_softmax rows should (approximately) sum to 1 after exp
    assert jnp.allclose(jnp.sum(jnp.exp(policy), axis=1), 1.0, atol=1e-4)

    print("KERNEL_OK")
</pallas_src>

<mosaic_0001>
module attributes {stable_mosaic.version = 11 : i64} {
  func.func @_conv3_feat_kernel(%arg0: i32, %arg1: memref<2x9x9x64xbf16, #tpu.memory_space<vmem>>, %arg2: memref<576x64xbf16, #tpu.memory_space<vmem>>, %arg3: memref<1x64xf32, #tpu.memory_space<vmem>>, %arg4: memref<2x50x64xbf16, #tpu.memory_space<vmem>>) attributes {dimension_semantics = [#tpu.dimension_semantics<parallel>], iteration_bounds = array<i64: 1>, scalar_prefetch = 0 : i64, scratch_operands = 0 : i64, tpu.core_type = #tpu.core_type<tc>, window_params = [{transform_indices = @transform_0, window_bounds = array<i64: 2, 9, 9, 64>}, {pipeline_mode = #tpu.pipeline_mode<synchronous>, transform_indices = @transform_1, window_bounds = array<i64: 576, 64>}, {pipeline_mode = #tpu.pipeline_mode<synchronous>, transform_indices = @transform_2, window_bounds = array<i64: 1, 64>}, {transform_indices = @transform_3, window_bounds = array<i64: 2, 50, 64>}]} {
    %c0 = arith.constant 0 : index
    %c0_0 = arith.constant 0 : index
    %c0_1 = arith.constant 0 : index
    %c0_2 = arith.constant 0 : index
    %0 = vector.load %arg1[%c0, %c0_0, %c0_1, %c0_2] : memref<2x9x9x64xbf16, #tpu.memory_space<vmem>>, vector<2x9x9x64xbf16>
    %1 = vector.extract_strided_slice %0 {offsets = [0, 0, 0, 0], sizes = [2, 7, 7, 64], strides = [1, 1, 1, 1]} : vector<2x9x9x64xbf16> to vector<2x7x7x64xbf16>
    %2 = vector.extract_strided_slice %0 {offsets = [0, 0, 1, 0], sizes = [2, 7, 7, 64], strides = [1, 1, 1, 1]} : vector<2x9x9x64xbf16> to vector<2x7x7x64xbf16>
    %3 = vector.extract_strided_slice %0 {offsets = [0, 0, 2, 0], sizes = [2, 7, 7, 64], strides = [1, 1, 1, 1]} : vector<2x9x9x64xbf16> to vector<2x7x7x64xbf16>
    %4 = vector.extract_strided_slice %0 {offsets = [0, 1, 0, 0], sizes = [2, 7, 7, 64], strides = [1, 1, 1, 1]} : vector<2x9x9x64xbf16> to vector<2x7x7x64xbf16>
    %5 = vector.extract_strided_slice %0 {offsets = [0, 1, 1, 0], sizes = [2, 7, 7, 64], strides = [1, 1, 1, 1]} : vector<2x9x9x64xbf16> to vector<2x7x7x64xbf16>
    %6 = vector.extract_strided_slice %0 {offsets = [0, 1, 2, 0], sizes = [2, 7, 7, 64], strides = [1, 1, 1, 1]} : vector<2x9x9x64xbf16> to vector<2x7x7x64xbf16>
    %7 = vector.extract_strided_slice %0 {offsets = [0, 2, 0, 0], sizes = [2, 7, 7, 64], strides = [1, 1, 1, 1]} : vector<2x9x9x64xbf16> to vector<2x7x7x64xbf16>
    %8 = vector.extract_strided_slice %0 {offsets = [0, 2, 1, 0], sizes = [2, 7, 7, 64], strides = [1, 1, 1, 1]} : vector<2x9x9x64xbf16> to vector<2x7x7x64xbf16>
    %9 = vector.extract_strided_slice %0 {offsets = [0, 2, 2, 0], sizes = [2, 7, 7, 64], strides = [1, 1, 1, 1]} : vector<2x9x9x64xbf16> to vector<2x7x7x64xbf16>
    %10 = tpu.concatenate %1, %2, %3, %4, %5, %6, %7, %8, %9 in 3 : vector<2x7x7x64xbf16>, vector<2x7x7x64xbf16>, vector<2x7x7x64xbf16>, vector<2x7x7x64xbf16>, vector<2x7x7x64xbf16>, vector<2x7x7x64xbf16>, vector<2x7x7x64xbf16>, vector<2x7x7x64xbf16>, vector<2x7x7x64xbf16> -> vector<2x7x7x576xbf16>
    %11 = vector.shape_cast %10 : vector<2x7x7x576xbf16> to vector<98x576xbf16>
    %c0_3 = arith.constant 0 : index
    %c0_4 = arith.constant 0 : index
    %12 = vector.load %arg2[%c0_3, %c0_4] : memref<576x64xbf16, #tpu.memory_space<vmem>>, vector<576x64xbf16>
    %cst = arith.constant dense<0.000000e+00> : vector<98x64xf32>
    %13 = tpu.matmul %11, %12, %cst {dimension_numbers = #tpu.dot_dimension_numbers<[1], [0], [0], [1], [0, 0, 1, 1], [], []>} : vector<98x576xbf16>, vector<576x64xbf16>, vector<98x64xf32> -> vector<98x64xf32>
    %c0_5 = arith.constant 0 : index
    %c0_6 = arith.constant 0 : index
    %14 = vector.load %arg3[%c0_5, %c0_6] : memref<1x64xf32, #tpu.memory_space<vmem>>, vector<1x64xf32>
    %15 = vector.broadcast %14 : vector<1x64xf32> to vector<98x64xf32>
    %16 = arith.addf %13, %15 : vector<98x64xf32>
    %cst_7 = arith.constant 0.000000e+00 : f32
    %17 = vector.broadcast %cst_7 : f32 to vector<98x64xf32>
    %18 = arith.maximumf %16, %17 : vector<98x64xf32>
    %19 = vector.shape_cast %18 : vector<98x64xf32> to vector<2x49x64xf32>
    %20 = arith.truncf %19 : vector<2x49x64xf32> to vector<2x49x64xbf16>
    %c0_8 = arith.constant 0 : index
    %c0_9 = arith.constant 0 : index
    %c0_10 = arith.constant 0 : index
    %21 = vector.load %arg4[%c0_8, %c0_9, %c0_10] : memref<2x50x64xbf16, #tpu.memory_space<vmem>>, vector<2x49x64xbf16>
    tpu.vector_store %arg4[%c0_8, %c0_9, %c0_10], %20 {strides = array<i32>} : memref<2x50x64xbf16, #tpu.memory_space<vmem>>, vector<2x49x64xbf16>,
    %cst_11 = arith.constant 0.000000e+00 : bf16
    %22 = vector.broadcast %cst_11 : bf16 to vector<2x1x64xbf16>
    %c0_12 = arith.constant 0 : index
    %c49 = arith.constant 49 : index
    %c0_13 = arith.constant 0 : index
    %23 = vector.load %arg4[%c0_12, %c49, %c0_13] : memref<2x50x64xbf16, #tpu.memory_space<vmem>>, vector<2x1x64xbf16>
    tpu.vector_store %arg4[%c0_12, %c49, %c0_13], %22 {strides = array<i32>} : memref<2x50x64xbf16, #tpu.memory_space<vmem>>, vector<2x1x64xbf16>,
    return
  }
  func.func @transform_0(%arg0: i32) -> (i32, i32, i32, i32) {
    %c0_i32 = arith.constant 0 : i32
    %c0_i32_0 = arith.constant 0 : i32
    %c0_i32_1 = arith.constant 0 : i32
    %c0_i32_2 = arith.constant 0 : i32
    return %arg0, %c0_i32, %c0_i32_0, %c0_i32_1 : i32, i32, i32, i32
  }
  func.func @transform_1(%arg0: i32) -> (i32, i32) {
    %c0_i32 = arith.constant 0 : i32
    %c0_i32_0 = arith.constant 0 : i32
    %c0_i32_1 = arith.constant 0 : i32
    return %c0_i32, %c0_i32_0 : i32, i32
  }
  func.func @transform_2(%arg0: i32) -> (i32, i32) {
    %c0_i32 = arith.constant 0 : i32
    %c0_i32_0 = arith.constant 0 : i32
    %c0_i32_1 = arith.constant 0 : i32
    return %c0_i32, %c0_i32_0 : i32, i32
  }
  func.func @transform_3(%arg0: i32) -> (i32, i32, i32) {
    %c0_i32 = arith.constant 0 : i32
    %c0_i32_0 = arith.constant 0 : i32
    %c0_i32_1 = arith.constant 0 : i32
    return %arg0, %c0_i32, %c0_i32_0 : i32, i32, i32
  }
}

module attributes {stable_mosaic.version = 11 : i64} {
  func.func @_matmul_bias_relu_kernel(%arg0: i32, %arg1: memref<800x256xbf16, #tpu.memory_space<vmem>>, %arg2: memref<256x32xbf16, #tpu.memory_space<vmem>>, %arg3: memref<1x32xf32, #tpu.memory_space<vmem>>, %arg4: memref<800x32xbf16, #tpu.memory_space<vmem>>) attributes {dimension_semantics = [#tpu.dimension_semantics<parallel>], iteration_bounds = array<i64: 1>, scalar_prefetch = 0 : i64, scratch_operands = 0 : i64, tpu.core_type = #tpu.core_type<tc>, window_params = [{transform_indices = @transform_0, window_bounds = array<i64: 800, 256>}, {pipeline_mode = #tpu.pipeline_mode<synchronous>, transform_indices = @transform_1, window_bounds = array<i64: 256, 32>}, {pipeline_mode = #tpu.pipeline_mode<synchronous>, transform_indices = @transform_2, window_bounds = array<i64: 1, 32>}, {transform_indices = @transform_3, window_bounds = array<i64: 800, 32>}]} {
    %c0 = arith.constant 0 : index
    %c0_0 = arith.constant 0 : index
    %0 = vector.load %arg1[%c0, %c0_0] : memref<800x256xbf16, #tpu.memory_space<vmem>>, vector<800x256xbf16>
    %c0_1 = arith.constant 0 : index
    %c0_2 = arith.constant 0 : index
    %1 = vector.load %arg2[%c0_1, %c0_2] : memref<256x32xbf16, #tpu.memory_space<vmem>>, vector<256x32xbf16>
    %cst = arith.constant dense<0.000000e+00> : vector<800x32xf32>
    %2 = tpu.matmul %0, %1, %cst {dimension_numbers = #tpu.dot_dimension_numbers<[1], [0], [0], [1], [0, 0, 1, 1], [], []>} : vector<800x256xbf16>, vector<256x32xbf16>, vector<800x32xf32> -> vector<800x32xf32>
    %c0_3 = arith.constant 0 : index
    %c0_4 = arith.constant 0 : index
    %3 = vector.load %arg3[%c0_3, %c0_4] : memref<1x32xf32, #tpu.memory_space<vmem>>, vector<1x32xf32>
    %4 = vector.broadcast %3 : vector<1x32xf32> to vector<800x32xf32>
    %5 = arith.addf %2, %4 : vector<800x32xf32>
    %cst_5 = arith.constant 0.000000e+00 : f32
    %6 = vector.broadcast %cst_5 : f32 to vector<800x32xf32>
    %7 = arith.maximumf %5, %6 : vector<800x32xf32>
    %8 = arith.truncf %7 : vector<800x32xf32> to vector<800x32xbf16>
    %c0_6 = arith.constant 0 : index
    %c0_7 = arith.constant 0 : index
    %9 = vector.load %arg4[%c0_6, %c0_7] : memref<800x32xbf16, #tpu.memory_space<vmem>>, vector<800x32xbf16>
    tpu.vector_store %arg4[%c0_6, %c0_7], %8 {strides = array<i32>} : memref<800x32xbf16, #tpu.memory_space<vmem>>, vector<800x32xbf16>,
    return
  }
  func.func @transform_0(%arg0: i32) -> (i32, i32) {
    %c0_i32 = arith.constant 0 : i32
    %c0_i32_0 = arith.constant 0 : i32
    return %arg0, %c0_i32 : i32, i32
  }
  func.func @transform_1(%arg0: i32) -> (i32, i32) {
    %c0_i32 = arith.constant 0 : i32
    %c0_i32_0 = arith.constant 0 : i32
    %c0_i32_1 = arith.constant 0 : i32
    return %c0_i32, %c0_i32_0 : i32, i32
  }
  func.func @transform_2(%arg0: i32) -> (i32, i32) {
    %c0_i32 = arith.constant 0 : i32
    %c0_i32_0 = arith.constant 0 : i32
    %c0_i32_1 = arith.constant 0 : i32
    return %c0_i32, %c0_i32_0 : i32, i32
  }
  func.func @transform_3(%arg0: i32) -> (i32, i32) {
    %c0_i32 = arith.constant 0 : i32
    %c0_i32_0 = arith.constant 0 : i32
    return %arg0, %c0_i32 : i32, i32
  }
}

module attributes {stable_mosaic.version = 11 : i64} {
  func.func @_matmul_bias_relu_kernel(%arg0: i32, %arg1: memref<162x512xbf16, #tpu.memory_space<vmem>>, %arg2: memref<512x64xbf16, #tpu.memory_space<vmem>>, %arg3: memref<1x64xf32, #tpu.memory_space<vmem>>, %arg4: memref<162x64xbf16, #tpu.memory_space<vmem>>) attributes {dimension_semantics = [#tpu.dimension_semantics<parallel>], iteration_bounds = array<i64: 1>, scalar_prefetch = 0 : i64, scratch_operands = 0 : i64, tpu.core_type = #tpu.core_type<tc>, window_params = [{transform_indices = @transform_0, window_bounds = array<i64: 162, 512>}, {pipeline_mode = #tpu.pipeline_mode<synchronous>, transform_indices = @transform_1, window_bounds = array<i64: 512, 64>}, {pipeline_mode = #tpu.pipeline_mode<synchronous>, transform_indices = @transform_2, window_bounds = array<i64: 1, 64>}, {transform_indices = @transform_3, window_bounds = array<i64: 162, 64>}]} {
    %c0 = arith.constant 0 : index
    %c0_0 = arith.constant 0 : index
    %0 = vector.load %arg1[%c0, %c0_0] : memref<162x512xbf16, #tpu.memory_space<vmem>>, vector<162x512xbf16>
    %c0_1 = arith.constant 0 : index
    %c0_2 = arith.constant 0 : index
    %1 = vector.load %arg2[%c0_1, %c0_2] : memref<512x64xbf16, #tpu.memory_space<vmem>>, vector<512x64xbf16>
    %cst = arith.constant dense<0.000000e+00> : vector<162x64xf32>
    %2 = tpu.matmul %0, %1, %cst {dimension_numbers = #tpu.dot_dimension_numbers<[1], [0], [0], [1], [0, 0, 1, 1], [], []>} : vector<162x512xbf16>, vector<512x64xbf16>, vector<162x64xf32> -> vector<162x64xf32>
    %c0_3 = arith.constant 0 : index
    %c0_4 = arith.constant 0 : index
    %3 = vector.load %arg3[%c0_3, %c0_4] : memref<1x64xf32, #tpu.memory_space<vmem>>, vector<1x64xf32>
    %4 = vector.broadcast %3 : vector<1x64xf32> to vector<162x64xf32>
    %5 = arith.addf %2, %4 : vector<162x64xf32>
    %cst_5 = arith.constant 0.000000e+00 : f32
    %6 = vector.broadcast %cst_5 : f32 to vector<162x64xf32>
    %7 = arith.maximumf %5, %6 : vector<162x64xf32>
    %8 = arith.truncf %7 : vector<162x64xf32> to vector<162x64xbf16>
    %c0_6 = arith.constant 0 : index
    %c0_7 = arith.constant 0 : index
    %9 = vector.load %arg4[%c0_6, %c0_7] : memref<162x64xbf16, #tpu.memory_space<vmem>>, vector<162x64xbf16>
    tpu.vector_store %arg4[%c0_6, %c0_7], %8 {strides = array<i32>} : memref<162x64xbf16, #tpu.memory_space<vmem>>, vector<162x64xbf16>,
    return
  }
  func.func @transform_0(%arg0: i32) -> (i32, i32) {
    %c0_i32 = arith.constant 0 : i32
    %c0_i32_0 = arith.constant 0 : i32
    return %arg0, %c0_i32 : i32, i32
  }
  func.func @transform_1(%arg0: i32) -> (i32, i32) {
    %c0_i32 = arith.constant 0 : i32
    %c0_i32_0 = arith.constant 0 : i32
    %c0_i32_1 = arith.constant 0 : i32
    return %c0_i32, %c0_i32_0 : i32, i32
  }
  func.func @transform_2(%arg0: i32) -> (i32, i32) {
    %c0_i32 = arith.constant 0 : i32
    %c0_i32_0 = arith.constant 0 : i32
    %c0_i32_1 = arith.constant 0 : i32
    return %c0_i32, %c0_i32_0 : i32, i32
  }
  func.func @transform_3(%arg0: i32) -> (i32, i32) {
    %c0_i32 = arith.constant 0 : i32
    %c0_i32_0 = arith.constant 0 : i32
    return %arg0, %c0_i32 : i32, i32
  }
}

module attributes {stable_mosaic.version = 11 : i64} {
  func.func @_matmul_bias_relu_kernel(%arg0: i32, %arg1: memref<98x576xbf16, #tpu.memory_space<vmem>>, %arg2: memref<576x64xbf16, #tpu.memory_space<vmem>>, %arg3: memref<1x64xf32, #tpu.memory_space<vmem>>, %arg4: memref<98x64xbf16, #tpu.memory_space<vmem>>) attributes {dimension_semantics = [#tpu.dimension_semantics<parallel>], iteration_bounds = array<i64: 1>, scalar_prefetch = 0 : i64, scratch_operands = 0 : i64, tpu.core_type = #tpu.core_type<tc>, window_params = [{transform_indices = @transform_0, window_bounds = array<i64: 98, 576>}, {pipeline_mode = #tpu.pipeline_mode<synchronous>, transform_indices = @transform_1, window_bounds = array<i64: 576, 64>}, {pipeline_mode = #tpu.pipeline_mode<synchronous>, transform_indices = @transform_2, window_bounds = array<i64: 1, 64>}, {transform_indices = @transform_3, window_bounds = array<i64: 98, 64>}]} {
    %c0 = arith.constant 0 : index
    %c0_0 = arith.constant 0 : index
    %0 = vector.load %arg1[%c0, %c0_0] : memref<98x576xbf16, #tpu.memory_space<vmem>>, vector<98x576xbf16>
    %c0_1 = arith.constant 0 : index
    %c0_2 = arith.constant 0 : index
    %1 = vector.load %arg2[%c0_1, %c0_2] : memref<576x64xbf16, #tpu.memory_space<vmem>>, vector<576x64xbf16>
    %cst = arith.constant dense<0.000000e+00> : vector<98x64xf32>
    %2 = tpu.matmul %0, %1, %cst {dimension_numbers = #tpu.dot_dimension_numbers<[1], [0], [0], [1], [0, 0, 1, 1], [], []>} : vector<98x576xbf16>, vector<576x64xbf16>, vector<98x64xf32> -> vector<98x64xf32>
    %c0_3 = arith.constant 0 : index
    %c0_4 = arith.constant 0 : index
    %3 = vector.load %arg3[%c0_3, %c0_4] : memref<1x64xf32, #tpu.memory_space<vmem>>, vector<1x64xf32>
    %4 = vector.broadcast %3 : vector<1x64xf32> to vector<98x64xf32>
    %5 = arith.addf %2, %4 : vector<98x64xf32>
    %cst_5 = arith.constant 0.000000e+00 : f32
    %6 = vector.broadcast %cst_5 : f32 to vector<98x64xf32>
    %7 = arith.maximumf %5, %6 : vector<98x64xf32>
    %8 = arith.truncf %7 : vector<98x64xf32> to vector<98x64xbf16>
    %c0_6 = arith.constant 0 : index
    %c0_7 = arith.constant 0 : index
    %9 = vector.load %arg4[%c0_6, %c0_7] : memref<98x64xbf16, #tpu.memory_space<vmem>>, vector<98x64xbf16>
    tpu.vector_store %arg4[%c0_6, %c0_7], %8 {strides = array<i32>} : memref<98x64xbf16, #tpu.memory_space<vmem>>, vector<98x64xbf16>,
    return
  }
  func.func @transform_0(%arg0: i32) -> (i32, i32) {
    %c0_i32 = arith.constant 0 : i32
    %c0_i32_0 = arith.constant 0 : i32
    return %arg0, %c0_i32 : i32, i32
  }
  func.func @transform_1(%arg0: i32) -> (i32, i32) {
    %c0_i32 = arith.constant 0 : i32
    %c0_i32_0 = arith.constant 0 : i32
    %c0_i32_1 = arith.constant 0 : i32
    return %c0_i32, %c0_i32_0 : i32, i32
  }
  func.func @transform_2(%arg0: i32) -> (i32, i32) {
    %c0_i32 = arith.constant 0 : i32
    %c0_i32_0 = arith.constant 0 : i32
    %c0_i32_1 = arith.constant 0 : i32
    return %c0_i32, %c0_i32_0 : i32, i32
  }
  func.func @transform_3(%arg0: i32) -> (i32, i32) {
    %c0_i32 = arith.constant 0 : i32
    %c0_i32_0 = arith.constant 0 : i32
    return %arg0, %c0_i32 : i32, i32
  }
}

module attributes {stable_mosaic.version = 11 : i64} {
  func.func @_head_kernel(%arg0: i32, %arg1: memref<2x3200xbf16, #tpu.memory_space<vmem>>, %arg2: memref<3200x512xbf16, #tpu.memory_space<vmem>>, %arg3: memref<1x512xf32, #tpu.memory_space<vmem>>, %arg4: memref<512x128xbf16, #tpu.memory_space<vmem>>, %arg5: memref<1x128xf32, #tpu.memory_space<vmem>>, %arg6: memref<2x128xf32, #tpu.memory_space<vmem>>) attributes {dimension_semantics = [#tpu.dimension_semantics<parallel>], iteration_bounds = array<i64: 1>, scalar_prefetch = 0 : i64, scratch_operands = 0 : i64, tpu.core_type = #tpu.core_type<tc>, window_params = [{transform_indices = @transform_0, window_bounds = array<i64: 2, 3200>}, {pipeline_mode = #tpu.pipeline_mode<synchronous>, transform_indices = @transform_1, window_bounds = array<i64: 3200, 512>}, {pipeline_mode = #tpu.pipeline_mode<synchronous>, transform_indices = @transform_2, window_bounds = array<i64: 1, 512>}, {pipeline_mode = #tpu.pipeline_mode<synchronous>, transform_indices = @transform_3, window_bounds = array<i64: 512, 128>}, {pipeline_mode = #tpu.pipeline_mode<synchronous>, transform_indices = @transform_4, window_bounds = array<i64: 1, 128>}, {transform_indices = @transform_5, window_bounds = array<i64: 2, 128>}]} {
    %c0 = arith.constant 0 : index
    %c0_0 = arith.constant 0 : index
    %0 = vector.load %arg1[%c0, %c0_0] : memref<2x3200xbf16, #tpu.memory_space<vmem>>, vector<2x3200xbf16>
    %c0_1 = arith.constant 0 : index
    %c0_2 = arith.constant 0 : index
    %1 = vector.load %arg2[%c0_1, %c0_2] : memref<3200x512xbf16, #tpu.memory_space<vmem>>, vector<3200x512xbf16>
    %cst = arith.constant dense<0.000000e+00> : vector<2x512xf32>
    %2 = tpu.matmul %0, %1, %cst {dimension_numbers = #tpu.dot_dimension_numbers<[1], [0], [0], [1], [0, 0, 1, 1], [], []>} : vector<2x3200xbf16>, vector<3200x512xbf16>, vector<2x512xf32> -> vector<2x512xf32>
    %c0_3 = arith.constant 0 : index
    %c0_4 = arith.constant 0 : index
    %3 = vector.load %arg3[%c0_3, %c0_4] : memref<1x512xf32, #tpu.memory_space<vmem>>, vector<1x512xf32>
    %4 = vector.broadcast %3 : vector<1x512xf32> to vector<2x512xf32>
    %5 = arith.addf %2, %4 : vector<2x512xf32>
    %cst_5 = arith.constant 0.000000e+00 : f32
    %6 = vector.broadcast %cst_5 : f32 to vector<2x512xf32>
    %7 = arith.maximumf %5, %6 : vector<2x512xf32>
    %8 = arith.truncf %7 : vector<2x512xf32> to vector<2x512xbf16>
    %c0_6 = arith.constant 0 : index
    %c0_7 = arith.constant 0 : index
    %9 = vector.load %arg4[%c0_6, %c0_7] : memref<512x128xbf16, #tpu.memory_space<vmem>>, vector<512x128xbf16>
    %cst_8 = arith.constant dense<0.000000e+00> : vector<2x128xf32>
    %10 = tpu.matmul %8, %9, %cst_8 {dimension_numbers = #tpu.dot_dimension_numbers<[1], [0], [0], [1], [0, 0, 1, 1], [], []>} : vector<2x512xbf16>, vector<512x128xbf16>, vector<2x128xf32> -> vector<2x128xf32>
    %c0_9 = arith.constant 0 : index
    %c0_10 = arith.constant 0 : index
    %11 = vector.load %arg5[%c0_9, %c0_10] : memref<1x128xf32, #tpu.memory_space<vmem>>, vector<1x128xf32>
    %12 = vector.broadcast %11 : vector<1x128xf32> to vector<2x128xf32>
    %13 = arith.addf %10, %12 : vector<2x128xf32>
    %14 = tpu.iota {dimensions = array<i32: 1>} : vector<2x128xi32>
    %c1_i32 = arith.constant 1 : i32
    %15 = vector.broadcast %c1_i32 : i32 to vector<2x128xi32>
    %16 = arith.cmpi sge, %14, %15 : vector<2x128xi32>
    %c4_i32 = arith.constant 4 : i32
    %17 = vector.broadcast %c4_i32 : i32 to vector<2x128xi32>
    %18 = arith.cmpi sle, %14, %17 : vector<2x128xi32>
    %19 = arith.andi %16, %18 : vector<2x128xi1>
    %cst_11 = arith.constant -1.000000e+30 : f32
    %20 = vector.broadcast %cst_11 : f32 to vector<2x128xf32>
    %21 = arith.select %19, %13, %20 : vector<2x128xi1>, vector<2x128xf32>
    %cst_12 = arith.constant dense<0xFF800000> : vector<2xf32>
    %22 = vector.multi_reduction <maximumf>, %21, %cst_12 [1] : vector<2x128xf32> to vector<2xf32>
    %23 = vector.shape_cast %22 : vector<2xf32> to vector<2x1xf32>
    %24 = vector.broadcast %23 : vector<2x1xf32> to vector<2x128xf32>
    %25 = arith.subf %21, %24 : vector<2x128xf32>
    %26 = math.exp %25 : vector<2x128xf32>
    %cst_13 = arith.constant dense<0.000000e+00> : vector<2xf32>
    %27 = vector.multi_reduction <add>, %26, %cst_13 [1] : vector<2x128xf32> to vector<2xf32>
    %28 = vector.shape_cast %27 : vector<2xf32> to vector<2x1xf32>
    %29 = vector.broadcast %23 : vector<2x1xf32> to vector<2x128xf32>
    %30 = arith.subf %13, %29 : vector<2x128xf32>
    %31 = math.log %28 : vector<2x1xf32>
    %32 = vector.broadcast %31 : vector<2x1xf32> to vector<2x128xf32>
    %33 = arith.subf %30, %32 : vector<2x128xf32>
    %c0_i32 = arith.constant 0 : i32
    %34 = vector.broadcast %c0_i32 : i32 to vector<2x128xi32>
    %35 = arith.cmpi eq, %14, %34 : vector<2x128xi32>
    %cst_14 = arith.constant 0.000000e+00 : f32
    %36 = vector.broadcast %cst_14 : f32 to vector<2x128xf32>
    %37 = arith.select %35, %13, %36 : vector<2x128xi1>, vector<2x128xf32>
    %38 = arith.select %19, %33, %37 : vector<2x128xi1>, vector<2x128xf32>
    %c0_15 = arith.constant 0 : index
    %c0_16 = arith.constant 0 : index
    %39 = vector.load %arg6[%c0_15, %c0_16] : memref<2x128xf32, #tpu.memory_space<vmem>>, vector<2x128xf32>
    tpu.vector_store %arg6[%c0_15, %c0_16], %38 {strides = array<i32>} : memref<2x128xf32, #tpu.memory_space<vmem>>, vector<2x128xf32>,
    return
  }
  func.func @transform_0(%arg0: i32) -> (i32, i32) {
    %c0_i32 = arith.constant 0 : i32
    %c0_i32_0 = arith.constant 0 : i32
    return %arg0, %c0_i32 : i32, i32
  }
  func.func @transform_1(%arg0: i32) -> (i32, i32) {
    %c0_i32 = arith.constant 0 : i32
    %c0_i32_0 = arith.constant 0 : i32
    %c0_i32_1 = arith.constant 0 : i32
    return %c0_i32, %c0_i32_0 : i32, i32
  }
  func.func @transform_2(%arg0: i32) -> (i32, i32) {
    %c0_i32 = arith.constant 0 : i32
    %c0_i32_0 = arith.constant 0 : i32
    %c0_i32_1 = arith.constant 0 : i32
    return %c0_i32, %c0_i32_0 : i32, i32
  }
  func.func @transform_3(%arg0: i32) -> (i32, i32) {
    %c0_i32 = arith.constant 0 : i32
    %c0_i32_0 = arith.constant 0 : i32
    %c0_i32_1 = arith.constant 0 : i32
    return %c0_i32, %c0_i32_0 : i32, i32
  }
  func.func @transform_4(%arg0: i32) -> (i32, i32) {
    %c0_i32 = arith.constant 0 : i32
    %c0_i32_0 = arith.constant 0 : i32
    %c0_i32_1 = arith.constant 0 : i32
    return %c0_i32, %c0_i32_0 : i32, i32
  }
  func.func @transform_5(%arg0: i32) -> (i32, i32) {
    %c0_i32 = arith.constant 0 : i32
    %c0_i32_0 = arith.constant 0 : i32
    return %arg0, %c0_i32 : i32, i32
  }
}

</mosaic_0001>

<bundles_post_ra>
// kernel: tpu_custom_call.1
= control target key start
LH: loop header
LB: loop body
LE: loop exit
PB: predicated region body
PF: predicated region fallthrough
CT: control target
= control target key end

     0   :  { %s4663_s22 = smov 64   ;;  %vm395_vm0 = vcmask 523264   ;;  %vm4666_vm1 = vmmov 0   ;;  %vm4212_vm2 = vcmask 519168   ;;  %vm4219_vm3 = vcmask 516096   ;;  %s6220_s0 = inlined_call_operand.vmem [shape: bf16[2,9,9,64], index: 0, kind: input, shape index: {}]   ;;  %s6221_s1 = inlined_call_operand.vmem [shape: bf16[576,64], index: 1, kind: input, shape index: {}]   ;;  %s6222_s2 = inlined_call_operand.vmem [shape: f32[1,64], index: 2, kind: input, shape index: {}]   ;;  %s6223_s3 = inlined_call_operand.vmem [shape: bf16[2,50,64], index: 3, kind: output, shape index: {}]  }
   0x1   :  { %v4690_v0 = vld [vmem:[%s6220_s0 + $0x10] sm:$0xf]  ;;  %v20_v1 = vld [vmem:[%s6220_s0 + $0x14] sm:$0x1]  ;;  %v4698_v2 = vld [vmem:[%s6220_s0 + $0x8] sm:$0xf] }
   0x2   :  { %v4248_v3 = vcombine.low %v4690_v0, %v4690_v0  ;;  %v4262_v4 = vcombine.low %v4690_v0, %v20_v1  ;;  %v4705_v5 = vcombine.low %v4698_v2, %v4698_v2  ;;  %v4710_v6 = vld [vmem:[%s6220_s0 + $0x18] sm:$0xf]  ;;  %v4717_v8 = vld [vmem:[%s6220_s0] sm:$0xf]  ;;  %v18_v12 = vld [vmem:[%s6220_s0 + $0xc] sm:$0x1] }
   0x3   :  { %v4249_v7 = vcombine.low %v4710_v6, %v4710_v6  ;;  %v4730_v16 = vld [vmem:[%s6220_s0 + $0x28] sm:$0xf]  ;;  %v4624_v17 = vld [vmem:[%s6221_s1 + $0x40] sm:$0xff]   ;;  %v4246_v20 = vcombine.low %v4717_v8, %v4717_v8  ;;  %v4261_v25 = vcombine.low %v4698_v2, %v18_v12  ;;  %v22_v44 = vld [vmem:[%s6220_s0 + $0x1c] sm:$0x1] }
   0x4   :  { %283 = vrot.lane.b32.xlu1 %v4248_v3, %s4663_s22  ;;  %v4720_v9 = vrot.slane %v4262_v4, 1  ;;  %v101_v10 = vshrl.u32 %v4705_v5, 16  ;;  %v103_v11 = vshll.u32 %v4705_v5, 16  ;;  %v108_v13 = vshrl.u32 %v4248_v3, 16  ;;  %v4740_v23 = vld [vmem:[%s6220_s0 + $0x20] sm:$0xf]  ;;  %4415 = vmatprep.subr.bf16.mxu0 %v4624_v17 }
   0x5   :  { %v110_v14 = vshll.u32 %v4248_v3, 16  ;;  %v117_v15 = vshll.u32 %v4249_v7, 16  ;;  %v115_v19 = vshrl.u32 %v4249_v7, 16  ;;  %v96_v26 = vshll.u32 %v4246_v20, 16  ;;  %v4625_v28 = vld [vmem:[%s6221_s1 + $0xc0] sm:$0xff]   ;;  %v4629_v42 = vld [vmem:[%s6221_s1 + $0x48] sm:$0xff]  }
   0x6   :  { %v105_v18 = vrot.slane %v103_v11, 1  ;;  %v4749_v27 = vcombine.low %v4730_v16, %v4730_v16  ;;  %v94_v31 = vshrl.u32 %v4246_v20, 16  ;;  %v4762_v33 = vcombine.low %v4740_v23, %v4740_v23  ;;  %4473 = vmatprep.subr.bf16.mxu1 %v4625_v28  ;;  %v4626_v36 = vld [vmem:[%s6221_s1] sm:$0xff]   ;;  %v4793_v45 = vld [vmem:[%s6220_s0 + $0x30] sm:$0xf]  ;;  %v4630_v48 = vld [vmem:[%s6221_s1 + $0xc8] sm:$0xff]  }
   0x7   :  { %v112_v21 = vrot.slane %v110_v14, 1  ;;  %v119_v22 = vrot.slane %v117_v15, 1  ;;  %v98_v32 = vrot.slane %v96_v26, 1  ;;  %v4766_v34 = vrot.slane %v4261_v25, 1  ;;  %4416 = vmatpush3.bf16.msra.mxu0 %v4626_v36  ;;  %v4627_v39 = vld [vmem:[%s6221_s1 + $0x80] sm:$0xff]   ;;  %v4631_v49 = vld [vmem:[%s6221_s1 + $0x8] sm:$0xff]  }
   0x8   :  { %333 = vrot.lane.b32.xlu1 %v4720_v9, %s4663_s22  ;;  %v4744_v24 = vor.u32 %v105_v18, %v101_v10  ;;  %v131_v35 = vshll.u32 %v4749_v27, 16  ;;  %v124_v38 = vshll.u32 %v4762_v33, 16  ;;  %v129_v40 = vshrl.u32 %v4749_v27, 16  ;;  %v24_v43 = vld [vmem:[%s6220_s0 + $0x24] sm:$0x1]  ;;  %4474 = vmatpush3.bf16.msra.mxu1 %v4627_v39  ;;  %v4632_v58 = vld [vmem:[%s6221_s1 + $0x88] sm:$0xff]  }
   0x9   :  { %v4754_v29 = vor.u32 %v112_v21, %v108_v13  ;;  %v4758_v30 = vor.u32 %v119_v22, %v115_v19  ;;  %v99_v37 = vor.u32 %v98_v32, %v94_v31  ;;  %v122_v46 = vshrl.u32 %v4762_v33, 16  ;;  %4417 = vmatprep.subr.bf16.mxu0 %v4629_v42  ;;  %v4810_v52 = vld [vmem:[%s6220_s0 + $0x38] sm:$0xf]  ;;  %4475 = vmatprep.subr.bf16.mxu1 %v4630_v48  ;;  %v26_v61 = vld [vmem:[%s6220_s0 + $0x2c] sm:$0x1]  ;;  %v4633_v62 = vld [vmem:[%s6221_s1 + $0x50] sm:$0xff]  }
   0xa   :  { %193 = vrot.lane.b32.xlu0 %v4744_v24, %s4663_s22  ;;  %v133_v41 = vrot.slane %v131_v35, 1  ;;  %v126_v47 = vrot.slane %v124_v38, 1  ;;  %v4264_v51 = vcombine.low %v4740_v23, %v24_v43  ;;  %v4263_v54 = vcombine.low %v4710_v6, %v22_v44  ;;  %v30_v1 = vld [vmem:[%s6220_s0 + $0x3c] sm:$0x1]  ;;  %v4634_v3 = vld [vmem:[%s6221_s1 + $0xd0] sm:$0xff]   ;;  %v4642_v38 = vld [vmem:[%s6221_s1 + $0xe0] sm:$0xff]  }
   0xb   :  { %4418 = vmatpush3.bf16.msra.mxu0 %v4631_v49  ;;  %v4252_v55 = vcombine.low %v4793_v45, %v4793_v45  ;;  %v4825_v57 = vcombine.low %v4810_v52, %v4810_v52  ;;  %v4635_v4 = vld [vmem:[%s6221_s1 + $0x10] sm:$0xff]   ;;  %v4265_v14 = vcombine.low %v4730_v16, %v26_v61  ;;  %v4637_v17 = vld [vmem:[%s6221_s1 + $0x58] sm:$0xff]   ;;  %v4276_v18 = vcombine.low %v4810_v52, %v30_v1  ;;  %v4890_v25 = vld [vmem:[%s6220_s0 + $0x40] sm:$0xf] }
   0xc   :  { %195 = vrot.lane.b32.xlu1 %v4754_v29, %s4663_s22  ;;  %v4804_v50 = vor.u32 %v133_v41, %v129_v40  ;;  %v4814_v53 = vor.u32 %v126_v47, %v122_v46  ;;  %v4821_v56 = vrot.slane %v4264_v51, 1  ;;  %v4832_v59 = vrot.slane %v4263_v54, 1  ;;  %4476 = vmatpush3.bf16.msra.mxu1 %v4632_v58  ;;  %v28_v19 = vld [vmem:[%s6220_s0 + $0x34] sm:$0x1]  ;;  %v4638_v20 = vld [vmem:[%s6221_s1 + $0xd8] sm:$0xff]   ;;  %v4643_v43 = vld [vmem:[%s6221_s1 + $0x20] sm:$0xff]  }
   0xd   :  { %v138_v60 = vshll.u32 %v4252_v55, 16  ;;  %v312_v63 = vshll.u32 %v4825_v57, 16  ;;  %4419 = vmatprep.subr.bf16.mxu0 %v4633_v62  ;;  %v136_v10 = vshrl.u32 %v4252_v55, 16  ;;  %4477 = vmatprep.subr.bf16.mxu1 %v4634_v3  ;;  %v310_v12 = vshrl.u32 %v4825_v57, 16  ;;  %v4885_v22 = vld [vmem:[%s6220_s0 + $0x50] sm:$0xf] }
   0xe   :  { %197 = vrot.lane.b32.xlu0 %v4758_v30, %s4663_s22  ;;  %v4639_v26 = vld [vmem:[%s6221_s1 + $0x18] sm:$0xff]   ;;  %v4898_v28 = vrot.slane %v4265_v14, 1  ;;  %v4906_v35 = vrot.slane %v4276_v18, 1  ;;  %v4278_v36 = vcombine.low %v4890_v25, %v4890_v25  ;;  %v4266_v39 = vcombine.low %v4793_v45, %v28_v19  ;;  %v4926_v42 = vld [vmem:[%s6220_s0 + $0x68] sm:$0xf]  ;;  %v4644_v46 = vld [vmem:[%s6221_s1 + $0xa0] sm:$0xff]  }
   0xf   :  { %v140_v11 = vrot.slane %v138_v60, 1  ;;  %4420 = vmatpush3.bf16.msra.mxu0 %v4635_v4  ;;  %v314_v13 = vrot.slane %v312_v63, 1  ;;  %v4640_v32 = vld [vmem:[%s6221_s1 + $0x98] sm:$0xff]   ;;  %v4254_v41 = vcombine.low %v4885_v22, %v4885_v22  ;;  %6255 = vst [vmem:[#allocation2_spill] sm:$0xff] %v4926_v42  ;;  %v4645_v48 = vld [vmem:[%s6221_s1 + $0x68] sm:$0xff]   ;;  %v4957_v62 = vcombine.low %v4926_v42, %v4926_v42  ;;  %v4649_v3 = vld [vmem:[%s6221_s1 + $0x70] sm:$0xff]  }
  0x10   :  { %331 = vrot.lane.b32.xlu1 %v4766_v34, %s4663_s22  ;;  %4421 = vmatprep.subr.bf16.mxu0 %v4637_v17  ;;  %v368_v47 = vshll.u32 %v4278_v36, 16  ;;  %v4941_v49 = vrot.slane %v4266_v39, 1  ;;  %v4646_v54 = vld [vmem:[%s6221_s1 + $0xe8] sm:$0xff]   ;;  %v366_v61 = vshrl.u32 %v4278_v36, 16  ;;  %v4962_v63 = vld [vmem:[%s6220_s0 + $0x60] sm:$0xf] }
  0x11   :  { %v4880_v21 = vor.u32 %v140_v11, %v136_v10  ;;  %v152_v58 = vshll.u32 %v4254_v41, 16  ;;  %6256 = vst [vmem:[#allocation3_spill] sm:$0xff] %v4962_v63  ;;  %v4648_v1 = vld [vmem:[%s6221_s1 + $0xa8] sm:$0xff]   ;;  %v4650_v11 = vld [vmem:[%s6221_s1 + $0xf0] sm:$0xff]   ;;  %v173_v14 = vshll.u32 %v4957_v62, 16  ;;  %v4256_v19 = vcombine.low %v4962_v63, %v4962_v63  ;;  %v4655_v36 = vld [vmem:[%s6221_s1 + $0x38] sm:$0xff]  }
  0x12   :  { %191 = vrot.lane.b32.xlu0 %v99_v37, %s4663_s22  ;;  %v4913_v37 = vld [vmem:[%s6220_s0 + $0x58] sm:$0xf]  ;;  %v370_v4 = vrot.slane %v368_v47, 1  ;;  %v36_v18 = vld [vmem:[%s6220_s0 + $0x54] sm:$0x1] }
  0x13   :  { %4422 = vmatpush3.bf16.msra.mxu0 %v4639_v26  ;;  %v4945_v51 = vcombine.low %v4913_v37, %v4913_v37  ;;  %v4656_v39 = vld [vmem:[%s6221_s1 + $0xb8] sm:$0xff]   ;;  %v5022_v47 = vld [vmem:[%s6220_s0 + $0x70] sm:$0xf]  ;;  %vm4220_vm4 = vsmask.f32 256 }
  0x14   :  { %285 = vrot.lane.b32.xlu1 %v4249_v7, %s4663_s22  ;;  %v4636_v7 = vld [vmem:[%s6221_s1 + $0x90] sm:$0xff]   ;;  %v371_v26 = vor.u32 %v370_v4, %v366_v61  ;;  %6259 = vst [vmem:[#allocation6_spill] sm:$0xff] %v5022_v47  ;;  %vm4234_vm5 = vsmask.f32 7938  ;;  %vm6119_vm6 = vmand %vm4219_vm3, %vm4220_vm4 }
  0x15   :  { %4478 = vmatpush3.bf16.msra.mxu1 %v4636_v7  ;;  %v150_v7 = vshrl.u32 %v4254_v41, 16  ;;  %v159_v10 = vshll.u32 %v4945_v51, 16  ;;  %v157_v17 = vshrl.u32 %v4945_v51, 16  ;;  %vm6158_vm7 = vmand %vm4219_vm3, %vm4234_vm5 }
  0x16   :  { %281 = vrot.lane.b32.xlu0 %v4705_v5, %s4663_s22  ;;  %v4855_v5 = vld [vmem:[%s6220_s0 + $0x48] sm:$0xf]  ;;  %4479 = vmatprep.subr.bf16.mxu1 %v4638_v20  ;;  %v4653_v20 = vld [vmem:[%s6221_s1 + $0x78] sm:$0xff]  }
  0x17   :  { %v4253_v15 = vcombine.low %v4855_v5, %v4855_v5 }
  0x18   :  { %201 = vrot.lane.b32.xlu1 %v4804_v50, %s4663_s22 }
  0x19   :  { %v145_v31 = vshll.u32 %v4253_v15, 16  ;;  %v143_v40 = vshrl.u32 %v4253_v15, 16  ;;  %4480 = vmatpush3.bf16.msra.mxu1 %v4640_v32  ;;  %v4652_v15 = vld [vmem:[%s6221_s1 + $0xb0] sm:$0xff]   ;;  %v4654_v32 = vld [vmem:[%s6221_s1 + $0xf8] sm:$0xff]  }
  0x1a   :  { %199 = vrot.lane.b32.xlu0 %v4814_v53, %s4663_s22  ;;  %4481 = vmatprep.subr.bf16.mxu1 %v4642_v38 }
  0x1b   :  { %v147_v44 = vrot.slane %v145_v31, 1  ;;  %v161_v31 = vrot.slane %v159_v10, 1 }
  0x1c   :  { %337 = vrot.lane.b32.xlu1 %v4821_v56, %s4663_s22 }
  0x1d   :  { %4482 = vmatpush3.bf16.msra.mxu1 %v4644_v46  ;;  %v148_v60 = vor.u32 %v147_v44, %v143_v40  ;;  %v166_v40 = vshll.u32 %v4256_v19, 16  ;;  %v4268_v44 = vcombine.low %v4885_v22, %v36_v18  ;;  %v40_v46 = vld [vmem:[%s6220_s0 + $0x64] sm:$0x1] }
  0x1e   :  { %335 = vrot.lane.b32.xlu0 %v4832_v59, %s4663_s22  ;;  %4483 = vmatprep.subr.bf16.mxu1 %v4646_v54 }
  0x1f   :  { %v5026_v22 = vrot.slane %v4268_v44, 1  ;;  %v168_v54 = vrot.slane %v166_v40, 1 }
  0x20   :  { %289 = vrot.lane.b32.xlu1 %v4749_v27, %s4663_s22  ;;  %v4896_v27 = vor.u32 %v314_v13, %v310_v12  ;;  %v154_v12 = vrot.slane %v152_v58, 1  ;;  %v4651_v13 = vld [vmem:[%s6221_s1 + $0x30] sm:$0xff]   ;;  %v4270_v58 = vcombine.low %v4962_v63, %v40_v46 }
  0x21   :  { %4484 = vmatpush3.bf16.msra.mxu1 %v4648_v1  ;;  %6260 = vst [vmem:[#allocation7_spill] sm:$0xff] %v5026_v22 }
  0x22   :  { %287 = vrot.lane.b32.xlu0 %v4762_v33, %s4663_s22  ;;  %v4641_v33 = vld [vmem:[%s6221_s1 + $0x60] sm:$0xff]   ;;  %4485 = vmatprep.subr.bf16.mxu1 %v4650_v11  ;;  %v5003_v38 = vor.u32 %v154_v12, %v150_v7  ;;  %v5048_v4 = vrot.slane %v4270_v58, 1  ;;  %v6224_v58 = vmov 0.0  }
  0x23   :  { %4423 = vmatprep.subr.bf16.mxu0 %v4641_v33  ;;  %v171_v33 = vshrl.u32 %v4957_v62, 16 }
  0x24   :  { %291 = vrot.lane.b32.xlu1 %v4252_v55, %s4663_s22  ;;  %4424 = vmatpush3.bf16.msra.mxu0 %v4643_v43  ;;  %v4647_v55 = vld [vmem:[%s6221_s1 + $0x28] sm:$0xff]   ;;  %v5009_v43 = vor.u32 %v161_v31, %v157_v17  ;;  %6263 = vst [vmem:[#allocation10_spill] sm:$0xff] %v5048_v4  ;;  %v5072_v31 = vld [vmem:[%s6220_s0 + $0x80] sm:$0xf] }
  0x25   :  { %4425 = vmatprep.subr.bf16.mxu0 %v4645_v48  ;;  %4486 = vmatpush3.bf16.msra.mxu1 %v4652_v15  ;;  %v164_v48 = vshrl.u32 %v4256_v19, 16  ;;  %6266 = vst [vmem:[#allocation13_spill] sm:$0xff] %v5072_v31  ;;  %v4275_v44 = vcombine.low %v5072_v31, %v5072_v31 }
  0x26   :  { %203 = vrot.lane.b32.xlu0 %v4880_v21, %s4663_s22  ;;  %4487 = vmatprep.subr.bf16.mxu1 %v4654_v32  ;;  %6257 = vst [vmem:[#allocation4_spill] sm:$0xff] %v5009_v43 }
  0x27   :  { %v5040_v61 = vor.u32 %v168_v54, %v164_v48  ;;  %v319_v54 = vshll.u32 %v4275_v44, 16 }
  0x28   :  { %379 = vrot.lane.b32.xlu1 %v4896_v27, %s4663_s22  ;;  %4426 = vmatpush3.bf16.msra.mxu0 %v4647_v55  ;;  %v5031_v55 = vld [vmem:[%s6220_s0 + $0x78] sm:$0xf] }
  0x29   :  { %4427 = vmatprep.subr.bf16.mxu0 %v4649_v3  ;;  %4488 = vmatpush3.bf16.msra.mxu1 %v4656_v39  ;;  %6261 = vst [vmem:[#allocation8_spill] sm:$0xff] %v5031_v55  ;;  %6262 = vst [vmem:[#allocation9_spill] sm:$0xff] %v5040_v61  ;;  %v4259_v1 = vcombine.low %v5031_v55, %v5031_v55  ;;  %v38_v3 = vld [vmem:[%s6220_s0 + $0x5c] sm:$0x1] }
  0x2a   :  { %339 = vrot.lane.b32.xlu0 %v4898_v28, %s4663_s22  ;;  %v4269_v10 = vcombine.low %v4913_v37, %v38_v3  ;;  %4578 = vmatprep.subr.bf16.mxu1 %v6224_v58  ;;  %v317_v3 = vshrl.u32 %v4275_v44, 16 }
  0x2b   :  { %v187_v11 = vshll.u32 %v4259_v1, 16  ;;  %v185_v17 = vshrl.u32 %v4259_v1, 16 }
  0x2c   :  { %343 = vrot.lane.b32.xlu1 %v4906_v35, %s4663_s22  ;;  %4428 = vmatpush3.bf16.msra.mxu0 %v4651_v13  ;;  %v5060_v15 = vrot.slane %v4269_v10, 1 }
  0x2d   :  { %4429 = vmatprep.subr.bf16.mxu0 %v4653_v20  ;;  %v189_v18 = vrot.slane %v187_v11, 1 }
  0x2e   :  { %341 = vrot.lane.b32.xlu0 %v4941_v49, %s4663_s22  ;;  %6264 = vst [vmem:[#allocation11_spill] sm:$0xff] %v5060_v15 }
  0x2f   :  { %v5079_v32 = vor.u32 %v189_v18, %v185_v17  ;;  %v4665_v18 = vmov 1966171168  }
  0x30   :  { %205 = vrot.lane.b32.xlu1 %v148_v60, %s4663_s22  ;;  %4430 = vmatpush3.bf16.msra.mxu0 %v4655_v36  ;;  %v4258_v60 = vcombine.low %v5022_v47, %v5022_v47  ;;  %v5085_v36 = vld [vmem:[%s6220_s0 + $0x88] sm:$0xf] }
  0x31   :  { %6267 = vst [vmem:[#allocation14_spill] sm:$0xff] %v5079_v32  ;;  %6268 = vst [vmem:[#allocation15_spill] sm:$0xff] %v5085_v36  ;;  %v4279_v46 = vcombine.low %v5085_v36, %v5085_v36  ;;  %4542 = vmatprep.subr.bf16.mxu0 %v6224_v58 }
  0x32   :  { %293 = vrot.lane.b32.xlu0 %v4825_v57, %s4663_s22  ;;  %v175_v57 = vrot.slane %v173_v14, 1  ;;  %v180_v7 = vshll.u32 %v4258_v60, 16  ;;  %v178_v12 = vshrl.u32 %v4258_v60, 16  ;;  %v42_v14 = vld [vmem:[%s6220_s0 + $0x6c] sm:$0x1] }
  0x33   :  { %v373_v10 = vshrl.u32 %v4279_v46, 16 }
  0x34   :  { %295 = vrot.lane.b32.xlu1 %v4254_v41, %s4663_s22  ;;  %v5014_v41 = vor.u32 %v175_v57, %v171_v33  ;;  %v182_v13 = vrot.slane %v180_v7, 1  ;;  %v321_v7 = vrot.slane %v319_v54, 1 }
  0x36   :  { %381 = vrot.lane.b32.xlu0 %v371_v26, %s4663_s22  ;;  %6258 = vst [vmem:[#allocation5_spill] sm:$0xff] %v5014_v41  ;;  %v5066_v20 = vor.u32 %v182_v13, %v178_v12  ;;  %v4271_v26 = vcombine.low %v4926_v42, %v42_v14  ;;  %v46_v12 = vld [vmem:[%s6220_s0 + $0x7c] sm:$0x1]  ;;  %v5116_v13 = vor.u32 %v321_v7, %v317_v3 }
  0x37   :  { %v4273_v17 = vcombine.low %v5031_v55, %v46_v12 }
  0x38   :  { %207 = vrot.lane.b32.xlu1 %v5003_v38, %s4663_s22  ;;  %6265 = vst [vmem:[#allocation12_spill] sm:$0xff] %v5066_v20  ;;  %v5089_v57 = vrot.slane %v4271_v26, 1  ;;  %6271 = vst [vmem:[#allocation18_spill] sm:$0xff] %v5116_v13 }
  0x3a   :  { %209 = vrot.lane.b32.xlu0 %v5009_v43, %s4663_s22  ;;  %6269 = vst [vmem:[#allocation16_spill] sm:$0xff] %v5089_v57 }
  0x3c   :  { %213 = vrot.lane.b32.xlu1 %v5014_v41, %s4663_s22 }
  0x3e   :  { %345 = vrot.lane.b32.xlu0 %v5026_v22, %s4663_s22 }
  0x40   :  { %299 = vrot.lane.b32.xlu1 %v4256_v19, %s4663_s22  ;;  %v44_v19 = vld [vmem:[%s6220_s0 + $0x74] sm:$0x1] }
  0x41   :  { %v4272_v33 = vcombine.low %v5022_v47, %v44_v19  ;;  %v583_v19 = vunpack.c.l.s4 %v4665_v18 }
  0x42   :  { %211 = vrot.lane.b32.xlu0 %v5040_v61, %s4663_s22 }
  0x43   :  { %v5094_v40 = vrot.slane %v4272_v33, 1  ;;  %v584_v26 = vunpack.c.0.s8 %v583_v19 }
  0x44   :  { %349 = vrot.lane.b32.xlu1 %v5048_v4, %s4663_s22 }
  0x45   :  { %6270 = vst [vmem:[#allocation17_spill] sm:$0xff] %v5094_v40 }
  0x46   :  { %297 = vrot.lane.b32.xlu0 %v4945_v51, %s4663_s22  ;;  %v48_v51 = vld [vmem:[%s6220_s0 + $0x84] sm:$0x1] }
  0x47   :  { %v4277_v39 = vcombine.low %v5072_v31, %v48_v51 }
  0x48   :  { %303 = vrot.lane.b32.xlu1 %v4258_v60, %s4663_s22  ;;  %v375_v60 = vshll.u32 %v4279_v46, 16  ;;  %v32_v46 = vld [vmem:[%s6220_s0 + $0x44] sm:$0x1] }
  0x49   :  { %v5102_v48 = vrot.slane %v4277_v39, 1 }
  0x4a   :  { %347 = vrot.lane.b32.xlu0 %v5060_v15, %s4663_s22  ;;  %v377_v11 = vrot.slane %v375_v60, 1 }
  0x4c   :  { %215 = vrot.lane.b32.xlu1 %v5066_v20, %s4663_s22  ;;  %v378_v14 = vor.u32 %v377_v11, %v373_v10  ;;  %v4280_v10 = vcombine.low %v4890_v25, %v32_v46 }
  0x4e   :  { %217 = vrot.lane.b32.xlu0 %v5079_v32, %s4663_s22 }
  0x50   :  { %351 = vrot.lane.b32.xlu1 %v5089_v57, %s4663_s22 }
  0x52   :  { %353 = vrot.lane.b32.xlu0 %v5094_v40, %s4663_s22 }
  0x54   :  { %357 = vrot.lane.b32.xlu1 %v5102_v48, %s4663_s22 }
  0x56   :  { %301 = vrot.lane.b32.xlu0 %v4957_v62, %s4663_s22  ;;  %v5123_v62 = vrot.slane %v4273_v17, 1 }
  0x58   :  { %305 = vrot.lane.b32.xlu1 %v4259_v1, %s4663_s22  ;;  %6272 = vst [vmem:[#allocation19_spill] sm:$0xff] %v5123_v62  ;;  %v585_v1 = vlaneseq }
  0x5a   :  { %307 = vrot.lane.b32.xlu0 %v4275_v44, %s4663_s22  ;;  %v586_v51 = vshrl.u32 %v585_v1, 7 }
  0x5c   :  { %383 = vrot.lane.b32.xlu1 %v5116_v13, %s4663_s22  ;;  %v5127_v33 = vsub.s32 %v584_v26, %v586_v51  ;;  %v393_v26 = vrot.slane %v4280_v10, 1 }
  0x5e   :  { %385 = vrot.lane.b32.xlu0 %v378_v14, %s4663_s22  ;;  %v602_v39 = vrot.slane %v4720_v9, %v5127_v33  ;;  %v718_v54 = vrot.slane %v4821_v56, %v5127_v33  ;;  %v834_v7 = vrot.slane %v4941_v49, %v5127_v33  ;;  %v660_v12 = vrot.slane %v4832_v59, %v5127_v33 }
  0x5f   :  { %v776_v17 = vrot.slane %v4898_v28, %v5127_v33  ;;  %v892_v19 = vrot.slane %v4906_v35, %v5127_v33  ;;  %v1066_v35 = vrot.slane %v5048_v4, %v5127_v33  ;;  %v5178_v41 = vrot.slane %v393_v26, %v5127_v33  ;;  %v16_v4 = vld [vmem:[%s6220_s0 + $0x4] sm:$0x1] }
  0x60   :  { %v605_v44 = vcombine.high %v602_v39, %v602_v39  ;;  %v5137_v60 = vrot.slane %v602_v39, %v5127_v33  ;;  %v721_v18 = vcombine.high %v718_v54, %v718_v54  ;;  %v837_v1 = vcombine.high %v834_v7, %v834_v7 }
  0x61   :  { %v663_v39 = vcombine.high %v660_v12, %v660_v12  ;;  %v5157_v46 = vrot.slane %v718_v54, %v5127_v33  ;;  %v5160_v58 = vrot.slane %v660_v12, %v5127_v33  ;;  %v779_v32 = vcombine.high %v776_v17, %v776_v17 }
  0x62   :  { %355 = vrot.lane.b32.xlu0 %v5123_v62, %s4663_s22  ;;  %v5140_v3 = vrot.slane %v605_v44, %v5127_v33  ;;  %v5163_v13 = vrot.slane %v721_v18, %v5127_v33  ;;  %v895_v20 = vcombine.high %v892_v19, %v892_v19  ;;  %v5172_v54 = vrot.slane %v834_v7, %v5127_v33 }
  0x63   :  { %v5175_v12 = vrot.slane %v837_v1, %v5127_v33  ;;  %v5197_v1 = vrot.slane %v892_v19, %v5127_v33  ;;  %v1298_v26 = vrot.slane %v5102_v48, %v5127_v33  ;;  %v1069_v47 = vcombine.high %v1066_v35, %v1066_v35 }
  0x64   :  { %v4312_v14 = vcombine.low %v5137_v60, %v5140_v3  ;;  %v1124_v63 = vrot.slane %v5089_v57, %v5127_v33  ;;  %v5212_v19 = vrot.slane %v895_v20, %v5127_v33  ;;  %v5221_v57 = vrot.slane %v5178_v41, %v5127_v33 }
  0x65   :  { %v5227_v20 = vrot.slane %v1066_v35, %v5127_v33  ;;  %v1301_v48 = vcombine.high %v1298_v26, %v1298_v26  ;;  %v5232_v42 = vrot.slane %v1069_v47, %v5127_v33 }
  0x66   :  { %v5154_v44 = vrot.slane %v4312_v14, %v5127_v33  ;;  %6273 = vst [vmem:[#allocation20_spill] sm:$0xff] %v5221_v57  ;;  %v1127_v61 = vcombine.high %v1124_v63, %v1124_v63  ;;  %v5247_v47 = vrot.slane %v1124_v63, %v5127_v33  ;;  %v1240_v63 = vrot.slane %v5123_v62, %v5127_v33 }
  0x68   :  { %6276 = vst [vmem:[#allocation23_spill] sm:$0xff] %v5247_v47 }
  0x76   :  { %v284_v11 = vpop.permute.xlu1 %283 }
  0x77   :  { %v443_v10 = vsel %vm395_vm0, %v4766_v34, %v284_v11  ;;  %v5184_v34 = vrot.slane %v663_v39, %v5127_v33  ;;  %v5194_v11 = vrot.slane %v779_v32, %v5127_v33  ;;  %v4260_v32 = vcombine.low %v4717_v8, %v16_v4 }
  0x7a   :  { %v334_v51 = vpop.permute.xlu1 %333 }
  0x7b   :  { %v485_v7 = vsel %vm395_vm0, %v4754_v29, %v334_v51  ;;  %v953_v51 = vcombine.high %v5178_v41, %v5178_v41 }
  0x7c   :  { %v194_v31 = vpop.permute.xlu0 %193 }
  0x7d   :  { %v401_v14 = vsel %vm395_vm0, %v4698_v2, %v194_v31  ;;  %v5187_v2 = vrot.slane %v776_v17, %v5127_v33  ;;  %v1008_v31 = vrot.slane %v5060_v15, %v5127_v33  ;;  %v50_v17 = vld [vmem:[%s6220_s0 + $0x8c] sm:$0x1]  ;;  %v261_v15 = vrot.slane %v4260_v32, 1 }
  0x7e   :  { %v196_v18 = vpop.permute.xlu1 %195  ;;  %v638_v39 = vcombine.low %v401_v14, %v443_v10  ;;  %v4281_v4 = vcombine.low %v5085_v36, %v50_v17  ;;  %v5250_v32 = vrot.slane %v1298_v26, %v5127_v33 }
  0x7f   :  { %v5235_v41 = vrot.slane %v1008_v31, %v5127_v33  ;;  %v5239_v17 = vsel %vm395_vm0, %v4690_v0, %v196_v18  ;;  %v5253_v0 = vrot.slane %v1301_v48, %v5127_v33 }
  0x80   :  { %v198_v55 = vpop.permute.xlu0 %197  ;;  %v646_v43 = vrot.slane %v638_v39, %v5127_v33  ;;  %6277 = vst [vmem:[#allocation24_spill] sm:$0xff] %v5250_v32 }
  0x81   :  { %v5208_v29 = vsel %vm395_vm0, %v4710_v6, %v198_v55  ;;  %v1011_v6 = vcombine.high %v1008_v31, %v1008_v31  ;;  %v1182_v55 = vrot.slane %v5094_v40, %v5127_v33  ;;  %6274 = vst [vmem:[#allocation21_spill] sm:$0xff] %v5235_v41  ;;  %v394_v41 = vrot.slane %v4281_v4, 1  ;;  %6278 = vst [vmem:[#allocation25_spill] sm:$0xff] %v5253_v0 }
  0x82   :  { %v639_v10 = vcombine.low %v485_v7, %v5208_v29  ;;  %v332_v14 = vpop.permute.xlu1 %331 }
  0x83   :  { %v482_v39 = vsel %vm395_vm0, %v4744_v24, %v332_v14  ;;  %v1185_v31 = vcombine.high %v1182_v55, %v1182_v55  ;;  %v5274_v18 = vrot.slane %v1182_v55, %v5127_v33  ;;  %v1243_v55 = vcombine.high %v1240_v63, %v1240_v63 }
  0x84   :  { %v653_v22 = vrot.slane %v639_v10, %v5127_v33  ;;  %v192_v7 = vpop.permute.xlu0 %191  ;;  %v5244_v10 = vrot.slane %v1011_v6, %v5127_v33  ;;  %v581_v14 = vcombine.low %v482_v39, %v5239_v17  ;;  %v5266_v6 = vrot.slane %v1127_v61, %v5127_v33  ;;  %v34_v61 = vld [vmem:[%s6220_s0 + $0x4c] sm:$0x1] }
  0x85   :  { %v398_v4 = vsel %vm395_vm0, %v4717_v8, %v192_v7  ;;  %6280 = vst [vmem:[#allocation27_spill] sm:$0xff] %v5274_v18  ;;  %v5277_v62 = vrot.slane %v1185_v31, %v5127_v33 }
  0x86   :  { %v661_v35 = vcombine.low %v646_v43, %v653_v22  ;;  %v662_v36 = vcombine.high %v646_v43, %v653_v22  ;;  %v286_v40 = vpop.permute.xlu1 %285  ;;  %6275 = vst [vmem:[#allocation22_spill] sm:$0xff] %v5244_v10  ;;  %6279 = vst [vmem:[#allocation26_spill] sm:$0xff] %v5266_v6  ;;  %v595_v18 = vrot.slane %v581_v14, %v5127_v33 }
  0x87   :  { %6281 = vst [vmem:[#allocation28_spill] sm:$0xff] %v5277_v62  ;;  %v446_v31 = vsel %vm395_vm0, %v4720_v9, %v286_v40 }
  0x88   :  { %v670_v43 = vrot.slane %v661_v35, %v5127_v33  ;;  %v5257_v22 = vrot.slane %v662_v36, %v5127_v33  ;;  %v282_v24 = vpop.permute.xlu0 %281  ;;  %v696_v14 = vcombine.low %v5239_v17, %v446_v31 }
  0x89   :  { %v440_v26 = vsel %vm395_vm0, %v261_v15, %v282_v24  ;;  %v1356_v15 = vrot.slane %v394_v41, %v5127_v33  ;;  %v4330_v24 = vcombine.low %v5250_v32, %v5253_v0  ;;  %v4267_v32 = vcombine.low %v4855_v5, %v34_v61 }
  0x8a   :  { %v692_v48 = vcombine.low %v670_v43, %v5160_v58  ;;  %v694_v36 = vcombine.low %v5257_v22, %v5184_v34  ;;  %v202_v35 = vpop.permute.xlu1 %201  ;;  %v580_v39 = vcombine.low %v398_v4, %v440_v26  ;;  %v693_v6 = vcombine.high %v670_v43, %v5160_v58 }
  0x8b   :  { %v5291_v4 = vrot.slane %v1240_v63, %v5127_v33  ;;  %v5295_v0 = vrot.slane %v953_v51, %v5127_v33  ;;  %v1359_v57 = vcombine.high %v1356_v15, %v1356_v15  ;;  %v5300_v9 = vsel %vm395_vm0, %v4730_v16, %v202_v35 }
  0x8c   :  { %v200_v8 = vpop.permute.xlu0 %199  ;;  %v1400_v7 = vunpack.i.h.s16 %v692_v48  ;;  %v1402_v47 = vunpack.i.h.s16 %v694_v36  ;;  %v588_v26 = vrot.slane %v580_v39, %v5127_v33  ;;  %v5313_v39 = vrot.slane %v1243_v55, %v5127_v33 }
  0x8d   :  { %v5304_v40 = vsel %vm395_vm0, %v4740_v23, %v200_v8  ;;  %v5316_v23 = vrot.slane %v4267_v32, 1  ;;  %v5319_v61 = vrot.slane %v1356_v15, %v5127_v33  ;;  %v5323_v31 = vrot.slane %v1359_v57, %v5127_v33 }
  0x8e   :  { %v338_v41 = vpop.permute.xlu1 %337  ;;  %v4284_v62 = vpack.i.b16 %v694_v36, %v1400_v7  ;;  %v4285_v10 = vpack.i.b16 %v693_v6, %v1402_v47  ;;  %v603_v58 = vcombine.low %v588_v26, %v595_v18  ;;  %v604_v43 = vcombine.high %v588_v26, %v595_v18 }
  0x8f   :  { %v491_v51 = vsel %vm395_vm0, %v4814_v53, %v338_v41  ;;  %v1404_v7 = vunpack.i.h.s16 %v693_v6  ;;  %v695_v55 = vcombine.high %v5257_v22, %v5184_v34  ;;  %v704_v32 = vrot.slane %v696_v14, %v5127_v33 }
  0x90   :  { %v336_v63 = vpop.permute.xlu0 %335  ;;  %v1623_v47 = vcombine.high %v4284_v62, %v4285_v10  ;;  %v612_v36 = vrot.slane %v603_v58, %v5127_v33  ;;  %v619_v18 = vrot.slane %v604_v43, %v5127_v33  ;;  %v755_v15 = vcombine.low %v491_v51, %v5300_v9 }
  0x91   :  { %v488_v17 = vsel %vm395_vm0, %v4758_v30, %v336_v63  ;;  %v6282_v30 = vcombine.low %v5172_v54, %v5175_v12  ;;  %v1622_v58 = vcombine.low %v4284_v62, %v4285_v10  ;;  %v4286_v51 = vpack.i.b16 %v695_v55, %v1404_v7 }
  0x92   :  { %v697_v16 = vcombine.low %v488_v17, %v5304_v40  ;;  %v290_v35 = vpop.permute.xlu1 %289  ;;  %v637_v8 = vcombine.high %v619_v18, %v5140_v3  ;;  %v635_v6 = vcombine.high %v612_v36, %v5137_v60  ;;  %v4311_v34 = vcombine.low %v612_v36, %v619_v18 }
  0x93   :  { %v5329_v53 = vrot.slane %v6282_v30, %v5127_v33  ;;  %v452_v22 = vsel %vm395_vm0, %v4821_v56, %v290_v35  ;;  %v769_v36 = vrot.slane %v755_v15, %v5127_v33 }
  0x94   :  { %v711_v26 = vrot.slane %v697_v16, %v5127_v33  ;;  %v288_v3 = vpop.permute.xlu0 %287  ;;  %v4283_v41 = vpack.i.b16 %v692_v48, %v637_v8  ;;  %v5345_v16 = vrot.slane %v4330_v24, %v5127_v33  ;;  %v1667_v24 = vrot.slane %v1623_v47, %v5127_v33 }
  0x95   :  { %v449_v57 = vsel %vm395_vm0, %v4832_v59, %v288_v3  ;;  %v812_v8 = vcombine.low %v5304_v40, %v452_v22  ;;  %v5366_v55 = vrot.slane %v4311_v34, %v5127_v33 }
  0x96   :  { %v719_v43 = vcombine.low %v704_v32, %v711_v26  ;;  %v720_v63 = vcombine.high %v704_v32, %v711_v26  ;;  %v754_v17 = vcombine.low %v5208_v29, %v449_v57  ;;  %v292_v30 = vpop.permute.xlu1 %291  ;;  %v1620_v48 = vcombine.low %v635_v6, %v4283_v41 }
  0x97   :  { %v455_v14 = vsel %vm395_vm0, %v4898_v28, %v292_v30  ;;  %v4313_v56 = vcombine.high %v5137_v60, %v4283_v41  ;;  %v5357_v28 = vrot.slane %v1622_v58, %v5127_v33 }
  0x98   :  { %v5348_v59 = vrot.slane %v719_v43, %v5127_v33  ;;  %v5351_v62 = vrot.slane %v720_v63, %v5127_v33  ;;  %v762_v29 = vrot.slane %v754_v17, %v5127_v33  ;;  %v204_v10 = vpop.permute.xlu0 %203  ;;  %v870_v60 = vcombine.low %v5300_v9, %v455_v14 }
  0x99   :  { %v5371_v26 = vsel %vm395_vm0, %v4793_v45, %v204_v10  ;;  %v1646_v40 = vrot.slane %v1620_v48, %v5127_v33  ;;  %v1653_v43 = vrot.slane %v4313_v56, %v5127_v33 }
  0x9a   :  { %v750_v18 = vcombine.low %v5348_v59, %v5157_v46  ;;  %v752_v35 = vcombine.low %v5351_v62, %v5163_v13  ;;  %v380_v7 = vpop.permute.xlu1 %379  ;;  %v777_v32 = vcombine.low %v762_v29, %v769_v36  ;;  %v778_v15 = vcombine.high %v762_v29, %v769_v36 }
  0x9b   :  { %v4314_v57 = vcombine.low %v4286_v51, %v5348_v59  ;;  %v753_v45 = vcombine.high %v5351_v62, %v5163_v13  ;;  %v1683_v48 = vcombine.high %v5366_v55, %v1646_v40 }
  0x9c   :  { %v5374_v47 = vcombine.high %v752_v35, %v5157_v46  ;;  %v340_v3 = vpop.permute.xlu0 %339  ;;  %v1625_v6 = vcombine.high %v4286_v51, %v750_v18  ;;  %v786_v41 = vrot.slane %v777_v32, %v5127_v33  ;;  %v793_v58 = vrot.slane %v778_v15, %v5127_v33 }
  0x9d   :  { %v494_v9 = vsel %vm395_vm0, %v4804_v50, %v340_v3  ;;  %v1674_v30 = vrot.slane %v4314_v57, %v5127_v33  ;;  %v524_v50 = vsel %vm395_vm0, %v4810_v52, %v380_v7  ;;  %v878_v52 = vrot.slane %v870_v60, %v5127_v33 }
  0x9e   :  { %v813_v63 = vcombine.low %v494_v9, %v5371_v26  ;;  %v344_v17 = vpop.permute.xlu1 %343  ;;  %v1681_v34 = vrot.slane %v1625_v6, %v5127_v33  ;;  %v808_v22 = vcombine.low %v786_v41, %v5187_v2  ;;  %v809_v14 = vcombine.high %v786_v41, %v5187_v2 }
  0x9f   :  { %v810_v51 = vcombine.low %v793_v58, %v5194_v11  ;;  %v811_v29 = vcombine.high %v793_v58, %v5194_v11  ;;  %v1686_v32 = vcombine.high %v5357_v28, %v1674_v30  ;;  %v820_v2 = vrot.slane %v812_v8, %v5127_v33 }
  0xa0   :  { %v827_v13 = vrot.slane %v813_v63, %v5127_v33  ;;  %v342_v10 = vpop.permute.xlu0 %341  ;;  %v5396_v36 = vcombine.low %v1667_v24, %v1681_v34  ;;  %v1414_v56 = vunpack.i.h.s16 %v808_v22  ;;  %v1418_v35 = vunpack.i.h.s16 %v809_v14 }
  0xa1   :  { %v1416_v18 = vunpack.i.h.s16 %v810_v51  ;;  %v5400_v15 = vpack.i.b16 %v808_v22, %v753_v45  ;;  %v497_v11 = vsel %vm395_vm0, %v4880_v21, %v342_v10  ;;  %v1684_v9 = vcombine.low %v5154_v44, %v1653_v43 }
  0xa2   :  { %v206_v7 = vpop.permute.xlu1 %205  ;;  %v5405_v3 = vpack.i.b16 %v810_v51, %v1414_v56  ;;  %v5409_v24 = vpack.i.b16 %v811_v29, %v1418_v35  ;;  %v871_v6 = vcombine.low %v497_v11, %v524_v50  ;;  %v835_v41 = vcombine.low %v820_v2, %v827_v13 }
  0xa3   :  { %v5407_v57 = vpack.i.b16 %v809_v14, %v1416_v18  ;;  %v836_v58 = vcombine.high %v820_v2, %v827_v13  ;;  %v1708_v8 = vrot.slane %v1683_v48, %v5127_v33  ;;  %v1729_v34 = vrot.slane %v1686_v32, %v5127_v33 }
  0xa4   :  { %v294_v45 = vpop.permute.xlu0 %293  ;;  %v885_v63 = vrot.slane %v871_v6, %v5127_v33  ;;  %v751_v22 = vcombine.high %v5348_v59, %v5157_v46  ;;  %v500_v14 = vsel %vm395_vm0, %v4896_v27, %v344_v17  ;;  %v6283_v51 = vcombine.low %v5227_v20, %v5232_v42  ;;  %v4658_v6 = vld [vmem:[%s6221_s1 + $0x100] sm:$0xff]  }
  0xa5   :  { %v458_v44 = vsel %vm395_vm0, %v4941_v49, %v294_v45  ;;  %v1733_v10 = vcombine.low %v1708_v8, %v1729_v34  ;;  %v1734_v48 = vcombine.high %v1708_v8, %v1729_v34  ;;  %v5432_v56 = vrot.slane %v835_v41, %v5127_v33 }
  0xa6   :  { %v296_v43 = vpop.permute.xlu1 %295  ;;  %v5429_v50 = vrot.slane %v6283_v51, %v5127_v33  ;;  %v893_v29 = vcombine.low %v878_v52, %v885_v63  ;;  %v894_v13 = vcombine.high %v878_v52, %v885_v63  ;;  %v5435_v46 = vrot.slane %v1684_v9, %v5127_v33 }
  0xa7   :  { %v1682_v27 = vcombine.low %v5366_v55, %v1646_v40  ;;  %v1685_v49 = vcombine.low %v5357_v28, %v1674_v30  ;;  %v5440_v17 = vrot.slane %v836_v58, %v5127_v33  ;;  %2656 = vmatprep.mubr.bf16.mxu0 %v1733_v10  ;;  %2744 = vmatprep.mubr.bf16.mxu1 %v1734_v48 }
  0xa8   :  { %6284 = vst [vmem:[#allocation29_spill] sm:$0xff] %v5429_v50  ;;  %v382_v59 = vpop.permute.xlu0 %381  ;;  %v902_v18 = vrot.slane %v893_v29, %v5127_v33  ;;  %v909_v35 = vrot.slane %v894_v13, %v5127_v33  ;;  %v928_v32 = vcombine.low %v5371_v26, %v458_v44  ;;  %v419_v11 = vsel %vm395_vm0, %v4855_v5, %v206_v7 }
  0xa9   :  { %v1694_v2 = vrot.slane %v1682_v27, %v5127_v33  ;;  %v1715_v52 = vrot.slane %v1685_v49, %v5127_v33  ;;  %v527_v55 = vsel %vm395_vm0, %v4890_v25, %v382_v59  ;;  %v461_v26 = vsel %vm395_vm0, %v5316_v23, %v296_v43 }
  0xaa   :  { %v5449_v28 = vpop.permute.xlu1 %207  ;;  %v5452_v40 = vcombine.low %v902_v18, %v5197_v1  ;;  %v926_v30 = vcombine.low %v909_v35, %v5212_v19  ;;  %v925_v41 = vcombine.high %v902_v18, %v5197_v1  ;;  %v929_v9 = vcombine.low %v500_v14, %v527_v55 }
  0xab   :  { %v1730_v25 = vcombine.low %v1694_v2, %v1715_v52  ;;  %v1731_v58 = vcombine.high %v1694_v2, %v1715_v52  ;;  %v4317_v45 = vcombine.low %v5432_v56, %v5440_v17  ;;  %v869_v23 = vcombine.high %v5440_v17, %v5175_v12  ;;  %v4659_v12 = vld [vmem:[%s6221_s1 + $0x108] sm:$0xff]  }
  0xac   :  { %v210_v8 = vpop.permute.xlu0 %209  ;;  %v1428_v63 = vunpack.i.h.s16 %v5452_v40  ;;  %v1430_v34 = vunpack.i.h.s16 %v926_v30  ;;  %v936_v7 = vrot.slane %v928_v32, %v5127_v33  ;;  %v943_v1 = vrot.slane %v929_v9, %v5127_v33 }
  0xad   :  { %2657 = vmatmul.mubr.bf16.vlgmr.msra.gmra.mrb[0].mxu0 %v1730_v25  ;;  %2745 = vmatmul.mubr.bf16.vlgmr.msra.gmra.mrb[0].mxu1 %v1731_v58  ;;  %v927_v44 = vcombine.high %v909_v35, %v5212_v19  ;;  %v986_v29 = vcombine.low %v419_v11, %v461_v26  ;;  %v1432_v13 = vunpack.i.h.s16 %v925_v41  ;;  %v4315_v27 = vcombine.low %v5351_v62, %v751_v22 }
  0xae   :  { %v5472_v14 = vpop.permute.xlu1 %213  ;;  %v5475_v43 = vpack.i.b16 %v926_v30, %v1428_v63  ;;  %v5477_v51 = vpack.i.b16 %v925_v41, %v1430_v34  ;;  %4543 = vmatpush3.bf16.msra.mxu0 %v4658_v6  ;;  %v951_v10 = vcombine.low %v936_v7, %v943_v1  ;;  %v952_v48 = vcombine.high %v936_v7, %v943_v1  ;;  %v6286_v41 = vld [vmem:[#allocation20_spill] sm:$0xff] }
  0xaf   :  { %4582 = vmatpush3.bf16.msra.mxu1 %v4658_v6  ;;  %v1737_v59 = vcombine.low %v5400_v15, %v5405_v3  ;;  %v1739_v17 = vcombine.low %v5407_v57, %v5409_v24  ;;  %v1791_v18 = vrot.slane %v4317_v45, %v5127_v33  ;;  %v6285_v35 = vmov 0.0  }
  0xb0   :  { %v346_v49 = vpop.permute.xlu0 %345  ;;  %4544 = vmatprep.subr.bf16.mxu0 %v6285_v35  ;;  %v5492_v32 = vrot.slane %v951_v10, %v5127_v33  ;;  %v5495_v62 = vrot.slane %v952_v48, %v5127_v33  ;;  %v5499_v22 = vsel %vm395_vm0, %v4913_v37, %v210_v8  ;;  %4579 = vmatprep.subr.bf16.mxu1 %v6285_v35  ;;  %v4660_v37 = vld [vmem:[%s6221_s1 + $0x110] sm:$0xff]  }
  0xb1   :  { %v503_v2 = vsel %vm395_vm0, %v5003_v38, %v346_v49  ;;  %v1749_v55 = vrot.slane %v4315_v27, %v5127_v33  ;;  %v1763_v30 = vrot.slane %v1737_v59, %v5127_v33  ;;  %v1777_v11 = vrot.slane %v1739_v17, %v5127_v33 }
  0xb2   :  { %v300_v52 = vpop.permute.xlu1 %299  ;;  %v987_v26 = vcombine.low %v503_v2, %v5499_v22  ;;  %4545 = vmatpush3.bf16.msra.mxu0 %v4659_v12  ;;  %v5511_v6 = vpack.i.b16 %v927_v44, %v1432_v13  ;;  %v994_v38 = vrot.slane %v986_v29, %v5127_v33  ;;  %v982_v25 = vcombine.low %v5492_v32, %v6286_v41  ;;  %v6287_v29 = vld [vmem:[#allocation11_spill] sm:$0xff] }
  0xb3   :  { %v984_v58 = vcombine.low %v5495_v62, %v5295_v0  ;;  %4583 = vmatpush3.bf16.msra.mxu1 %v4659_v12  ;;  %v1800_v8 = vcombine.high %v1749_v55, %v1763_v30  ;;  %v1803_v45 = vcombine.high %v1777_v11, %v1791_v18  ;;  %v1799_v34 = vcombine.low %v1749_v55, %v1763_v30 }
  0xb4   :  { %v212_v9 = vpop.permute.xlu0 %211  ;;  %v1001_v63 = vrot.slane %v987_v26, %v5127_v33  ;;  %4546 = vmatprep.subr.bf16.mxu0 %v6285_v35  ;;  %v5521_v7 = vcombine.high %v5511_v6, %v982_v25  ;;  %v1802_v44 = vcombine.low %v1777_v11, %v1791_v18  ;;  %v467_v13 = vsel %vm395_vm0, %v6287_v29, %v300_v52  ;;  %v6288_v25 = vld [vmem:[#allocation9_spill] sm:$0xff] }
  0xb5   :  { %v5524_v1 = vcombine.high %v984_v58, %v6286_v41  ;;  %4580 = vmatprep.subr.bf16.mxu1 %v6285_v35  ;;  %v1825_v12 = vrot.slane %v1800_v8, %v5127_v33  ;;  %v1846_v48 = vrot.slane %v1803_v45, %v5127_v33  ;;  %v867_v59 = vcombine.high %v5432_v56, %v5172_v54  ;;  %v4661_v56 = vld [vmem:[%s6221_s1 + $0x118] sm:$0xff]   ;;  %v6289_v8 = vld [vmem:[#allocation2_spill] sm:$0xff] }
  0xb6   :  { %v350_v10 = vpop.permute.xlu1 %349  ;;  %v1009_v27 = vcombine.low %v994_v38, %v1001_v63  ;;  %v1010_v49 = vcombine.high %v994_v38, %v1001_v63  ;;  %4547 = vmatpush3.bf16.msra.mxu0 %v4660_v37  ;;  %v5534_v17 = vpack.i.b16 %v5452_v40, %v869_v23  ;;  %v1811_v18 = vrot.slane %v1799_v34, %v5127_v33  ;;  %v6290_v63 = vld [vmem:[#allocation21_spill] sm:$0xff] }
  0xb7   :  { %v1832_v2 = vrot.slane %v1802_v44, %v5127_v33  ;;  %4584 = vmatpush3.bf16.msra.mxu1 %v4660_v37  ;;  %v1850_v55 = vcombine.low %v1825_v12, %v1846_v48  ;;  %v1851_v30 = vcombine.high %v1825_v12, %v1846_v48  ;;  %4548 = vmatprep.subr.bf16.mxu0 %v6285_v35  ;;  %v6291_v44 = vld [vmem:[#allocation22_spill] sm:$0xff] }
  0xb8   :  { %v298_v52 = vpop.permute.xlu0 %297  ;;  %v1018_v11 = vrot.slane %v1009_v27, %v5127_v33  ;;  %v1025_v26 = vrot.slane %v1010_v49, %v5127_v33  ;;  %v1102_v38 = vcombine.low %v5499_v22, %v467_v13  ;;  %v509_v58 = vsel %vm395_vm0, %v6288_v25, %v350_v10  ;;  %4581 = vmatprep.subr.bf16.mxu1 %v6285_v35  ;;  %v6292_v13 = vld [vmem:[#allocation7_spill] sm:$0xff]  ;;  %v4662_v49 = vld [vmem:[%s6220_s0 + $0x50] sm:$0xf] }
  0xb9   :  { %v1847_v40 = vcombine.low %v1811_v18, %v1832_v2  ;;  %v1848_v23 = vcombine.high %v1811_v18, %v1832_v2  ;;  %v5551_v45 = vsel %vm395_vm0, %v6289_v8, %v5472_v14  ;;  %2664 = vmatprep.mubr.bf16.mxu0 %v1850_v55  ;;  %2752 = vmatprep.mubr.bf16.mxu1 %v1851_v30  ;;  %v6293_v30 = vld [vmem:[#allocation4_spill] sm:$0xff]  ;;  %v6294_v25 = vld [vmem:[#allocation3_spill] sm:$0xff] }
  0xba   :  { %v304_v37 = vpop.permute.xlu1 %303  ;;  %v1040_v34 = vcombine.low %v1018_v11, %v6290_v63  ;;  %v1042_v29 = vcombine.low %v1025_v26, %v6291_v44  ;;  %v1041_v12 = vcombine.high %v1018_v11, %v6290_v63  ;;  %v1103_v22 = vcombine.low %v509_v58, %v5551_v45  ;;  %4549 = vmatpush3.bf16.msra.mxu0 %v4661_v56 }
  0xbb   :  { %2665 = vmatmul.mubr.bf16.gmra.mrb[4].mxu0 %v1847_v40  ;;  %2753 = vmatmul.mubr.bf16.gmra.mrb[4].mxu1 %v1848_v23  ;;  %v464_v10 = vsel %vm395_vm0, %v6292_v13, %v298_v52  ;;  %v983_v27 = vcombine.high %v5492_v32, %v6286_v41  ;;  %v422_v18 = vsel %vm395_vm0, %v4662_v49, %v5449_v28  ;;  %v6295_v49 = vld [vmem:[#allocation16_spill] sm:$0xff] }
  0xbc   :  { %v348_v48 = vpop.permute.xlu0 %347  ;;  %4585 = vmatpush3.bf16.msra.mxu1 %v4661_v56  ;;  %v985_v2 = vcombine.high %v5495_v62, %v5295_v0  ;;  %v1110_v52 = vrot.slane %v1102_v38, %v5127_v33  ;;  %v1117_v55 = vrot.slane %v1103_v22, %v5127_v33  ;;  %v1442_v40 = vunpack.i.h.s16 %v1040_v34 }
  0xbd   :  { %v506_v11 = vsel %vm395_vm0, %v6293_v30, %v348_v48  ;;  %v1444_v23 = vunpack.i.h.s16 %v1042_v29  ;;  %v5576_v58 = vsel %vm395_vm0, %v6294_v25, %v212_v9  ;;  %v1044_v28 = vcombine.low %v422_v18, %v464_v10 }
  0xbe   :  { %v216_v41 = vpop.permute.xlu1 %215  ;;  %v1446_v8 = vunpack.i.h.s16 %v1041_v12  ;;  %v1125_v56 = vcombine.low %v1110_v52, %v1117_v55  ;;  %v1126_v63 = vcombine.high %v1110_v52, %v1117_v55  ;;  %v1045_v0 = vcombine.low %v506_v11, %v5576_v58 }
  0xbf   :  { %v1043_v38 = vcombine.high %v1025_v26, %v6291_v44  ;;  %v5580_v22 = vpack.i.b16 %v1040_v34, %v985_v2  ;;  %v473_v48 = vsel %vm395_vm0, %v6295_v49, %v304_v37  ;;  %v1852_v30 = vcombine.low %v867_v59, %v5534_v17  ;;  %v6296_v2 = vld [vmem:[#allocation23_spill] sm:$0xff] }
  0xc0   :  { %v218_v13 = vpop.permute.xlu0 %217  ;;  %v1134_v19 = vrot.slane %v1125_v56, %v5127_v33  ;;  %v1141_v9 = vrot.slane %v1126_v63, %v5127_v33  ;;  %v1059_v10 = vrot.slane %v1045_v0, %v5127_v33  ;;  %v1854_v18 = vcombine.low %v5475_v43, %v5477_v51  ;;  %v6297_v63 = vld [vmem:[#allocation26_spill] sm:$0xff] }
  0xc1   :  { %v5590_v55 = vpack.i.b16 %v1042_v29, %v1442_v40  ;;  %v1052_v26 = vrot.slane %v1044_v28, %v5127_v33  ;;  %v4320_v34 = vcombine.low %v5511_v6, %v5492_v32  ;;  %v4321_v37 = vcombine.low %v5495_v62, %v983_v27  ;;  %v6298_v6 = vld [vmem:[#allocation6_spill] sm:$0xff] }
  0xc2   :  { %v352_v52 = vpop.permute.xlu1 %351  ;;  %v5596_v59 = vpack.i.b16 %v1041_v12, %v1444_v23  ;;  %v5598_v44 = vpack.i.b16 %v1043_v38, %v1446_v8  ;;  %v1156_v11 = vcombine.low %v1134_v19, %v6296_v2  ;;  %v1218_v25 = vcombine.low %v5551_v45, %v473_v48 }
  0xc3   :  { %v1158_v0 = vcombine.low %v1141_v9, %v6297_v63  ;;  %v1068_v29 = vcombine.high %v1052_v26, %v1059_v10  ;;  %v1866_v40 = vrot.slane %v1852_v30, %v5127_v33  ;;  %v1880_v28 = vrot.slane %v1854_v18, %v5127_v33 }
  0xc4   :  { %v354_v56 = vpop.permute.xlu0 %353  ;;  %v1157_v32 = vcombine.high %v1134_v19, %v6296_v2  ;;  %v5608_v62 = vsel %vm395_vm0, %v6298_v6, %v216_v41  ;;  %v1894_v12 = vrot.slane %v4320_v34, %v5127_v33  ;;  %v1908_v27 = vrot.slane %v4321_v37, %v5127_v33  ;;  %v6299_v6 = vld [vmem:[#allocation8_spill] sm:$0xff] }
  0xc5   :  { %v1456_v8 = vunpack.i.h.s16 %v1156_v11  ;;  %v1067_v38 = vcombine.low %v1052_v26, %v1059_v10  ;;  %v1917_v49 = vcombine.high %v1866_v40, %v1880_v28  ;;  %v1226_v19 = vrot.slane %v1218_v25, %v5127_v33 }
  0xc6   :  { %v358_v23 = vpop.permute.xlu1 %357  ;;  %v1920_v30 = vcombine.high %v1894_v12, %v1908_v27  ;;  %v1916_v18 = vcombine.low %v1866_v40, %v1880_v28  ;;  %v1159_v2 = vcombine.high %v1141_v9, %v6297_v63  ;;  %v1458_v34 = vunpack.i.h.s16 %v1158_v0  ;;  %v6300_v40 = vld [vmem:[#allocation5_spill] sm:$0xff]  ;;  %v6301_v63 = vld [vmem:[#allocation12_spill] sm:$0xff] }
  0xc7   :  { %v5619_v37 = vrot.slane %v1068_v29, %v5127_v33  ;;  %v437_v45 = vsel %vm395_vm0, %v6299_v6, %v218_v13  ;;  %v1460_v14 = vunpack.i.h.s16 %v1157_v32  ;;  %v1942_v10 = vrot.slane %v1917_v49, %v5127_v33 }
  0xc8   :  { %v302_v41 = vpop.permute.xlu0 %301  ;;  %v1963_v26 = vrot.slane %v1920_v30, %v5127_v33  ;;  %v1919_v48 = vcombine.low %v1894_v12, %v1908_v27  ;;  %v5625_v21 = vpack.i.b16 %v1158_v0, %v1456_v8  ;;  %v5628_v25 = vrot.slane %v1067_v38, %v5127_v33  ;;  %v6302_v8 = vld [vmem:[#allocation10_spill] sm:$0xff] }
  0xc9   :  { %v512_v9 = vsel %vm395_vm0, %v6300_v40, %v352_v52  ;;  %v515_v29 = vsel %vm395_vm0, %v6301_v63, %v354_v56  ;;  %v1928_v13 = vrot.slane %v1916_v18, %v5127_v33  ;;  %v1101_v0 = vcombine.high %v5619_v37, %v5232_v42  ;;  %v6303_v40 = vld [vmem:[#allocation17_spill] sm:$0xff] }
  0xca   :  { %v1967_v28 = vcombine.low %v1942_v10, %v1963_v26  ;;  %v1968_v60 = vcombine.high %v1942_v10, %v1963_v26  ;;  %v1949_v49 = vrot.slane %v1919_v48, %v5127_v33  ;;  %v306_v6 = vpop.permute.xlu1 %305  ;;  %v1161_v12 = vcombine.low %v512_v9, %v5608_v62 }
  0xcb   :  { %v1219_v27 = vcombine.low %v515_v29, %v437_v45  ;;  %v470_v52 = vsel %vm395_vm0, %v6302_v8, %v302_v41  ;;  %v5642_v18 = vpack.i.b16 %v1157_v32, %v1458_v34  ;;  %v5644_v48 = vpack.i.b16 %v1159_v2, %v1460_v14  ;;  %v6305_v2 = vld [vmem:[#allocation15_spill] sm:$0xff] }
  0xcc   :  { %v308_v30 = vpop.permute.xlu0 %307  ;;  %2672 = vmatprep.mubr.bf16.mxu0 %v1967_v28  ;;  %2760 = vmatprep.mubr.bf16.mxu1 %v1968_v60  ;;  %v1964_v56 = vcombine.low %v1928_v13, %v1949_v49  ;;  %v1965_v38 = vcombine.high %v1928_v13, %v1949_v49  ;;  %v1160_v10 = vcombine.low %v5576_v58, %v470_v52  ;;  %v6304_v60 = vld [vmem:[#allocation19_spill] sm:$0xff]  ;;  %v6306_v28 = vld [vmem:[#allocation18_spill] sm:$0xff] }
  0xcd   :  { %v1233_v26 = vrot.slane %v1219_v27, %v5127_v33  ;;  %v476_v42 = vsel %vm395_vm0, %v6303_v40, %v306_v6  ;;  %v1175_v9 = vrot.slane %v1161_v12, %v5127_v33  ;;  %v479_v63 = vsel %vm395_vm0, %v6304_v60, %v308_v30 }
  0xce   :  { %2673 = vmatmul.mubr.bf16.gmra.mrb[8].mxu0 %v1964_v56  ;;  %2761 = vmatmul.mubr.bf16.gmra.mrb[8].mxu1 %v1965_v38  ;;  %v1168_v41 = vrot.slane %v1160_v10, %v5127_v33  ;;  %v5653_v58 = vpack.i.b16 %v1156_v11, %v1101_v0  ;;  %v521_v13 = vsel %vm395_vm0, %v6306_v28, %v358_v23  ;;  %v384_v11 = vpop.permute.xlu1 %383 }
  0xcf   :  { %v1241_v32 = vcombine.low %v1226_v19, %v1233_v26  ;;  %v1242_v14 = vcombine.high %v1226_v19, %v1233_v26  ;;  %v1276_v12 = vcombine.low %v5608_v62, %v476_v42  ;;  %v1334_v30 = vcombine.low %v437_v45, %v479_v63  ;;  %v6310_v62 = vld [vmem:[#allocation14_spill] sm:$0xff] }
  0xd0   :  { %v386_v29 = vpop.permute.xlu0 %385  ;;  %v1183_v49 = vcombine.low %v1168_v41, %v1175_v9  ;;  %v1184_v6 = vcombine.high %v1168_v41, %v1175_v9  ;;  %v1099_v19 = vcombine.high %v5628_v25, %v5227_v20  ;;  %v1969_v23 = vcombine.low %v5580_v22, %v5590_v55  ;;  %v6307_v9 = vld [vmem:[#allocation13_spill] sm:$0xff] }
  0xd1   :  { %v533_v34 = vsel %vm395_vm0, %v6305_v2, %v386_v29  ;;  %v1250_v27 = vrot.slane %v1241_v32, %v5127_v33  ;;  %v1257_v8 = vrot.slane %v1242_v14, %v5127_v33  ;;  %v1971_v56 = vcombine.low %v5596_v59, %v5598_v44  ;;  %v6308_v32 = vld [vmem:[#allocation27_spill] sm:$0xff] }
  0xd2   :  { %v1335_v52 = vcombine.low %v521_v13, %v533_v34  ;;  %v5665_v0 = vrot.slane %v1183_v49, %v5127_v33  ;;  %v4323_v45 = vcombine.low %v5628_v25, %v5619_v37  ;;  %v5681_v42 = vrot.slane %v1184_v6, %v5127_v33 }
  0xd3   :  { %v1272_v38 = vcombine.low %v1250_v27, %v5291_v4  ;;  %v1274_v10 = vcombine.low %v1257_v8, %v5313_v39  ;;  %v1273_v40 = vcombine.high %v1250_v27, %v5291_v4  ;;  %v530_v41 = vsel %vm395_vm0, %v6307_v9, %v384_v11  ;;  %v6309_v27 = vld [vmem:[#allocation28_spill] sm:$0xff] }
  0xd4   :  { %v1284_v60 = vrot.slane %v1276_v12, %v5127_v33  ;;  %v1342_v63 = vrot.slane %v1334_v30, %v5127_v33  ;;  %v1349_v37 = vrot.slane %v1335_v52, %v5127_v33  ;;  %v1975_v25 = vcombine.low %v1099_v19, %v5653_v58  ;;  %v356_v6 = vpop.permute.xlu0 %355 }
  0xd5   :  { %v1275_v29 = vcombine.high %v1257_v8, %v5313_v39  ;;  %v1214_v14 = vcombine.low %v5665_v0, %v6308_v32  ;;  %v1983_v4 = vrot.slane %v1969_v23, %v5127_v33  ;;  %v1997_v2 = vrot.slane %v1971_v56, %v5127_v33 }
  0xd6   :  { %v1470_v34 = vunpack.i.h.s16 %v1272_v38  ;;  %v1472_v28 = vunpack.i.h.s16 %v1274_v10  ;;  %v1215_v13 = vcombine.high %v5665_v0, %v6308_v32  ;;  %v1357_v49 = vcombine.low %v1342_v63, %v1349_v37 }
  0xd7   :  { %v1474_v12 = vunpack.i.h.s16 %v1273_v40  ;;  %v1217_v39 = vcombine.high %v5681_v42, %v6309_v27  ;;  %v1358_v8 = vcombine.high %v1342_v63, %v1349_v37  ;;  %v2011_v11 = vrot.slane %v4323_v45, %v5127_v33 }
  0xd8   :  { %v1366_v52 = vrot.slane %v1357_v49, %v5127_v33  ;;  %v2025_v19 = vrot.slane %v1975_v25, %v5127_v33  ;;  %v2034_v23 = vcombine.high %v1983_v4, %v1997_v2  ;;  %v5704_v56 = vcombine.high %v5644_v48, %v1214_v14 }
  0xd9   :  { %v5707_v9 = vrot.slane %v1358_v8, %v5127_v33  ;;  %v518_v26 = vsel %vm395_vm0, %v6310_v62, %v356_v6  ;;  %v2033_v30 = vcombine.low %v1983_v4, %v1997_v2  ;;  %v5711_v5 = vpack.i.b16 %v1274_v10, %v1470_v34 }
  0xda   :  { %v5713_v63 = vpack.i.b16 %v1273_v40, %v1472_v28  ;;  %v1388_v37 = vcombine.low %v1366_v52, %v5319_v61  ;;  %v2037_v45 = vcombine.high %v2011_v11, %v2025_v19  ;;  %v5716_v49 = vpack.i.b16 %v1275_v29, %v1474_v12 }
  0xdb   :  { %v1390_v25 = vcombine.low %v5707_v9, %v5323_v31  ;;  %v1277_v14 = vcombine.low %v518_v26, %v530_v41  ;;  %v2036_v35 = vcombine.low %v2011_v11, %v2025_v19  ;;  %v2059_v50 = vrot.slane %v2034_v23, %v5127_v33 }
  0xdc   :  { %v1484_v8 = vunpack.i.h.s16 %v1388_v37  ;;  %v2080_v62 = vrot.slane %v2037_v45, %v5127_v33  ;;  %v5722_v4 = vpack.i.b16 %v1272_v38, %v1217_v39  ;;  %v2045_v2 = vrot.slane %v2033_v30, %v5127_v33  ;;  %v6311_v45 = vld [vmem:[#allocation25_spill] sm:$0xff] }
  0xdd   :  { %v1486_v10 = vunpack.i.h.s16 %v1390_v25  ;;  %v1291_v40 = vrot.slane %v1277_v14, %v5127_v33  ;;  %v2066_v29 = vrot.slane %v2036_v35, %v5127_v33  ;;  %v2086_v26 = vcombine.low %v5625_v21, %v5642_v18 }
  0xde   :  { %v2084_v34 = vcombine.low %v2059_v50, %v2080_v62  ;;  %v2085_v28 = vcombine.high %v2059_v50, %v2080_v62  ;;  %v4326_v41 = vcombine.low %v5644_v48, %v5665_v0  ;;  %v1389_v6 = vcombine.high %v1366_v52, %v5319_v61 }
  0xdf   :  { %v1299_v12 = vcombine.low %v1284_v60, %v1291_v40  ;;  %v1300_v38 = vcombine.high %v1284_v60, %v1291_v40  ;;  %v2081_v39 = vcombine.low %v2045_v2, %v2066_v29  ;;  %v2082_v11 = vcombine.high %v2045_v2, %v2066_v29  ;;  %v6312_v29 = vld [vmem:[#allocation24_spill] sm:$0xff] }
  0xe0   :  { %2680 = vmatprep.mubr.bf16.mxu0 %v2084_v34  ;;  %2768 = vmatprep.mubr.bf16.mxu1 %v2085_v28  ;;  %v4327_v30 = vcombine.low %v5681_v42, %v1215_v13  ;;  %v2092_v35 = vcombine.low %v5722_v4, %v5711_v5  ;;  %v5735_v50 = vpack.i.b16 %v1390_v25, %v1484_v8  ;;  %v1488_v8 = vunpack.i.h.s16 %v1389_v6 }
  0xe1   :  { %v5737_v19 = vpack.i.b16 %v1389_v6, %v1486_v10  ;;  %v1308_v23 = vrot.slane %v1299_v12, %v5127_v33  ;;  %v1315_v48 = vrot.slane %v1300_v38, %v5127_v33  ;;  %2681 = vmatmul.mubr.bf16.gmra.mrb[12].mxu0 %v2081_v39  ;;  %2769 = vmatmul.mubr.bf16.gmra.mrb[12].mxu1 %v2082_v11 }
  0xe2   :  { %v2100_v61 = vrot.slane %v2086_v26, %v5127_v33  ;;  %v2114_v0 = vrot.slane %v4326_v41, %v5127_v33  ;;  %v2128_v60 = vrot.slane %v4327_v30, %v5127_v33  ;;  %v2142_v13 = vrot.slane %v2092_v35, %v5127_v33 }
  0xe3   :  { %v1391_v52 = vcombine.high %v5707_v9, %v5323_v31  ;;  %v1333_v25 = vcombine.high %v1315_v48, %v6311_v45  ;;  %v4329_v14 = vcombine.low %v1308_v23, %v1315_v48  ;;  %v1331_v34 = vcombine.high %v1308_v23, %v6312_v29 }
  0xe4   :  { %v2151_v62 = vcombine.high %v2100_v61, %v2114_v0  ;;  %v2154_v10 = vcombine.high %v2128_v60, %v2142_v13  ;;  %v2150_v40 = vcombine.low %v2100_v61, %v2114_v0  ;;  %v2153_v2 = vcombine.low %v2128_v60, %v2142_v13 }
  0xe5   :  { %v4307_v28 = vpack.i.b16 %v1388_v37, %v1333_v25  ;;  %v2203_v26 = vcombine.low %v5713_v63, %v5716_v49  ;;  %v2209_v41 = vcombine.low %v5735_v50, %v5737_v19  ;;  %v2231_v37 = vrot.slane %v4329_v14, %v5127_v33 }
  0xe6   :  { %v2176_v12 = vrot.slane %v2151_v62, %v5127_v33  ;;  %v2197_v31 = vrot.slane %v2154_v10, %v5127_v33  ;;  %v2162_v9 = vrot.slane %v2150_v40, %v5127_v33  ;;  %v2183_v6 = vrot.slane %v2153_v2, %v5127_v33 }
  0xe7   :  { %v4331_v38 = vcombine.high %v6312_v29, %v4307_v28  ;;  %v2207_v39 = vcombine.low %v1331_v34, %v4307_v28  ;;  %v2217_v11 = vrot.slane %v2203_v26, %v5127_v33  ;;  %v2259_v0 = vrot.slane %v2209_v41, %v5127_v33 }
  0xe8   :  { %v2201_v30 = vcombine.low %v2176_v12, %v2197_v31  ;;  %v2202_v35 = vcombine.high %v2176_v12, %v2197_v31  ;;  %v2198_v23 = vcombine.low %v2162_v9, %v2183_v6  ;;  %v2199_v48 = vcombine.high %v2162_v9, %v2183_v6 }
  0xe9   :  { %v2245_v61 = vrot.slane %v2207_v39, %v5127_v33  ;;  %v2268_v60 = vcombine.high %v2217_v11, %v2231_v37  ;;  %v2267_v13 = vcombine.low %v2217_v11, %v2231_v37  ;;  %v2204_v45 = vcombine.high %v5713_v63, %v5716_v49 }
  0xea   :  { %2688 = vmatprep.mubr.bf16.mxu0 %v2201_v30  ;;  %2776 = vmatprep.mubr.bf16.mxu1 %v2202_v35  ;;  %v5764_v25 = vpack.i.b16 %v1391_v52, %v1488_v8  ;;  %v6313_v14 = vrot.slane %v5396_v36, %v5127_v33  ;;  %v2210_v10 = vcombine.high %v5735_v50, %v5737_v19 }
  0xeb   :  { %2689 = vmatmul.mubr.bf16.gmra.mrb[16].mxu0 %v2198_v23  ;;  %2777 = vmatmul.mubr.bf16.gmra.mrb[16].mxu1 %v2199_v48  ;;  %v2271_v40 = vcombine.high %v2245_v61, %v2259_v0  ;;  %v2270_v2 = vcombine.low %v2245_v61, %v2259_v0  ;;  %v2093_v63 = vcombine.high %v5722_v4, %v5711_v5 }
  0xec   :  { %v5770_v62 = vcombine.low %v5435_v46, %v6313_v14  ;;  %v2293_v49 = vrot.slane %v2268_v60, %v5127_v33  ;;  %v2279_v52 = vrot.slane %v2267_v13, %v5127_v33  ;;  %v2327_v36 = vrot.slane %v5764_v25, %v5127_v33 }
  0xed   :  { %v2314_v46 = vrot.slane %v2271_v40, %v5127_v33  ;;  %v2300_v8 = vrot.slane %v2270_v2, %v5127_v33  ;;  %v6314_v50 = vcombine.high %v5400_v15, %v5405_v3  ;;  %v6315_v5 = vcombine.high %v5407_v57, %v5409_v24 }
  0xee   :  { %v6316_v29 = vcombine.low %v5681_v42, %v6309_v27  ;;  %v2335_v28 = vcombine.high %v2327_v36, %v2327_v36  ;;  %v1756_v26 = vrot.slane %v5374_v47, %v5127_v33  ;;  %v2224_v41 = vrot.slane %v2204_v45, %v5127_v33 }
  0xef   :  { %v1770_v19 = vrot.slane %v6314_v50, %v5127_v33  ;;  %v1784_v4 = vrot.slane %v6315_v5, %v5127_v33  ;;  %v2318_v12 = vcombine.low %v2293_v49, %v2314_v46  ;;  %v2319_v31 = vcombine.high %v2293_v49, %v2314_v46 }
  0xf0   :  { %v4328_v34 = vcombine.high %v6316_v29, %v6308_v32  ;;  %v2315_v15 = vcombine.low %v2279_v52, %v2300_v8  ;;  %v2316_v3 = vcombine.high %v2279_v52, %v2300_v8  ;;  %v2149_v9 = vrot.slane %v2093_v63, %v5127_v33  ;;  %v6322_v63 = vld [vmem:[#allocation29_spill] sm:$0xff] }
  0xf1   :  { %v2356_v57 = vrot.slane %v2335_v28, %v5127_v33  ;;  %v1801_v24 = vcombine.low %v1756_v26, %v1770_v19  ;;  %v1804_v6 = vcombine.low %v1784_v4, %v5329_v53  ;;  %2696 = vmatprep.mubr.bf16.mxu0 %v2318_v12  ;;  %2784 = vmatprep.mubr.bf16.mxu1 %v2319_v31  ;;  %v6324_v8 = vmov 0.0  }
  0xf2   :  { %v2252_v42 = vrot.slane %v4331_v38, %v5127_v33  ;;  %v2266_v32 = vrot.slane %v2210_v10, %v5127_v33  ;;  %v2269_v47 = vcombine.low %v2224_v41, %v5345_v16  ;;  %v2342_v39 = vrot.slane %v2327_v36, %v5127_v33 }
  0xf3   :  { %v2358_v27 = vcombine.high %v2356_v57, %v2356_v57  ;;  %v1818_v11 = vrot.slane %v1801_v24, %v5127_v33  ;;  %v1839_v37 = vrot.slane %v1804_v6, %v5127_v33  ;;  %2697 = vmatmul.mubr.bf16.gmra.mrb[20].mxu0 %v2315_v15  ;;  %2785 = vmatmul.mubr.bf16.gmra.mrb[20].mxu1 %v2316_v3 }
  0xf4   :  { %v2272_v30 = vcombine.low %v2252_v42, %v2266_v32  ;;  %v6317_v53 = vcombine.high %v5172_v54, %v5534_v17  ;;  %v6318_v38 = vcombine.high %v5475_v43, %v5477_v51  ;;  %2704 = vmatprep.mubr.bf16.mxu0 %v2356_v57  ;;  %v1901_v48 = vrot.slane %v5521_v7, %v5127_v33 }
  0xf5   :  { %2792 = vmatprep.mubr.bf16.mxu1 %v2358_v27  ;;  %v1849_v23 = vcombine.low %v1818_v11, %v1839_v37  ;;  %v1915_v61 = vrot.slane %v5524_v1, %v5127_v33  ;;  %v2286_v0 = vrot.slane %v2269_v47, %v5127_v33  ;;  %v6319_v17 = vcombine.high %v5580_v22, %v5590_v55 }
  0xf6   :  { %v1873_v35 = vrot.slane %v6317_v53, %v5127_v33  ;;  %v1887_v16 = vrot.slane %v6318_v38, %v5127_v33  ;;  %v2307_v60 = vrot.slane %v2272_v30, %v5127_v33  ;;  %v6320_v13 = vcombine.high %v5596_v59, %v5598_v44 }
  0xf7   :  { %v1990_v43 = vrot.slane %v6319_v17, %v5127_v33  ;;  %v1921_v51 = vcombine.low %v1901_v48, %v1915_v61  ;;  %v6321_v7 = vcombine.high %v5227_v20, %v5653_v58  ;;  %v2121_v14 = vrot.slane %v5704_v56, %v5127_v33 }
  0xf8   :  { %v1918_v54 = vcombine.low %v1873_v35, %v1887_v16  ;;  %v2004_v45 = vrot.slane %v6320_v13, %v5127_v33  ;;  %v2135_v10 = vrot.slane %v4328_v34, %v5127_v33  ;;  %v2317_v40 = vcombine.low %v2286_v0, %v2307_v60  ;;  %v5875_v34 = vld [vmem:[%s6222_s2] ss:$0 sm:$0xff] }
  0xf9   :  { %v2032_v1 = vrot.slane %v6321_v7, %v5127_v33  ;;  %v1956_v55 = vrot.slane %v1921_v51, %v5127_v33  ;;  %v6323_v59 = vcombine.high %v5625_v21, %v5642_v18  ;;  %v2357_v58 = vcombine.high %v2342_v39, %v2342_v39 }
  0xfa   :  { %v1935_v22 = vrot.slane %v1918_v54, %v5127_v33  ;;  %v2035_v2 = vcombine.low %v1990_v43, %v2004_v45  ;;  %v2155_v20 = vcombine.low %v2135_v10, %v2149_v9  ;;  %v2320_v5 = vcombine.high %v5764_v25, %v5764_v25 }
  0xfb   :  { %v2038_v49 = vcombine.low %v6322_v63, %v2032_v1  ;;  %v2107_v44 = vrot.slane %v6323_v59, %v5127_v33  ;;  %2705 = vmatmul.mubr.bf16.gmra.mrb[24].mxu0 %v2342_v39  ;;  %2793 = vmatmul.mubr.bf16.gmra.mrb[24].mxu1 %v2357_v58 }
  0xfc   :  { %v1966_v52 = vcombine.low %v1935_v22, %v1956_v55  ;;  %v2052_v56 = vrot.slane %v2035_v2, %v5127_v33  ;;  %4550 = vmatprep.mubr.msk.bf16.mxu0 %vm4666_vm1, %v6324_v8  ;;  %4566 = vmatprep.mubr.msk.bf16.mxu1 %vm4666_vm1, %v6324_v8  ;;  %v2190_v21 = vrot.slane %v2155_v20, %v5127_v33 }
  0xfd   :  { %v2073_v36 = vrot.slane %v2038_v49, %v5127_v33  ;;  %v2152_v46 = vcombine.low %v2107_v44, %v2121_v14 }
  0xff   :  { %v2083_v50 = vcombine.low %v2052_v56, %v2073_v36  ;;  %v2169_v18 = vrot.slane %v2152_v46, %v5127_v33 }
 0x101   :  { %v2200_v19 = vcombine.low %v2169_v18, %v2190_v21 }
 0x103   :  { %4551 = vmatmul.mubr.msk.bf16.vlgmr.msra.gmra.mrb[28].mxu0 %vm395_vm0, %v5770_v62  ;;  %4567 = vmatmul.mubr.msk.bf16.vlgmr.msra.gmra.mrb[28].mxu1 %vm395_vm0, %v2200_v19  ;;  %v2334_v62 = vrot.slane %v2320_v5, %v5127_v33 }
 0x104   :  { %4554 = vmatprep.mubr.msk.bf16.mxu0 %vm4666_vm1, %v6324_v8  ;;  %4570 = vmatprep.mubr.msk.bf16.mxu1 %vm4666_vm1, %v6324_v8 }
 0x105   :  { %v2349_v4 = vrot.slane %v2334_v62, %v5127_v33 }
 0x10b   :  { %4555 = vmatmul.mubr.msk.bf16.gmra.mrb[32].mxu0 %vm395_vm0, %v1849_v23  ;;  %4571 = vmatmul.mubr.msk.bf16.gmra.mrb[32].mxu1 %vm395_vm0, %v2317_v40 }
 0x10c   :  { %4558 = vmatprep.mubr.msk.bf16.mxu0 %vm4666_vm1, %v6324_v8  ;;  %4574 = vmatprep.mubr.msk.bf16.mxu1 %vm4666_vm1, %v6324_v8 }
 0x113   :  { %4559 = vmatmul.mubr.msk.bf16.gmra.mrb[36].mxu0 %vm395_vm0, %v1966_v52  ;;  %4575 = vmatmul.mubr.msk.bf16.gmra.mrb[36].mxu1 %vm395_vm0, %v2349_v4 }
 0x114   :  { %4562 = vmatprep.mubr.msk.bf16.mxu0 %vm4666_vm1, %v6324_v8 }
 0x11b   :  { %4563 = vmatmul.mubr.msk.bf16.gmra.mrb[40].mxu0 %vm395_vm0, %v2083_v50 }
 0x180   :  { %v4431_v25 = vpop.f32.mrb[0].mxu0  ;;  %v4489_v29 = vpop.f32.mrb[0].mxu1 }
 0x181   :  { %v4432_v28 = vpop.f32.mrb[1].mxu0  ;;  %v4490_v26 = vpop.f32.mrb[1].mxu1 }
 0x182   :  { %v4433_v41 = vadd.f32 %v4432_v28, %v4431_v25  ;;  %v4491_v12 = vadd.f32 %v4490_v26, %v4489_v29  ;;  %v4434_v31 = vpop.f32.mrb[2].mxu0  ;;  %v4492_v15 = vpop.f32.mrb[2].mxu1 }
 0x183   :  { %v4435_v3 = vpop.f32.mrb[3].mxu0  ;;  %v4493_v9 = vpop.f32.mrb[3].mxu1 }
 0x184   :  { %v2659_v57 = vadd.f32 %v4433_v41, %v5875_v34  ;;  %v4436_v24 = vadd.f32 %v4435_v3, %v4434_v31  ;;  %v4494_v6 = vadd.f32 %v4493_v9, %v4492_v15 }
 0x186   :  { %v2662_v42 = vadd.f32 %v4436_v24, %v5875_v34  ;;  %v5879_v32 = vadd.f32 %v4491_v12, %v2659_v57 }
 0x188   :  { %v5881_v47 = vadd.f32 %v4494_v6, %v2662_v42 }
 0x18e   :  { %v4437_v27 = vpop.f32.mrb[4].mxu0  ;;  %v4495_v39 = vpop.f32.mrb[4].mxu1 }
 0x18f   :  { %v4438_v11 = vpop.f32.mrb[5].mxu0  ;;  %v4496_v37 = vpop.f32.mrb[5].mxu1 }
 0x190   :  { %v4439_v30 = vadd.f32 %v4438_v11, %v4437_v27  ;;  %v4497_v53 = vadd.f32 %v4496_v37, %v4495_v39  ;;  %v4440_v35 = vpop.f32.mrb[6].mxu0  ;;  %v4498_v38 = vpop.f32.mrb[6].mxu1 }
 0x191   :  { %v4441_v16 = vpop.f32.mrb[7].mxu0  ;;  %v4499_v23 = vpop.f32.mrb[7].mxu1 }
 0x192   :  { %v2667_v48 = vadd.f32 %v4439_v30, %v5875_v34  ;;  %v4442_v61 = vadd.f32 %v4441_v16, %v4440_v35  ;;  %v4500_v0 = vadd.f32 %v4499_v23, %v4498_v38 }
 0x194   :  { %v2670_v60 = vadd.f32 %v4442_v61, %v5875_v34  ;;  %v5885_v54 = vadd.f32 %v4497_v53, %v2667_v48 }
 0x196   :  { %v5887_v17 = vadd.f32 %v4500_v0, %v2670_v60 }
 0x1a1   :  { %v4443_v43 = vpop.f32.mrb[8].mxu0  ;;  %v4501_v51 = vpop.f32.mrb[8].mxu1 }
 0x1a2   :  { %v4444_v13 = vpop.f32.mrb[9].mxu0  ;;  %v4502_v45 = vpop.f32.mrb[9].mxu1 }
 0x1a3   :  { %v4445_v7 = vadd.f32 %v4444_v13, %v4443_v43  ;;  %v4503_v1 = vadd.f32 %v4502_v45, %v4501_v51  ;;  %v4446_v14 = vpop.f32.mrb[10].mxu0  ;;  %v4504_v10 = vpop.f32.mrb[10].mxu1 }
 0x1a4   :  { %v4447_v40 = vpop.f32.mrb[11].mxu0  ;;  %v4505_v22 = vpop.f32.mrb[11].mxu1 }
 0x1a5   :  { %v2675_v55 = vadd.f32 %v4445_v7, %v5875_v34  ;;  %v4448_v2 = vadd.f32 %v4447_v40, %v4446_v14  ;;  %v4506_v63 = vadd.f32 %v4505_v22, %v4504_v10 }
 0x1a7   :  { %v2678_v49 = vadd.f32 %v4448_v2, %v5875_v34  ;;  %v5891_v59 = vadd.f32 %v4503_v1, %v2675_v55 }
 0x1a9   :  { %v5893_v44 = vadd.f32 %v4506_v63, %v2678_v49 }
 0x1b4   :  { %v4449_v20 = vpop.f32.mrb[12].mxu0  ;;  %v4507_v58 = vpop.f32.mrb[12].mxu1 }
 0x1b5   :  { %v4450_v52 = vpop.f32.mrb[13].mxu0  ;;  %v4508_v36 = vpop.f32.mrb[13].mxu1 }
 0x1b6   :  { %v4451_v56 = vadd.f32 %v4450_v52, %v4449_v20  ;;  %v4452_v46 = vpop.f32.mrb[14].mxu0  ;;  %v4509_v8 = vadd.f32 %v4508_v36, %v4507_v58  ;;  %v4510_v50 = vpop.f32.mrb[14].mxu1 }
 0x1b7   :  { %v4453_v21 = vpop.f32.mrb[15].mxu0  ;;  %v4511_v5 = vpop.f32.mrb[15].mxu1 }
 0x1b8   :  { %v2683_v18 = vadd.f32 %v4451_v56, %v5875_v34  ;;  %v4454_v19 = vadd.f32 %v4453_v21, %v4452_v46  ;;  %v4512_v62 = vadd.f32 %v4511_v5, %v4510_v50 }
 0x1ba   :  { %v2686_v4 = vadd.f32 %v4454_v19, %v5875_v34  ;;  %v5897_v25 = vadd.f32 %v4509_v8, %v2683_v18 }
 0x1bc   :  { %v5899_v29 = vadd.f32 %v4512_v62, %v2686_v4 }
 0x1be   :  { %v4455_v28 = vpop.f32.mrb[16].mxu0  ;;  %v4513_v26 = vpop.f32.mrb[16].mxu1 }
 0x1bf   :  { %v4456_v41 = vpop.f32.mrb[17].mxu0  ;;  %v4514_v12 = vpop.f32.mrb[17].mxu1 }
 0x1c0   :  { %v4457_v31 = vadd.f32 %v4456_v41, %v4455_v28  ;;  %v4515_v15 = vadd.f32 %v4514_v12, %v4513_v26  ;;  %v4458_v3 = vpop.f32.mrb[18].mxu0  ;;  %v4516_v9 = vpop.f32.mrb[18].mxu1 }
 0x1c1   :  { %v4459_v57 = vpop.f32.mrb[19].mxu0  ;;  %v4517_v24 = vpop.f32.mrb[19].mxu1 }
 0x1c2   :  { %v2691_v6 = vadd.f32 %v4457_v31, %v5875_v34  ;;  %v4460_v42 = vadd.f32 %v4459_v57, %v4458_v3  ;;  %v4518_v27 = vadd.f32 %v4517_v24, %v4516_v9 }
 0x1c4   :  { %v2694_v39 = vadd.f32 %v4460_v42, %v5875_v34  ;;  %v2779_v11 = vadd.f32 %v4515_v15, %v2691_v6 }
 0x1c6   :  { %v4461_v37 = vpop.f32.mrb[20].mxu0  ;;  %v4519_v30 = vpop.f32.mrb[20].mxu1  ;;  %v2782_v53 = vadd.f32 %v4518_v27, %v2694_v39 }
 0x1c7   :  { %v4462_v35 = vpop.f32.mrb[21].mxu0  ;;  %v4520_v38 = vpop.f32.mrb[21].mxu1 }
 0x1c8   :  { %v4463_v16 = vadd.f32 %v4462_v35, %v4461_v37  ;;  %v4521_v23 = vadd.f32 %v4520_v38, %v4519_v30  ;;  %v4464_v48 = vpop.f32.mrb[22].mxu0  ;;  %v4522_v61 = vpop.f32.mrb[22].mxu1 }
 0x1c9   :  { %v4465_v0 = vpop.f32.mrb[23].mxu0  ;;  %v4523_v60 = vpop.f32.mrb[23].mxu1 }
 0x1ca   :  { %v2699_v43 = vadd.f32 %v4463_v16, %v5875_v34  ;;  %v4466_v51 = vadd.f32 %v4465_v0, %v4464_v48  ;;  %v4524_v13 = vadd.f32 %v4523_v60, %v4522_v61 }
 0x1cc   :  { %v2702_v45 = vadd.f32 %v4466_v51, %v5875_v34  ;;  %v5905_v7 = vadd.f32 %v4521_v23, %v2699_v43 }
 0x1ce   :  { %v4467_v1 = vpop.f32.mrb[24].mxu0  ;;  %v4525_v14 = vpop.f32.mrb[24].mxu1  ;;  %v5907_v10 = vadd.f32 %v4524_v13, %v2702_v45 }
 0x1cf   :  { %v4468_v40 = vpop.f32.mrb[25].mxu0  ;;  %v4526_v22 = vpop.f32.mrb[25].mxu1 }
 0x1d0   :  { %v4469_v55 = vadd.f32 %v4468_v40, %v4467_v1  ;;  %v4527_v2 = vadd.f32 %v4526_v22, %v4525_v14  ;;  %v4470_v63 = vpop.f32.mrb[26].mxu0  ;;  %v4528_v49 = vpop.f32.mrb[26].mxu1 }
 0x1d1   :  { %v4471_v20 = vpop.f32.mrb[27].mxu0  ;;  %v4529_v58 = vpop.f32.mrb[27].mxu1 }
 0x1d2   :  { %v2707_v52 = vadd.f32 %v4469_v55, %v5875_v34 }
 0x1d4   :  { %v5910_v56 = vadd.f32 %v4527_v2, %v2707_v52 }
 0x1d6   :  { %v2834_v36 = vpop.f32.mrb[28].mxu0  ;;  %v2866_v46 = vpop.f32.mrb[28].mxu1 }
 0x1d7   :  { %v2835_v8 = vadd.f32 %v2834_v36, %v5879_v32  ;;  %v2867_v50 = vadd.f32 %v2866_v46, %v2779_v11  ;;  %v4552_v21 = vpop.f32.mrb[29].mxu0  ;;  %v4568_v18 = vpop.f32.mrb[29].mxu1 }
 0x1d8   :  { %v2837_v19 = vpop.f32.mrb[30].mxu0  ;;  %v2869_v5 = vpop.f32.mrb[30].mxu1 }
 0x1d9   :  { %v2888_v62 = vmax.f32 %v2835_v8, 0.0  ;;  %v2896_v4 = vmax.f32 %v2867_v50, 0.0  ;;  %v2838_v28 = vadd.f32 %v2837_v19, %v5881_v47  ;;  %v2870_v26 = vadd.f32 %v2869_v5, %v2782_v53  ;;  %v4553_v41 = vpop.f32.mrb[31].mxu0  ;;  %v4569_v12 = vpop.f32.mrb[31].mxu1 }
 0x1db   :  { %v2914_v31 = vcombine.high %v2888_v62, %v2888_v62  ;;  %v2921_v34 = vrot.slane %v2888_v62, %v5127_v33  ;;  %v3306_v15 = vcombine.high %v2896_v4, %v2896_v4  ;;  %v3313_v3 = vrot.slane %v2896_v4, %v5127_v33 }
 0x1dc   :  { %v2889_v9 = vmax.f32 %v2838_v28, 0.0  ;;  %v5916_v32 = vmax.f32 %v2870_v26, 0.0 }
 0x1dd   :  { %v2928_v57 = vrot.slane %v2914_v31, %v5127_v33  ;;  %v2929_v24 = vcombine.high %v2921_v34, %v2921_v34  ;;  %v2937_v6 = vrot.slane %v2921_v34, %v5127_v33  ;;  %v3320_v42 = vrot.slane %v3306_v15, %v5127_v33 }
 0x1de   :  { %v3321_v47 = vcombine.high %v3313_v3, %v3313_v3  ;;  %v5922_v27 = vrot.slane %v3313_v3, %v5127_v33  ;;  %v2963_v39 = vcombine.high %v2889_v9, %v2889_v9  ;;  %v2970_v11 = vrot.slane %v2889_v9, %v5127_v33  ;;  %v5925_v37 = vpop.f32.mrb[32].mxu0  ;;  %v5927_v30 = vpop.f32.mrb[32].mxu1 }
 0x1df   :  { %v2930_v53 = vcombine.high %v2928_v57, %v2928_v57  ;;  %v2944_v35 = vrot.slane %v2928_v57, %v5127_v33  ;;  %v2951_v38 = vrot.slane %v2929_v24, %v5127_v33  ;;  %v3322_v16 = vcombine.high %v3320_v42, %v3320_v42  ;;  %v4556_v23 = vpop.f32.mrb[33].mxu0  ;;  %v4572_v48 = vpop.f32.mrb[33].mxu1 }
 0x1e0   :  { %v3336_v61 = vrot.slane %v3320_v42, %v5127_v33  ;;  %v3343_v0 = vrot.slane %v3321_v47, %v5127_v33  ;;  %v3351_v60 = vcombine.high %v5922_v27, %v5922_v27  ;;  %v2977_v43 = vrot.slane %v2963_v39, %v5127_v33  ;;  %v5936_v51 = vpop.f32.mrb[34].mxu0  ;;  %v5938_v13 = vpop.f32.mrb[34].mxu1 }
 0x1e1   :  { %v2958_v45 = vrot.slane %v2930_v53, %v5127_v33  ;;  %v3524_v1 = vcombine.low %v2937_v6, %v2951_v38  ;;  %v4375_v14 = vcombine.high %v2937_v6, %v2951_v38  ;;  %v5942_v40 = vrot.slane %v3322_v16, %v5127_v33  ;;  %v4557_v22 = vpop.f32.mrb[35].mxu0  ;;  %v4573_v55 = vpop.f32.mrb[35].mxu1 }
 0x1e2   :  { %v3352_v2 = vcombine.high %v3336_v61, %v3336_v61  ;;  %v3353_v63 = vcombine.high %v3343_v0, %v3343_v0  ;;  %v3930_v49 = vcombine.low %v3343_v0, %v3351_v60  ;;  %v2978_v20 = vcombine.high %v2970_v11, %v2970_v11 }
 0x1e3   :  { %v3526_v58 = vcombine.low %v2944_v35, %v2958_v45  ;;  %v4376_v52 = vcombine.high %v2944_v35, %v2958_v45  ;;  %v3534_v36 = vrot.slane %v3524_v1, %v5127_v33  ;;  %v3541_v46 = vrot.slane %v4375_v14, %v5127_v33 }
 0x1e4   :  { %v3931_v8 = vcombine.low %v3353_v63, %v3336_v61  ;;  %v5947_v50 = vcombine.low %v5942_v40, %v3352_v2  ;;  %v3940_v21 = vrot.slane %v3930_v49, %v5127_v33  ;;  %v2979_v18 = vcombine.high %v2977_v43, %v2977_v43 }
 0x1e5   :  { %v3548_v19 = vrot.slane %v3526_v58, %v5127_v33  ;;  %v3555_v5 = vrot.slane %v4376_v52, %v5127_v33  ;;  %v3556_v62 = vcombine.low %v3534_v36, %v3541_v46  ;;  %v2986_v4 = vrot.slane %v2970_v11, %v5127_v33 }
 0x1e6   :  { %v3947_v28 = vrot.slane %v3931_v8, %v5127_v33  ;;  %v2993_v26 = vrot.slane %v2977_v43, %v5127_v33  ;;  %v3000_v41 = vrot.slane %v2978_v20, %v5127_v33  ;;  %v3007_v12 = vrot.slane %v2979_v18, %v5127_v33  ;;  %v5957_v31 = vpop.f32.mrb[36].mxu0  ;;  %v5959_v34 = vpop.f32.mrb[36].mxu1 }
 0x1e7   :  { %v3557_v15 = vcombine.low %v3548_v19, %v3555_v5  ;;  %v3564_v3 = vrot.slane %v3556_v62, %v5127_v33  ;;  %v3354_v9 = vcombine.high %v5942_v40, %v5942_v40  ;;  %v3355_v57 = vcombine.high %v5916_v32, %v5916_v32  ;;  %v4560_v24 = vpop.f32.mrb[37].mxu0  ;;  %v4576_v6 = vpop.f32.mrb[37].mxu1 }
 0x1e8   :  { %v5966_v42 = vcombine.low %v3940_v21, %v3947_v28  ;;  %v3573_v47 = vcombine.low %v2986_v4, %v3000_v41  ;;  %v4377_v39 = vcombine.high %v2986_v4, %v3000_v41  ;;  %v3575_v11 = vcombine.low %v2993_v26, %v3007_v12  ;;  %v5968_v53 = vpop.f32.mrb[38].mxu0  ;;  %v2885_v35 = vpop.f32.mrb[38].mxu1 }
 0x1e9   :  { %v3571_v38 = vrot.slane %v3557_v15, %v5127_v33  ;;  %v4378_v16 = vcombine.high %v2993_v26, %v3007_v12  ;;  %v3362_v23 = vrot.slane %v5916_v32, %v5127_v33  ;;  %v3369_v48 = vrot.slane %v3355_v57, %v5127_v33  ;;  %v4561_v61 = vpop.f32.mrb[39].mxu0  ;;  %v4577_v0 = vpop.f32.mrb[39].mxu1 }
 0x1ea   :  { %v3970_v60 = vrot.slane %v5966_v42, %v5127_v33  ;;  %v3583_v43 = vrot.slane %v3573_v47, %v5127_v33  ;;  %v3590_v45 = vrot.slane %v4377_v39, %v5127_v33  ;;  %v3597_v1 = vrot.slane %v3575_v11, %v5127_v33 }
 0x1eb   :  { %v3572_v14 = vcombine.low %v3564_v3, %v3571_v38  ;;  %v3604_v40 = vrot.slane %v4378_v16, %v5127_v33  ;;  %v3370_v22 = vcombine.high %v3362_v23, %v3362_v23  ;;  %v3371_v55 = vcombine.high %v3369_v48, %v3369_v48 }
 0x1ec   :  { %v3605_v2 = vcombine.low %v3583_v43, %v3590_v45  ;;  %v3378_v32 = vrot.slane %v3362_v23, %v5127_v33  ;;  %v3385_v63 = vrot.slane %v3369_v48, %v5127_v33  ;;  %v3954_v49 = vrot.slane %v5947_v50, %v5127_v33 }
 0x1ed   :  { %v4401_v20 = vpack.c.bf16 %v3572_v14, %v3572_v14  ;;  %v3606_v58 = vcombine.low %v3597_v1, %v3604_v40  ;;  %v3392_v52 = vrot.slane %v3370_v22, %v5127_v33  ;;  %v3399_v36 = vrot.slane %v3371_v55, %v5127_v33 }
 0x1ee   :  { %v3613_v46 = vrot.slane %v3605_v2, %v5127_v33  ;;  %v3400_v8 = vcombine.high %v3378_v32, %v3378_v32  ;;  %v3401_v21 = vcombine.high %v3385_v63, %v3385_v63  ;;  %v3933_v18 = vcombine.low %v3354_v9, %v3378_v32  ;;  %v5987_v19 = vpop.f32.mrb[40].mxu0 }
 0x1ef   :  { %4213 = vst.msk [vmem:[%s6223_s3] sm:$0xf] %vm4212_vm2, %v4401_v20  ;;  %v3620_v50 = vrot.slane %v3606_v58, %v5127_v33  ;;  %v3402_v5 = vcombine.high %v3392_v52, %v3392_v52  ;;  %v2843_v62 = vadd.f32 %v5925_v37, %v5885_v54  ;;  %v2875_v4 = vadd.f32 %v5927_v30, %v5905_v7  ;;  %v4564_v28 = vpop.f32.mrb[41].mxu0 }
 0x1f0   :  { %v3961_v26 = vrot.slane %v3933_v18, %v5127_v33  ;;  %v3979_v41 = vcombine.low %v3392_v52, %v3400_v8  ;;  %v3981_v12 = vcombine.low %v3399_v36, %v3401_v21  ;;  %v3403_v15 = vcombine.high %v3399_v36, %v3399_v36  ;;  %v5999_v3 = vpop.f32.mrb[42].mxu0 }
 0x1f1   :  { %v3621_v9 = vcombine.low %v3613_v46, %v3620_v50  ;;  %v3980_v57 = vcombine.low %v3402_v5, %v3385_v63  ;;  %v2890_v24 = vmax.f32 %v2843_v62, 0.0  ;;  %v2898_v6 = vmax.f32 %v2875_v4, 0.0  ;;  %v4565_v42 = vpop.f32.mrb[43].mxu0 }
 0x1f2   :  { %v3963_v47 = vcombine.low %v3954_v49, %v3961_v26  ;;  %v3989_v39 = vrot.slane %v3979_v41, %v5127_v33  ;;  %v4003_v54 = vrot.slane %v3981_v12, %v5127_v33  ;;  %v2846_v7 = vadd.f32 %v5936_v51, %v5887_v17 }
 0x1f3   :  { %v4402_v37 = vpack.c.bf16 %v3621_v9, %v3621_v9  ;;  %v3996_v30 = vrot.slane %v3980_v57, %v5127_v33  ;;  %v3012_v11 = vcombine.high %v2890_v24, %v2890_v24  ;;  %v3019_v35 = vrot.slane %v2890_v24, %v5127_v33 }
 0x1f4   :  { %v3977_v38 = vrot.slane %v3963_v47, %v5127_v33  ;;  %v3404_v16 = vcombine.high %v2898_v6, %v2898_v6  ;;  %v3411_v23 = vrot.slane %v2898_v6, %v5127_v33  ;;  %v2891_v48 = vmax.f32 %v2846_v7, 0.0 }
 0x1f5   :  { %4214 = vst.msk [vmem:[%s6223_s3 + $0x4] sm:$0xf] %vm4212_vm2, %v4402_v37  ;;  %v4011_v61 = vcombine.low %v3989_v39, %v3996_v30  ;;  %v3026_v17 = vrot.slane %v3012_v11, %v5127_v33  ;;  %v3027_v51 = vcombine.high %v3019_v35, %v3019_v35  ;;  %v3035_v0 = vrot.slane %v3019_v35, %v5127_v33 }
 0x1f6   :  { %v3978_v43 = vcombine.low %v3970_v60, %v3977_v38  ;;  %v3418_v45 = vrot.slane %v3404_v16, %v5127_v33  ;;  %v3419_v1 = vcombine.high %v3411_v23, %v3411_v23  ;;  %v3427_v14 = vrot.slane %v3411_v23, %v5127_v33 }
 0x1f7   :  { %v4019_v40 = vrot.slane %v4011_v61, %v5127_v33  ;;  %v3028_v22 = vcombine.high %v3026_v17, %v3026_v17  ;;  %v3042_v55 = vrot.slane %v3026_v17, %v5127_v33  ;;  %v3049_v2 = vrot.slane %v3027_v51, %v5127_v33 }
 0x1f8   :  { %v4410_v32 = vpack.c.bf16 %v3978_v43, %v3978_v43  ;;  %v3420_v63 = vcombine.high %v3418_v45, %v3418_v45  ;;  %v3434_v49 = vrot.slane %v3418_v45, %v5127_v33  ;;  %v3441_v20 = vrot.slane %v3419_v1, %v5127_v33 }
 0x1f9   :  { %v3056_v60 = vrot.slane %v3028_v22, %v5127_v33  ;;  %v3622_v58 = vcombine.low %v3035_v0, %v3049_v2  ;;  %v4379_v52 = vcombine.high %v3035_v0, %v3049_v2  ;;  %v3449_v36 = vcombine.high %v3427_v14, %v3427_v14 }
 0x1fa   :  { %4227 = vst.msk [vmem:[%s6223_s3 + $0x24] sm:$0xf] %vm4212_vm2, %v4410_v32  ;;  %v3448_v46 = vrot.slane %v3420_v63, %v5127_v33  ;;  %v3450_v8 = vcombine.high %v3434_v49, %v3434_v49  ;;  %v3451_v21 = vcombine.high %v3441_v20, %v3441_v20  ;;  %v3982_v18 = vcombine.low %v3403_v15, %v3427_v14 }
 0x1fb   :  { %v3624_v50 = vcombine.low %v3042_v55, %v3056_v60  ;;  %v4380_v5 = vcombine.high %v3042_v55, %v3056_v60  ;;  %v3632_v62 = vrot.slane %v3622_v58, %v5127_v33  ;;  %v3639_v4 = vrot.slane %v4379_v52, %v5127_v33 }
 0x1fc   :  { %v4010_v28 = vrot.slane %v3982_v18, %v5127_v33  ;;  %v4028_v26 = vcombine.low %v3441_v20, %v3449_v36  ;;  %v4029_v41 = vcombine.low %v3451_v21, %v3434_v49  ;;  %v6031_v12 = vcombine.low %v3448_v46, %v3450_v8 }
 0x1fd   :  { %v3646_v9 = vrot.slane %v3624_v50, %v5127_v33  ;;  %v3653_v57 = vrot.slane %v4380_v5, %v5127_v33  ;;  %v3654_v24 = vcombine.low %v3632_v62, %v3639_v4  ;;  %v3061_v6 = vcombine.high %v2891_v48, %v2891_v48 }
 0x1fe   :  { %v4012_v42 = vcombine.low %v4003_v54, %v4010_v28  ;;  %v4038_v15 = vrot.slane %v4028_v26, %v5127_v33  ;;  %v4045_v47 = vrot.slane %v4029_v41, %v5127_v33  ;;  %v3068_v39 = vrot.slane %v2891_v48, %v5127_v33 }
 0x1ff   :  { %v3655_v7 = vcombine.low %v3646_v9, %v3653_v57  ;;  %v3662_v37 = vrot.slane %v3654_v24, %v5127_v33  ;;  %v3075_v30 = vrot.slane %v3061_v6, %v5127_v33  ;;  %v2878_v11 = vadd.f32 %v5938_v13, %v5907_v10 }
 0x200   :  { %v4026_v35 = vrot.slane %v4012_v42, %v5127_v33  ;;  %v6043_v38 = vcombine.low %v4038_v15, %v4045_v47  ;;  %v3076_v16 = vcombine.high %v3068_v39, %v3068_v39  ;;  %v3084_v54 = vrot.slane %v3068_v39, %v5127_v33 }
 0x201   :  { %v3669_v23 = vrot.slane %v3655_v7, %v5127_v33  ;;  %v3077_v61 = vcombine.high %v3075_v30, %v3075_v30  ;;  %v3091_v48 = vrot.slane %v3075_v30, %v5127_v33  ;;  %v2899_v17 = vmax.f32 %v2878_v11, 0.0 }
 0x202   :  { %v4027_v51 = vcombine.low %v4019_v40, %v4026_v35  ;;  %v4068_v0 = vrot.slane %v6043_v38, %v5127_v33  ;;  %v3098_v43 = vrot.slane %v3076_v16, %v5127_v33  ;;  %v3452_v10 = vcombine.high %v3448_v46, %v3448_v46 }
 0x203   :  { %v3670_v13 = vcombine.low %v3662_v37, %v3669_v23  ;;  %v3105_v45 = vrot.slane %v3077_v61, %v5127_v33  ;;  %v3453_v1 = vcombine.high %v2899_v17, %v2899_v17  ;;  %v3460_v14 = vrot.slane %v2899_v17, %v5127_v33 }
 0x204   :  { %v4411_v22 = vpack.c.bf16 %v4027_v51, %v4027_v51  ;;  %v3671_v55 = vcombine.low %v3084_v54, %v3098_v43  ;;  %v4381_v2 = vcombine.high %v3084_v54, %v3098_v43  ;;  %v4052_v32 = vrot.slane %v6031_v12, %v5127_v33 }
 0x205   :  { %v4403_v63 = vpack.c.bf16 %v3670_v13, %v3670_v13  ;;  %v3673_v40 = vcombine.low %v3091_v48, %v3105_v45  ;;  %v4382_v49 = vcombine.high %v3091_v48, %v3105_v45  ;;  %v3467_v20 = vrot.slane %v3453_v1, %v5127_v33 }
 0x206   :  { %4228 = vst.msk [vmem:[%s6223_s3 + $0x28] sm:$0xf] %vm4212_vm2, %v4411_v22  ;;  %v3681_v60 = vrot.slane %v3671_v55, %v5127_v33  ;;  %v3688_v58 = vrot.slane %v4381_v2, %v5127_v33  ;;  %v3468_v52 = vcombine.high %v3460_v14, %v3460_v14  ;;  %v3476_v36 = vrot.slane %v3460_v14, %v5127_v33 }
 0x207   :  { %4215 = vst.msk [vmem:[%s6223_s3 + $0x8] sm:$0xf] %vm4212_vm2, %v4403_v63  ;;  %v3695_v46 = vrot.slane %v3673_v40, %v5127_v33  ;;  %v3702_v8 = vrot.slane %v4382_v49, %v5127_v33  ;;  %v3469_v21 = vcombine.high %v3467_v20, %v3467_v20  ;;  %v3483_v18 = vrot.slane %v3467_v20, %v5127_v33 }
 0x208   :  { %v3703_v50 = vcombine.low %v3681_v60, %v3688_v58  ;;  %v3490_v5 = vrot.slane %v3468_v52, %v5127_v33  ;;  %v3498_v62 = vcombine.high %v3476_v36, %v3476_v36  ;;  %v4031_v4 = vcombine.low %v3452_v10, %v3476_v36 }
 0x209   :  { %v3704_v28 = vcombine.low %v3695_v46, %v3702_v8  ;;  %v3497_v26 = vrot.slane %v3469_v21, %v5127_v33  ;;  %v3499_v41 = vcombine.high %v3483_v18, %v3483_v18  ;;  %v2851_v12 = vadd.f32 %v5957_v31, %v5891_v59 }
 0x20a   :  { %v3711_v9 = vrot.slane %v3703_v50, %v5127_v33  ;;  %v3500_v57 = vcombine.high %v3490_v5, %v3490_v5  ;;  %v4059_v24 = vrot.slane %v4031_v4, %v5127_v33  ;;  %v4077_v6 = vcombine.low %v3490_v5, %v3498_v62 }
 0x20b   :  { %v3718_v42 = vrot.slane %v3704_v28, %v5127_v33  ;;  %v4079_v15 = vcombine.low %v3497_v26, %v3499_v41  ;;  %v2892_v47 = vmax.f32 %v2851_v12, 0.0  ;;  %v2883_v39 = vadd.f32 %v5959_v34, %v5910_v56 }
 0x20c   :  { %v4061_v7 = vcombine.low %v4052_v32, %v4059_v24  ;;  %v4078_v37 = vcombine.low %v3500_v57, %v3483_v18  ;;  %v4087_v30 = vrot.slane %v4077_v6, %v5127_v33  ;;  %v3501_v11 = vcombine.high %v3497_v26, %v3497_v26  ;;  %v4231_v6 = vld [vmem:[%s6223_s3 + $0x34] sm:$0x1] }
 0x20d   :  { %v3719_v35 = vcombine.low %v3711_v9, %v3718_v42  ;;  %v3110_v59 = vcombine.high %v2892_v47, %v2892_v47  ;;  %v3117_v31 = vrot.slane %v2892_v47, %v5127_v33  ;;  %v2900_v38 = vmax.f32 %v2883_v39, 0.0 }
 0x20e   :  { %v4075_v16 = vrot.slane %v4061_v7, %v5127_v33  ;;  %v4094_v54 = vrot.slane %v4078_v37, %v5127_v33  ;;  %v4101_v23 = vrot.slane %v4079_v15, %v5127_v33  ;;  %v2854_v56 = vadd.f32 %v5968_v53, %v5893_v44 }
 0x20f   :  { %v4404_v34 = vpack.c.bf16 %v3719_v35, %v3719_v35  ;;  %v3124_v61 = vrot.slane %v3110_v59, %v5127_v33  ;;  %v3125_v48 = vcombine.high %v3117_v31, %v3117_v31  ;;  %v3133_v17 = vrot.slane %v3117_v31, %v5127_v33 }
 0x210   :  { %v4076_v51 = vcombine.low %v4068_v0, %v4075_v16  ;;  %v4109_v43 = vcombine.low %v4087_v30, %v4094_v54  ;;  %v3508_v10 = vrot.slane %v2900_v38, %v5127_v33  ;;  %v2893_v13 = vmax.f32 %v2854_v56, 0.0 }
 0x211   :  { %4216 = vst.msk [vmem:[%s6223_s3 + $0xc] sm:$0xf] %vm4212_vm2, %v4404_v34  ;;  %v3126_v45 = vcombine.high %v3124_v61, %v3124_v61  ;;  %v3140_v1 = vrot.slane %v3124_v61, %v5127_v33  ;;  %v3147_v44 = vrot.slane %v3125_v48, %v5127_v33  ;;  %v2859_v53 = vadd.f32 %v5987_v19, %v5897_v25 }
 0x212   :  { %v4117_v14 = vrot.slane %v4109_v43, %v5127_v33  ;;  %v4412_v0 = vpack.c.bf16 %v4076_v51, %v4076_v51  ;;  %v3509_v22 = vcombine.high %v3508_v10, %v3508_v10  ;;  %v3516_v55 = vrot.slane %v3508_v10, %v5127_v33 }
 0x213   :  { %v3154_v2 = vrot.slane %v3126_v45, %v5127_v33  ;;  %v3720_v32 = vcombine.low %v3133_v17, %v3147_v44  ;;  %v4383_v63 = vcombine.high %v3133_v17, %v3147_v44  ;;  %v3159_v40 = vcombine.high %v2893_v13, %v2893_v13 }
 0x214   :  { %4229 = vst.msk [vmem:[%s6223_s3 + $0x2c] sm:$0xf] %vm4212_vm2, %v4412_v0  ;;  %v3523_v49 = vrot.slane %v3509_v22, %v5127_v33  ;;  %v4080_v20 = vcombine.low %v3501_v11, %v3516_v55  ;;  %v3166_v25 = vrot.slane %v2893_v13, %v5127_v33  ;;  %v2894_v19 = vmax.f32 %v2859_v53, 0.0 }
 0x215   :  { %v3722_v60 = vcombine.low %v3140_v1, %v3154_v2  ;;  %v4384_v58 = vcombine.high %v3140_v1, %v3154_v2  ;;  %v3730_v52 = vrot.slane %v3720_v32, %v5127_v33  ;;  %v3737_v36 = vrot.slane %v4383_v63, %v5127_v33 }
 0x216   :  { %v4108_v46 = vrot.slane %v4080_v20, %v5127_v33  ;;  %v4132_v8 = vrot.slane %v3523_v49, %v5127_v33  ;;  %v3173_v21 = vrot.slane %v3159_v40, %v5127_v33  ;;  %v3174_v18 = vcombine.high %v3166_v25, %v3166_v25 }
 0x217   :  { %v3744_v50 = vrot.slane %v3722_v60, %v5127_v33  ;;  %v3751_v5 = vrot.slane %v4384_v58, %v5127_v33  ;;  %v3752_v62 = vcombine.low %v3730_v52, %v3737_v36  ;;  %v3182_v4 = vrot.slane %v3166_v25, %v5127_v33  ;;  %v4222_v60 = vld [vmem:[%s6223_s3 + $0x18] sm:$0x1] }
 0x218   :  { %v4110_v28 = vcombine.low %v4101_v23, %v4108_v46  ;;  %v4139_v26 = vrot.slane %v4132_v8, %v5127_v33  ;;  %v3175_v41 = vcombine.high %v3173_v21, %v3173_v21  ;;  %v3189_v12 = vrot.slane %v3173_v21, %v5127_v33 }
 0x219   :  { %v3753_v9 = vcombine.low %v3744_v50, %v3751_v5  ;;  %v3760_v57 = vrot.slane %v3752_v62, %v5127_v33  ;;  %v3196_v42 = vrot.slane %v3174_v18, %v5127_v33  ;;  %v3208_v15 = vcombine.high %v2894_v19, %v2894_v19 }
 0x21a   :  { %v4124_v47 = vrot.slane %v4110_v28, %v5127_v33  ;;  %v4414_v39 = vpack.c.bf16 %v4139_v26, %v4139_v26  ;;  %v3203_v7 = vrot.slane %v3175_v41, %v5127_v33  ;;  %v3215_v37 = vrot.slane %v2894_v19, %v5127_v33 }
 0x21b   :  { %v3767_v30 = vrot.slane %v3753_v9, %v5127_v33  ;;  %v3769_v11 = vcombine.low %v3182_v4, %v3196_v42  ;;  %v4385_v35 = vcombine.high %v3182_v4, %v3196_v42  ;;  %v3222_v59 = vrot.slane %v3208_v15, %v5127_v33 }
 0x21c   :  { %v4125_v31 = vcombine.low %v4117_v14, %v4124_v47  ;;  %v4232_v38 = vsel %vm6119_vm6, %v4414_v39, %v4231_v6  ;;  %v3771_v16 = vcombine.low %v3189_v12, %v3203_v7  ;;  %v4386_v54 = vcombine.high %v3189_v12, %v3203_v7 }
 0x21d   :  { %v3768_v23 = vcombine.low %v3760_v57, %v3767_v30  ;;  %4233 = vst [vmem:[%s6223_s3 + $0x34] sm:$0x1] %v4232_v38  ;;  %v3779_v56 = vrot.slane %v3769_v11, %v5127_v33  ;;  %v3786_v34 = vrot.slane %v4385_v35, %v5127_v33  ;;  %v3223_v61 = vcombine.high %v3215_v37, %v3215_v37 }
 0x21e   :  { %v4413_v48 = vpack.c.bf16 %v4125_v31, %v4125_v31  ;;  %v3793_v17 = vrot.slane %v3771_v16, %v5127_v33  ;;  %v3800_v51 = vrot.slane %v4386_v54, %v5127_v33  ;;  %v3224_v43 = vcombine.high %v3222_v59, %v3222_v59 }
 0x21f   :  { %v4405_v10 = vpack.c.bf16 %v3768_v23, %v3768_v23  ;;  %v3801_v13 = vcombine.low %v3779_v56, %v3786_v34  ;;  %v3231_v45 = vrot.slane %v3215_v37, %v5127_v33  ;;  %v3238_v1 = vrot.slane %v3222_v59, %v5127_v33 }
 0x220   :  { %4230 = vst.msk [vmem:[%s6223_s3 + $0x30] sm:$0xf] %vm4212_vm2, %v4413_v48  ;;  %v3802_v44 = vcombine.low %v3793_v17, %v3800_v51  ;;  %v3245_v53 = vrot.slane %v3223_v61, %v5127_v33  ;;  %v2862_v14 = vadd.f32 %v5999_v3, %v5899_v29  ;;  %v3252_v0 = vrot.slane %v3224_v43, %v5127_v33 }
 0x221   :  { %4217 = vst.msk [vmem:[%s6223_s3 + $0x10] sm:$0xf] %vm4212_vm2, %v4405_v10  ;;  %v3253_v22 = vcombine.high %v3231_v45, %v3231_v45  ;;  %v3824_v55 = vrot.slane %v3231_v45, %v5127_v33  ;;  %v3809_v32 = vrot.slane %v3801_v13, %v5127_v33  ;;  %v3254_v40 = vcombine.high %v3238_v1, %v3238_v1 }
 0x222   :  { %v3816_v29 = vrot.slane %v3802_v44, %v5127_v33  ;;  %v3255_v3 = vcombine.high %v3245_v53, %v3245_v53  ;;  %v2895_v63 = vmax.f32 %v2862_v14, 0.0  ;;  %v3256_v21 = vcombine.high %v3252_v0, %v3252_v0 }
 0x223   :  { %v3831_v49 = vrot.slane %v3824_v55, %v5127_v33  ;;  %v3832_v46 = vcombine.low %v3245_v53, %v3253_v22  ;;  %v3834_v62 = vcombine.low %v3252_v0, %v3254_v40 }
 0x224   :  { %v4239_v20 = vld [vmem:[%s6223_s3 + $0x34] sm:$0x1]  ;;  %v3817_v25 = vcombine.low %v3809_v32, %v3816_v29  ;;  %v3833_v19 = vcombine.low %v3255_v3, %v3238_v1  ;;  %v3257_v58 = vcombine.high %v2895_v63, %v2895_v63  ;;  %v3264_v52 = vrot.slane %v2895_v63, %v5127_v33 }
 0x225   :  { %v4240_v36 = vsel %vm6158_vm7, 0, %v4239_v20  ;;  %v4407_v8 = vpack.c.bf16 %v3831_v49, %v3831_v49  ;;  %v3842_v57 = vrot.slane %v3832_v46, %v5127_v33  ;;  %v3856_v7 = vrot.slane %v3834_v62, %v5127_v33 }
 0x226   :  { %4241 = vst [vmem:[%s6223_s3 + $0x34] sm:$0x1] %v4240_v36  ;;  %v4406_v18 = vpack.c.bf16 %v3817_v25, %v3817_v25  ;;  %v3271_v50 = vrot.slane %v3257_v58, %v5127_v33  ;;  %v3272_v5 = vcombine.high %v3264_v52, %v3264_v52  ;;  %v3849_v4 = vrot.slane %v3833_v19, %v5127_v33 }
 0x227   :  { %v4223_v28 = vsel %vm6119_vm6, %v4407_v8, %v4222_v60  ;;  %v3280_v26 = vrot.slane %v3264_v52, %v5127_v33 }
 0x228   :  { %4218 = vst.msk [vmem:[%s6223_s3 + $0x14] sm:$0xf] %vm4212_vm2, %v4406_v18  ;;  %4224 = vst [vmem:[%s6223_s3 + $0x18] sm:$0x1] %v4223_v28  ;;  %v3273_v41 = vcombine.high %v3271_v50, %v3271_v50  ;;  %v3287_v12 = vrot.slane %v3271_v50, %v5127_v33  ;;  %v3294_v9 = vrot.slane %v3272_v5, %v5127_v33 }
 0x229   :  { %v3302_v24 = vcombine.high %v3280_v26, %v3280_v26  ;;  %v3835_v6 = vcombine.low %v3256_v21, %v3280_v26  ;;  %v3864_v39 = vcombine.low %v3842_v57, %v3849_v4 }
 0x22a   :  { %v3301_v42 = vrot.slane %v3273_v41, %v5127_v33  ;;  %v3303_v15 = vcombine.high %v3287_v12, %v3287_v12  ;;  %v3304_v47 = vcombine.high %v3294_v9, %v3294_v9 }
 0x22b   :  { %v3863_v37 = vrot.slane %v3835_v6, %v5127_v33  ;;  %v3881_v30 = vcombine.low %v3294_v9, %v3302_v24  ;;  %v3872_v23 = vrot.slane %v3864_v39, %v5127_v33 }
 0x22c   :  { %v3305_v11 = vcombine.high %v3301_v42, %v3301_v42  ;;  %v3882_v35 = vcombine.low %v3304_v47, %v3287_v12  ;;  %v3883_v59 = vcombine.low %v3301_v42, %v3303_v15 }
 0x22d   :  { %v3865_v31 = vcombine.low %v3856_v7, %v3863_v37  ;;  %v3891_v16 = vrot.slane %v3881_v30, %v5127_v33 }
 0x22e   :  { %v3884_v38 = vcombine.low %v3305_v11, %v5922_v27  ;;  %v3898_v54 = vrot.slane %v3882_v35, %v5127_v33  ;;  %v3905_v48 = vrot.slane %v3883_v59, %v5127_v33 }
 0x22f   :  { %v4236_v56 = vld [vmem:[%s6223_s3 + $0x18] sm:$0x1]  ;;  %v3879_v34 = vrot.slane %v3865_v31, %v5127_v33 }
 0x230   :  { %v4237_v61 = vsel %vm6158_vm7, 0, %v4236_v56  ;;  %v3912_v17 = vrot.slane %v3884_v38, %v5127_v33  ;;  %v3913_v27 = vcombine.low %v3891_v16, %v3898_v54 }
 0x231   :  { %4238 = vst [vmem:[%s6223_s3 + $0x18] sm:$0x1] %v4237_v61  ;;  %v3880_v51 = vcombine.low %v3872_v23, %v3879_v34 }
 0x232   :  { %v3914_v43 = vcombine.low %v3905_v48, %v3912_v17  ;;  %v3921_v13 = vrot.slane %v3913_v27, %v5127_v33 }
 0x233   :  { %v4408_v10 = vpack.c.bf16 %v3880_v51, %v3880_v51 }
 0x234   :  { %v3928_v45 = vrot.slane %v3914_v43, %v5127_v33 }
 0x235   :  { %4225 = vst.msk [vmem:[%s6223_s3 + $0x1c] sm:$0xf] %vm4212_vm2, %v4408_v10 }
 0x236   :  { %v3929_v1 = vcombine.low %v3921_v13, %v3928_v45 }
 0x238   :  { %v4409_v44 = vpack.c.bf16 %v3929_v1, %v3929_v1 }
 0x23a   :  { %4226 = vst.msk [vmem:[%s6223_s3 + $0x20] sm:$0xf] %vm4212_vm2, %v4409_v44 }

// kernel: model_forward.4
= control target key start
LH: loop header
LB: loop body
LE: loop exit
PB: predicated region body
PF: predicated region fallthrough
CT: control target
= control target key end

     0   :  { %v2305_v0 = vmov 0   ;;  %vm1683_vm0 = vcmask 257024   ;;  %s3216_s1 = inlined_call_operand.vmem [shape: bf16[256,32], index: 1, kind: input, shape index: {}]   ;;  %s3217_s0 = inlined_call_operand.vmem [shape: bf16[800,256], index: 0, kind: input, shape index: {}]   ;;  %s3218_s2 = inlined_call_operand.vmem [shape: f32[1,32], index: 2, kind: input, shape index: {}]   ;;  %s3219_s3 = inlined_call_operand.vmem [shape: bf16[800,32], index: 3, kind: output, shape index: {}]  }
   0x1   :  { %750 = vmatprep.subr.bf16.mxu0 %v2305_v0  ;;  %2105 = vmatprep.subr.bf16.mxu1 %v2305_v0  ;;  %v2138_v1 = vld [vmem:[%s3216_s1] sm:$0xff]   ;;  %v2139_v2 = vld [vmem:[%s3216_s1 + $0x8] sm:$0xff]   ;;  %v2140_v3 = vld [vmem:[%s3216_s1 + $0x10] sm:$0xff]  }
   0x2   :  { %751 = vmatpush1.bf16.msra.mxu0 %v2138_v1  ;;  %2121 = vmatpush1.bf16.msra.mxu1 %v2138_v1  ;;  %v2141_v4 = vld [vmem:[%s3216_s1 + $0x18] sm:$0xff]   ;;  %v2142_v5 = vld [vmem:[%s3216_s1 + $0x20] sm:$0xff]   ;;  %v2143_v7 = vld [vmem:[%s3216_s1 + $0x28] sm:$0xff]  }
   0x3   :  { %752 = vmatprep.subr.bf16.mxu0 %v2305_v0  ;;  %2106 = vmatprep.subr.bf16.mxu1 %v2305_v0  ;;  %v2156_v6 = vld [vmem:[%s3217_s0 + $0x4] ss:$8 sps:$4 sm:$0xff]   ;;  %v2159_v8 = vld [vmem:[%s3217_s0 + $0x194] ss:$8 sps:$4 sm:$0xff]   ;;  %v2154_v19 = vld [vmem:[%s3217_s0] ss:$8 sps:$4 sm:$0xff]  }
   0x4   :  { %782 = vmatprep.mubr.bf16.mxu0 %v2156_v6  ;;  %982 = vmatprep.mubr.bf16.mxu1 %v2159_v8  ;;  %v2144_v9 = vld [vmem:[%s3216_s1 + $0x30] sm:$0xff]   ;;  %v2145_v10 = vld [vmem:[%s3216_s1 + $0x38] sm:$0xff]   ;;  %v2146_v11 = vld [vmem:[%s3216_s1 + $0x40] sm:$0xff]  }
   0x5   :  { %v2147_v12 = vld [vmem:[%s3216_s1 + $0x48] sm:$0xff]   ;;  %v2148_v13 = vld [vmem:[%s3216_s1 + $0x50] sm:$0xff]   ;;  %v2149_v14 = vld [vmem:[%s3216_s1 + $0x58] sm:$0xff]  }
   0x6   :  { %753 = vmatpush1.bf16.msra.mxu0 %v2139_v2  ;;  %2122 = vmatpush1.bf16.msra.mxu1 %v2139_v2  ;;  %v2150_v15 = vld [vmem:[%s3216_s1 + $0x60] sm:$0xff]   ;;  %v2151_v16 = vld [vmem:[%s3216_s1 + $0x68] sm:$0xff]   ;;  %v2152_v17 = vld [vmem:[%s3216_s1 + $0x70] sm:$0xff]  }
   0x7   :  { %754 = vmatprep.subr.bf16.mxu0 %v2305_v0  ;;  %2107 = vmatprep.subr.bf16.mxu1 %v2305_v0  ;;  %v2153_v18 = vld [vmem:[%s3216_s1 + $0x78] sm:$0xff]   ;;  %v2162_v22 = vld [vmem:[%s3217_s0 + $0x1a4] ss:$8 sps:$4 sm:$0xff]   ;;  %v2165_v24 = vld [vmem:[%s3217_s0 + $0x1a0] ss:$8 sps:$4 sm:$0xff]  }
   0x8   :  { %v2157_v20 = vld [vmem:[%s3217_s0 + $0x190] ss:$8 sps:$4 sm:$0xff]   ;;  %v2160_v21 = vld [vmem:[%s3217_s0 + $0x14] ss:$8 sps:$4 sm:$0xff]   ;;  %v2166_v25 = vld [vmem:[%s3217_s0 + $0x24] ss:$8 sps:$4 sm:$0xff]  }
   0x9   :  { %v2164_v23 = vld [vmem:[%s3217_s0 + $0x10] ss:$8 sps:$4 sm:$0xff]   ;;  %v2168_v26 = vld [vmem:[%s3217_s0 + $0x1b4] ss:$8 sps:$4 sm:$0xff]   ;;  %v2170_v27 = vld [vmem:[%s3217_s0 + $0x20] ss:$8 sps:$4 sm:$0xff]  }
   0xa   :  { %755 = vmatpush1.bf16.msra.mxu0 %v2140_v3  ;;  %2123 = vmatpush1.bf16.msra.mxu1 %v2140_v3  ;;  %v2171_v28 = vld [vmem:[%s3217_s0 + $0x1b0] ss:$8 sps:$4 sm:$0xff]   ;;  %v2172_v29 = vld [vmem:[%s3217_s0 + $0x34] ss:$8 sps:$4 sm:$0xff]   ;;  %v2174_v30 = vld [vmem:[%s3217_s0 + $0x1c4] ss:$8 sps:$4 sm:$0xff]  }
   0xb   :  { %756 = vmatprep.subr.bf16.mxu0 %v2305_v0  ;;  %2108 = vmatprep.subr.bf16.mxu1 %v2305_v0  ;;  %v2176_v31 = vld [vmem:[%s3217_s0 + $0x30] ss:$8 sps:$4 sm:$0xff]   ;;  %v2177_v32 = vld [vmem:[%s3217_s0 + $0x1c0] ss:$8 sps:$4 sm:$0xff]   ;;  %v2178_v33 = vld [vmem:[%s3217_s0 + $0x44] ss:$8 sps:$4 sm:$0xff]  }
   0xc   :  { %v2180_v34 = vld [vmem:[%s3217_s0 + $0x1d4] ss:$8 sps:$4 sm:$0xff]   ;;  %v2182_v35 = vld [vmem:[%s3217_s0 + $0x40] ss:$8 sps:$4 sm:$0xff]   ;;  %v2183_v36 = vld [vmem:[%s3217_s0 + $0x1d0] ss:$8 sps:$4 sm:$0xff]  }
   0xd   :  { %v2184_v37 = vld [vmem:[%s3217_s0 + $0x54] ss:$8 sps:$4 sm:$0xff]   ;;  %v2186_v38 = vld [vmem:[%s3217_s0 + $0x1e4] ss:$8 sps:$4 sm:$0xff]   ;;  %v2188_v39 = vld [vmem:[%s3217_s0 + $0x50] ss:$8 sps:$4 sm:$0xff]  }
   0xe   :  { %757 = vmatpush1.bf16.msra.mxu0 %v2141_v4  ;;  %2124 = vmatpush1.bf16.msra.mxu1 %v2141_v4  ;;  %v2189_v40 = vld [vmem:[%s3217_s0 + $0x1e0] ss:$8 sps:$4 sm:$0xff]   ;;  %v2190_v41 = vld [vmem:[%s3217_s0 + $0x64] ss:$8 sps:$4 sm:$0xff]   ;;  %v2192_v42 = vld [vmem:[%s3217_s0 + $0x1f4] ss:$8 sps:$4 sm:$0xff]  }
   0xf   :  { %758 = vmatprep.subr.bf16.mxu0 %v2305_v0  ;;  %2109 = vmatprep.subr.bf16.mxu1 %v2305_v0  ;;  %v2194_v43 = vld [vmem:[%s3217_s0 + $0x60] ss:$8 sps:$4 sm:$0xff]   ;;  %v2195_v44 = vld [vmem:[%s3217_s0 + $0x1f0] ss:$8 sps:$4 sm:$0xff]   ;;  %v2196_v45 = vld [vmem:[%s3217_s0 + $0x74] ss:$8 sps:$4 sm:$0xff]  }
  0x10   :  { %v2198_v46 = vld [vmem:[%s3217_s0 + $0x204] ss:$8 sps:$4 sm:$0xff]   ;;  %v2200_v47 = vld [vmem:[%s3217_s0 + $0x70] ss:$8 sps:$4 sm:$0xff]   ;;  %v2201_v48 = vld [vmem:[%s3217_s0 + $0x200] ss:$8 sps:$4 sm:$0xff]  }
  0x11   :  { %v2202_v49 = vld [vmem:[%s3217_s0 + $0x84] ss:$8 sps:$4 sm:$0xff]   ;;  %v2204_v50 = vld [vmem:[%s3217_s0 + $0x214] ss:$8 sps:$4 sm:$0xff]   ;;  %v2206_v51 = vld [vmem:[%s3217_s0 + $0x80] ss:$8 sps:$4 sm:$0xff]  }
  0x12   :  { %759 = vmatpush1.bf16.msra.mxu0 %v2142_v5  ;;  %2125 = vmatpush1.bf16.msra.mxu1 %v2142_v5  ;;  %v2207_v52 = vld [vmem:[%s3217_s0 + $0x210] ss:$8 sps:$4 sm:$0xff]   ;;  %v2208_v53 = vld [vmem:[%s3217_s0 + $0x94] ss:$8 sps:$4 sm:$0xff]   ;;  %v2210_v54 = vld [vmem:[%s3217_s0 + $0x224] ss:$8 sps:$4 sm:$0xff]  }
  0x13   :  { %760 = vmatprep.subr.bf16.mxu0 %v2305_v0  ;;  %2110 = vmatprep.subr.bf16.mxu1 %v2305_v0  ;;  %v2212_v55 = vld [vmem:[%s3217_s0 + $0x90] ss:$8 sps:$4 sm:$0xff]   ;;  %v2213_v56 = vld [vmem:[%s3217_s0 + $0x220] ss:$8 sps:$4 sm:$0xff]   ;;  %v2214_v57 = vld [vmem:[%s3217_s0 + $0xa4] ss:$8 sps:$4 sm:$0xff]  }
  0x14   :  { %v2216_v58 = vld [vmem:[%s3217_s0 + $0x234] ss:$8 sps:$4 sm:$0xff]   ;;  %v2218_v59 = vld [vmem:[%s3217_s0 + $0xa0] ss:$8 sps:$4 sm:$0xff]   ;;  %v2219_v60 = vld [vmem:[%s3217_s0 + $0x230] ss:$8 sps:$4 sm:$0xff]  }
  0x15   :  { %v2220_v61 = vld [vmem:[%s3217_s0 + $0xb4] ss:$8 sps:$4 sm:$0xff]   ;;  %v2222_v62 = vld [vmem:[%s3217_s0 + $0x244] ss:$8 sps:$4 sm:$0xff]   ;;  %v2224_v63 = vld [vmem:[%s3217_s0 + $0xb0] ss:$8 sps:$4 sm:$0xff]  }
  0x16   :  { %761 = vmatpush1.bf16.msra.mxu0 %v2143_v7  ;;  %2126 = vmatpush1.bf16.msra.mxu1 %v2143_v7  ;;  %v2226_v1 = vld [vmem:[%s3217_s0 + $0xc4] ss:$8 sps:$4 sm:$0xff]   ;;  %v2228_v2 = vld [vmem:[%s3217_s0 + $0x254] ss:$8 sps:$4 sm:$0xff]   ;;  %v2230_v3 = vld [vmem:[%s3217_s0 + $0xc0] ss:$8 sps:$4 sm:$0xff]  }
  0x17   :  { %762 = vmatprep.subr.bf16.mxu0 %v2305_v0  ;;  %2111 = vmatprep.subr.bf16.mxu1 %v2305_v0  ;;  %v2231_v4 = vld [vmem:[%s3217_s0 + $0x250] ss:$8 sps:$4 sm:$0xff]   ;;  %v2232_v5 = vld [vmem:[%s3217_s0 + $0xd4] ss:$8 sps:$4 sm:$0xff]   ;;  %v2234_v6 = vld [vmem:[%s3217_s0 + $0x264] ss:$8 sps:$4 sm:$0xff]  }
  0x18   :  { %v2236_v7 = vld [vmem:[%s3217_s0 + $0xd0] ss:$8 sps:$4 sm:$0xff]   ;;  %v2237_v8 = vld [vmem:[%s3217_s0 + $0x260] ss:$8 sps:$4 sm:$0xff]  }
  0x1a   :  { %763 = vmatpush1.bf16.msra.mxu0 %v2144_v9  ;;  %2127 = vmatpush1.bf16.msra.mxu1 %v2144_v9  ;;  %v2238_v9 = vld [vmem:[%s3217_s0 + $0xe4] ss:$8 sps:$4 sm:$0xff]  }
  0x1b   :  { %764 = vmatprep.subr.bf16.mxu0 %v2305_v0  ;;  %2112 = vmatprep.subr.bf16.mxu1 %v2305_v0 }
  0x1e   :  { %765 = vmatpush1.bf16.msra.mxu0 %v2145_v10  ;;  %2128 = vmatpush1.bf16.msra.mxu1 %v2145_v10  ;;  %v2240_v10 = vld [vmem:[%s3217_s0 + $0x274] ss:$8 sps:$4 sm:$0xff]  }
  0x1f   :  { %766 = vmatprep.subr.bf16.mxu0 %v2305_v0  ;;  %2113 = vmatprep.subr.bf16.mxu1 %v2305_v0 }
  0x22   :  { %767 = vmatpush1.bf16.msra.mxu0 %v2146_v11  ;;  %2129 = vmatpush1.bf16.msra.mxu1 %v2146_v11  ;;  %v2242_v11 = vld [vmem:[%s3217_s0 + $0xe0] ss:$8 sps:$4 sm:$0xff]  }
  0x23   :  { %768 = vmatprep.subr.bf16.mxu0 %v2305_v0  ;;  %2114 = vmatprep.subr.bf16.mxu1 %v2305_v0 }
  0x26   :  { %769 = vmatpush1.bf16.msra.mxu0 %v2147_v12  ;;  %2130 = vmatpush1.bf16.msra.mxu1 %v2147_v12  ;;  %v2243_v12 = vld [vmem:[%s3217_s0 + $0x270] ss:$8 sps:$4 sm:$0xff]  }
  0x27   :  { %770 = vmatprep.subr.bf16.mxu0 %v2305_v0  ;;  %2115 = vmatprep.subr.bf16.mxu1 %v2305_v0 }
  0x2a   :  { %771 = vmatpush1.bf16.msra.mxu0 %v2148_v13  ;;  %2131 = vmatpush1.bf16.msra.mxu1 %v2148_v13  ;;  %v2244_v13 = vld [vmem:[%s3217_s0 + $0xf4] ss:$8 sps:$4 sm:$0xff]  }
  0x2b   :  { %772 = vmatprep.subr.bf16.mxu0 %v2305_v0  ;;  %2116 = vmatprep.subr.bf16.mxu1 %v2305_v0 }
  0x2e   :  { %773 = vmatpush1.bf16.msra.mxu0 %v2149_v14  ;;  %2132 = vmatpush1.bf16.msra.mxu1 %v2149_v14  ;;  %v2246_v14 = vld [vmem:[%s3217_s0 + $0x284] ss:$8 sps:$4 sm:$0xff]  }
  0x2f   :  { %774 = vmatprep.subr.bf16.mxu0 %v2305_v0  ;;  %2117 = vmatprep.subr.bf16.mxu1 %v2305_v0 }
  0x32   :  { %775 = vmatpush1.bf16.msra.mxu0 %v2150_v15  ;;  %2133 = vmatpush1.bf16.msra.mxu1 %v2150_v15  ;;  %v2248_v15 = vld [vmem:[%s3217_s0 + $0xf0] ss:$8 sps:$4 sm:$0xff]  }
  0x33   :  { %776 = vmatprep.subr.bf16.mxu0 %v2305_v0  ;;  %2118 = vmatprep.subr.bf16.mxu1 %v2305_v0 }
  0x36   :  { %777 = vmatpush1.bf16.msra.mxu0 %v2151_v16  ;;  %2134 = vmatpush1.bf16.msra.mxu1 %v2151_v16  ;;  %v2249_v16 = vld [vmem:[%s3217_s0 + $0x280] ss:$8 sps:$4 sm:$0xff]  }
  0x37   :  { %778 = vmatprep.subr.bf16.mxu0 %v2305_v0  ;;  %2119 = vmatprep.subr.bf16.mxu1 %v2305_v0 }
  0x3a   :  { %779 = vmatpush1.bf16.msra.mxu0 %v2152_v17  ;;  %2135 = vmatpush1.bf16.msra.mxu1 %v2152_v17  ;;  %v2250_v17 = vld [vmem:[%s3217_s0 + $0x104] ss:$8 sps:$4 sm:$0xff]  }
  0x3b   :  { %780 = vmatprep.subr.bf16.mxu0 %v2305_v0  ;;  %2120 = vmatprep.subr.bf16.mxu1 %v2305_v0  ;;  %v2225_v0 = vld [vmem:[%s3217_s0 + $0x240] ss:$8 sps:$4 sm:$0xff]  }
  0x3e   :  { %781 = vmatpush1.bf16.msra.mxu0 %v2153_v18  ;;  %2136 = vmatpush1.bf16.msra.mxu1 %v2153_v18  ;;  %v2252_v18 = vld [vmem:[%s3217_s0 + $0x294] ss:$8 sps:$4 sm:$0xff]  }
  0x41   :  { %783 = vmatmul.mubr.bf16.vlgmr.msra.gmra.mrb[0].mxu0 %v2154_v19  ;;  %983 = vmatmul.mubr.bf16.vlgmr.msra.gmra.mrb[0].mxu1 %v2157_v20  ;;  %v2254_v19 = vld [vmem:[%s3217_s0 + $0x100] ss:$8 sps:$4 sm:$0xff]   ;;  %v2255_v20 = vld [vmem:[%s3217_s0 + $0x290] ss:$8 sps:$4 sm:$0xff]  }
  0x42   :  { %790 = vmatprep.mubr.bf16.mxu0 %v2160_v21  ;;  %990 = vmatprep.mubr.bf16.mxu1 %v2162_v22  ;;  %v2256_v21 = vld [vmem:[%s3217_s0 + $0x114] ss:$8 sps:$4 sm:$0xff]   ;;  %v2258_v22 = vld [vmem:[%s3217_s0 + $0x2a4] ss:$8 sps:$4 sm:$0xff]  }
  0x49   :  { %791 = vmatmul.mubr.bf16.gmra.mrb[4].mxu0 %v2164_v23  ;;  %991 = vmatmul.mubr.bf16.gmra.mrb[4].mxu1 %v2165_v24  ;;  %v2260_v23 = vld [vmem:[%s3217_s0 + $0x110] ss:$8 sps:$4 sm:$0xff]   ;;  %v2261_v24 = vld [vmem:[%s3217_s0 + $0x2a0] ss:$8 sps:$4 sm:$0xff]  }
  0x4a   :  { %798 = vmatprep.mubr.bf16.mxu0 %v2166_v25  ;;  %998 = vmatprep.mubr.bf16.mxu1 %v2168_v26  ;;  %v2262_v25 = vld [vmem:[%s3217_s0 + $0x124] ss:$8 sps:$4 sm:$0xff]   ;;  %v2264_v26 = vld [vmem:[%s3217_s0 + $0x2b4] ss:$8 sps:$4 sm:$0xff]  }
  0x51   :  { %799 = vmatmul.mubr.bf16.gmra.mrb[8].mxu0 %v2170_v27  ;;  %999 = vmatmul.mubr.bf16.gmra.mrb[8].mxu1 %v2171_v28  ;;  %v2266_v27 = vld [vmem:[%s3217_s0 + $0x120] ss:$8 sps:$4 sm:$0xff]   ;;  %v2267_v28 = vld [vmem:[%s3217_s0 + $0x2b0] ss:$8 sps:$4 sm:$0xff]  }
  0x52   :  { %806 = vmatprep.mubr.bf16.mxu0 %v2172_v29  ;;  %1006 = vmatprep.mubr.bf16.mxu1 %v2174_v30  ;;  %v2268_v29 = vld [vmem:[%s3217_s0 + $0x134] ss:$8 sps:$4 sm:$0xff]   ;;  %v2270_v30 = vld [vmem:[%s3217_s0 + $0x2c4] ss:$8 sps:$4 sm:$0xff]  }
  0x59   :  { %807 = vmatmul.mubr.bf16.gmra.mrb[12].mxu0 %v2176_v31  ;;  %1007 = vmatmul.mubr.bf16.gmra.mrb[12].mxu1 %v2177_v32  ;;  %v2272_v31 = vld [vmem:[%s3217_s0 + $0x130] ss:$8 sps:$4 sm:$0xff]   ;;  %v2273_v32 = vld [vmem:[%s3217_s0 + $0x2c0] ss:$8 sps:$4 sm:$0xff]  }
  0x5a   :  { %814 = vmatprep.mubr.bf16.mxu0 %v2178_v33  ;;  %1014 = vmatprep.mubr.bf16.mxu1 %v2180_v34  ;;  %v2274_v33 = vld [vmem:[%s3217_s0 + $0x144] ss:$8 sps:$4 sm:$0xff]   ;;  %v2276_v34 = vld [vmem:[%s3217_s0 + $0x2d4] ss:$8 sps:$4 sm:$0xff]  }
  0x61   :  { %815 = vmatmul.mubr.bf16.gmra.mrb[16].mxu0 %v2182_v35  ;;  %1015 = vmatmul.mubr.bf16.gmra.mrb[16].mxu1 %v2183_v36  ;;  %v2278_v35 = vld [vmem:[%s3217_s0 + $0x140] ss:$8 sps:$4 sm:$0xff]   ;;  %v2279_v36 = vld [vmem:[%s3217_s0 + $0x2d0] ss:$8 sps:$4 sm:$0xff]  }
  0x62   :  { %822 = vmatprep.mubr.bf16.mxu0 %v2184_v37  ;;  %1022 = vmatprep.mubr.bf16.mxu1 %v2186_v38  ;;  %v2280_v37 = vld [vmem:[%s3217_s0 + $0x154] ss:$8 sps:$4 sm:$0xff]   ;;  %v2282_v38 = vld [vmem:[%s3217_s0 + $0x2e4] ss:$8 sps:$4 sm:$0xff]  }
  0x69   :  { %823 = vmatmul.mubr.bf16.gmra.mrb[20].mxu0 %v2188_v39  ;;  %1023 = vmatmul.mubr.bf16.gmra.mrb[20].mxu1 %v2189_v40  ;;  %v2284_v39 = vld [vmem:[%s3217_s0 + $0x150] ss:$8 sps:$4 sm:$0xff]   ;;  %v2285_v40 = vld [vmem:[%s3217_s0 + $0x2e0] ss:$8 sps:$4 sm:$0xff]  }
  0x6a   :  { %830 = vmatprep.mubr.bf16.mxu0 %v2190_v41  ;;  %1030 = vmatprep.mubr.bf16.mxu1 %v2192_v42  ;;  %v2286_v41 = vld [vmem:[%s3217_s0 + $0x164] ss:$8 sps:$4 sm:$0xff]   ;;  %v2288_v42 = vld [vmem:[%s3217_s0 + $0x2f4] ss:$8 sps:$4 sm:$0xff]  }
  0x71   :  { %831 = vmatmul.mubr.bf16.gmra.mrb[24].mxu0 %v2194_v43  ;;  %1031 = vmatmul.mubr.bf16.gmra.mrb[24].mxu1 %v2195_v44  ;;  %v2290_v43 = vld [vmem:[%s3217_s0 + $0x160] ss:$8 sps:$4 sm:$0xff]   ;;  %v2291_v44 = vld [vmem:[%s3217_s0 + $0x2f0] ss:$8 sps:$4 sm:$0xff]  }
  0x72   :  { %838 = vmatprep.mubr.bf16.mxu0 %v2196_v45  ;;  %1038 = vmatprep.mubr.bf16.mxu1 %v2198_v46  ;;  %v2292_v45 = vld [vmem:[%s3217_s0 + $0x174] ss:$8 sps:$4 sm:$0xff]   ;;  %v2294_v46 = vld [vmem:[%s3217_s0 + $0x304] ss:$8 sps:$4 sm:$0xff]  }
  0x79   :  { %839 = vmatmul.mubr.bf16.gmra.mrb[28].mxu0 %v2200_v47  ;;  %1039 = vmatmul.mubr.bf16.gmra.mrb[28].mxu1 %v2201_v48  ;;  %v2296_v47 = vld [vmem:[%s3217_s0 + $0x170] ss:$8 sps:$4 sm:$0xff]   ;;  %v2297_v48 = vld [vmem:[%s3217_s0 + $0x300] ss:$8 sps:$4 sm:$0xff]  }
  0x7a   :  { %846 = vmatprep.mubr.bf16.mxu0 %v2202_v49  ;;  %1046 = vmatprep.mubr.bf16.mxu1 %v2204_v50  ;;  %v2298_v49 = vld [vmem:[%s3217_s0 + $0x184] ss:$8 sps:$4 sm:$0xff]   ;;  %v2300_v50 = vld [vmem:[%s3217_s0 + $0x314] ss:$8 sps:$4 sm:$0xff]  }
  0x81   :  { %847 = vmatmul.mubr.bf16.gmra.mrb[32].mxu0 %v2206_v51  ;;  %1047 = vmatmul.mubr.bf16.gmra.mrb[32].mxu1 %v2207_v52  ;;  %v2302_v51 = vld [vmem:[%s3217_s0 + $0x180] ss:$8 sps:$4 sm:$0xff]   ;;  %v2303_v52 = vld [vmem:[%s3217_s0 + $0x310] ss:$8 sps:$4 sm:$0xff]  }
  0x82   :  { %854 = vmatprep.mubr.bf16.mxu0 %v2208_v53  ;;  %1054 = vmatprep.mubr.bf16.mxu1 %v2210_v54  ;;  %v2709_v53 = vld [vmem:[%s3218_s2] ss:$0 sm:$0xff] }
  0x89   :  { %855 = vmatmul.mubr.bf16.gmra.mrb[36].mxu0 %v2212_v55  ;;  %1055 = vmatmul.mubr.bf16.gmra.mrb[36].mxu1 %v2213_v56 }
  0x8a   :  { %862 = vmatprep.mubr.bf16.mxu0 %v2214_v57  ;;  %1062 = vmatprep.mubr.bf16.mxu1 %v2216_v58 }
  0x91   :  { %863 = vmatmul.mubr.bf16.gmra.mrb[40].mxu0 %v2218_v59  ;;  %1063 = vmatmul.mubr.bf16.gmra.mrb[40].mxu1 %v2219_v60 }
  0x92   :  { %870 = vmatprep.mubr.bf16.mxu0 %v2220_v61  ;;  %1070 = vmatprep.mubr.bf16.mxu1 %v2222_v62 }
  0x99   :  { %871 = vmatmul.mubr.bf16.gmra.mrb[44].mxu0 %v2224_v63  ;;  %1071 = vmatmul.mubr.bf16.gmra.mrb[44].mxu1 %v2225_v0 }
  0x9a   :  { %878 = vmatprep.mubr.bf16.mxu0 %v2226_v1  ;;  %1078 = vmatprep.mubr.bf16.mxu1 %v2228_v2 }
  0xa1   :  { %879 = vmatmul.mubr.bf16.gmra.mrb[48].mxu0 %v2230_v3  ;;  %1079 = vmatmul.mubr.bf16.gmra.mrb[48].mxu1 %v2231_v4 }
  0xa2   :  { %886 = vmatprep.mubr.bf16.mxu0 %v2232_v5  ;;  %1086 = vmatprep.mubr.bf16.mxu1 %v2234_v6 }
  0xa9   :  { %887 = vmatmul.mubr.bf16.gmra.mrb[52].mxu0 %v2236_v7  ;;  %1087 = vmatmul.mubr.bf16.gmra.mrb[52].mxu1 %v2237_v8 }
  0xaa   :  { %894 = vmatprep.mubr.bf16.mxu0 %v2238_v9  ;;  %1094 = vmatprep.mubr.bf16.mxu1 %v2240_v10 }
  0xb1   :  { %895 = vmatmul.mubr.bf16.gmra.mrb[56].mxu0 %v2242_v11  ;;  %1095 = vmatmul.mubr.bf16.gmra.mrb[56].mxu1 %v2243_v12 }
  0xb2   :  { %902 = vmatprep.mubr.bf16.mxu0 %v2244_v13  ;;  %1102 = vmatprep.mubr.bf16.mxu1 %v2246_v14 }
  0xb9   :  { %903 = vmatmul.mubr.bf16.gmra.mrb[60].mxu0 %v2248_v15  ;;  %1103 = vmatmul.mubr.bf16.gmra.mrb[60].mxu1 %v2249_v16 }
  0xba   :  { %910 = vmatprep.mubr.bf16.mxu0 %v2250_v17  ;;  %1110 = vmatprep.mubr.bf16.mxu1 %v2252_v18 }
  0xc1   :  { %911 = vmatmul.mubr.bf16.gmra.mrb[64].mxu0 %v2254_v19  ;;  %1111 = vmatmul.mubr.bf16.gmra.mrb[64].mxu1 %v2255_v20 }
  0xc2   :  { %918 = vmatprep.mubr.bf16.mxu0 %v2256_v21  ;;  %1118 = vmatprep.mubr.bf16.mxu1 %v2258_v22 }
  0xc9   :  { %919 = vmatmul.mubr.bf16.gmra.mrb[68].mxu0 %v2260_v23  ;;  %1119 = vmatmul.mubr.bf16.gmra.mrb[68].mxu1 %v2261_v24 }
  0xca   :  { %926 = vmatprep.mubr.bf16.mxu0 %v2262_v25  ;;  %1126 = vmatprep.mubr.bf16.mxu1 %v2264_v26 }
  0xd1   :  { %927 = vmatmul.mubr.bf16.gmra.mrb[72].mxu0 %v2266_v27  ;;  %1127 = vmatmul.mubr.bf16.gmra.mrb[72].mxu1 %v2267_v28 }
  0xd2   :  { %934 = vmatprep.mubr.bf16.mxu0 %v2268_v29  ;;  %1134 = vmatprep.mubr.bf16.mxu1 %v2270_v30 }
  0xd9   :  { %935 = vmatmul.mubr.bf16.gmra.mrb[76].mxu0 %v2272_v31  ;;  %1135 = vmatmul.mubr.bf16.gmra.mrb[76].mxu1 %v2273_v32 }
  0xda   :  { %942 = vmatprep.mubr.bf16.mxu0 %v2274_v33  ;;  %1142 = vmatprep.mubr.bf16.mxu1 %v2276_v34 }
  0xe1   :  { %943 = vmatmul.mubr.bf16.gmra.mrb[80].mxu0 %v2278_v35  ;;  %1143 = vmatmul.mubr.bf16.gmra.mrb[80].mxu1 %v2279_v36 }
  0xe2   :  { %950 = vmatprep.mubr.bf16.mxu0 %v2280_v37  ;;  %1150 = vmatprep.mubr.bf16.mxu1 %v2282_v38 }
  0xe9   :  { %951 = vmatmul.mubr.bf16.gmra.mrb[84].mxu0 %v2284_v39  ;;  %1151 = vmatmul.mubr.bf16.gmra.mrb[84].mxu1 %v2285_v40 }
  0xea   :  { %958 = vmatprep.mubr.bf16.mxu0 %v2286_v41  ;;  %1158 = vmatprep.mubr.bf16.mxu1 %v2288_v42 }
  0xf1   :  { %959 = vmatmul.mubr.bf16.gmra.mrb[88].mxu0 %v2290_v43  ;;  %1159 = vmatmul.mubr.bf16.gmra.mrb[88].mxu1 %v2291_v44 }
  0xf2   :  { %966 = vmatprep.mubr.bf16.mxu0 %v2292_v45  ;;  %1166 = vmatprep.mubr.bf16.mxu1 %v2294_v46 }
  0xf9   :  { %967 = vmatmul.mubr.bf16.gmra.mrb[92].mxu0 %v2296_v47  ;;  %1167 = vmatmul.mubr.bf16.gmra.mrb[92].mxu1 %v2297_v48 }
  0xfa   :  { %974 = vmatprep.mubr.bf16.mxu0 %v2298_v49  ;;  %1174 = vmatprep.mubr.bf16.mxu1 %v2300_v50 }
 0x101   :  { %975 = vmatmul.mubr.bf16.gmra.mrb[96].mxu0 %v2302_v51  ;;  %1175 = vmatmul.mubr.bf16.gmra.mrb[96].mxu1 %v2303_v52 }
 0x114   :  { %v784_v54 = vpop.f32.mrb[0].mxu0  ;;  %v984_v55 = vpop.f32.mrb[0].mxu1 }
 0x115   :  { %v785_v56 = vadd.f32 %v2709_v53, %v784_v54  ;;  %v985_v57 = vadd.f32 %v2709_v53, %v984_v55  ;;  %v786_v58 = vpop.f32.mrb[1].mxu0  ;;  %v986_v59 = vpop.f32.mrb[1].mxu1 }
 0x116   :  { %v787_v60 = vpop.f32.mrb[2].mxu0  ;;  %v987_v61 = vpop.f32.mrb[2].mxu1 }
 0x117   :  { %v1183_v62 = vmax.f32 %v785_v56, 0.0  ;;  %v1233_v63 = vmax.f32 %v985_v57, 0.0  ;;  %v788_v0 = vadd.f32 %v2709_v53, %v787_v60  ;;  %v988_v1 = vadd.f32 %v2709_v53, %v987_v61  ;;  %v789_v2 = vpop.f32.mrb[3].mxu0  ;;  %v989_v3 = vpop.f32.mrb[3].mxu1 }
 0x119   :  { %v2005_v4 = vpack.c.bf16 %v1183_v62, %v1183_v62  ;;  %v2055_v5 = vpack.c.bf16 %v1233_v63, %v1233_v63  ;;  %v1184_v6 = vmax.f32 %v788_v0, 0.0  ;;  %v1234_v7 = vmax.f32 %v988_v1, 0.0 }
 0x11b   :  { %1684 = vst.msk [vmem:[%s3219_s3] sm:$0xf] %vm1683_vm0, %v2005_v4  ;;  %1734 = vst.msk [vmem:[%s3219_s3 + $0xc8] sm:$0xf] %vm1683_vm0, %v2055_v5  ;;  %v2006_v8 = vpack.c.bf16 %v1184_v6, %v1184_v6  ;;  %v2056_v9 = vpack.c.bf16 %v1234_v7, %v1234_v7 }
 0x11c   :  { %v792_v10 = vpop.f32.mrb[4].mxu0  ;;  %v992_v11 = vpop.f32.mrb[4].mxu1 }
 0x11d   :  { %1685 = vst.msk [vmem:[%s3219_s3 + $0x4] sm:$0xf] %vm1683_vm0, %v2006_v8  ;;  %1735 = vst.msk [vmem:[%s3219_s3 + $0xcc] sm:$0xf] %vm1683_vm0, %v2056_v9  ;;  %v793_v12 = vadd.f32 %v2709_v53, %v792_v10  ;;  %v993_v13 = vadd.f32 %v2709_v53, %v992_v11  ;;  %v794_v14 = vpop.f32.mrb[5].mxu0  ;;  %v994_v15 = vpop.f32.mrb[5].mxu1 }
 0x11e   :  { %v795_v16 = vpop.f32.mrb[6].mxu0  ;;  %v995_v17 = vpop.f32.mrb[6].mxu1 }
 0x11f   :  { %v1185_v18 = vmax.f32 %v793_v12, 0.0  ;;  %v1235_v19 = vmax.f32 %v993_v13, 0.0  ;;  %v796_v20 = vadd.f32 %v2709_v53, %v795_v16  ;;  %v996_v21 = vadd.f32 %v2709_v53, %v995_v17  ;;  %v797_v22 = vpop.f32.mrb[7].mxu0  ;;  %v997_v23 = vpop.f32.mrb[7].mxu1 }
 0x121   :  { %v2007_v24 = vpack.c.bf16 %v1185_v18, %v1185_v18  ;;  %v2057_v25 = vpack.c.bf16 %v1235_v19, %v1235_v19  ;;  %v1186_v26 = vmax.f32 %v796_v20, 0.0  ;;  %v1236_v27 = vmax.f32 %v996_v21, 0.0 }
 0x123   :  { %1686 = vst.msk [vmem:[%s3219_s3 + $0x8] sm:$0xf] %vm1683_vm0, %v2007_v24  ;;  %1736 = vst.msk [vmem:[%s3219_s3 + $0xd0] sm:$0xf] %vm1683_vm0, %v2057_v25  ;;  %v2008_v28 = vpack.c.bf16 %v1186_v26, %v1186_v26  ;;  %v2058_v29 = vpack.c.bf16 %v1236_v27, %v1236_v27 }
 0x124   :  { %v800_v30 = vpop.f32.mrb[8].mxu0  ;;  %v1000_v31 = vpop.f32.mrb[8].mxu1 }
 0x125   :  { %1687 = vst.msk [vmem:[%s3219_s3 + $0xc] sm:$0xf] %vm1683_vm0, %v2008_v28  ;;  %1737 = vst.msk [vmem:[%s3219_s3 + $0xd4] sm:$0xf] %vm1683_vm0, %v2058_v29  ;;  %v801_v32 = vadd.f32 %v2709_v53, %v800_v30  ;;  %v1001_v33 = vadd.f32 %v2709_v53, %v1000_v31  ;;  %v802_v34 = vpop.f32.mrb[9].mxu0  ;;  %v1002_v35 = vpop.f32.mrb[9].mxu1 }
 0x126   :  { %v803_v36 = vpop.f32.mrb[10].mxu0  ;;  %v1003_v37 = vpop.f32.mrb[10].mxu1 }
 0x127   :  { %v1187_v38 = vmax.f32 %v801_v32, 0.0  ;;  %v1237_v39 = vmax.f32 %v1001_v33, 0.0  ;;  %v804_v40 = vadd.f32 %v2709_v53, %v803_v36  ;;  %v1004_v41 = vadd.f32 %v2709_v53, %v1003_v37  ;;  %v805_v42 = vpop.f32.mrb[11].mxu0  ;;  %v1005_v43 = vpop.f32.mrb[11].mxu1 }
 0x129   :  { %v2009_v44 = vpack.c.bf16 %v1187_v38, %v1187_v38  ;;  %v2059_v45 = vpack.c.bf16 %v1237_v39, %v1237_v39  ;;  %v1188_v46 = vmax.f32 %v804_v40, 0.0  ;;  %v1238_v47 = vmax.f32 %v1004_v41, 0.0 }
 0x12b   :  { %1688 = vst.msk [vmem:[%s3219_s3 + $0x10] sm:$0xf] %vm1683_vm0, %v2009_v44  ;;  %1738 = vst.msk [vmem:[%s3219_s3 + $0xd8] sm:$0xf] %vm1683_vm0, %v2059_v45  ;;  %v2010_v48 = vpack.c.bf16 %v1188_v46, %v1188_v46  ;;  %v2060_v49 = vpack.c.bf16 %v1238_v47, %v1238_v47 }
 0x12c   :  { %v808_v50 = vpop.f32.mrb[12].mxu0  ;;  %v1008_v51 = vpop.f32.mrb[12].mxu1 }
 0x12d   :  { %1689 = vst.msk [vmem:[%s3219_s3 + $0x14] sm:$0xf] %vm1683_vm0, %v2010_v48  ;;  %1739 = vst.msk [vmem:[%s3219_s3 + $0xdc] sm:$0xf] %vm1683_vm0, %v2060_v49  ;;  %v809_v52 = vadd.f32 %v2709_v53, %v808_v50  ;;  %v1009_v54 = vadd.f32 %v2709_v53, %v1008_v51  ;;  %v810_v55 = vpop.f32.mrb[13].mxu0  ;;  %v1010_v56 = vpop.f32.mrb[13].mxu1 }
 0x12e   :  { %v811_v57 = vpop.f32.mrb[14].mxu0  ;;  %v1011_v58 = vpop.f32.mrb[14].mxu1 }
 0x12f   :  { %v1189_v59 = vmax.f32 %v809_v52, 0.0  ;;  %v1239_v60 = vmax.f32 %v1009_v54, 0.0  ;;  %v812_v61 = vadd.f32 %v2709_v53, %v811_v57  ;;  %v1012_v62 = vadd.f32 %v2709_v53, %v1011_v58  ;;  %v813_v63 = vpop.f32.mrb[15].mxu0  ;;  %v1013_v0 = vpop.f32.mrb[15].mxu1 }
 0x131   :  { %v2011_v1 = vpack.c.bf16 %v1189_v59, %v1189_v59  ;;  %v2061_v2 = vpack.c.bf16 %v1239_v60, %v1239_v60  ;;  %v1190_v3 = vmax.f32 %v812_v61, 0.0  ;;  %v1240_v4 = vmax.f32 %v1012_v62, 0.0 }
 0x133   :  { %1690 = vst.msk [vmem:[%s3219_s3 + $0x18] sm:$0xf] %vm1683_vm0, %v2011_v1  ;;  %1740 = vst.msk [vmem:[%s3219_s3 + $0xe0] sm:$0xf] %vm1683_vm0, %v2061_v2  ;;  %v2012_v5 = vpack.c.bf16 %v1190_v3, %v1190_v3  ;;  %v2062_v6 = vpack.c.bf16 %v1240_v4, %v1240_v4 }
 0x134   :  { %v816_v7 = vpop.f32.mrb[16].mxu0  ;;  %v1016_v8 = vpop.f32.mrb[16].mxu1 }
 0x135   :  { %1691 = vst.msk [vmem:[%s3219_s3 + $0x1c] sm:$0xf] %vm1683_vm0, %v2012_v5  ;;  %1741 = vst.msk [vmem:[%s3219_s3 + $0xe4] sm:$0xf] %vm1683_vm0, %v2062_v6  ;;  %v817_v9 = vadd.f32 %v2709_v53, %v816_v7  ;;  %v1017_v10 = vadd.f32 %v2709_v53, %v1016_v8  ;;  %v818_v11 = vpop.f32.mrb[17].mxu0  ;;  %v1018_v12 = vpop.f32.mrb[17].mxu1 }
 0x136   :  { %v819_v13 = vpop.f32.mrb[18].mxu0  ;;  %v1019_v14 = vpop.f32.mrb[18].mxu1 }
 0x137   :  { %v1191_v15 = vmax.f32 %v817_v9, 0.0  ;;  %v1241_v16 = vmax.f32 %v1017_v10, 0.0  ;;  %v820_v17 = vadd.f32 %v2709_v53, %v819_v13  ;;  %v1020_v18 = vadd.f32 %v2709_v53, %v1019_v14  ;;  %v821_v19 = vpop.f32.mrb[19].mxu0  ;;  %v1021_v20 = vpop.f32.mrb[19].mxu1 }
 0x139   :  { %v2013_v21 = vpack.c.bf16 %v1191_v15, %v1191_v15  ;;  %v2063_v22 = vpack.c.bf16 %v1241_v16, %v1241_v16  ;;  %v1192_v23 = vmax.f32 %v820_v17, 0.0  ;;  %v1242_v24 = vmax.f32 %v1020_v18, 0.0 }
 0x13b   :  { %1692 = vst.msk [vmem:[%s3219_s3 + $0x20] sm:$0xf] %vm1683_vm0, %v2013_v21  ;;  %1742 = vst.msk [vmem:[%s3219_s3 + $0xe8] sm:$0xf] %vm1683_vm0, %v2063_v22  ;;  %v2014_v25 = vpack.c.bf16 %v1192_v23, %v1192_v23  ;;  %v2064_v26 = vpack.c.bf16 %v1242_v24, %v1242_v24 }
 0x13c   :  { %v824_v27 = vpop.f32.mrb[20].mxu0  ;;  %v1024_v28 = vpop.f32.mrb[20].mxu1 }
 0x13d   :  { %1693 = vst.msk [vmem:[%s3219_s3 + $0x24] sm:$0xf] %vm1683_vm0, %v2014_v25  ;;  %1743 = vst.msk [vmem:[%s3219_s3 + $0xec] sm:$0xf] %vm1683_vm0, %v2064_v26  ;;  %v825_v29 = vadd.f32 %v2709_v53, %v824_v27  ;;  %v1025_v30 = vadd.f32 %v2709_v53, %v1024_v28  ;;  %v826_v31 = vpop.f32.mrb[21].mxu0  ;;  %v1026_v32 = vpop.f32.mrb[21].mxu1 }
 0x13e   :  { %v827_v33 = vpop.f32.mrb[22].mxu0  ;;  %v1027_v34 = vpop.f32.mrb[22].mxu1 }
 0x13f   :  { %v1193_v35 = vmax.f32 %v825_v29, 0.0  ;;  %v1243_v36 = vmax.f32 %v1025_v30, 0.0  ;;  %v828_v37 = vadd.f32 %v2709_v53, %v827_v33  ;;  %v1028_v38 = vadd.f32 %v2709_v53, %v1027_v34  ;;  %v829_v39 = vpop.f32.mrb[23].mxu0  ;;  %v1029_v40 = vpop.f32.mrb[23].mxu1 }
 0x141   :  { %v2015_v41 = vpack.c.bf16 %v1193_v35, %v1193_v35  ;;  %v2065_v42 = vpack.c.bf16 %v1243_v36, %v1243_v36  ;;  %v1194_v43 = vmax.f32 %v828_v37, 0.0  ;;  %v1244_v44 = vmax.f32 %v1028_v38, 0.0 }
 0x143   :  { %1694 = vst.msk [vmem:[%s3219_s3 + $0x28] sm:$0xf] %vm1683_vm0, %v2015_v41  ;;  %1744 = vst.msk [vmem:[%s3219_s3 + $0xf0] sm:$0xf] %vm1683_vm0, %v2065_v42  ;;  %v2016_v45 = vpack.c.bf16 %v1194_v43, %v1194_v43  ;;  %v2066_v46 = vpack.c.bf16 %v1244_v44, %v1244_v44 }
 0x144   :  { %v832_v47 = vpop.f32.mrb[24].mxu0  ;;  %v1032_v48 = vpop.f32.mrb[24].mxu1 }
 0x145   :  { %1695 = vst.msk [vmem:[%s3219_s3 + $0x2c] sm:$0xf] %vm1683_vm0, %v2016_v45  ;;  %1745 = vst.msk [vmem:[%s3219_s3 + $0xf4] sm:$0xf] %vm1683_vm0, %v2066_v46  ;;  %v833_v49 = vadd.f32 %v2709_v53, %v832_v47  ;;  %v1033_v50 = vadd.f32 %v2709_v53, %v1032_v48  ;;  %v834_v51 = vpop.f32.mrb[25].mxu0  ;;  %v1034_v52 = vpop.f32.mrb[25].mxu1 }
 0x146   :  { %v835_v54 = vpop.f32.mrb[26].mxu0  ;;  %v1035_v55 = vpop.f32.mrb[26].mxu1 }
 0x147   :  { %v1195_v56 = vmax.f32 %v833_v49, 0.0  ;;  %v1245_v57 = vmax.f32 %v1033_v50, 0.0  ;;  %v836_v58 = vadd.f32 %v2709_v53, %v835_v54  ;;  %v1036_v59 = vadd.f32 %v2709_v53, %v1035_v55  ;;  %v837_v60 = vpop.f32.mrb[27].mxu0  ;;  %v1037_v61 = vpop.f32.mrb[27].mxu1 }
 0x149   :  { %v2017_v62 = vpack.c.bf16 %v1195_v56, %v1195_v56  ;;  %v2067_v63 = vpack.c.bf16 %v1245_v57, %v1245_v57  ;;  %v1196_v0 = vmax.f32 %v836_v58, 0.0  ;;  %v1246_v1 = vmax.f32 %v1036_v59, 0.0 }
 0x14b   :  { %1696 = vst.msk [vmem:[%s3219_s3 + $0x30] sm:$0xf] %vm1683_vm0, %v2017_v62  ;;  %1746 = vst.msk [vmem:[%s3219_s3 + $0xf8] sm:$0xf] %vm1683_vm0, %v2067_v63  ;;  %v2018_v2 = vpack.c.bf16 %v1196_v0, %v1196_v0  ;;  %v2068_v3 = vpack.c.bf16 %v1246_v1, %v1246_v1 }
 0x14c   :  { %v840_v4 = vpop.f32.mrb[28].mxu0  ;;  %v1040_v5 = vpop.f32.mrb[28].mxu1 }
 0x14d   :  { %1697 = vst.msk [vmem:[%s3219_s3 + $0x34] sm:$0xf] %vm1683_vm0, %v2018_v2  ;;  %1747 = vst.msk [vmem:[%s3219_s3 + $0xfc] sm:$0xf] %vm1683_vm0, %v2068_v3  ;;  %v841_v6 = vadd.f32 %v2709_v53, %v840_v4  ;;  %v1041_v7 = vadd.f32 %v2709_v53, %v1040_v5  ;;  %v842_v8 = vpop.f32.mrb[29].mxu0  ;;  %v1042_v9 = vpop.f32.mrb[29].mxu1 }
 0x14e   :  { %v843_v10 = vpop.f32.mrb[30].mxu0  ;;  %v1043_v11 = vpop.f32.mrb[30].mxu1 }
 0x14f   :  { %v1197_v12 = vmax.f32 %v841_v6, 0.0  ;;  %v1247_v13 = vmax.f32 %v1041_v7, 0.0  ;;  %v844_v14 = vadd.f32 %v2709_v53, %v843_v10  ;;  %v1044_v15 = vadd.f32 %v2709_v53, %v1043_v11  ;;  %v845_v16 = vpop.f32.mrb[31].mxu0  ;;  %v1045_v17 = vpop.f32.mrb[31].mxu1 }
 0x151   :  { %v2019_v18 = vpack.c.bf16 %v1197_v12, %v1197_v12  ;;  %v2069_v19 = vpack.c.bf16 %v1247_v13, %v1247_v13  ;;  %v1198_v20 = vmax.f32 %v844_v14, 0.0  ;;  %v1248_v21 = vmax.f32 %v1044_v15, 0.0 }
 0x153   :  { %1698 = vst.msk [vmem:[%s3219_s3 + $0x38] sm:$0xf] %vm1683_vm0, %v2019_v18  ;;  %1748 = vst.msk [vmem:[%s3219_s3 + $0x100] sm:$0xf] %vm1683_vm0, %v2069_v19  ;;  %v2020_v22 = vpack.c.bf16 %v1198_v20, %v1198_v20  ;;  %v2070_v23 = vpack.c.bf16 %v1248_v21, %v1248_v21 }
 0x154   :  { %v848_v24 = vpop.f32.mrb[32].mxu0  ;;  %v1048_v25 = vpop.f32.mrb[32].mxu1 }
 0x155   :  { %1699 = vst.msk [vmem:[%s3219_s3 + $0x3c] sm:$0xf] %vm1683_vm0, %v2020_v22  ;;  %1749 = vst.msk [vmem:[%s3219_s3 + $0x104] sm:$0xf] %vm1683_vm0, %v2070_v23  ;;  %v849_v26 = vadd.f32 %v2709_v53, %v848_v24  ;;  %v1049_v27 = vadd.f32 %v2709_v53, %v1048_v25  ;;  %v850_v28 = vpop.f32.mrb[33].mxu0  ;;  %v1050_v29 = vpop.f32.mrb[33].mxu1 }
 0x156   :  { %v851_v30 = vpop.f32.mrb[34].mxu0  ;;  %v1051_v31 = vpop.f32.mrb[34].mxu1 }
 0x157   :  { %v1199_v32 = vmax.f32 %v849_v26, 0.0  ;;  %v1249_v33 = vmax.f32 %v1049_v27, 0.0  ;;  %v852_v34 = vadd.f32 %v2709_v53, %v851_v30  ;;  %v1052_v35 = vadd.f32 %v2709_v53, %v1051_v31  ;;  %v853_v36 = vpop.f32.mrb[35].mxu0  ;;  %v1053_v37 = vpop.f32.mrb[35].mxu1 }
 0x159   :  { %v2021_v38 = vpack.c.bf16 %v1199_v32, %v1199_v32  ;;  %v2071_v39 = vpack.c.bf16 %v1249_v33, %v1249_v33  ;;  %v1200_v40 = vmax.f32 %v852_v34, 0.0  ;;  %v1250_v41 = vmax.f32 %v1052_v35, 0.0 }
 0x15b   :  { %1700 = vst.msk [vmem:[%s3219_s3 + $0x40] sm:$0xf] %vm1683_vm0, %v2021_v38  ;;  %1750 = vst.msk [vmem:[%s3219_s3 + $0x108] sm:$0xf] %vm1683_vm0, %v2071_v39  ;;  %v2022_v42 = vpack.c.bf16 %v1200_v40, %v1200_v40  ;;  %v2072_v43 = vpack.c.bf16 %v1250_v41, %v1250_v41 }
 0x15c   :  { %v856_v44 = vpop.f32.mrb[36].mxu0  ;;  %v1056_v45 = vpop.f32.mrb[36].mxu1 }
 0x15d   :  { %1701 = vst.msk [vmem:[%s3219_s3 + $0x44] sm:$0xf] %vm1683_vm0, %v2022_v42  ;;  %1751 = vst.msk [vmem:[%s3219_s3 + $0x10c] sm:$0xf] %vm1683_vm0, %v2072_v43  ;;  %v857_v46 = vadd.f32 %v2709_v53, %v856_v44  ;;  %v1057_v47 = vadd.f32 %v2709_v53, %v1056_v45  ;;  %v858_v48 = vpop.f32.mrb[37].mxu0  ;;  %v1058_v49 = vpop.f32.mrb[37].mxu1 }
 0x15e   :  { %v859_v50 = vpop.f32.mrb[38].mxu0  ;;  %v1059_v51 = vpop.f32.mrb[38].mxu1 }
 0x15f   :  { %v1201_v52 = vmax.f32 %v857_v46, 0.0  ;;  %v1251_v54 = vmax.f32 %v1057_v47, 0.0  ;;  %v860_v55 = vadd.f32 %v2709_v53, %v859_v50  ;;  %v1060_v56 = vadd.f32 %v2709_v53, %v1059_v51  ;;  %v861_v57 = vpop.f32.mrb[39].mxu0  ;;  %v1061_v58 = vpop.f32.mrb[39].mxu1 }
 0x161   :  { %v2023_v59 = vpack.c.bf16 %v1201_v52, %v1201_v52  ;;  %v2073_v60 = vpack.c.bf16 %v1251_v54, %v1251_v54  ;;  %v1202_v61 = vmax.f32 %v860_v55, 0.0  ;;  %v1252_v62 = vmax.f32 %v1060_v56, 0.0 }
 0x163   :  { %1702 = vst.msk [vmem:[%s3219_s3 + $0x48] sm:$0xf] %vm1683_vm0, %v2023_v59  ;;  %1752 = vst.msk [vmem:[%s3219_s3 + $0x110] sm:$0xf] %vm1683_vm0, %v2073_v60  ;;  %v2024_v63 = vpack.c.bf16 %v1202_v61, %v1202_v61  ;;  %v2074_v0 = vpack.c.bf16 %v1252_v62, %v1252_v62 }
 0x164   :  { %v864_v1 = vpop.f32.mrb[40].mxu0  ;;  %v1064_v2 = vpop.f32.mrb[40].mxu1 }
 0x165   :  { %1703 = vst.msk [vmem:[%s3219_s3 + $0x4c] sm:$0xf] %vm1683_vm0, %v2024_v63  ;;  %1753 = vst.msk [vmem:[%s3219_s3 + $0x114] sm:$0xf] %vm1683_vm0, %v2074_v0  ;;  %v865_v3 = vadd.f32 %v2709_v53, %v864_v1  ;;  %v1065_v4 = vadd.f32 %v2709_v53, %v1064_v2  ;;  %v866_v5 = vpop.f32.mrb[41].mxu0  ;;  %v1066_v6 = vpop.f32.mrb[41].mxu1 }
 0x166   :  { %v867_v7 = vpop.f32.mrb[42].mxu0  ;;  %v1067_v8 = vpop.f32.mrb[42].mxu1 }
 0x167   :  { %v1203_v9 = vmax.f32 %v865_v3, 0.0  ;;  %v1253_v10 = vmax.f32 %v1065_v4, 0.0  ;;  %v868_v11 = vadd.f32 %v2709_v53, %v867_v7  ;;  %v1068_v12 = vadd.f32 %v2709_v53, %v1067_v8  ;;  %v869_v13 = vpop.f32.mrb[43].mxu0  ;;  %v1069_v14 = vpop.f32.mrb[43].mxu1 }
 0x169   :  { %v2025_v15 = vpack.c.bf16 %v1203_v9, %v1203_v9  ;;  %v2075_v16 = vpack.c.bf16 %v1253_v10, %v1253_v10  ;;  %v1204_v17 = vmax.f32 %v868_v11, 0.0  ;;  %v1254_v18 = vmax.f32 %v1068_v12, 0.0 }
 0x16b   :  { %1704 = vst.msk [vmem:[%s3219_s3 + $0x50] sm:$0xf] %vm1683_vm0, %v2025_v15  ;;  %1754 = vst.msk [vmem:[%s3219_s3 + $0x118] sm:$0xf] %vm1683_vm0, %v2075_v16  ;;  %v2026_v19 = vpack.c.bf16 %v1204_v17, %v1204_v17  ;;  %v2076_v20 = vpack.c.bf16 %v1254_v18, %v1254_v18 }
 0x16c   :  { %v872_v21 = vpop.f32.mrb[44].mxu0  ;;  %v1072_v22 = vpop.f32.mrb[44].mxu1 }
 0x16d   :  { %1705 = vst.msk [vmem:[%s3219_s3 + $0x54] sm:$0xf] %vm1683_vm0, %v2026_v19  ;;  %1755 = vst.msk [vmem:[%s3219_s3 + $0x11c] sm:$0xf] %vm1683_vm0, %v2076_v20  ;;  %v873_v23 = vadd.f32 %v2709_v53, %v872_v21  ;;  %v1073_v24 = vadd.f32 %v2709_v53, %v1072_v22  ;;  %v874_v25 = vpop.f32.mrb[45].mxu0  ;;  %v1074_v26 = vpop.f32.mrb[45].mxu1 }
 0x16e   :  { %v875_v27 = vpop.f32.mrb[46].mxu0  ;;  %v1075_v28 = vpop.f32.mrb[46].mxu1 }
 0x16f   :  { %v1205_v29 = vmax.f32 %v873_v23, 0.0  ;;  %v1255_v30 = vmax.f32 %v1073_v24, 0.0  ;;  %v876_v31 = vadd.f32 %v2709_v53, %v875_v27  ;;  %v1076_v32 = vadd.f32 %v2709_v53, %v1075_v28  ;;  %v877_v33 = vpop.f32.mrb[47].mxu0  ;;  %v1077_v34 = vpop.f32.mrb[47].mxu1 }
 0x171   :  { %v2027_v35 = vpack.c.bf16 %v1205_v29, %v1205_v29  ;;  %v2077_v36 = vpack.c.bf16 %v1255_v30, %v1255_v30  ;;  %v1206_v37 = vmax.f32 %v876_v31, 0.0  ;;  %v1256_v38 = vmax.f32 %v1076_v32, 0.0 }
 0x173   :  { %1706 = vst.msk [vmem:[%s3219_s3 + $0x58] sm:$0xf] %vm1683_vm0, %v2027_v35  ;;  %1756 = vst.msk [vmem:[%s3219_s3 + $0x120] sm:$0xf] %vm1683_vm0, %v2077_v36  ;;  %v2028_v39 = vpack.c.bf16 %v1206_v37, %v1206_v37  ;;  %v2078_v40 = vpack.c.bf16 %v1256_v38, %v1256_v38 }
 0x174   :  { %v880_v41 = vpop.f32.mrb[48].mxu0  ;;  %v1080_v42 = vpop.f32.mrb[48].mxu1 }
 0x175   :  { %1707 = vst.msk [vmem:[%s3219_s3 + $0x5c] sm:$0xf] %vm1683_vm0, %v2028_v39  ;;  %1757 = vst.msk [vmem:[%s3219_s3 + $0x124] sm:$0xf] %vm1683_vm0, %v2078_v40  ;;  %v881_v43 = vadd.f32 %v2709_v53, %v880_v41  ;;  %v1081_v44 = vadd.f32 %v2709_v53, %v1080_v42  ;;  %v882_v45 = vpop.f32.mrb[49].mxu0  ;;  %v1082_v46 = vpop.f32.mrb[49].mxu1 }
 0x176   :  { %v883_v47 = vpop.f32.mrb[50].mxu0  ;;  %v1083_v48 = vpop.f32.mrb[50].mxu1 }
 0x177   :  { %v1207_v49 = vmax.f32 %v881_v43, 0.0  ;;  %v1257_v50 = vmax.f32 %v1081_v44, 0.0  ;;  %v884_v51 = vadd.f32 %v2709_v53, %v883_v47  ;;  %v1084_v52 = vadd.f32 %v2709_v53, %v1083_v48  ;;  %v885_v54 = vpop.f32.mrb[51].mxu0  ;;  %v1085_v55 = vpop.f32.mrb[51].mxu1 }
 0x179   :  { %v2029_v56 = vpack.c.bf16 %v1207_v49, %v1207_v49  ;;  %v2079_v57 = vpack.c.bf16 %v1257_v50, %v1257_v50  ;;  %v1208_v58 = vmax.f32 %v884_v51, 0.0  ;;  %v1258_v59 = vmax.f32 %v1084_v52, 0.0 }
 0x17b   :  { %1708 = vst.msk [vmem:[%s3219_s3 + $0x60] sm:$0xf] %vm1683_vm0, %v2029_v56  ;;  %1758 = vst.msk [vmem:[%s3219_s3 + $0x128] sm:$0xf] %vm1683_vm0, %v2079_v57  ;;  %v2030_v60 = vpack.c.bf16 %v1208_v58, %v1208_v58  ;;  %v2080_v61 = vpack.c.bf16 %v1258_v59, %v1258_v59 }
 0x17c   :  { %v888_v62 = vpop.f32.mrb[52].mxu0  ;;  %v1088_v63 = vpop.f32.mrb[52].mxu1 }
 0x17d   :  { %1709 = vst.msk [vmem:[%s3219_s3 + $0x64] sm:$0xf] %vm1683_vm0, %v2030_v60  ;;  %1759 = vst.msk [vmem:[%s3219_s3 + $0x12c] sm:$0xf] %vm1683_vm0, %v2080_v61  ;;  %v889_v0 = vadd.f32 %v2709_v53, %v888_v62  ;;  %v1089_v1 = vadd.f32 %v2709_v53, %v1088_v63  ;;  %v890_v2 = vpop.f32.mrb[53].mxu0  ;;  %v1090_v3 = vpop.f32.mrb[53].mxu1 }
 0x17e   :  { %v891_v4 = vpop.f32.mrb[54].mxu0  ;;  %v1091_v5 = vpop.f32.mrb[54].mxu1 }
 0x17f   :  { %v1209_v6 = vmax.f32 %v889_v0, 0.0  ;;  %v1259_v7 = vmax.f32 %v1089_v1, 0.0  ;;  %v892_v8 = vadd.f32 %v2709_v53, %v891_v4  ;;  %v1092_v9 = vadd.f32 %v2709_v53, %v1091_v5  ;;  %v893_v10 = vpop.f32.mrb[55].mxu0  ;;  %v1093_v11 = vpop.f32.mrb[55].mxu1 }
 0x181   :  { %v2031_v12 = vpack.c.bf16 %v1209_v6, %v1209_v6  ;;  %v2081_v13 = vpack.c.bf16 %v1259_v7, %v1259_v7  ;;  %v1210_v14 = vmax.f32 %v892_v8, 0.0  ;;  %v1260_v15 = vmax.f32 %v1092_v9, 0.0 }
 0x183   :  { %1710 = vst.msk [vmem:[%s3219_s3 + $0x68] sm:$0xf] %vm1683_vm0, %v2031_v12  ;;  %1760 = vst.msk [vmem:[%s3219_s3 + $0x130] sm:$0xf] %vm1683_vm0, %v2081_v13  ;;  %v2032_v16 = vpack.c.bf16 %v1210_v14, %v1210_v14  ;;  %v2082_v17 = vpack.c.bf16 %v1260_v15, %v1260_v15 }
 0x184   :  { %v896_v18 = vpop.f32.mrb[56].mxu0  ;;  %v1096_v19 = vpop.f32.mrb[56].mxu1 }
 0x185   :  { %1711 = vst.msk [vmem:[%s3219_s3 + $0x6c] sm:$0xf] %vm1683_vm0, %v2032_v16  ;;  %1761 = vst.msk [vmem:[%s3219_s3 + $0x134] sm:$0xf] %vm1683_vm0, %v2082_v17  ;;  %v897_v20 = vadd.f32 %v2709_v53, %v896_v18  ;;  %v1097_v21 = vadd.f32 %v2709_v53, %v1096_v19  ;;  %v898_v22 = vpop.f32.mrb[57].mxu0  ;;  %v1098_v23 = vpop.f32.mrb[57].mxu1 }
 0x186   :  { %v899_v24 = vpop.f32.mrb[58].mxu0  ;;  %v1099_v25 = vpop.f32.mrb[58].mxu1 }
 0x187   :  { %v1211_v26 = vmax.f32 %v897_v20, 0.0  ;;  %v1261_v27 = vmax.f32 %v1097_v21, 0.0  ;;  %v900_v28 = vadd.f32 %v2709_v53, %v899_v24  ;;  %v1100_v29 = vadd.f32 %v2709_v53, %v1099_v25  ;;  %v901_v30 = vpop.f32.mrb[59].mxu0  ;;  %v1101_v31 = vpop.f32.mrb[59].mxu1 }
 0x189   :  { %v2033_v32 = vpack.c.bf16 %v1211_v26, %v1211_v26  ;;  %v2083_v33 = vpack.c.bf16 %v1261_v27, %v1261_v27  ;;  %v1212_v34 = vmax.f32 %v900_v28, 0.0  ;;  %v1262_v35 = vmax.f32 %v1100_v29, 0.0 }
 0x18b   :  { %1712 = vst.msk [vmem:[%s3219_s3 + $0x70] sm:$0xf] %vm1683_vm0, %v2033_v32  ;;  %1762 = vst.msk [vmem:[%s3219_s3 + $0x138] sm:$0xf] %vm1683_vm0, %v2083_v33  ;;  %v2034_v36 = vpack.c.bf16 %v1212_v34, %v1212_v34  ;;  %v2084_v37 = vpack.c.bf16 %v1262_v35, %v1262_v35 }
 0x18c   :  { %v904_v38 = vpop.f32.mrb[60].mxu0  ;;  %v1104_v39 = vpop.f32.mrb[60].mxu1 }
 0x18d   :  { %1713 = vst.msk [vmem:[%s3219_s3 + $0x74] sm:$0xf] %vm1683_vm0, %v2034_v36  ;;  %1763 = vst.msk [vmem:[%s3219_s3 + $0x13c] sm:$0xf] %vm1683_vm0, %v2084_v37  ;;  %v905_v40 = vadd.f32 %v2709_v53, %v904_v38  ;;  %v1105_v41 = vadd.f32 %v2709_v53, %v1104_v39  ;;  %v906_v42 = vpop.f32.mrb[61].mxu0  ;;  %v1106_v43 = vpop.f32.mrb[61].mxu1 }
 0x18e   :  { %v907_v44 = vpop.f32.mrb[62].mxu0  ;;  %v1107_v45 = vpop.f32.mrb[62].mxu1 }
 0x18f   :  { %v1213_v46 = vmax.f32 %v905_v40, 0.0  ;;  %v1263_v47 = vmax.f32 %v1105_v41, 0.0  ;;  %v908_v48 = vadd.f32 %v2709_v53, %v907_v44  ;;  %v1108_v49 = vadd.f32 %v2709_v53, %v1107_v45  ;;  %v909_v50 = vpop.f32.mrb[63].mxu0  ;;  %v1109_v51 = vpop.f32.mrb[63].mxu1 }
 0x191   :  { %v2035_v52 = vpack.c.bf16 %v1213_v46, %v1213_v46  ;;  %v2085_v54 = vpack.c.bf16 %v1263_v47, %v1263_v47  ;;  %v1214_v55 = vmax.f32 %v908_v48, 0.0  ;;  %v1264_v56 = vmax.f32 %v1108_v49, 0.0 }
 0x193   :  { %1714 = vst.msk [vmem:[%s3219_s3 + $0x78] sm:$0xf] %vm1683_vm0, %v2035_v52  ;;  %1764 = vst.msk [vmem:[%s3219_s3 + $0x140] sm:$0xf] %vm1683_vm0, %v2085_v54  ;;  %v2036_v57 = vpack.c.bf16 %v1214_v55, %v1214_v55  ;;  %v2086_v58 = vpack.c.bf16 %v1264_v56, %v1264_v56 }
 0x194   :  { %v912_v59 = vpop.f32.mrb[64].mxu0  ;;  %v1112_v60 = vpop.f32.mrb[64].mxu1 }
 0x195   :  { %1715 = vst.msk [vmem:[%s3219_s3 + $0x7c] sm:$0xf] %vm1683_vm0, %v2036_v57  ;;  %1765 = vst.msk [vmem:[%s3219_s3 + $0x144] sm:$0xf] %vm1683_vm0, %v2086_v58  ;;  %v913_v61 = vadd.f32 %v2709_v53, %v912_v59  ;;  %v1113_v62 = vadd.f32 %v2709_v53, %v1112_v60  ;;  %v914_v63 = vpop.f32.mrb[65].mxu0  ;;  %v1114_v0 = vpop.f32.mrb[65].mxu1 }
 0x196   :  { %v915_v1 = vpop.f32.mrb[66].mxu0  ;;  %v1115_v2 = vpop.f32.mrb[66].mxu1 }
 0x197   :  { %v1215_v3 = vmax.f32 %v913_v61, 0.0  ;;  %v1265_v4 = vmax.f32 %v1113_v62, 0.0  ;;  %v916_v5 = vadd.f32 %v2709_v53, %v915_v1  ;;  %v1116_v6 = vadd.f32 %v2709_v53, %v1115_v2  ;;  %v917_v7 = vpop.f32.mrb[67].mxu0  ;;  %v1117_v8 = vpop.f32.mrb[67].mxu1 }
 0x199   :  { %v2037_v9 = vpack.c.bf16 %v1215_v3, %v1215_v3  ;;  %v2087_v10 = vpack.c.bf16 %v1265_v4, %v1265_v4  ;;  %v1216_v11 = vmax.f32 %v916_v5, 0.0  ;;  %v1266_v12 = vmax.f32 %v1116_v6, 0.0 }
 0x19b   :  { %1716 = vst.msk [vmem:[%s3219_s3 + $0x80] sm:$0xf] %vm1683_vm0, %v2037_v9  ;;  %1766 = vst.msk [vmem:[%s3219_s3 + $0x148] sm:$0xf] %vm1683_vm0, %v2087_v10  ;;  %v2038_v13 = vpack.c.bf16 %v1216_v11, %v1216_v11  ;;  %v2088_v14 = vpack.c.bf16 %v1266_v12, %v1266_v12 }
 0x19c   :  { %v920_v15 = vpop.f32.mrb[68].mxu0  ;;  %v1120_v16 = vpop.f32.mrb[68].mxu1 }
 0x19d   :  { %1717 = vst.msk [vmem:[%s3219_s3 + $0x84] sm:$0xf] %vm1683_vm0, %v2038_v13  ;;  %1767 = vst.msk [vmem:[%s3219_s3 + $0x14c] sm:$0xf] %vm1683_vm0, %v2088_v14  ;;  %v921_v17 = vadd.f32 %v2709_v53, %v920_v15  ;;  %v1121_v18 = vadd.f32 %v2709_v53, %v1120_v16  ;;  %v922_v19 = vpop.f32.mrb[69].mxu0  ;;  %v1122_v20 = vpop.f32.mrb[69].mxu1 }
 0x19e   :  { %v923_v21 = vpop.f32.mrb[70].mxu0  ;;  %v1123_v22 = vpop.f32.mrb[70].mxu1 }
 0x19f   :  { %v1217_v23 = vmax.f32 %v921_v17, 0.0  ;;  %v1267_v24 = vmax.f32 %v1121_v18, 0.0  ;;  %v924_v25 = vadd.f32 %v2709_v53, %v923_v21  ;;  %v1124_v26 = vadd.f32 %v2709_v53, %v1123_v22  ;;  %v925_v27 = vpop.f32.mrb[71].mxu0  ;;  %v1125_v28 = vpop.f32.mrb[71].mxu1 }
 0x1a1   :  { %v2039_v29 = vpack.c.bf16 %v1217_v23, %v1217_v23  ;;  %v2089_v30 = vpack.c.bf16 %v1267_v24, %v1267_v24  ;;  %v1218_v31 = vmax.f32 %v924_v25, 0.0  ;;  %v1268_v32 = vmax.f32 %v1124_v26, 0.0 }
 0x1a3   :  { %1718 = vst.msk [vmem:[%s3219_s3 + $0x88] sm:$0xf] %vm1683_vm0, %v2039_v29  ;;  %1768 = vst.msk [vmem:[%s3219_s3 + $0x150] sm:$0xf] %vm1683_vm0, %v2089_v30  ;;  %v2040_v33 = vpack.c.bf16 %v1218_v31, %v1218_v31  ;;  %v2090_v34 = vpack.c.bf16 %v1268_v32, %v1268_v32 }
 0x1a4   :  { %v928_v35 = vpop.f32.mrb[72].mxu0  ;;  %v1128_v36 = vpop.f32.mrb[72].mxu1 }
 0x1a5   :  { %1719 = vst.msk [vmem:[%s3219_s3 + $0x8c] sm:$0xf] %vm1683_vm0, %v2040_v33  ;;  %1769 = vst.msk [vmem:[%s3219_s3 + $0x154] sm:$0xf] %vm1683_vm0, %v2090_v34  ;;  %v929_v37 = vadd.f32 %v2709_v53, %v928_v35  ;;  %v1129_v38 = vadd.f32 %v2709_v53, %v1128_v36  ;;  %v930_v39 = vpop.f32.mrb[73].mxu0  ;;  %v1130_v40 = vpop.f32.mrb[73].mxu1 }
 0x1a6   :  { %v931_v41 = vpop.f32.mrb[74].mxu0  ;;  %v1131_v42 = vpop.f32.mrb[74].mxu1 }
 0x1a7   :  { %v1219_v43 = vmax.f32 %v929_v37, 0.0  ;;  %v1269_v44 = vmax.f32 %v1129_v38, 0.0  ;;  %v932_v45 = vadd.f32 %v2709_v53, %v931_v41  ;;  %v1132_v46 = vadd.f32 %v2709_v53, %v1131_v42  ;;  %v933_v47 = vpop.f32.mrb[75].mxu0  ;;  %v1133_v48 = vpop.f32.mrb[75].mxu1  ;;  %v3136_v42 = vld [vmem:[%s3218_s2] ss:$0 sm:$0xff] }
 0x1a9   :  { %v2041_v49 = vpack.c.bf16 %v1219_v43, %v1219_v43  ;;  %v2091_v50 = vpack.c.bf16 %v1269_v44, %v1269_v44  ;;  %v1220_v51 = vmax.f32 %v932_v45, 0.0  ;;  %v1270_v52 = vmax.f32 %v1132_v46, 0.0 }
 0x1ab   :  { %1720 = vst.msk [vmem:[%s3219_s3 + $0x90] sm:$0xf] %vm1683_vm0, %v2041_v49  ;;  %1770 = vst.msk [vmem:[%s3219_s3 + $0x158] sm:$0xf] %vm1683_vm0, %v2091_v50  ;;  %v2042_v54 = vpack.c.bf16 %v1220_v51, %v1220_v51  ;;  %v2092_v55 = vpack.c.bf16 %v1270_v52, %v1270_v52 }
 0x1ac   :  { %v936_v56 = vpop.f32.mrb[76].mxu0  ;;  %v1136_v57 = vpop.f32.mrb[76].mxu1 }
 0x1ad   :  { %1721 = vst.msk [vmem:[%s3219_s3 + $0x94] sm:$0xf] %vm1683_vm0, %v2042_v54  ;;  %1771 = vst.msk [vmem:[%s3219_s3 + $0x15c] sm:$0xf] %vm1683_vm0, %v2092_v55  ;;  %v937_v58 = vadd.f32 %v2709_v53, %v936_v56  ;;  %v1137_v59 = vadd.f32 %v2709_v53, %v1136_v57  ;;  %v938_v60 = vpop.f32.mrb[77].mxu0  ;;  %v1138_v61 = vpop.f32.mrb[77].mxu1 }
 0x1ae   :  { %v939_v62 = vpop.f32.mrb[78].mxu0  ;;  %v1139_v63 = vpop.f32.mrb[78].mxu1 }
 0x1af   :  { %v1221_v0 = vmax.f32 %v937_v58, 0.0  ;;  %v1271_v1 = vmax.f32 %v1137_v59, 0.0  ;;  %v940_v2 = vadd.f32 %v2709_v53, %v939_v62  ;;  %v1140_v3 = vadd.f32 %v2709_v53, %v1139_v63  ;;  %v941_v4 = vpop.f32.mrb[79].mxu0  ;;  %v1141_v5 = vpop.f32.mrb[79].mxu1 }
 0x1b1   :  { %v2043_v6 = vpack.c.bf16 %v1221_v0, %v1221_v0  ;;  %v2093_v7 = vpack.c.bf16 %v1271_v1, %v1271_v1  ;;  %v1222_v8 = vmax.f32 %v940_v2, 0.0  ;;  %v1272_v9 = vmax.f32 %v1140_v3, 0.0 }
 0x1b3   :  { %1722 = vst.msk [vmem:[%s3219_s3 + $0x98] sm:$0xf] %vm1683_vm0, %v2043_v6  ;;  %1772 = vst.msk [vmem:[%s3219_s3 + $0x160] sm:$0xf] %vm1683_vm0, %v2093_v7  ;;  %v2044_v10 = vpack.c.bf16 %v1222_v8, %v1222_v8  ;;  %v2094_v11 = vpack.c.bf16 %v1272_v9, %v1272_v9 }
 0x1b4   :  { %v944_v12 = vpop.f32.mrb[80].mxu0  ;;  %v1144_v13 = vpop.f32.mrb[80].mxu1 }
 0x1b5   :  { %1723 = vst.msk [vmem:[%s3219_s3 + $0x9c] sm:$0xf] %vm1683_vm0, %v2044_v10  ;;  %1773 = vst.msk [vmem:[%s3219_s3 + $0x164] sm:$0xf] %vm1683_vm0, %v2094_v11  ;;  %v945_v14 = vadd.f32 %v2709_v53, %v944_v12  ;;  %v1145_v15 = vadd.f32 %v2709_v53, %v1144_v13  ;;  %v946_v16 = vpop.f32.mrb[81].mxu0  ;;  %v1146_v17 = vpop.f32.mrb[81].mxu1 }
 0x1b6   :  { %v947_v18 = vpop.f32.mrb[82].mxu0  ;;  %v1147_v19 = vpop.f32.mrb[82].mxu1 }
 0x1b7   :  { %v1223_v20 = vmax.f32 %v945_v14, 0.0  ;;  %v1273_v21 = vmax.f32 %v1145_v15, 0.0  ;;  %v948_v22 = vadd.f32 %v2709_v53, %v947_v18  ;;  %v1148_v23 = vadd.f32 %v2709_v53, %v1147_v19  ;;  %v949_v24 = vpop.f32.mrb[83].mxu0  ;;  %v1149_v25 = vpop.f32.mrb[83].mxu1 }
 0x1b9   :  { %v2045_v26 = vpack.c.bf16 %v1223_v20, %v1223_v20  ;;  %v2095_v27 = vpack.c.bf16 %v1273_v21, %v1273_v21  ;;  %v1224_v28 = vmax.f32 %v948_v22, 0.0  ;;  %v1274_v29 = vmax.f32 %v1148_v23, 0.0 }
 0x1bb   :  { %1724 = vst.msk [vmem:[%s3219_s3 + $0xa0] sm:$0xf] %vm1683_vm0, %v2045_v26  ;;  %1774 = vst.msk [vmem:[%s3219_s3 + $0x168] sm:$0xf] %vm1683_vm0, %v2095_v27  ;;  %v2046_v30 = vpack.c.bf16 %v1224_v28, %v1224_v28  ;;  %v2096_v31 = vpack.c.bf16 %v1274_v29, %v1274_v29 }
 0x1bc   :  { %v952_v32 = vpop.f32.mrb[84].mxu0  ;;  %v1152_v33 = vpop.f32.mrb[84].mxu1 }
 0x1bd   :  { %1725 = vst.msk [vmem:[%s3219_s3 + $0xa4] sm:$0xf] %vm1683_vm0, %v2046_v30  ;;  %1775 = vst.msk [vmem:[%s3219_s3 + $0x16c] sm:$0xf] %vm1683_vm0, %v2096_v31  ;;  %v953_v34 = vadd.f32 %v2709_v53, %v952_v32  ;;  %v1153_v35 = vadd.f32 %v2709_v53, %v1152_v33  ;;  %v954_v36 = vpop.f32.mrb[85].mxu0  ;;  %v1154_v37 = vpop.f32.mrb[85].mxu1 }
 0x1be   :  { %v955_v38 = vpop.f32.mrb[86].mxu0  ;;  %v1155_v39 = vpop.f32.mrb[86].mxu1 }
 0x1bf   :  { %v1225_v40 = vmax.f32 %v953_v34, 0.0  ;;  %v1275_v41 = vmax.f32 %v1153_v35, 0.0  ;;  %v956_v43 = vadd.f32 %v3136_v42, %v955_v38  ;;  %v1156_v44 = vadd.f32 %v3136_v42, %v1155_v39  ;;  %v957_v45 = vpop.f32.mrb[87].mxu0  ;;  %v1157_v46 = vpop.f32.mrb[87].mxu1 }
 0x1c1   :  { %v2047_v47 = vpack.c.bf16 %v1225_v40, %v1225_v40  ;;  %v2097_v48 = vpack.c.bf16 %v1275_v41, %v1275_v41  ;;  %v1226_v53 = vmax.f32 %v956_v43, 0.0  ;;  %v1276_v49 = vmax.f32 %v1156_v44, 0.0 }
 0x1c3   :  { %1726 = vst.msk [vmem:[%s3219_s3 + $0xa8] sm:$0xf] %vm1683_vm0, %v2047_v47  ;;  %1776 = vst.msk [vmem:[%s3219_s3 + $0x170] sm:$0xf] %vm1683_vm0, %v2097_v48  ;;  %v2048_v50 = vpack.c.bf16 %v1226_v53, %v1226_v53  ;;  %v2098_v51 = vpack.c.bf16 %v1276_v49, %v1276_v49 }
 0x1c4   :  { %v960_v52 = vpop.f32.mrb[88].mxu0  ;;  %v1160_v54 = vpop.f32.mrb[88].mxu1 }
 0x1c5   :  { %1727 = vst.msk [vmem:[%s3219_s3 + $0xac] sm:$0xf] %vm1683_vm0, %v2048_v50  ;;  %1777 = vst.msk [vmem:[%s3219_s3 + $0x174] sm:$0xf] %vm1683_vm0, %v2098_v51  ;;  %v961_v55 = vadd.f32 %v3136_v42, %v960_v52  ;;  %v1161_v56 = vadd.f32 %v3136_v42, %v1160_v54  ;;  %v962_v57 = vpop.f32.mrb[89].mxu0  ;;  %v1162_v58 = vpop.f32.mrb[89].mxu1 }
 0x1c6   :  { %v963_v59 = vpop.f32.mrb[90].mxu0  ;;  %v1163_v60 = vpop.f32.mrb[90].mxu1 }
 0x1c7   :  { %v1227_v61 = vmax.f32 %v961_v55, 0.0  ;;  %v1277_v62 = vmax.f32 %v1161_v56, 0.0  ;;  %v964_v63 = vadd.f32 %v3136_v42, %v963_v59  ;;  %v1164_v0 = vadd.f32 %v3136_v42, %v1163_v60  ;;  %v965_v1 = vpop.f32.mrb[91].mxu0  ;;  %v1165_v2 = vpop.f32.mrb[91].mxu1 }
 0x1c9   :  { %v2049_v3 = vpack.c.bf16 %v1227_v61, %v1227_v61  ;;  %v2099_v4 = vpack.c.bf16 %v1277_v62, %v1277_v62  ;;  %v1228_v5 = vmax.f32 %v964_v63, 0.0  ;;  %v1278_v6 = vmax.f32 %v1164_v0, 0.0 }
 0x1cb   :  { %1728 = vst.msk [vmem:[%s3219_s3 + $0xb0] sm:$0xf] %vm1683_vm0, %v2049_v3  ;;  %1778 = vst.msk [vmem:[%s3219_s3 + $0x178] sm:$0xf] %vm1683_vm0, %v2099_v4  ;;  %v2050_v7 = vpack.c.bf16 %v1228_v5, %v1228_v5  ;;  %v2100_v8 = vpack.c.bf16 %v1278_v6, %v1278_v6 }
 0x1cc   :  { %v968_v9 = vpop.f32.mrb[92].mxu0  ;;  %v1168_v10 = vpop.f32.mrb[92].mxu1 }
 0x1cd   :  { %1729 = vst.msk [vmem:[%s3219_s3 + $0xb4] sm:$0xf] %vm1683_vm0, %v2050_v7  ;;  %1779 = vst.msk [vmem:[%s3219_s3 + $0x17c] sm:$0xf] %vm1683_vm0, %v2100_v8  ;;  %v969_v11 = vadd.f32 %v3136_v42, %v968_v9  ;;  %v1169_v12 = vadd.f32 %v3136_v42, %v1168_v10  ;;  %v970_v13 = vpop.f32.mrb[93].mxu0  ;;  %v1170_v14 = vpop.f32.mrb[93].mxu1 }
 0x1ce   :  { %v971_v15 = vpop.f32.mrb[94].mxu0  ;;  %v1171_v16 = vpop.f32.mrb[94].mxu1 }
 0x1cf   :  { %v1229_v17 = vmax.f32 %v969_v11, 0.0  ;;  %v1279_v18 = vmax.f32 %v1169_v12, 0.0  ;;  %v972_v19 = vadd.f32 %v3136_v42, %v971_v15  ;;  %v1172_v20 = vadd.f32 %v3136_v42, %v1171_v16  ;;  %v973_v21 = vpop.f32.mrb[95].mxu0  ;;  %v1173_v22 = vpop.f32.mrb[95].mxu1 }
 0x1d1   :  { %v2051_v23 = vpack.c.bf16 %v1229_v17, %v1229_v17  ;;  %v2101_v24 = vpack.c.bf16 %v1279_v18, %v1279_v18  ;;  %v1230_v25 = vmax.f32 %v972_v19, 0.0  ;;  %v1280_v26 = vmax.f32 %v1172_v20, 0.0 }
 0x1d3   :  { %1730 = vst.msk [vmem:[%s3219_s3 + $0xb8] sm:$0xf] %vm1683_vm0, %v2051_v23  ;;  %1780 = vst.msk [vmem:[%s3219_s3 + $0x180] sm:$0xf] %vm1683_vm0, %v2101_v24  ;;  %v2052_v27 = vpack.c.bf16 %v1230_v25, %v1230_v25  ;;  %v2102_v28 = vpack.c.bf16 %v1280_v26, %v1280_v26 }
 0x1d4   :  { %v976_v29 = vpop.f32.mrb[96].mxu0  ;;  %v1176_v30 = vpop.f32.mrb[96].mxu1 }
 0x1d5   :  { %1731 = vst.msk [vmem:[%s3219_s3 + $0xbc] sm:$0xf] %vm1683_vm0, %v2052_v27  ;;  %1781 = vst.msk [vmem:[%s3219_s3 + $0x184] sm:$0xf] %vm1683_vm0, %v2102_v28  ;;  %v977_v31 = vadd.f32 %v3136_v42, %v976_v29  ;;  %v1177_v32 = vadd.f32 %v3136_v42, %v1176_v30  ;;  %v978_v33 = vpop.f32.mrb[97].mxu0  ;;  %v1178_v34 = vpop.f32.mrb[97].mxu1 }
 0x1d6   :  { %v979_v35 = vpop.f32.mrb[98].mxu0  ;;  %v1179_v36 = vpop.f32.mrb[98].mxu1 }
 0x1d7   :  { %v1231_v37 = vmax.f32 %v977_v31, 0.0  ;;  %v1281_v38 = vmax.f32 %v1177_v32, 0.0  ;;  %v980_v39 = vadd.f32 %v3136_v42, %v979_v35  ;;  %v1180_v40 = vadd.f32 %v3136_v42, %v1179_v36  ;;  %v981_v41 = vpop.f32.mrb[99].mxu0  ;;  %v1181_v43 = vpop.f32.mrb[99].mxu1 }
 0x1d9   :  { %v2053_v44 = vpack.c.bf16 %v1231_v37, %v1231_v37  ;;  %v2103_v45 = vpack.c.bf16 %v1281_v38, %v1281_v38  ;;  %v1232_v46 = vmax.f32 %v980_v39, 0.0  ;;  %v1282_v47 = vmax.f32 %v1180_v40, 0.0 }
 0x1db   :  { %1732 = vst.msk [vmem:[%s3219_s3 + $0xc0] sm:$0xf] %vm1683_vm0, %v2053_v44  ;;  %1782 = vst.msk [vmem:[%s3219_s3 + $0x188] sm:$0xf] %vm1683_vm0, %v2103_v45  ;;  %v2054_v48 = vpack.c.bf16 %v1232_v46, %v1232_v46  ;;  %v2104_v53 = vpack.c.bf16 %v1282_v47, %v1282_v47 }
 0x1dd   :  { %1733 = vst.msk [vmem:[%s3219_s3 + $0xc4] sm:$0xf] %vm1683_vm0, %v2054_v48  ;;  %1783 = vst.msk [vmem:[%s3219_s3 + $0x18c] sm:$0xf] %vm1683_vm0, %v2104_v53 }

// kernel: model_forward.5
= control target key start
LH: loop header
LB: loop body
LE: loop exit
PB: predicated region body
PF: predicated region fallthrough
CT: control target
= control target key end

     0   :  { %vm880_vm0 = vcmask 519168   ;;  %vm901_vm1 = vcmask 516096   ;;  %s1637_s1 = inlined_call_operand.vmem [shape: bf16[512,64], index: 1, kind: input, shape index: {}]   ;;  %s1638_s0 = inlined_call_operand.vmem [shape: bf16[162,512], index: 0, kind: input, shape index: {}]   ;;  %s1639_s2 = inlined_call_operand.vmem [shape: f32[1,64], index: 2, kind: input, shape index: {}]   ;;  %s1640_s3 = inlined_call_operand.vmem [shape: bf16[162,64], index: 3, kind: output, shape index: {}]  }
   0x1   :  { %v1190_v0 = vld [vmem:[%s1637_s1 + $0x40] sm:$0xff]   ;;  %v1194_v4 = vld [vmem:[%s1637_s1 + $0x48] sm:$0xff]   ;;  %v1198_v8 = vld [vmem:[%s1637_s1 + $0x50] sm:$0xff]  }
   0x2   :  { %v1191_v1 = vld [vmem:[%s1637_s1 + $0xc0] sm:$0xff]   ;;  %1026 = vmatprep.subr.bf16.mxu0 %v1190_v0  ;;  %v1195_v5 = vld [vmem:[%s1637_s1 + $0xc8] sm:$0xff]   ;;  %v1199_v9 = vld [vmem:[%s1637_s1 + $0xd0] sm:$0xff]  }
   0x3   :  { %v1192_v2 = vld [vmem:[%s1637_s1] sm:$0xff]   ;;  %1108 = vmatprep.subr.bf16.mxu1 %v1191_v1  ;;  %v1196_v6 = vld [vmem:[%s1637_s1 + $0x8] sm:$0xff]   ;;  %v1200_v10 = vld [vmem:[%s1637_s1 + $0x10] sm:$0xff]  }
   0x4   :  { %v1193_v3 = vld [vmem:[%s1637_s1 + $0x80] sm:$0xff]   ;;  %1027 = vmatpush3.bf16.msra.mxu0 %v1192_v2  ;;  %v1197_v7 = vld [vmem:[%s1637_s1 + $0x88] sm:$0xff]   ;;  %v1201_v11 = vld [vmem:[%s1637_s1 + $0x90] sm:$0xff]  }
   0x5   :  { %1109 = vmatpush3.bf16.msra.mxu1 %v1193_v3  ;;  %1028 = vmatprep.subr.bf16.mxu0 %v1194_v4  ;;  %v1202_v12 = vld [vmem:[%s1637_s1 + $0x58] sm:$0xff]   ;;  %v1206_v16 = vld [vmem:[%s1637_s1 + $0x60] sm:$0xff]   ;;  %v1210_v20 = vld [vmem:[%s1637_s1 + $0x68] sm:$0xff]  }
   0x6   :  { %1110 = vmatprep.subr.bf16.mxu1 %v1195_v5  ;;  %v1203_v13 = vld [vmem:[%s1637_s1 + $0xd8] sm:$0xff]   ;;  %v1207_v17 = vld [vmem:[%s1637_s1 + $0xe0] sm:$0xff]   ;;  %v1211_v21 = vld [vmem:[%s1637_s1 + $0xe8] sm:$0xff]  }
   0x7   :  { %v1204_v14 = vld [vmem:[%s1637_s1 + $0x18] sm:$0xff]   ;;  %v1208_v18 = vld [vmem:[%s1637_s1 + $0x20] sm:$0xff]   ;;  %v1212_v22 = vld [vmem:[%s1637_s1 + $0x28] sm:$0xff]  }
   0x8   :  { %1029 = vmatpush3.bf16.msra.mxu0 %v1196_v6  ;;  %v1205_v15 = vld [vmem:[%s1637_s1 + $0x98] sm:$0xff]   ;;  %v1209_v19 = vld [vmem:[%s1637_s1 + $0xa0] sm:$0xff]   ;;  %v1213_v23 = vld [vmem:[%s1637_s1 + $0xa8] sm:$0xff]  }
   0x9   :  { %1111 = vmatpush3.bf16.msra.mxu1 %v1197_v7  ;;  %1030 = vmatprep.subr.bf16.mxu0 %v1198_v8  ;;  %v1214_v24 = vld [vmem:[%s1637_s1 + $0x70] sm:$0xff]   ;;  %v1218_v28 = vld [vmem:[%s1637_s1 + $0x78] sm:$0xff]   ;;  %v55_v6 = vld [vmem:[%s1638_s0 + $0x140] sm:$0x11] }
   0xa   :  { %1112 = vmatprep.subr.bf16.mxu1 %v1199_v9  ;;  %v1215_v25 = vld [vmem:[%s1637_s1 + $0xf0] sm:$0xff]   ;;  %v1219_v29 = vld [vmem:[%s1637_s1 + $0xf8] sm:$0xff]   ;;  %v56_v7 = vld [vmem:[%s1638_s0 + $0x148] sm:$0x11] }
   0xb   :  { %v1216_v26 = vld [vmem:[%s1637_s1 + $0x30] sm:$0xff]   ;;  %v1220_v30 = vld [vmem:[%s1637_s1 + $0x38] sm:$0xff]  }
   0xc   :  { %1031 = vmatpush3.bf16.msra.mxu0 %v1200_v10  ;;  %v1217_v27 = vld [vmem:[%s1637_s1 + $0xb0] sm:$0xff]   ;;  %v1221_v31 = vld [vmem:[%s1637_s1 + $0xb8] sm:$0xff]   ;;  %v949_v10 = vcombine.high %v55_v6, %v55_v6 }
   0xd   :  { %1113 = vmatpush3.bf16.msra.mxu1 %v1201_v11  ;;  %1032 = vmatprep.subr.bf16.mxu0 %v1202_v12  ;;  %v1222_v32 = vld [vmem:[%s1638_s0] ss:$16 sps:$4 sm:$0xff]   ;;  %v1224_v33 = vld [vmem:[%s1638_s0 + $0x4] ss:$16 sps:$4 sm:$0xff]   ;;  %v1225_v34 = vld [vmem:[%s1638_s0 + $0x8] ss:$16 sps:$4 sm:$0xff]   ;;  %v951_v11 = vcombine.high %v56_v7, %v56_v7  ;;  %v948_v12 = vcombine.low %v55_v6, %v55_v6 }
   0xe   :  { %1114 = vmatprep.subr.bf16.mxu1 %v1203_v13  ;;  %v1227_v35 = vld [vmem:[%s1638_s0 + $0xc] ss:$16 sps:$4 sm:$0xff]   ;;  %566 = vmatprep.mubr.bf16.mxu0 %v1224_v33  ;;  %v1228_v36 = vld [vmem:[%s1638_s0 + $0x24] ss:$16 sps:$4 sm:$0xff]   ;;  %v1232_v38 = vld [vmem:[%s1638_s0 + $0x20] ss:$16 sps:$4 sm:$0xff]   ;;  %v950_v13 = vcombine.low %v56_v7, %v56_v7 }
   0xf   :  { %686 = vmatprep.mubr.bf16.mxu1 %v1227_v35  ;;  %v1230_v37 = vld [vmem:[%s1638_s0 + $0x2c] ss:$16 sps:$4 sm:$0xff]   ;;  %v1233_v39 = vld [vmem:[%s1638_s0 + $0x28] ss:$16 sps:$4 sm:$0xff]   ;;  %v1234_v40 = vld [vmem:[%s1638_s0 + $0x44] ss:$16 sps:$4 sm:$0xff]  }
  0x10   :  { %1033 = vmatpush3.bf16.msra.mxu0 %v1204_v14  ;;  %v1236_v41 = vld [vmem:[%s1638_s0 + $0x4c] ss:$16 sps:$4 sm:$0xff]   ;;  %v1238_v42 = vld [vmem:[%s1638_s0 + $0x40] ss:$16 sps:$4 sm:$0xff]   ;;  %v1239_v43 = vld [vmem:[%s1638_s0 + $0x48] ss:$16 sps:$4 sm:$0xff]  }
  0x11   :  { %1115 = vmatpush3.bf16.msra.mxu1 %v1205_v15  ;;  %1034 = vmatprep.subr.bf16.mxu0 %v1206_v16  ;;  %v1240_v44 = vld [vmem:[%s1638_s0 + $0x64] ss:$16 sps:$4 sm:$0xff]   ;;  %v1242_v45 = vld [vmem:[%s1638_s0 + $0x6c] ss:$16 sps:$4 sm:$0xff]   ;;  %v1244_v46 = vld [vmem:[%s1638_s0 + $0x60] ss:$16 sps:$4 sm:$0xff]  }
  0x12   :  { %1116 = vmatprep.subr.bf16.mxu1 %v1207_v17  ;;  %v1245_v47 = vld [vmem:[%s1638_s0 + $0x68] ss:$16 sps:$4 sm:$0xff]   ;;  %v1246_v48 = vld [vmem:[%s1638_s0 + $0x84] ss:$16 sps:$4 sm:$0xff]   ;;  %v1248_v49 = vld [vmem:[%s1638_s0 + $0x8c] ss:$16 sps:$4 sm:$0xff]  }
  0x13   :  { %v1250_v50 = vld [vmem:[%s1638_s0 + $0x80] ss:$16 sps:$4 sm:$0xff]   ;;  %v1251_v51 = vld [vmem:[%s1638_s0 + $0x88] ss:$16 sps:$4 sm:$0xff]   ;;  %v1252_v52 = vld [vmem:[%s1638_s0 + $0xa4] ss:$16 sps:$4 sm:$0xff]  }
  0x14   :  { %1035 = vmatpush3.bf16.msra.mxu0 %v1208_v18  ;;  %v1254_v53 = vld [vmem:[%s1638_s0 + $0xac] ss:$16 sps:$4 sm:$0xff]   ;;  %v1256_v54 = vld [vmem:[%s1638_s0 + $0xa0] ss:$16 sps:$4 sm:$0xff]   ;;  %v1257_v55 = vld [vmem:[%s1638_s0 + $0xa8] ss:$16 sps:$4 sm:$0xff]  }
  0x15   :  { %1117 = vmatpush3.bf16.msra.mxu1 %v1209_v19  ;;  %1036 = vmatprep.subr.bf16.mxu0 %v1210_v20  ;;  %v1258_v56 = vld [vmem:[%s1638_s0 + $0xc4] ss:$16 sps:$4 sm:$0xff]   ;;  %v1260_v57 = vld [vmem:[%s1638_s0 + $0xcc] ss:$16 sps:$4 sm:$0xff]   ;;  %v1262_v58 = vld [vmem:[%s1638_s0 + $0xc0] ss:$16 sps:$4 sm:$0xff]  }
  0x16   :  { %1118 = vmatprep.subr.bf16.mxu1 %v1211_v21  ;;  %v1263_v59 = vld [vmem:[%s1638_s0 + $0xc8] ss:$16 sps:$4 sm:$0xff]   ;;  %v1264_v60 = vld [vmem:[%s1638_s0 + $0xe4] ss:$16 sps:$4 sm:$0xff]   ;;  %v1266_v61 = vld [vmem:[%s1638_s0 + $0xec] ss:$16 sps:$4 sm:$0xff]  }
  0x17   :  { %v1268_v62 = vld [vmem:[%s1638_s0 + $0xe0] ss:$16 sps:$4 sm:$0xff]   ;;  %v1269_v63 = vld [vmem:[%s1638_s0 + $0xe8] ss:$16 sps:$4 sm:$0xff]   ;;  %v1270_v0 = vld [vmem:[%s1638_s0 + $0x104] ss:$16 sps:$4 sm:$0xff]  }
  0x18   :  { %1037 = vmatpush3.bf16.msra.mxu0 %v1212_v22  ;;  %v1272_v1 = vld [vmem:[%s1638_s0 + $0x10c] ss:$16 sps:$4 sm:$0xff]   ;;  %v1274_v2 = vld [vmem:[%s1638_s0 + $0x100] ss:$16 sps:$4 sm:$0xff]   ;;  %v1275_v3 = vld [vmem:[%s1638_s0 + $0x108] ss:$16 sps:$4 sm:$0xff]  }
  0x19   :  { %1119 = vmatpush3.bf16.msra.mxu1 %v1213_v23  ;;  %1038 = vmatprep.subr.bf16.mxu0 %v1214_v24  ;;  %v1276_v4 = vld [vmem:[%s1638_s0 + $0x124] ss:$16 sps:$4 sm:$0xff]   ;;  %v1278_v5 = vld [vmem:[%s1638_s0 + $0x12c] ss:$16 sps:$4 sm:$0xff]   ;;  %v1280_v8 = vld [vmem:[%s1638_s0 + $0x120] ss:$16 sps:$4 sm:$0xff]  }
  0x1a   :  { %1120 = vmatprep.subr.bf16.mxu1 %v1215_v25  ;;  %v1281_v9 = vld [vmem:[%s1638_s0 + $0x128] ss:$16 sps:$4 sm:$0xff]   ;;  %v1531_v16 = vld [vmem:[%s1639_s2] ss:$0 sm:$0xff] }
  0x1c   :  { %1039 = vmatpush3.bf16.msra.mxu0 %v1216_v26 }
  0x1d   :  { %1121 = vmatpush3.bf16.msra.mxu1 %v1217_v27  ;;  %1040 = vmatprep.subr.bf16.mxu0 %v1218_v28 }
  0x1e   :  { %1122 = vmatprep.subr.bf16.mxu1 %v1219_v29 }
  0x20   :  { %1041 = vmatpush3.bf16.msra.mxu0 %v1220_v30 }
  0x21   :  { %1123 = vmatpush3.bf16.msra.mxu1 %v1221_v31 }
  0x23   :  { %567 = vmatmul.mubr.bf16.vlgmr.msra.gmra.mrb[0].mxu0 %v1222_v32 }
  0x24   :  { %687 = vmatmul.mubr.bf16.vlgmr.msra.gmra.mrb[0].mxu1 %v1225_v34  ;;  %574 = vmatprep.mubr.bf16.mxu0 %v1228_v36 }
  0x25   :  { %694 = vmatprep.mubr.bf16.mxu1 %v1230_v37 }
  0x2b   :  { %575 = vmatmul.mubr.bf16.gmra.mrb[4].mxu0 %v1232_v38 }
  0x2c   :  { %695 = vmatmul.mubr.bf16.gmra.mrb[4].mxu1 %v1233_v39  ;;  %582 = vmatprep.mubr.bf16.mxu0 %v1234_v40 }
  0x2d   :  { %702 = vmatprep.mubr.bf16.mxu1 %v1236_v41 }
  0x33   :  { %583 = vmatmul.mubr.bf16.gmra.mrb[8].mxu0 %v1238_v42 }
  0x34   :  { %703 = vmatmul.mubr.bf16.gmra.mrb[8].mxu1 %v1239_v43  ;;  %590 = vmatprep.mubr.bf16.mxu0 %v1240_v44 }
  0x35   :  { %710 = vmatprep.mubr.bf16.mxu1 %v1242_v45 }
  0x3b   :  { %591 = vmatmul.mubr.bf16.gmra.mrb[12].mxu0 %v1244_v46 }
  0x3c   :  { %711 = vmatmul.mubr.bf16.gmra.mrb[12].mxu1 %v1245_v47  ;;  %598 = vmatprep.mubr.bf16.mxu0 %v1246_v48 }
  0x3d   :  { %718 = vmatprep.mubr.bf16.mxu1 %v1248_v49 }
  0x43   :  { %599 = vmatmul.mubr.bf16.gmra.mrb[16].mxu0 %v1250_v50 }
  0x44   :  { %719 = vmatmul.mubr.bf16.gmra.mrb[16].mxu1 %v1251_v51  ;;  %606 = vmatprep.mubr.bf16.mxu0 %v1252_v52 }
  0x45   :  { %726 = vmatprep.mubr.bf16.mxu1 %v1254_v53 }
  0x4b   :  { %607 = vmatmul.mubr.bf16.gmra.mrb[20].mxu0 %v1256_v54 }
  0x4c   :  { %727 = vmatmul.mubr.bf16.gmra.mrb[20].mxu1 %v1257_v55  ;;  %614 = vmatprep.mubr.bf16.mxu0 %v1258_v56 }
  0x4d   :  { %734 = vmatprep.mubr.bf16.mxu1 %v1260_v57 }
  0x53   :  { %615 = vmatmul.mubr.bf16.gmra.mrb[24].mxu0 %v1262_v58 }
  0x54   :  { %735 = vmatmul.mubr.bf16.gmra.mrb[24].mxu1 %v1263_v59  ;;  %622 = vmatprep.mubr.bf16.mxu0 %v1264_v60 }
  0x55   :  { %742 = vmatprep.mubr.bf16.mxu1 %v1266_v61 }
  0x5b   :  { %623 = vmatmul.mubr.bf16.gmra.mrb[28].mxu0 %v1268_v62 }
  0x5c   :  { %743 = vmatmul.mubr.bf16.gmra.mrb[28].mxu1 %v1269_v63  ;;  %630 = vmatprep.mubr.bf16.mxu0 %v1270_v0 }
  0x5d   :  { %750 = vmatprep.mubr.bf16.mxu1 %v1272_v1 }
  0x63   :  { %631 = vmatmul.mubr.bf16.gmra.mrb[32].mxu0 %v1274_v2 }
  0x64   :  { %751 = vmatmul.mubr.bf16.gmra.mrb[32].mxu1 %v1275_v3  ;;  %638 = vmatprep.mubr.bf16.mxu0 %v1276_v4 }
  0x65   :  { %758 = vmatprep.mubr.bf16.mxu1 %v1278_v5 }
  0x6b   :  { %639 = vmatmul.mubr.bf16.gmra.mrb[36].mxu0 %v1280_v8 }
  0x6c   :  { %759 = vmatmul.mubr.bf16.gmra.mrb[36].mxu1 %v1281_v9  ;;  %646 = vmatprep.mubr.bf16.mxu0 %v949_v10 }
  0x6d   :  { %766 = vmatprep.mubr.bf16.mxu1 %v951_v11 }
  0x73   :  { %647 = vmatmul.mubr.bf16.gmra.mrb[40].mxu0 %v948_v12 }
  0x74   :  { %767 = vmatmul.mubr.bf16.gmra.mrb[40].mxu1 %v950_v13 }
  0xf6   :  { %v1042_v14 = vpop.f32.mrb[0].mxu0 }
  0xf7   :  { %v1124_v15 = vpop.f32.mrb[0].mxu1  ;;  %v1043_v17 = vpop.f32.mrb[1].mxu0 }
  0xf8   :  { %v1044_v18 = vadd.f32 %v1043_v17, %v1042_v14  ;;  %v1125_v19 = vpop.f32.mrb[1].mxu1  ;;  %v1045_v20 = vpop.f32.mrb[2].mxu0 }
  0xf9   :  { %v1126_v21 = vadd.f32 %v1125_v19, %v1124_v15  ;;  %v1127_v22 = vpop.f32.mrb[2].mxu1  ;;  %v1046_v23 = vpop.f32.mrb[3].mxu0 }
  0xfa   :  { %v569_v24 = vadd.f32 %v1044_v18, %v1531_v16  ;;  %v1047_v25 = vadd.f32 %v1046_v23, %v1045_v20  ;;  %v1128_v26 = vpop.f32.mrb[3].mxu1 }
  0xfb   :  { %v1129_v27 = vadd.f32 %v1128_v26, %v1127_v22 }
  0xfc   :  { %v689_v28 = vadd.f32 %v1126_v21, %v569_v24  ;;  %v572_v29 = vadd.f32 %v1047_v25, %v1531_v16 }
  0xfe   :  { %v774_v30 = vmax.f32 %v689_v28, 0.0  ;;  %v692_v31 = vadd.f32 %v1129_v27, %v572_v29  ;;  %v1048_v32 = vpop.f32.mrb[4].mxu0 }
  0xff   :  { %v1130_v33 = vpop.f32.mrb[4].mxu1  ;;  %v1049_v34 = vpop.f32.mrb[5].mxu0 }
 0x100   :  { %v1005_v35 = vpack.c.bf16 %v774_v30, %v774_v30  ;;  %v775_v36 = vmax.f32 %v692_v31, 0.0  ;;  %v1050_v37 = vadd.f32 %v1049_v34, %v1048_v32  ;;  %v1131_v38 = vpop.f32.mrb[5].mxu1  ;;  %v1051_v39 = vpop.f32.mrb[6].mxu0 }
 0x101   :  { %v1132_v40 = vadd.f32 %v1131_v38, %v1130_v33  ;;  %v1133_v41 = vpop.f32.mrb[6].mxu1  ;;  %v1052_v42 = vpop.f32.mrb[7].mxu0 }
 0x102   :  { %881 = vst.msk [vmem:[%s1640_s3] sm:$0xf] %vm880_vm0, %v1005_v35  ;;  %v1006_v43 = vpack.c.bf16 %v775_v36, %v775_v36  ;;  %v577_v44 = vadd.f32 %v1050_v37, %v1531_v16  ;;  %v1053_v45 = vadd.f32 %v1052_v42, %v1051_v39  ;;  %v1134_v46 = vpop.f32.mrb[7].mxu1 }
 0x103   :  { %v1135_v47 = vadd.f32 %v1134_v46, %v1133_v41 }
 0x104   :  { %882 = vst.msk [vmem:[%s1640_s3 + $0x4] sm:$0xf] %vm880_vm0, %v1006_v43  ;;  %v697_v48 = vadd.f32 %v1132_v40, %v577_v44  ;;  %v580_v49 = vadd.f32 %v1053_v45, %v1531_v16 }
 0x106   :  { %v776_v50 = vmax.f32 %v697_v48, 0.0  ;;  %v700_v51 = vadd.f32 %v1135_v47, %v580_v49  ;;  %v1054_v52 = vpop.f32.mrb[8].mxu0 }
 0x107   :  { %v1136_v53 = vpop.f32.mrb[8].mxu1  ;;  %v1055_v54 = vpop.f32.mrb[9].mxu0 }
 0x108   :  { %v1007_v55 = vpack.c.bf16 %v776_v50, %v776_v50  ;;  %v777_v56 = vmax.f32 %v700_v51, 0.0  ;;  %v1056_v57 = vadd.f32 %v1055_v54, %v1054_v52  ;;  %v1137_v58 = vpop.f32.mrb[9].mxu1  ;;  %v1057_v59 = vpop.f32.mrb[10].mxu0 }
 0x109   :  { %v1138_v60 = vadd.f32 %v1137_v58, %v1136_v53  ;;  %v1139_v61 = vpop.f32.mrb[10].mxu1  ;;  %v1058_v62 = vpop.f32.mrb[11].mxu0 }
 0x10a   :  { %883 = vst.msk [vmem:[%s1640_s3 + $0x8] sm:$0xf] %vm880_vm0, %v1007_v55  ;;  %v1008_v63 = vpack.c.bf16 %v777_v56, %v777_v56  ;;  %v585_v0 = vadd.f32 %v1056_v57, %v1531_v16  ;;  %v1059_v1 = vadd.f32 %v1058_v62, %v1057_v59  ;;  %v1140_v2 = vpop.f32.mrb[11].mxu1 }
 0x10b   :  { %v1141_v3 = vadd.f32 %v1140_v2, %v1139_v61 }
 0x10c   :  { %884 = vst.msk [vmem:[%s1640_s3 + $0xc] sm:$0xf] %vm880_vm0, %v1008_v63  ;;  %v705_v4 = vadd.f32 %v1138_v60, %v585_v0  ;;  %v588_v5 = vadd.f32 %v1059_v1, %v1531_v16 }
 0x10e   :  { %v778_v6 = vmax.f32 %v705_v4, 0.0  ;;  %v708_v7 = vadd.f32 %v1141_v3, %v588_v5  ;;  %v1060_v8 = vpop.f32.mrb[12].mxu0 }
 0x10f   :  { %v1142_v9 = vpop.f32.mrb[12].mxu1  ;;  %v1061_v10 = vpop.f32.mrb[13].mxu0 }
 0x110   :  { %v1009_v11 = vpack.c.bf16 %v778_v6, %v778_v6  ;;  %v779_v12 = vmax.f32 %v708_v7, 0.0  ;;  %v1062_v13 = vadd.f32 %v1061_v10, %v1060_v8  ;;  %v1143_v14 = vpop.f32.mrb[13].mxu1  ;;  %v1063_v15 = vpop.f32.mrb[14].mxu0 }
 0x111   :  { %v1144_v17 = vadd.f32 %v1143_v14, %v1142_v9  ;;  %v1145_v18 = vpop.f32.mrb[14].mxu1  ;;  %v1064_v19 = vpop.f32.mrb[15].mxu0 }
 0x112   :  { %885 = vst.msk [vmem:[%s1640_s3 + $0x10] sm:$0xf] %vm880_vm0, %v1009_v11  ;;  %v1010_v20 = vpack.c.bf16 %v779_v12, %v779_v12  ;;  %v593_v21 = vadd.f32 %v1062_v13, %v1531_v16  ;;  %v1065_v22 = vadd.f32 %v1064_v19, %v1063_v15  ;;  %v1146_v23 = vpop.f32.mrb[15].mxu1 }
 0x113   :  { %v1147_v24 = vadd.f32 %v1146_v23, %v1145_v18 }
 0x114   :  { %886 = vst.msk [vmem:[%s1640_s3 + $0x14] sm:$0xf] %vm880_vm0, %v1010_v20  ;;  %v713_v25 = vadd.f32 %v1144_v17, %v593_v21  ;;  %v596_v26 = vadd.f32 %v1065_v22, %v1531_v16 }
 0x116   :  { %v780_v27 = vmax.f32 %v713_v25, 0.0  ;;  %v716_v28 = vadd.f32 %v1147_v24, %v596_v26  ;;  %v1066_v29 = vpop.f32.mrb[16].mxu0 }
 0x117   :  { %v1148_v30 = vpop.f32.mrb[16].mxu1  ;;  %v1067_v31 = vpop.f32.mrb[17].mxu0 }
 0x118   :  { %v1011_v32 = vpack.c.bf16 %v780_v27, %v780_v27  ;;  %v781_v33 = vmax.f32 %v716_v28, 0.0  ;;  %v1068_v34 = vadd.f32 %v1067_v31, %v1066_v29  ;;  %v1149_v35 = vpop.f32.mrb[17].mxu1  ;;  %v1069_v36 = vpop.f32.mrb[18].mxu0 }
 0x119   :  { %v1150_v37 = vadd.f32 %v1149_v35, %v1148_v30  ;;  %v1151_v38 = vpop.f32.mrb[18].mxu1  ;;  %v1070_v39 = vpop.f32.mrb[19].mxu0 }
 0x11a   :  { %887 = vst.msk [vmem:[%s1640_s3 + $0x18] sm:$0xf] %vm880_vm0, %v1011_v32  ;;  %v1012_v40 = vpack.c.bf16 %v781_v33, %v781_v33  ;;  %v601_v41 = vadd.f32 %v1068_v34, %v1531_v16  ;;  %v1071_v42 = vadd.f32 %v1070_v39, %v1069_v36  ;;  %v1152_v43 = vpop.f32.mrb[19].mxu1 }
 0x11b   :  { %v1153_v44 = vadd.f32 %v1152_v43, %v1151_v38 }
 0x11c   :  { %888 = vst.msk [vmem:[%s1640_s3 + $0x1c] sm:$0xf] %vm880_vm0, %v1012_v40  ;;  %v721_v45 = vadd.f32 %v1150_v37, %v601_v41  ;;  %v604_v46 = vadd.f32 %v1071_v42, %v1531_v16 }
 0x11e   :  { %v782_v47 = vmax.f32 %v721_v45, 0.0  ;;  %v724_v48 = vadd.f32 %v1153_v44, %v604_v46  ;;  %v1072_v49 = vpop.f32.mrb[20].mxu0 }
 0x11f   :  { %v1154_v50 = vpop.f32.mrb[20].mxu1  ;;  %v1073_v51 = vpop.f32.mrb[21].mxu0 }
 0x120   :  { %v1013_v52 = vpack.c.bf16 %v782_v47, %v782_v47  ;;  %v783_v53 = vmax.f32 %v724_v48, 0.0  ;;  %v1074_v54 = vadd.f32 %v1073_v51, %v1072_v49  ;;  %v1155_v55 = vpop.f32.mrb[21].mxu1  ;;  %v1075_v56 = vpop.f32.mrb[22].mxu0 }
 0x121   :  { %v1156_v57 = vadd.f32 %v1155_v55, %v1154_v50  ;;  %v1157_v58 = vpop.f32.mrb[22].mxu1  ;;  %v1076_v59 = vpop.f32.mrb[23].mxu0 }
 0x122   :  { %889 = vst.msk [vmem:[%s1640_s3 + $0x20] sm:$0xf] %vm880_vm0, %v1013_v52  ;;  %v1014_v60 = vpack.c.bf16 %v783_v53, %v783_v53  ;;  %v609_v61 = vadd.f32 %v1074_v54, %v1531_v16  ;;  %v1077_v62 = vadd.f32 %v1076_v59, %v1075_v56  ;;  %v1158_v63 = vpop.f32.mrb[23].mxu1 }
 0x123   :  { %v1159_v0 = vadd.f32 %v1158_v63, %v1157_v58 }
 0x124   :  { %890 = vst.msk [vmem:[%s1640_s3 + $0x24] sm:$0xf] %vm880_vm0, %v1014_v60  ;;  %v729_v1 = vadd.f32 %v1156_v57, %v609_v61  ;;  %v612_v2 = vadd.f32 %v1077_v62, %v1531_v16 }
 0x126   :  { %v784_v3 = vmax.f32 %v729_v1, 0.0  ;;  %v732_v4 = vadd.f32 %v1159_v0, %v612_v2  ;;  %v1078_v5 = vpop.f32.mrb[24].mxu0 }
 0x127   :  { %v1160_v6 = vpop.f32.mrb[24].mxu1  ;;  %v1079_v7 = vpop.f32.mrb[25].mxu0 }
 0x128   :  { %v1015_v8 = vpack.c.bf16 %v784_v3, %v784_v3  ;;  %v785_v9 = vmax.f32 %v732_v4, 0.0  ;;  %v1080_v10 = vadd.f32 %v1079_v7, %v1078_v5  ;;  %v1161_v11 = vpop.f32.mrb[25].mxu1  ;;  %v1081_v12 = vpop.f32.mrb[26].mxu0 }
 0x129   :  { %v1162_v13 = vadd.f32 %v1161_v11, %v1160_v6  ;;  %v1163_v14 = vpop.f32.mrb[26].mxu1  ;;  %v1082_v15 = vpop.f32.mrb[27].mxu0 }
 0x12a   :  { %891 = vst.msk [vmem:[%s1640_s3 + $0x28] sm:$0xf] %vm880_vm0, %v1015_v8  ;;  %v1016_v17 = vpack.c.bf16 %v785_v9, %v785_v9  ;;  %v617_v18 = vadd.f32 %v1080_v10, %v1531_v16  ;;  %v1083_v19 = vadd.f32 %v1082_v15, %v1081_v12  ;;  %v1164_v20 = vpop.f32.mrb[27].mxu1 }
 0x12b   :  { %v1165_v21 = vadd.f32 %v1164_v20, %v1163_v14 }
 0x12c   :  { %892 = vst.msk [vmem:[%s1640_s3 + $0x2c] sm:$0xf] %vm880_vm0, %v1016_v17  ;;  %v737_v22 = vadd.f32 %v1162_v13, %v617_v18  ;;  %v620_v23 = vadd.f32 %v1083_v19, %v1531_v16 }
 0x12e   :  { %v786_v24 = vmax.f32 %v737_v22, 0.0  ;;  %v740_v25 = vadd.f32 %v1165_v21, %v620_v23  ;;  %v1084_v26 = vpop.f32.mrb[28].mxu0 }
 0x12f   :  { %v1166_v27 = vpop.f32.mrb[28].mxu1  ;;  %v1085_v28 = vpop.f32.mrb[29].mxu0 }
 0x130   :  { %v1017_v29 = vpack.c.bf16 %v786_v24, %v786_v24  ;;  %v787_v30 = vmax.f32 %v740_v25, 0.0  ;;  %v1086_v31 = vadd.f32 %v1085_v28, %v1084_v26  ;;  %v1167_v32 = vpop.f32.mrb[29].mxu1  ;;  %v1087_v33 = vpop.f32.mrb[30].mxu0 }
 0x131   :  { %v1168_v34 = vadd.f32 %v1167_v32, %v1166_v27  ;;  %v1169_v35 = vpop.f32.mrb[30].mxu1  ;;  %v1088_v36 = vpop.f32.mrb[31].mxu0 }
 0x132   :  { %893 = vst.msk [vmem:[%s1640_s3 + $0x30] sm:$0xf] %vm880_vm0, %v1017_v29  ;;  %v1018_v37 = vpack.c.bf16 %v787_v30, %v787_v30  ;;  %v625_v38 = vadd.f32 %v1086_v31, %v1531_v16  ;;  %v1089_v39 = vadd.f32 %v1088_v36, %v1087_v33  ;;  %v1170_v40 = vpop.f32.mrb[31].mxu1 }
 0x133   :  { %v1171_v41 = vadd.f32 %v1170_v40, %v1169_v35 }
 0x134   :  { %894 = vst.msk [vmem:[%s1640_s3 + $0x34] sm:$0xf] %vm880_vm0, %v1018_v37  ;;  %v745_v42 = vadd.f32 %v1168_v34, %v625_v38  ;;  %v628_v43 = vadd.f32 %v1089_v39, %v1531_v16 }
 0x136   :  { %v788_v44 = vmax.f32 %v745_v42, 0.0  ;;  %v748_v45 = vadd.f32 %v1171_v41, %v628_v43  ;;  %v1090_v46 = vpop.f32.mrb[32].mxu0 }
 0x137   :  { %v1172_v47 = vpop.f32.mrb[32].mxu1  ;;  %v1091_v48 = vpop.f32.mrb[33].mxu0 }
 0x138   :  { %v1019_v49 = vpack.c.bf16 %v788_v44, %v788_v44  ;;  %v789_v50 = vmax.f32 %v748_v45, 0.0  ;;  %v1092_v51 = vadd.f32 %v1091_v48, %v1090_v46  ;;  %v1173_v52 = vpop.f32.mrb[33].mxu1  ;;  %v1093_v53 = vpop.f32.mrb[34].mxu0 }
 0x139   :  { %v1174_v54 = vadd.f32 %v1173_v52, %v1172_v47  ;;  %v1175_v55 = vpop.f32.mrb[34].mxu1  ;;  %v1094_v56 = vpop.f32.mrb[35].mxu0 }
 0x13a   :  { %895 = vst.msk [vmem:[%s1640_s3 + $0x38] sm:$0xf] %vm880_vm0, %v1019_v49  ;;  %v1020_v57 = vpack.c.bf16 %v789_v50, %v789_v50  ;;  %v633_v58 = vadd.f32 %v1092_v51, %v1531_v16  ;;  %v1095_v59 = vadd.f32 %v1094_v56, %v1093_v53  ;;  %v1176_v60 = vpop.f32.mrb[35].mxu1 }
 0x13b   :  { %v1177_v61 = vadd.f32 %v1176_v60, %v1175_v55 }
 0x13c   :  { %896 = vst.msk [vmem:[%s1640_s3 + $0x3c] sm:$0xf] %vm880_vm0, %v1020_v57  ;;  %v753_v62 = vadd.f32 %v1174_v54, %v633_v58  ;;  %v636_v63 = vadd.f32 %v1095_v59, %v1531_v16 }
 0x13e   :  { %v790_v0 = vmax.f32 %v753_v62, 0.0  ;;  %v756_v1 = vadd.f32 %v1177_v61, %v636_v63  ;;  %v1096_v2 = vpop.f32.mrb[36].mxu0 }
 0x13f   :  { %v1178_v3 = vpop.f32.mrb[36].mxu1  ;;  %v1097_v4 = vpop.f32.mrb[37].mxu0 }
 0x140   :  { %v1021_v5 = vpack.c.bf16 %v790_v0, %v790_v0  ;;  %v791_v6 = vmax.f32 %v756_v1, 0.0  ;;  %v1098_v7 = vadd.f32 %v1097_v4, %v1096_v2  ;;  %v1179_v8 = vpop.f32.mrb[37].mxu1  ;;  %v1099_v9 = vpop.f32.mrb[38].mxu0 }
 0x141   :  { %v1180_v10 = vadd.f32 %v1179_v8, %v1178_v3  ;;  %v1181_v11 = vpop.f32.mrb[38].mxu1  ;;  %v1100_v12 = vpop.f32.mrb[39].mxu0 }
 0x142   :  { %897 = vst.msk [vmem:[%s1640_s3 + $0x40] sm:$0xf] %vm880_vm0, %v1021_v5  ;;  %v1022_v13 = vpack.c.bf16 %v791_v6, %v791_v6  ;;  %v641_v14 = vadd.f32 %v1098_v7, %v1531_v16  ;;  %v1101_v15 = vadd.f32 %v1100_v12, %v1099_v9  ;;  %v1182_v17 = vpop.f32.mrb[39].mxu1 }
 0x143   :  { %v1183_v18 = vadd.f32 %v1182_v17, %v1181_v11 }
 0x144   :  { %898 = vst.msk [vmem:[%s1640_s3 + $0x44] sm:$0xf] %vm880_vm0, %v1022_v13  ;;  %v761_v19 = vadd.f32 %v1180_v10, %v641_v14  ;;  %v644_v20 = vadd.f32 %v1101_v15, %v1531_v16 }
 0x146   :  { %v792_v21 = vmax.f32 %v761_v19, 0.0  ;;  %v764_v22 = vadd.f32 %v1183_v18, %v644_v20  ;;  %v1102_v23 = vpop.f32.mrb[40].mxu0 }
 0x147   :  { %v1184_v24 = vpop.f32.mrb[40].mxu1  ;;  %v1103_v25 = vpop.f32.mrb[41].mxu0 }
 0x148   :  { %v1023_v26 = vpack.c.bf16 %v792_v21, %v792_v21  ;;  %v793_v27 = vmax.f32 %v764_v22, 0.0  ;;  %v1104_v28 = vadd.f32 %v1103_v25, %v1102_v23  ;;  %v1185_v29 = vpop.f32.mrb[41].mxu1  ;;  %v1105_v30 = vpop.f32.mrb[42].mxu0 }
 0x149   :  { %v1186_v31 = vadd.f32 %v1185_v29, %v1184_v24  ;;  %v1187_v32 = vpop.f32.mrb[42].mxu1  ;;  %v1106_v33 = vpop.f32.mrb[43].mxu0 }
 0x14a   :  { %899 = vst.msk [vmem:[%s1640_s3 + $0x48] sm:$0xf] %vm880_vm0, %v1023_v26  ;;  %v1024_v34 = vpack.c.bf16 %v793_v27, %v793_v27  ;;  %v649_v35 = vadd.f32 %v1104_v28, %v1531_v16  ;;  %v1188_v36 = vpop.f32.mrb[43].mxu1 }
 0x14c   :  { %900 = vst.msk [vmem:[%s1640_s3 + $0x4c] sm:$0xf] %vm880_vm0, %v1024_v34  ;;  %v769_v37 = vadd.f32 %v1186_v31, %v649_v35 }
 0x14e   :  { %v794_v38 = vmax.f32 %v769_v37, 0.0 }
 0x150   :  { %v1025_v39 = vpack.c.bf16 %v794_v38, %v794_v38 }
 0x152   :  { %902 = vst.msk [vmem:[%s1640_s3 + $0x50] sm:$0x1] %vm901_vm1, %v1025_v39 }

// kernel: model_forward.6
= control target key start
LH: loop header
LB: loop body
LE: loop exit
PB: predicated region body
PF: predicated region fallthrough
CT: control target
= control target key end

     0   :  { %v1248_v34 = vmov 0.0   ;;  %vm1249_vm0 = vmmov 0   ;;  %vm516_vm1 = vcmask 523264   ;;  %vm868_vm2 = vcmask 519168   ;;  %s1599_s1 = inlined_call_operand.vmem [shape: bf16[576,64], index: 1, kind: input, shape index: {}]   ;;  %s1600_s0 = inlined_call_operand.vmem [shape: bf16[98,576], index: 0, kind: input, shape index: {}]   ;;  %s1601_s2 = inlined_call_operand.vmem [shape: f32[1,64], index: 2, kind: input, shape index: {}]   ;;  %s1602_s3 = inlined_call_operand.vmem [shape: bf16[98,64], index: 3, kind: output, shape index: {}]  }
   0x1   :  { %v1165_v0 = vld [vmem:[%s1599_s1 + $0x40] sm:$0xff]   ;;  %v1169_v4 = vld [vmem:[%s1599_s1 + $0x48] sm:$0xff]   ;;  %v1173_v8 = vld [vmem:[%s1599_s1 + $0x50] sm:$0xff]   ;;  %vm881_vm3 = vcmask 516096  }
   0x2   :  { %v1166_v1 = vld [vmem:[%s1599_s1 + $0xc0] sm:$0xff]   ;;  %992 = vmatprep.subr.bf16.mxu0 %v1165_v0  ;;  %v1170_v5 = vld [vmem:[%s1599_s1 + $0xc8] sm:$0xff]   ;;  %v1174_v9 = vld [vmem:[%s1599_s1 + $0xd0] sm:$0xff]  }
   0x3   :  { %v1167_v2 = vld [vmem:[%s1599_s1] sm:$0xff]   ;;  %1050 = vmatprep.subr.bf16.mxu1 %v1166_v1  ;;  %v1171_v6 = vld [vmem:[%s1599_s1 + $0x8] sm:$0xff]   ;;  %v1175_v10 = vld [vmem:[%s1599_s1 + $0x10] sm:$0xff]  }
   0x4   :  { %v1168_v3 = vld [vmem:[%s1599_s1 + $0x80] sm:$0xff]   ;;  %993 = vmatpush3.bf16.msra.mxu0 %v1167_v2  ;;  %v1172_v7 = vld [vmem:[%s1599_s1 + $0x88] sm:$0xff]   ;;  %v1176_v11 = vld [vmem:[%s1599_s1 + $0x90] sm:$0xff]  }
   0x5   :  { %1051 = vmatpush3.bf16.msra.mxu1 %v1168_v3  ;;  %994 = vmatprep.subr.bf16.mxu0 %v1169_v4  ;;  %v1177_v12 = vld [vmem:[%s1599_s1 + $0x58] sm:$0xff]   ;;  %v1181_v16 = vld [vmem:[%s1599_s1 + $0x60] sm:$0xff]   ;;  %v1185_v20 = vld [vmem:[%s1599_s1 + $0x68] sm:$0xff]  }
   0x6   :  { %1052 = vmatprep.subr.bf16.mxu1 %v1170_v5  ;;  %v1178_v13 = vld [vmem:[%s1599_s1 + $0xd8] sm:$0xff]   ;;  %v1182_v17 = vld [vmem:[%s1599_s1 + $0xe0] sm:$0xff]   ;;  %v1186_v21 = vld [vmem:[%s1599_s1 + $0xe8] sm:$0xff]  }
   0x7   :  { %v1179_v14 = vld [vmem:[%s1599_s1 + $0x18] sm:$0xff]   ;;  %v1183_v18 = vld [vmem:[%s1599_s1 + $0x20] sm:$0xff]   ;;  %v1187_v22 = vld [vmem:[%s1599_s1 + $0x28] sm:$0xff]  }
   0x8   :  { %995 = vmatpush3.bf16.msra.mxu0 %v1171_v6  ;;  %v1180_v15 = vld [vmem:[%s1599_s1 + $0x98] sm:$0xff]   ;;  %v1184_v19 = vld [vmem:[%s1599_s1 + $0xa0] sm:$0xff]   ;;  %v1188_v23 = vld [vmem:[%s1599_s1 + $0xa8] sm:$0xff]  }
   0x9   :  { %1053 = vmatpush3.bf16.msra.mxu1 %v1172_v7  ;;  %996 = vmatprep.subr.bf16.mxu0 %v1173_v8  ;;  %v1189_v24 = vld [vmem:[%s1599_s1 + $0x70] sm:$0xff]   ;;  %v1193_v28 = vld [vmem:[%s1599_s1 + $0x78] sm:$0xff]   ;;  %v1202_v36 = vld [vmem:[%s1600_s0 + $0xc] ss:$20 sps:$4 sm:$0xff]  }
   0xa   :  { %1054 = vmatprep.subr.bf16.mxu1 %v1174_v9  ;;  %v1190_v25 = vld [vmem:[%s1599_s1 + $0xf0] sm:$0xff]   ;;  %v1194_v29 = vld [vmem:[%s1599_s1 + $0xf8] sm:$0xff]   ;;  %v1203_v37 = vld [vmem:[%s1599_s1 + $0x100] sm:$0xff]   ;;  %658 = vmatprep.mubr.bf16.mxu1 %v1202_v36 }
   0xb   :  { %v1191_v26 = vld [vmem:[%s1599_s1 + $0x30] sm:$0xff]   ;;  %v1195_v30 = vld [vmem:[%s1599_s1 + $0x38] sm:$0xff]   ;;  %v1204_v38 = vld [vmem:[%s1600_s0 + $0x2c] ss:$20 sps:$4 sm:$0xff]  }
   0xc   :  { %997 = vmatpush3.bf16.msra.mxu0 %v1175_v10  ;;  %v1192_v27 = vld [vmem:[%s1599_s1 + $0xb0] sm:$0xff]   ;;  %v1196_v31 = vld [vmem:[%s1599_s1 + $0xb8] sm:$0xff]   ;;  %v1214_v43 = vld [vmem:[%s1599_s1 + $0x108] sm:$0xff]  }
   0xd   :  { %1055 = vmatpush3.bf16.msra.mxu1 %v1176_v11  ;;  %998 = vmatprep.subr.bf16.mxu0 %v1177_v12  ;;  %v1197_v32 = vld [vmem:[%s1600_s0] ss:$20 sps:$4 sm:$0xff]   ;;  %v1199_v33 = vld [vmem:[%s1600_s0 + $0x4] ss:$20 sps:$4 sm:$0xff]   ;;  %v1200_v35 = vld [vmem:[%s1600_s0 + $0x8] ss:$20 sps:$4 sm:$0xff]  }
   0xe   :  { %1056 = vmatprep.subr.bf16.mxu1 %v1178_v13  ;;  %570 = vmatprep.mubr.bf16.mxu0 %v1199_v33  ;;  %v1206_v39 = vld [vmem:[%s1600_s0 + $0x34] ss:$20 sps:$4 sm:$0xff]   ;;  %v1209_v41 = vld [vmem:[%s1600_s0 + $0x30] ss:$20 sps:$4 sm:$0xff]   ;;  %v1216_v47 = vld [vmem:[%s1600_s0 + $0x58] ss:$20 sps:$4 sm:$0xff]  }
   0xf   :  { %v1208_v40 = vld [vmem:[%s1600_s0 + $0x28] ss:$20 sps:$4 sm:$0xff]   ;;  %v1223_v45 = vld [vmem:[%s1599_s1 + $0x110] sm:$0xff]   ;;  %v1219_v49 = vld [vmem:[%s1600_s0 + $0x84] ss:$20 sps:$4 sm:$0xff]  }
  0x10   :  { %999 = vmatpush3.bf16.msra.mxu0 %v1179_v14  ;;  %v1210_v42 = vld [vmem:[%s1600_s0 + $0x54] ss:$20 sps:$4 sm:$0xff]   ;;  %v1212_v44 = vld [vmem:[%s1600_s0 + $0x5c] ss:$20 sps:$4 sm:$0xff]   ;;  %v1221_v51 = vld [vmem:[%s1600_s0 + $0x78] ss:$20 sps:$4 sm:$0xff]  }
  0x11   :  { %1057 = vmatpush3.bf16.msra.mxu1 %v1180_v15  ;;  %1000 = vmatprep.subr.bf16.mxu0 %v1181_v16  ;;  %v1215_v46 = vld [vmem:[%s1600_s0 + $0x50] ss:$20 sps:$4 sm:$0xff]   ;;  %v1236_v50 = vld [vmem:[%s1599_s1 + $0x118] sm:$0xff]   ;;  %v1222_v52 = vld [vmem:[%s1600_s0 + $0x80] ss:$20 sps:$4 sm:$0xff]  }
  0x12   :  { %1058 = vmatprep.subr.bf16.mxu1 %v1182_v17  ;;  %v1217_v48 = vld [vmem:[%s1600_s0 + $0x7c] ss:$20 sps:$4 sm:$0xff]   ;;  %v1224_v53 = vld [vmem:[%s1600_s0 + $0xa4] ss:$20 sps:$4 sm:$0xff]   ;;  %v1226_v54 = vld [vmem:[%s1600_s0 + $0xac] ss:$20 sps:$4 sm:$0xff]  }
  0x13   :  { %v1228_v55 = vld [vmem:[%s1600_s0 + $0xa0] ss:$20 sps:$4 sm:$0xff]   ;;  %v1229_v56 = vld [vmem:[%s1600_s0 + $0xa8] ss:$20 sps:$4 sm:$0xff]   ;;  %v1235_v62 = vld [vmem:[%s1600_s0 + $0xd0] ss:$20 sps:$4 sm:$0xff]  }
  0x14   :  { %1001 = vmatpush3.bf16.msra.mxu0 %v1183_v18  ;;  %v1230_v57 = vld [vmem:[%s1600_s0 + $0xcc] ss:$20 sps:$4 sm:$0xff]   ;;  %v1232_v58 = vld [vmem:[%s1600_s0 + $0xd4] ss:$20 sps:$4 sm:$0xff]   ;;  %v52_v60 = vld [vmem:[%s1600_s0 + $0xf8] sm:$0x11] }
  0x15   :  { %1059 = vmatpush3.bf16.msra.mxu1 %v1184_v19  ;;  %1002 = vmatprep.subr.bf16.mxu0 %v1185_v20  ;;  %v51_v59 = vld [vmem:[%s1600_s0 + $0xf0] sm:$0x11]  ;;  %v1234_v61 = vld [vmem:[%s1600_s0 + $0xc8] ss:$20 sps:$4 sm:$0xff]   ;;  %v921_v0 = vcombine.high %v52_v60, %v52_v60  ;;  %v920_v2 = vcombine.low %v52_v60, %v52_v60  ;;  %v1243_v5 = vld [vmem:[%s1600_s0 + $0x38] ss:$20 sps:$4 sm:$0xff]  }
  0x16   :  { %1060 = vmatprep.subr.bf16.mxu1 %v1186_v21  ;;  %v919_v63 = vcombine.high %v51_v59, %v51_v59  ;;  %v918_v1 = vcombine.low %v51_v59, %v51_v59  ;;  %v1241_v3 = vld [vmem:[%s1600_s0 + $0x10] ss:$20 sps:$4 sm:$0xff]   ;;  %v1244_v6 = vld [vmem:[%s1600_s0 + $0xd8] ss:$20 sps:$4 sm:$0xff]   ;;  %v1245_v7 = vld [vmem:[%s1600_s0 + $0x60] ss:$20 sps:$4 sm:$0xff]  }
  0x17   :  { %v1242_v4 = vld [vmem:[%s1600_s0 + $0xb0] ss:$20 sps:$4 sm:$0xff]   ;;  %v1246_v8 = vld [vmem:[%s1600_s0 + $0x100] ss:$0 sps:$4 sm:$0x11]  }
  0x18   :  { %1003 = vmatpush3.bf16.msra.mxu0 %v1187_v22  ;;  %v1247_v9 = vld [vmem:[%s1600_s0 + $0x88] ss:$20 sps:$4 sm:$0xff]   ;;  %v1509_v11 = vld [vmem:[%s1601_s2] ss:$0 sm:$0xff] }
  0x19   :  { %1061 = vmatpush3.bf16.msra.mxu1 %v1188_v23  ;;  %1004 = vmatprep.subr.bf16.mxu0 %v1189_v24 }
  0x1a   :  { %1062 = vmatprep.subr.bf16.mxu1 %v1190_v25 }
  0x1c   :  { %1005 = vmatpush3.bf16.msra.mxu0 %v1191_v26 }
  0x1d   :  { %1063 = vmatpush3.bf16.msra.mxu1 %v1192_v27  ;;  %1006 = vmatprep.subr.bf16.mxu0 %v1193_v28 }
  0x1e   :  { %1064 = vmatprep.subr.bf16.mxu1 %v1194_v29 }
  0x20   :  { %1007 = vmatpush3.bf16.msra.mxu0 %v1195_v30 }
  0x21   :  { %1065 = vmatpush3.bf16.msra.mxu1 %v1196_v31  ;;  %1119 = vmatprep.subr.bf16.mxu0 %v1248_v34 }
  0x22   :  { %1155 = vmatprep.subr.bf16.mxu1 %v1248_v34 }
  0x23   :  { %571 = vmatmul.mubr.bf16.vlgmr.msra.gmra.mrb[0].mxu0 %v1197_v32 }
  0x24   :  { %659 = vmatmul.mubr.bf16.vlgmr.msra.gmra.mrb[0].mxu1 %v1200_v35  ;;  %1120 = vmatpush3.bf16.msra.mxu0 %v1203_v37 }
  0x25   :  { %578 = vmatprep.mubr.bf16.mxu0 %v1204_v38  ;;  %1159 = vmatpush3.bf16.msra.mxu1 %v1203_v37 }
  0x26   :  { %666 = vmatprep.mubr.bf16.mxu1 %v1206_v39  ;;  %1121 = vmatprep.subr.bf16.mxu0 %v1248_v34 }
  0x27   :  { %1156 = vmatprep.subr.bf16.mxu1 %v1248_v34 }
  0x28   :  { %1122 = vmatpush3.bf16.msra.mxu0 %v1214_v43 }
  0x29   :  { %1160 = vmatpush3.bf16.msra.mxu1 %v1214_v43  ;;  %1123 = vmatprep.subr.bf16.mxu0 %v1248_v34 }
  0x2a   :  { %1157 = vmatprep.subr.bf16.mxu1 %v1248_v34 }
  0x2b   :  { %579 = vmatmul.mubr.bf16.gmra.mrb[4].mxu0 %v1208_v40 }
  0x2c   :  { %667 = vmatmul.mubr.bf16.gmra.mrb[4].mxu1 %v1209_v41  ;;  %586 = vmatprep.mubr.bf16.mxu0 %v1210_v42 }
  0x2d   :  { %674 = vmatprep.mubr.bf16.mxu1 %v1212_v44  ;;  %1124 = vmatpush3.bf16.msra.mxu0 %v1223_v45 }
  0x2e   :  { %1161 = vmatpush3.bf16.msra.mxu1 %v1223_v45  ;;  %1125 = vmatprep.subr.bf16.mxu0 %v1248_v34 }
  0x2f   :  { %1158 = vmatprep.subr.bf16.mxu1 %v1248_v34 }
  0x31   :  { %1126 = vmatpush3.bf16.msra.mxu0 %v1236_v50 }
  0x32   :  { %1162 = vmatpush3.bf16.msra.mxu1 %v1236_v50 }
  0x33   :  { %587 = vmatmul.mubr.bf16.gmra.mrb[8].mxu0 %v1215_v46 }
  0x34   :  { %675 = vmatmul.mubr.bf16.gmra.mrb[8].mxu1 %v1216_v47  ;;  %594 = vmatprep.mubr.bf16.mxu0 %v1217_v48 }
  0x35   :  { %682 = vmatprep.mubr.bf16.mxu1 %v1219_v49 }
  0x3b   :  { %595 = vmatmul.mubr.bf16.gmra.mrb[12].mxu0 %v1221_v51 }
  0x3c   :  { %683 = vmatmul.mubr.bf16.gmra.mrb[12].mxu1 %v1222_v52  ;;  %602 = vmatprep.mubr.bf16.mxu0 %v1224_v53 }
  0x3d   :  { %690 = vmatprep.mubr.bf16.mxu1 %v1226_v54 }
  0x43   :  { %603 = vmatmul.mubr.bf16.gmra.mrb[16].mxu0 %v1228_v55 }
  0x44   :  { %691 = vmatmul.mubr.bf16.gmra.mrb[16].mxu1 %v1229_v56  ;;  %610 = vmatprep.mubr.bf16.mxu0 %v1230_v57 }
  0x45   :  { %698 = vmatprep.mubr.bf16.mxu1 %v1232_v58 }
  0x4b   :  { %611 = vmatmul.mubr.bf16.gmra.mrb[20].mxu0 %v1234_v61 }
  0x4c   :  { %699 = vmatmul.mubr.bf16.gmra.mrb[20].mxu1 %v1235_v62  ;;  %618 = vmatprep.mubr.bf16.mxu0 %v919_v63 }
  0x4d   :  { %706 = vmatprep.mubr.bf16.mxu1 %v921_v0 }
  0x53   :  { %619 = vmatmul.mubr.bf16.gmra.mrb[24].mxu0 %v918_v1 }
  0x54   :  { %707 = vmatmul.mubr.bf16.gmra.mrb[24].mxu1 %v920_v2  ;;  %1127 = vmatprep.mubr.msk.bf16.mxu0 %vm1249_vm0, %v1248_v34 }
  0x55   :  { %1143 = vmatprep.mubr.msk.bf16.mxu1 %vm1249_vm0, %v1248_v34 }
  0x5b   :  { %1128 = vmatmul.mubr.msk.bf16.vlgmr.msra.gmra.mrb[28].mxu0 %vm516_vm1, %v1241_v3 }
  0x5c   :  { %1144 = vmatmul.mubr.msk.bf16.vlgmr.msra.gmra.mrb[28].mxu1 %vm516_vm1, %v1242_v4  ;;  %1131 = vmatprep.mubr.msk.bf16.mxu0 %vm1249_vm0, %v1248_v34 }
  0x5d   :  { %1147 = vmatprep.mubr.msk.bf16.mxu1 %vm1249_vm0, %v1248_v34 }
  0x63   :  { %1132 = vmatmul.mubr.msk.bf16.gmra.mrb[32].mxu0 %vm516_vm1, %v1243_v5 }
  0x64   :  { %1148 = vmatmul.mubr.msk.bf16.gmra.mrb[32].mxu1 %vm516_vm1, %v1244_v6  ;;  %1135 = vmatprep.mubr.msk.bf16.mxu0 %vm1249_vm0, %v1248_v34 }
  0x65   :  { %1151 = vmatprep.mubr.msk.bf16.mxu1 %vm1249_vm0, %v1248_v34 }
  0x6b   :  { %1136 = vmatmul.mubr.msk.bf16.gmra.mrb[36].mxu0 %vm516_vm1, %v1245_v7 }
  0x6c   :  { %1152 = vmatmul.mubr.msk.bf16.gmra.mrb[36].mxu1 %vm516_vm1, %v1246_v8  ;;  %1139 = vmatprep.mubr.msk.bf16.mxu0 %vm1249_vm0, %v1248_v34 }
  0x73   :  { %1140 = vmatmul.mubr.msk.bf16.gmra.mrb[40].mxu0 %vm516_vm1, %v1247_v9 }
  0xf6   :  { %v1008_v10 = vpop.f32.mrb[0].mxu0 }
  0xf7   :  { %v1009_v12 = vpop.f32.mrb[1].mxu0  ;;  %v1066_v13 = vpop.f32.mrb[0].mxu1 }
  0xf8   :  { %v1010_v14 = vadd.f32 %v1009_v12, %v1008_v10  ;;  %v1011_v15 = vpop.f32.mrb[2].mxu0  ;;  %v1067_v16 = vpop.f32.mrb[1].mxu1 }
  0xf9   :  { %v1012_v17 = vpop.f32.mrb[3].mxu0  ;;  %v1068_v18 = vadd.f32 %v1067_v16, %v1066_v13  ;;  %v1069_v19 = vpop.f32.mrb[2].mxu1 }
  0xfa   :  { %v573_v20 = vadd.f32 %v1010_v14, %v1509_v11  ;;  %v1013_v21 = vadd.f32 %v1012_v17, %v1011_v15  ;;  %v1070_v22 = vpop.f32.mrb[3].mxu1 }
  0xfb   :  { %v1071_v23 = vadd.f32 %v1070_v22, %v1069_v19 }
  0xfc   :  { %v576_v24 = vadd.f32 %v1013_v21, %v1509_v11  ;;  %v1513_v25 = vadd.f32 %v1068_v18, %v573_v20 }
  0xfe   :  { %v1014_v26 = vpop.f32.mrb[4].mxu0  ;;  %v1515_v27 = vadd.f32 %v1071_v23, %v576_v24 }
  0xff   :  { %v1015_v28 = vpop.f32.mrb[5].mxu0  ;;  %v1072_v29 = vpop.f32.mrb[4].mxu1 }
 0x100   :  { %v1016_v30 = vadd.f32 %v1015_v28, %v1014_v26  ;;  %v1017_v31 = vpop.f32.mrb[6].mxu0  ;;  %v1073_v32 = vpop.f32.mrb[5].mxu1 }
 0x101   :  { %v1018_v33 = vpop.f32.mrb[7].mxu0  ;;  %v1074_v34 = vadd.f32 %v1073_v32, %v1072_v29  ;;  %v1075_v35 = vpop.f32.mrb[6].mxu1 }
 0x102   :  { %v581_v36 = vadd.f32 %v1016_v30, %v1509_v11  ;;  %v1019_v37 = vadd.f32 %v1018_v33, %v1017_v31  ;;  %v1076_v38 = vpop.f32.mrb[7].mxu1 }
 0x103   :  { %v1077_v39 = vadd.f32 %v1076_v38, %v1075_v35 }
 0x104   :  { %v584_v40 = vadd.f32 %v1019_v37, %v1509_v11  ;;  %v1519_v41 = vadd.f32 %v1074_v34, %v581_v36 }
 0x106   :  { %v1020_v42 = vpop.f32.mrb[8].mxu0  ;;  %v1521_v43 = vadd.f32 %v1077_v39, %v584_v40 }
 0x107   :  { %v1021_v44 = vpop.f32.mrb[9].mxu0  ;;  %v1078_v45 = vpop.f32.mrb[8].mxu1 }
 0x108   :  { %v1022_v46 = vadd.f32 %v1021_v44, %v1020_v42  ;;  %v1023_v47 = vpop.f32.mrb[10].mxu0  ;;  %v1079_v48 = vpop.f32.mrb[9].mxu1 }
 0x109   :  { %v1024_v49 = vpop.f32.mrb[11].mxu0  ;;  %v1080_v50 = vadd.f32 %v1079_v48, %v1078_v45  ;;  %v1081_v51 = vpop.f32.mrb[10].mxu1 }
 0x10a   :  { %v589_v52 = vadd.f32 %v1022_v46, %v1509_v11  ;;  %v1025_v53 = vadd.f32 %v1024_v49, %v1023_v47  ;;  %v1082_v54 = vpop.f32.mrb[11].mxu1 }
 0x10b   :  { %v1083_v55 = vadd.f32 %v1082_v54, %v1081_v51 }
 0x10c   :  { %v592_v56 = vadd.f32 %v1025_v53, %v1509_v11  ;;  %v1525_v57 = vadd.f32 %v1080_v50, %v589_v52 }
 0x10e   :  { %v1026_v58 = vpop.f32.mrb[12].mxu0  ;;  %v1527_v59 = vadd.f32 %v1083_v55, %v592_v56 }
 0x10f   :  { %v1027_v60 = vpop.f32.mrb[13].mxu0  ;;  %v1084_v61 = vpop.f32.mrb[12].mxu1 }
 0x110   :  { %v1028_v62 = vadd.f32 %v1027_v60, %v1026_v58  ;;  %v1029_v63 = vpop.f32.mrb[14].mxu0  ;;  %v1085_v0 = vpop.f32.mrb[13].mxu1 }
 0x111   :  { %v1030_v1 = vpop.f32.mrb[15].mxu0  ;;  %v1086_v2 = vadd.f32 %v1085_v0, %v1084_v61  ;;  %v1087_v3 = vpop.f32.mrb[14].mxu1 }
 0x112   :  { %v597_v4 = vadd.f32 %v1028_v62, %v1509_v11  ;;  %v1031_v5 = vadd.f32 %v1030_v1, %v1029_v63  ;;  %v1088_v6 = vpop.f32.mrb[15].mxu1 }
 0x113   :  { %v1089_v7 = vadd.f32 %v1088_v6, %v1087_v3 }
 0x114   :  { %v600_v8 = vadd.f32 %v1031_v5, %v1509_v11  ;;  %v1531_v9 = vadd.f32 %v1086_v2, %v597_v4 }
 0x116   :  { %v1032_v10 = vpop.f32.mrb[16].mxu0  ;;  %v1533_v12 = vadd.f32 %v1089_v7, %v600_v8 }
 0x117   :  { %v1033_v13 = vpop.f32.mrb[17].mxu0  ;;  %v1090_v14 = vpop.f32.mrb[16].mxu1 }
 0x118   :  { %v1034_v15 = vadd.f32 %v1033_v13, %v1032_v10  ;;  %v1035_v16 = vpop.f32.mrb[18].mxu0  ;;  %v1091_v17 = vpop.f32.mrb[17].mxu1 }
 0x119   :  { %v1036_v18 = vpop.f32.mrb[19].mxu0  ;;  %v1092_v19 = vadd.f32 %v1091_v17, %v1090_v14  ;;  %v1093_v20 = vpop.f32.mrb[18].mxu1 }
 0x11a   :  { %v605_v21 = vadd.f32 %v1034_v15, %v1509_v11  ;;  %v1037_v22 = vadd.f32 %v1036_v18, %v1035_v16  ;;  %v1094_v23 = vpop.f32.mrb[19].mxu1 }
 0x11b   :  { %v1095_v24 = vadd.f32 %v1094_v23, %v1093_v20 }
 0x11c   :  { %v608_v26 = vadd.f32 %v1037_v22, %v1509_v11  ;;  %v693_v28 = vadd.f32 %v1092_v19, %v605_v21 }
 0x11e   :  { %v1038_v29 = vpop.f32.mrb[20].mxu0  ;;  %v696_v30 = vadd.f32 %v1095_v24, %v608_v26 }
 0x11f   :  { %v1039_v31 = vpop.f32.mrb[21].mxu0  ;;  %v1096_v32 = vpop.f32.mrb[20].mxu1 }
 0x120   :  { %v1040_v33 = vadd.f32 %v1039_v31, %v1038_v29  ;;  %v1041_v34 = vpop.f32.mrb[22].mxu0  ;;  %v1097_v35 = vpop.f32.mrb[21].mxu1 }
 0x121   :  { %v1042_v36 = vpop.f32.mrb[23].mxu0  ;;  %v1098_v37 = vadd.f32 %v1097_v35, %v1096_v32  ;;  %v1099_v38 = vpop.f32.mrb[22].mxu1 }
 0x122   :  { %v613_v39 = vadd.f32 %v1040_v33, %v1509_v11  ;;  %v1043_v40 = vadd.f32 %v1042_v36, %v1041_v34  ;;  %v1100_v42 = vpop.f32.mrb[23].mxu1 }
 0x123   :  { %v1101_v44 = vadd.f32 %v1100_v42, %v1099_v38 }
 0x124   :  { %v616_v45 = vadd.f32 %v1043_v40, %v1509_v11  ;;  %v701_v46 = vadd.f32 %v1098_v37, %v613_v39 }
 0x126   :  { %v1044_v47 = vpop.f32.mrb[24].mxu0  ;;  %v704_v48 = vadd.f32 %v1101_v44, %v616_v45 }
 0x127   :  { %v1045_v49 = vpop.f32.mrb[25].mxu0  ;;  %v1102_v50 = vpop.f32.mrb[24].mxu1 }
 0x128   :  { %v1046_v51 = vadd.f32 %v1045_v49, %v1044_v47  ;;  %v1047_v52 = vpop.f32.mrb[26].mxu0  ;;  %v1103_v53 = vpop.f32.mrb[25].mxu1 }
 0x129   :  { %v1048_v54 = vpop.f32.mrb[27].mxu0  ;;  %v1104_v55 = vadd.f32 %v1103_v53, %v1102_v50  ;;  %v1105_v56 = vpop.f32.mrb[26].mxu1 }
 0x12a   :  { %v621_v58 = vadd.f32 %v1046_v51, %v1509_v11  ;;  %v1106_v60 = vpop.f32.mrb[27].mxu1 }
 0x12c   :  { %v709_v61 = vadd.f32 %v1104_v55, %v621_v58 }
 0x12e   :  { %v748_v62 = vpop.f32.mrb[28].mxu0 }
 0x12f   :  { %v749_v63 = vadd.f32 %v748_v62, %v1513_v25  ;;  %v780_v0 = vpop.f32.mrb[28].mxu1  ;;  %v1129_v1 = vpop.f32.mrb[29].mxu0 }
 0x130   :  { %v781_v2 = vadd.f32 %v780_v0, %v693_v28  ;;  %v1145_v3 = vpop.f32.mrb[29].mxu1  ;;  %v751_v4 = vpop.f32.mrb[30].mxu0 }
 0x131   :  { %v802_v5 = vmax.f32 %v749_v63, 0.0  ;;  %v752_v6 = vadd.f32 %v751_v4, %v1515_v27  ;;  %v783_v7 = vpop.f32.mrb[30].mxu1  ;;  %v1130_v8 = vpop.f32.mrb[31].mxu0 }
 0x132   :  { %v810_v10 = vmax.f32 %v781_v2, 0.0  ;;  %v784_v13 = vadd.f32 %v783_v7, %v696_v30  ;;  %v1146_v14 = vpop.f32.mrb[31].mxu1 }
 0x133   :  { %v979_v11 = vpack.c.bf16 %v802_v5, %v802_v5  ;;  %v803_v15 = vmax.f32 %v752_v6, 0.0 }
 0x134   :  { %v987_v16 = vpack.c.bf16 %v810_v10, %v810_v10  ;;  %v811_v17 = vmax.f32 %v784_v13, 0.0 }
 0x135   :  { %869 = vst.msk [vmem:[%s1602_s3] sm:$0xf] %vm868_vm2, %v979_v11  ;;  %v980_v25 = vpack.c.bf16 %v803_v15, %v803_v15 }
 0x136   :  { %877 = vst.msk [vmem:[%s1602_s3 + $0x20] sm:$0xf] %vm868_vm2, %v987_v16  ;;  %v988_v27 = vpack.c.bf16 %v811_v17, %v811_v17  ;;  %v756_v18 = vpop.f32.mrb[32].mxu0 }
 0x137   :  { %870 = vst.msk [vmem:[%s1602_s3 + $0x4] sm:$0xf] %vm868_vm2, %v980_v25  ;;  %v757_v19 = vadd.f32 %v756_v18, %v1519_v41  ;;  %v788_v20 = vpop.f32.mrb[32].mxu1  ;;  %v1133_v21 = vpop.f32.mrb[33].mxu0 }
 0x138   :  { %878 = vst.msk [vmem:[%s1602_s3 + $0x24] sm:$0xf] %vm868_vm2, %v988_v27  ;;  %v789_v22 = vadd.f32 %v788_v20, %v701_v46  ;;  %v1149_v23 = vpop.f32.mrb[33].mxu1  ;;  %v759_v24 = vpop.f32.mrb[34].mxu0 }
 0x139   :  { %v804_v26 = vmax.f32 %v757_v19, 0.0  ;;  %v760_v28 = vadd.f32 %v759_v24, %v1521_v43  ;;  %v791_v29 = vpop.f32.mrb[34].mxu1  ;;  %v1134_v30 = vpop.f32.mrb[35].mxu0 }
 0x13a   :  { %v812_v31 = vmax.f32 %v789_v22, 0.0  ;;  %v792_v32 = vadd.f32 %v791_v29, %v704_v48  ;;  %v1150_v33 = vpop.f32.mrb[35].mxu1 }
 0x13b   :  { %v981_v34 = vpack.c.bf16 %v804_v26, %v804_v26  ;;  %v805_v41 = vmax.f32 %v760_v28, 0.0 }
 0x13c   :  { %v989_v35 = vpack.c.bf16 %v812_v31, %v812_v31  ;;  %v813_v36 = vmax.f32 %v792_v32, 0.0 }
 0x13d   :  { %871 = vst.msk [vmem:[%s1602_s3 + $0x8] sm:$0xf] %vm868_vm2, %v981_v34  ;;  %v982_v37 = vpack.c.bf16 %v805_v41, %v805_v41 }
 0x13e   :  { %879 = vst.msk [vmem:[%s1602_s3 + $0x28] sm:$0xf] %vm868_vm2, %v989_v35  ;;  %v990_v43 = vpack.c.bf16 %v813_v36, %v813_v36  ;;  %v764_v38 = vpop.f32.mrb[36].mxu0 }
 0x13f   :  { %872 = vst.msk [vmem:[%s1602_s3 + $0xc] sm:$0xf] %vm868_vm2, %v982_v37  ;;  %v765_v39 = vadd.f32 %v764_v38, %v1525_v57  ;;  %v796_v40 = vpop.f32.mrb[36].mxu1  ;;  %v1137_v42 = vpop.f32.mrb[37].mxu0 }
 0x140   :  { %880 = vst.msk [vmem:[%s1602_s3 + $0x2c] sm:$0xf] %vm868_vm2, %v990_v43  ;;  %v797_v44 = vadd.f32 %v796_v40, %v709_v61  ;;  %v767_v45 = vpop.f32.mrb[38].mxu0  ;;  %v1153_v46 = vpop.f32.mrb[37].mxu1 }
 0x141   :  { %v806_v47 = vmax.f32 %v765_v39, 0.0  ;;  %v768_v48 = vadd.f32 %v767_v45, %v1527_v59  ;;  %v1138_v49 = vpop.f32.mrb[39].mxu0  ;;  %v799_v50 = vpop.f32.mrb[38].mxu1 }
 0x142   :  { %v814_v51 = vmax.f32 %v797_v44, 0.0  ;;  %v1154_v52 = vpop.f32.mrb[39].mxu1 }
 0x143   :  { %v983_v53 = vpack.c.bf16 %v806_v47, %v806_v47  ;;  %v807_v57 = vmax.f32 %v768_v48, 0.0 }
 0x144   :  { %v991_v54 = vpack.c.bf16 %v814_v51, %v814_v51 }
 0x145   :  { %873 = vst.msk [vmem:[%s1602_s3 + $0x10] sm:$0xf] %vm868_vm2, %v983_v53  ;;  %v984_v55 = vpack.c.bf16 %v807_v57, %v807_v57 }
 0x146   :  { %882 = vst.msk [vmem:[%s1602_s3 + $0x30] sm:$0x1] %vm881_vm3, %v991_v54  ;;  %v772_v56 = vpop.f32.mrb[40].mxu0 }
 0x147   :  { %874 = vst.msk [vmem:[%s1602_s3 + $0x14] sm:$0xf] %vm868_vm2, %v984_v55  ;;  %v773_v59 = vadd.f32 %v772_v56, %v1531_v9  ;;  %v1141_v58 = vpop.f32.mrb[41].mxu0 }
 0x148   :  { %v775_v60 = vpop.f32.mrb[42].mxu0 }
 0x149   :  { %v808_v61 = vmax.f32 %v773_v59, 0.0  ;;  %v776_v62 = vadd.f32 %v775_v60, %v1533_v12  ;;  %v1142_v63 = vpop.f32.mrb[43].mxu0 }
 0x14b   :  { %v985_v0 = vpack.c.bf16 %v808_v61, %v808_v61  ;;  %v809_v1 = vmax.f32 %v776_v62, 0.0 }
 0x14d   :  { %875 = vst.msk [vmem:[%s1602_s3 + $0x18] sm:$0xf] %vm868_vm2, %v985_v0  ;;  %v986_v2 = vpack.c.bf16 %v809_v1, %v809_v1 }
 0x14f   :  { %876 = vst.msk [vmem:[%s1602_s3 + $0x1c] sm:$0xf] %vm868_vm2, %v986_v2 }

// kernel: model_forward.7
= control target key start
LH: loop header
LB: loop body
LE: loop exit
PB: predicated region body
PF: predicated region fallthrough
CT: control target
= control target key end

     0   :  { %v827_v36 = vlaneseq  ;;  %v8703_v37 = vmov 1966171168   ;;  %vm6460_vm3 = vcmask 1041408   ;;  %s11393_s1 = inlined_call_operand.vmem [shape: bf16[3200,512], index: 1, kind: input, shape index: {}]   ;;  %s11394_s0 = inlined_call_operand.vmem [shape: bf16[2,3200], index: 0, kind: input, shape index: {}]   ;;  %s11395_s3 = inlined_call_operand.vmem [shape: bf16[512,128], index: 3, kind: input, shape index: {}]   ;;  %s11396_s2 = inlined_call_operand.vmem [shape: f32[1,512], index: 2, kind: input, shape index: {}]   ;;  %s11397_s4 = inlined_call_operand.vmem [shape: f32[1,128], index: 4, kind: input, shape index: {}]   ;;  %s11398_s5 = inlined_call_operand.vmem [shape: f32[2,128], index: 5, kind: output, shape index: {}]  }
   0x1   :  { %v7462_v0 = vld [vmem:[%s11393_s1 + $0x4] ss:$16 sps:$4 sm:$0xff]   ;;  %v7464_v1 = vld [vmem:[%s11393_s1 + $0xc] ss:$16 sps:$4 sm:$0xff]   ;;  %v7466_v2 = vld [vmem:[%s11393_s1] ss:$16 sps:$4 sm:$0xff]   ;;  %v853_v38 = vunpack.c.l.s4 %v8703_v37 }
   0x2   :  { %5037 = vmatprep.subr.bf16.mxu0 %v7462_v0  ;;  %v7467_v3 = vld [vmem:[%s11393_s1 + $0x8] ss:$16 sps:$4 sm:$0xff]   ;;  %5570 = vmatprep.subr.bf16.mxu1 %v7464_v1  ;;  %v7468_v4 = vld [vmem:[%s11393_s1 + $0x24] ss:$16 sps:$4 sm:$0xff]   ;;  %v7470_v5 = vld [vmem:[%s11393_s1 + $0x2c] ss:$16 sps:$4 sm:$0xff]  }
   0x3   :  { %5038 = vmatpush1.bf16.msra.mxu0 %v7466_v2  ;;  %5571 = vmatpush1.bf16.msra.mxu1 %v7467_v3  ;;  %v7472_v6 = vld [vmem:[%s11393_s1 + $0x20] ss:$16 sps:$4 sm:$0xff]   ;;  %v7473_v7 = vld [vmem:[%s11393_s1 + $0x28] ss:$16 sps:$4 sm:$0xff]   ;;  %v7474_v8 = vld [vmem:[%s11393_s1 + $0x44] ss:$16 sps:$4 sm:$0xff]   ;;  %v854_v43 = vunpack.c.0.s8 %v853_v38 }
   0x4   :  { %5039 = vmatprep.subr.bf16.mxu0 %v7468_v4  ;;  %5572 = vmatprep.subr.bf16.mxu1 %v7470_v5  ;;  %v7476_v9 = vld [vmem:[%s11393_s1 + $0x4c] ss:$16 sps:$4 sm:$0xff]   ;;  %v7478_v10 = vld [vmem:[%s11393_s1 + $0x40] ss:$16 sps:$4 sm:$0xff]   ;;  %v7479_v11 = vld [vmem:[%s11393_s1 + $0x48] ss:$16 sps:$4 sm:$0xff]  }
   0x5   :  { %v7480_v12 = vld [vmem:[%s11393_s1 + $0x64] ss:$16 sps:$4 sm:$0xff]   ;;  %v7482_v13 = vld [vmem:[%s11393_s1 + $0x6c] ss:$16 sps:$4 sm:$0xff]   ;;  %v7484_v14 = vld [vmem:[%s11393_s1 + $0x60] ss:$16 sps:$4 sm:$0xff]  }
   0x6   :  { %v7485_v15 = vld [vmem:[%s11393_s1 + $0x68] ss:$16 sps:$4 sm:$0xff]   ;;  %v7486_v16 = vld [vmem:[%s11393_s1 + $0x84] ss:$16 sps:$4 sm:$0xff]   ;;  %v7488_v17 = vld [vmem:[%s11393_s1 + $0x8c] ss:$16 sps:$4 sm:$0xff]  }
   0x7   :  { %5040 = vmatpush1.bf16.msra.mxu0 %v7472_v6  ;;  %5573 = vmatpush1.bf16.msra.mxu1 %v7473_v7  ;;  %v7490_v18 = vld [vmem:[%s11393_s1 + $0x80] ss:$16 sps:$4 sm:$0xff]   ;;  %v7491_v19 = vld [vmem:[%s11393_s1 + $0x88] ss:$16 sps:$4 sm:$0xff]   ;;  %v7492_v20 = vld [vmem:[%s11393_s1 + $0xa4] ss:$16 sps:$4 sm:$0xff]  }
   0x8   :  { %5041 = vmatprep.subr.bf16.mxu0 %v7474_v8  ;;  %5574 = vmatprep.subr.bf16.mxu1 %v7476_v9  ;;  %v7494_v21 = vld [vmem:[%s11393_s1 + $0xac] ss:$16 sps:$4 sm:$0xff]   ;;  %v7496_v22 = vld [vmem:[%s11393_s1 + $0xa0] ss:$16 sps:$4 sm:$0xff]   ;;  %v7497_v23 = vld [vmem:[%s11393_s1 + $0xa8] ss:$16 sps:$4 sm:$0xff]  }
   0x9   :  { %v7498_v24 = vld [vmem:[%s11393_s1 + $0xc4] ss:$16 sps:$4 sm:$0xff]   ;;  %v7500_v25 = vld [vmem:[%s11393_s1 + $0xcc] ss:$16 sps:$4 sm:$0xff]   ;;  %v7502_v26 = vld [vmem:[%s11393_s1 + $0xc0] ss:$16 sps:$4 sm:$0xff]  }
   0xa   :  { %v7503_v27 = vld [vmem:[%s11393_s1 + $0xc8] ss:$16 sps:$4 sm:$0xff]   ;;  %v7504_v28 = vld [vmem:[%s11393_s1 + $0xe4] ss:$16 sps:$4 sm:$0xff]   ;;  %v7506_v29 = vld [vmem:[%s11393_s1 + $0xec] ss:$16 sps:$4 sm:$0xff]  }
   0xb   :  { %5042 = vmatpush1.bf16.msra.mxu0 %v7478_v10  ;;  %5575 = vmatpush1.bf16.msra.mxu1 %v7479_v11  ;;  %v7508_v30 = vld [vmem:[%s11393_s1 + $0xe0] ss:$16 sps:$4 sm:$0xff]   ;;  %v7509_v31 = vld [vmem:[%s11393_s1 + $0xe8] ss:$16 sps:$4 sm:$0xff]   ;;  %v7510_v32 = vld [vmem:[%s11393_s1 + $0x104] ss:$16 sps:$4 sm:$0xff]  }
   0xc   :  { %5043 = vmatprep.subr.bf16.mxu0 %v7480_v12  ;;  %5576 = vmatprep.subr.bf16.mxu1 %v7482_v13  ;;  %v7512_v33 = vld [vmem:[%s11393_s1 + $0x10c] ss:$16 sps:$4 sm:$0xff]   ;;  %v7514_v34 = vld [vmem:[%s11393_s1 + $0x100] ss:$16 sps:$4 sm:$0xff]   ;;  %v7515_v35 = vld [vmem:[%s11393_s1 + $0x108] ss:$16 sps:$4 sm:$0xff]  }
   0xd   :  { %v7516_v39 = vld [vmem:[%s11393_s1 + $0x124] ss:$16 sps:$4 sm:$0xff]   ;;  %v7518_v40 = vld [vmem:[%s11393_s1 + $0x12c] ss:$16 sps:$4 sm:$0xff]   ;;  %v7520_v41 = vld [vmem:[%s11393_s1 + $0x120] ss:$16 sps:$4 sm:$0xff]  }
   0xe   :  { %v8853_v42 = vshrl.u32 %v827_v36, 7  ;;  %v7521_v44 = vld [vmem:[%s11393_s1 + $0x128] ss:$16 sps:$4 sm:$0xff]   ;;  %v7522_v45 = vld [vmem:[%s11393_s1 + $0x144] ss:$16 sps:$4 sm:$0xff]  }
   0xf   :  { %5044 = vmatpush1.bf16.msra.mxu0 %v7484_v14  ;;  %5577 = vmatpush1.bf16.msra.mxu1 %v7485_v15  ;;  %v7524_v46 = vld [vmem:[%s11393_s1 + $0x14c] ss:$16 sps:$4 sm:$0xff]   ;;  %v7526_v47 = vld [vmem:[%s11393_s1 + $0x140] ss:$16 sps:$4 sm:$0xff]   ;;  %v7527_v48 = vld [vmem:[%s11393_s1 + $0x148] ss:$16 sps:$4 sm:$0xff]  }
  0x10   :  { %5045 = vmatprep.subr.bf16.mxu0 %v7486_v16  ;;  %5578 = vmatprep.subr.bf16.mxu1 %v7488_v17  ;;  %v8871_v49 = vsub.s32 %v854_v43, %v8853_v42  ;;  %v7528_v50 = vld [vmem:[%s11393_s1 + $0x164] ss:$16 sps:$4 sm:$0xff]   ;;  %v7530_v51 = vld [vmem:[%s11393_s1 + $0x16c] ss:$16 sps:$4 sm:$0xff]   ;;  %v7532_v53 = vld [vmem:[%s11393_s1 + $0x160] ss:$16 sps:$4 sm:$0xff]  }
  0x11   :  { %v8882_v52 = vld [vmem:[%s11394_s0] sm:$0xff]  ;;  %v7533_v55 = vld [vmem:[%s11393_s1 + $0x168] ss:$16 sps:$4 sm:$0xff]   ;;  %v7536_v57 = vld [vmem:[%s11393_s1 + $0x18c] ss:$16 sps:$4 sm:$0xff]  }
  0x12   :  { %v858_v54 = vrot.slane %v8882_v52, %v8871_v49  ;;  %v7534_v56 = vld [vmem:[%s11393_s1 + $0x184] ss:$16 sps:$4 sm:$0xff]   ;;  %v7538_v59 = vld [vmem:[%s11393_s1 + $0x180] ss:$16 sps:$4 sm:$0xff]   ;;  %v7539_v61 = vld [vmem:[%s11393_s1 + $0x188] ss:$16 sps:$4 sm:$0xff]  }
  0x13   :  { %5046 = vmatpush1.bf16.msra.mxu0 %v7490_v18  ;;  %5579 = vmatpush1.bf16.msra.mxu1 %v7491_v19  ;;  %v7540_v62 = vld [vmem:[%s11393_s1 + $0x1a4] ss:$16 sps:$4 sm:$0xff]   ;;  %v7542_v63 = vld [vmem:[%s11393_s1 + $0x1ac] ss:$16 sps:$4 sm:$0xff]   ;;  %v7544_v0 = vld [vmem:[%s11393_s1 + $0x1a0] ss:$16 sps:$4 sm:$0xff]  }
  0x14   :  { %5047 = vmatprep.subr.bf16.mxu0 %v7492_v20  ;;  %5580 = vmatprep.subr.bf16.mxu1 %v7494_v21  ;;  %v866_v58 = vcombine.high %v858_v54, %v858_v54  ;;  %v7545_v1 = vld [vmem:[%s11393_s1 + $0x1a8] ss:$16 sps:$4 sm:$0xff]   ;;  %v7546_v2 = vld [vmem:[%s11393_s1 + $0x1c4] ss:$16 sps:$4 sm:$0xff]   ;;  %v7548_v3 = vld [vmem:[%s11393_s1 + $0x1cc] ss:$16 sps:$4 sm:$0xff]   ;;  %v8951_v13 = vrot.slane %v858_v54, %v8871_v49 }
  0x15   :  { %v7550_v4 = vld [vmem:[%s11393_s1 + $0x1c0] ss:$16 sps:$4 sm:$0xff]   ;;  %v7551_v5 = vld [vmem:[%s11393_s1 + $0x1c8] ss:$16 sps:$4 sm:$0xff]   ;;  %v7552_v6 = vld [vmem:[%s11393_s1 + $0x1e4] ss:$16 sps:$4 sm:$0xff]  }
  0x16   :  { %v888_v60 = vrot.slane %v866_v58, %v8871_v49  ;;  %v7554_v7 = vld [vmem:[%s11393_s1 + $0x1ec] ss:$16 sps:$4 sm:$0xff]   ;;  %v7556_v8 = vld [vmem:[%s11393_s1 + $0x1e0] ss:$16 sps:$4 sm:$0xff]   ;;  %v7557_v9 = vld [vmem:[%s11393_s1 + $0x1e8] ss:$16 sps:$4 sm:$0xff]  }
  0x17   :  { %5048 = vmatpush1.bf16.msra.mxu0 %v7496_v22  ;;  %5581 = vmatpush1.bf16.msra.mxu1 %v7497_v23  ;;  %v7560_v10 = vld [vmem:[%s11393_s1 + $0x204] ss:$16 sps:$4 sm:$0xff]   ;;  %v7563_v11 = vld [vmem:[%s11393_s1 + $0x20c] ss:$16 sps:$4 sm:$0xff]   ;;  %v7558_v12 = vld [vmem:[%s11393_s1 + $0x200] ss:$16 sps:$4 sm:$0xff]  }
  0x18   :  { %5049 = vmatprep.subr.bf16.mxu0 %v7498_v24  ;;  %5582 = vmatprep.subr.bf16.mxu1 %v7500_v25  ;;  %v7561_v14 = vld [vmem:[%s11393_s1 + $0x208] ss:$16 sps:$4 sm:$0xff]   ;;  %v7566_v15 = vld [vmem:[%s11393_s1 + $0x224] ss:$16 sps:$4 sm:$0xff]   ;;  %v7569_v16 = vld [vmem:[%s11393_s1 + $0x22c] ss:$16 sps:$4 sm:$0xff]   ;;  %v898_v17 = vcombine.high %v888_v60, %v888_v60 }
  0x19   :  { %5069 = vmatprep.mubr.bf16.mxu0 %v888_v60  ;;  %5602 = vmatprep.mubr.bf16.mxu1 %v888_v60  ;;  %v7564_v18 = vld [vmem:[%s11393_s1 + $0x220] ss:$16 sps:$4 sm:$0xff]   ;;  %v7567_v19 = vld [vmem:[%s11393_s1 + $0x228] ss:$16 sps:$4 sm:$0xff]   ;;  %v7572_v20 = vld [vmem:[%s11393_s1 + $0x244] ss:$16 sps:$4 sm:$0xff]  }
  0x1a   :  { %v7575_v21 = vld [vmem:[%s11393_s1 + $0x24c] ss:$16 sps:$4 sm:$0xff]   ;;  %v7570_v22 = vld [vmem:[%s11393_s1 + $0x240] ss:$16 sps:$4 sm:$0xff]   ;;  %v7573_v23 = vld [vmem:[%s11393_s1 + $0x248] ss:$16 sps:$4 sm:$0xff]  }
  0x1b   :  { %5050 = vmatpush1.bf16.msra.mxu0 %v7502_v26  ;;  %5583 = vmatpush1.bf16.msra.mxu1 %v7503_v27  ;;  %v7578_v24 = vld [vmem:[%s11393_s1 + $0x264] ss:$16 sps:$4 sm:$0xff]   ;;  %v7581_v25 = vld [vmem:[%s11393_s1 + $0x26c] ss:$16 sps:$4 sm:$0xff]   ;;  %v7576_v26 = vld [vmem:[%s11393_s1 + $0x260] ss:$16 sps:$4 sm:$0xff]  }
  0x1c   :  { %5051 = vmatprep.subr.bf16.mxu0 %v7504_v28  ;;  %5584 = vmatprep.subr.bf16.mxu1 %v7506_v29  ;;  %v7579_v27 = vld [vmem:[%s11393_s1 + $0x268] ss:$16 sps:$4 sm:$0xff]   ;;  %v7584_v28 = vld [vmem:[%s11393_s1 + $0x284] ss:$16 sps:$4 sm:$0xff]   ;;  %v7587_v29 = vld [vmem:[%s11393_s1 + $0x28c] ss:$16 sps:$4 sm:$0xff]  }
  0x1d   :  { %v7596_v37 = vld [vmem:[%s11393_s1 + $0x2c4] ss:$16 sps:$4 sm:$0xff]   ;;  %v7599_v38 = vld [vmem:[%s11393_s1 + $0x2cc] ss:$16 sps:$4 sm:$0xff]   ;;  %v7612_v54 = vld [vmem:[%s11393_s1 + $0x320] ss:$16 sps:$4 sm:$0xff]  }
  0x1e   :  { %v7605_v43 = vld [vmem:[%s11393_s1 + $0x2ec] ss:$16 sps:$4 sm:$0xff]   ;;  %v7618_v58 = vld [vmem:[%s11393_s1 + $0x340] ss:$16 sps:$4 sm:$0xff]   ;;  %v7626_v60 = vld [vmem:[%s11393_s1 + $0x364] ss:$16 sps:$4 sm:$0xff]  }
  0x1f   :  { %5052 = vmatpush1.bf16.msra.mxu0 %v7508_v30  ;;  %5585 = vmatpush1.bf16.msra.mxu1 %v7509_v31  ;;  %v7582_v30 = vld [vmem:[%s11393_s1 + $0x280] ss:$16 sps:$4 sm:$0xff]   ;;  %v7585_v31 = vld [vmem:[%s11393_s1 + $0x288] ss:$16 sps:$4 sm:$0xff]  }
  0x20   :  { %5053 = vmatprep.subr.bf16.mxu0 %v7510_v32  ;;  %5586 = vmatprep.subr.bf16.mxu1 %v7512_v33  ;;  %v7590_v32 = vld [vmem:[%s11393_s1 + $0x2a4] ss:$16 sps:$4 sm:$0xff]   ;;  %v7593_v33 = vld [vmem:[%s11393_s1 + $0x2ac] ss:$16 sps:$4 sm:$0xff]  }
  0x23   :  { %5054 = vmatpush1.bf16.msra.mxu0 %v7514_v34  ;;  %5587 = vmatpush1.bf16.msra.mxu1 %v7515_v35  ;;  %v7588_v34 = vld [vmem:[%s11393_s1 + $0x2a0] ss:$16 sps:$4 sm:$0xff]   ;;  %v7591_v35 = vld [vmem:[%s11393_s1 + $0x2a8] ss:$16 sps:$4 sm:$0xff]  }
  0x24   :  { %5055 = vmatprep.subr.bf16.mxu0 %v7516_v39  ;;  %5588 = vmatprep.subr.bf16.mxu1 %v7518_v40  ;;  %v7594_v39 = vld [vmem:[%s11393_s1 + $0x2c0] ss:$16 sps:$4 sm:$0xff]   ;;  %v7597_v40 = vld [vmem:[%s11393_s1 + $0x2c8] ss:$16 sps:$4 sm:$0xff]  }
  0x27   :  { %5056 = vmatpush1.bf16.msra.mxu0 %v7520_v41  ;;  %5589 = vmatpush1.bf16.msra.mxu1 %v7521_v44  ;;  %v7602_v41 = vld [vmem:[%s11393_s1 + $0x2e4] ss:$16 sps:$4 sm:$0xff]   ;;  %v7600_v44 = vld [vmem:[%s11393_s1 + $0x2e0] ss:$16 sps:$4 sm:$0xff]  }
  0x28   :  { %5057 = vmatprep.subr.bf16.mxu0 %v7522_v45  ;;  %5590 = vmatprep.subr.bf16.mxu1 %v7524_v46  ;;  %v7603_v45 = vld [vmem:[%s11393_s1 + $0x2e8] ss:$16 sps:$4 sm:$0xff]   ;;  %v7608_v46 = vld [vmem:[%s11393_s1 + $0x304] ss:$16 sps:$4 sm:$0xff]  }
  0x2b   :  { %5058 = vmatpush1.bf16.msra.mxu0 %v7526_v47  ;;  %5591 = vmatpush1.bf16.msra.mxu1 %v7527_v48  ;;  %v7611_v47 = vld [vmem:[%s11393_s1 + $0x30c] ss:$16 sps:$4 sm:$0xff]   ;;  %v7606_v48 = vld [vmem:[%s11393_s1 + $0x300] ss:$16 sps:$4 sm:$0xff]  }
  0x2c   :  { %5059 = vmatprep.subr.bf16.mxu0 %v7528_v50  ;;  %5592 = vmatprep.subr.bf16.mxu1 %v7530_v51  ;;  %v7609_v50 = vld [vmem:[%s11393_s1 + $0x308] ss:$16 sps:$4 sm:$0xff]   ;;  %v7614_v51 = vld [vmem:[%s11393_s1 + $0x324] ss:$16 sps:$4 sm:$0xff]  }
  0x2f   :  { %5060 = vmatpush1.bf16.msra.mxu0 %v7532_v53  ;;  %5593 = vmatpush1.bf16.msra.mxu1 %v7533_v55  ;;  %v7617_v53 = vld [vmem:[%s11393_s1 + $0x32c] ss:$16 sps:$4 sm:$0xff]   ;;  %v7615_v55 = vld [vmem:[%s11393_s1 + $0x328] ss:$16 sps:$4 sm:$0xff]  }
  0x30   :  { %5061 = vmatprep.subr.bf16.mxu0 %v7534_v56  ;;  %5594 = vmatprep.subr.bf16.mxu1 %v7536_v57  ;;  %v7620_v56 = vld [vmem:[%s11393_s1 + $0x344] ss:$16 sps:$4 sm:$0xff]   ;;  %v7623_v57 = vld [vmem:[%s11393_s1 + $0x34c] ss:$16 sps:$4 sm:$0xff]  }
  0x33   :  { %5062 = vmatpush1.bf16.msra.mxu0 %v7538_v59  ;;  %5595 = vmatpush1.bf16.msra.mxu1 %v7539_v61  ;;  %v7621_v59 = vld [vmem:[%s11393_s1 + $0x348] ss:$16 sps:$4 sm:$0xff]   ;;  %v7629_v61 = vld [vmem:[%s11393_s1 + $0x36c] ss:$16 sps:$4 sm:$0xff]  }
  0x34   :  { %5063 = vmatprep.subr.bf16.mxu0 %v7540_v62  ;;  %5596 = vmatprep.subr.bf16.mxu1 %v7542_v63  ;;  %v7624_v62 = vld [vmem:[%s11393_s1 + $0x360] ss:$16 sps:$4 sm:$0xff]   ;;  %v7627_v63 = vld [vmem:[%s11393_s1 + $0x368] ss:$16 sps:$4 sm:$0xff]  }
  0x37   :  { %5064 = vmatpush1.bf16.msra.mxu0 %v7544_v0  ;;  %5597 = vmatpush1.bf16.msra.mxu1 %v7545_v1  ;;  %v7632_v0 = vld [vmem:[%s11393_s1 + $0x384] ss:$16 sps:$4 sm:$0xff]   ;;  %v7635_v1 = vld [vmem:[%s11393_s1 + $0x38c] ss:$16 sps:$4 sm:$0xff]  }
  0x38   :  { %5065 = vmatprep.subr.bf16.mxu0 %v7546_v2  ;;  %5598 = vmatprep.subr.bf16.mxu1 %v7548_v3  ;;  %v7630_v2 = vld [vmem:[%s11393_s1 + $0x380] ss:$16 sps:$4 sm:$0xff]   ;;  %v7633_v3 = vld [vmem:[%s11393_s1 + $0x388] ss:$16 sps:$4 sm:$0xff]  }
  0x3b   :  { %5066 = vmatpush1.bf16.msra.mxu0 %v7550_v4  ;;  %5599 = vmatpush1.bf16.msra.mxu1 %v7551_v5  ;;  %v7638_v4 = vld [vmem:[%s11393_s1 + $0x3a4] ss:$16 sps:$4 sm:$0xff]   ;;  %v7641_v5 = vld [vmem:[%s11393_s1 + $0x3ac] ss:$16 sps:$4 sm:$0xff]  }
  0x3c   :  { %5067 = vmatprep.subr.bf16.mxu0 %v7552_v6  ;;  %5600 = vmatprep.subr.bf16.mxu1 %v7554_v7  ;;  %v7636_v6 = vld [vmem:[%s11393_s1 + $0x3a0] ss:$16 sps:$4 sm:$0xff]   ;;  %v7639_v7 = vld [vmem:[%s11393_s1 + $0x3a8] ss:$16 sps:$4 sm:$0xff]  }
  0x3f   :  { %5068 = vmatpush1.bf16.msra.mxu0 %v7556_v8  ;;  %5601 = vmatpush1.bf16.msra.mxu1 %v7557_v9  ;;  %v7644_v8 = vld [vmem:[%s11393_s1 + $0x3c4] ss:$16 sps:$4 sm:$0xff]   ;;  %v7647_v9 = vld [vmem:[%s11393_s1 + $0x3cc] ss:$16 sps:$4 sm:$0xff]  }
  0x40   :  { %5078 = vmatprep.subr.bf16.mxu0 %v7560_v10  ;;  %5611 = vmatprep.subr.bf16.mxu1 %v7563_v11  ;;  %v851_v10 = vcombine.high %v8882_v52, %v8882_v52  ;;  %v7642_v11 = vld [vmem:[%s11393_s1 + $0x3c0] ss:$16 sps:$4 sm:$0xff]   ;;  %v7653_v52 = vld [vmem:[%s11393_s1 + $0x3ec] ss:$16 sps:$4 sm:$0xff]  }
  0x42   :  { %5070 = vmatmul.mubr.bf16.vlgmr.msra.gmra.mrb[0].mxu0 %v8951_v13  ;;  %5603 = vmatmul.mubr.bf16.vlgmr.msra.gmra.mrb[0].mxu1 %v8951_v13 }
  0x43   :  { %5079 = vmatpush1.bf16.msra.mxu0 %v7558_v12  ;;  %5612 = vmatpush1.bf16.msra.mxu1 %v7561_v14  ;;  %v7645_v12 = vld [vmem:[%s11393_s1 + $0x3c8] ss:$16 sps:$4 sm:$0xff]   ;;  %v7650_v14 = vld [vmem:[%s11393_s1 + $0x3e4] ss:$16 sps:$4 sm:$0xff]  }
  0x44   :  { %5080 = vmatprep.subr.bf16.mxu0 %v7566_v15  ;;  %5613 = vmatprep.subr.bf16.mxu1 %v7569_v16  ;;  %v9135_v15 = vrot.slane %v851_v10, %v8871_v49  ;;  %v7648_v16 = vld [vmem:[%s11393_s1 + $0x3e0] ss:$16 sps:$4 sm:$0xff]  }
  0x45   :  { %5110 = vmatprep.mubr.bf16.mxu0 %v898_v17  ;;  %5643 = vmatprep.mubr.bf16.mxu1 %v898_v17  ;;  %v7651_v17 = vld [vmem:[%s11393_s1 + $0x3e8] ss:$16 sps:$4 sm:$0xff]   ;;  %v7726_v10 = vld [vmem:[%s11393_s1 + $0x580] ss:$16 sps:$4 sm:$0xff]  }
  0x47   :  { %5081 = vmatpush1.bf16.msra.mxu0 %v7564_v18  ;;  %5614 = vmatpush1.bf16.msra.mxu1 %v7567_v19  ;;  %v7656_v18 = vld [vmem:[%s11393_s1 + $0x404] ss:$16 sps:$4 sm:$0xff]   ;;  %v7659_v19 = vld [vmem:[%s11393_s1 + $0x40c] ss:$16 sps:$4 sm:$0xff]  }
  0x48   :  { %5082 = vmatprep.subr.bf16.mxu0 %v7572_v20  ;;  %5615 = vmatprep.subr.bf16.mxu1 %v7575_v21  ;;  %v867_v20 = vcombine.high %v9135_v15, %v9135_v15  ;;  %v7654_v21 = vld [vmem:[%s11393_s1 + $0x400] ss:$16 sps:$4 sm:$0xff]  }
  0x4b   :  { %5083 = vmatpush1.bf16.msra.mxu0 %v7570_v22  ;;  %5616 = vmatpush1.bf16.msra.mxu1 %v7573_v23  ;;  %v896_v22 = vcombine.high %v8951_v13, %v8951_v13  ;;  %v7657_v23 = vld [vmem:[%s11393_s1 + $0x408] ss:$16 sps:$4 sm:$0xff]   ;;  %v7660_v13 = vld [vmem:[%s11393_s1 + $0x420] ss:$16 sps:$4 sm:$0xff]  }
  0x4c   :  { %5084 = vmatprep.subr.bf16.mxu0 %v7578_v24  ;;  %5617 = vmatprep.subr.bf16.mxu1 %v7581_v25  ;;  %v7662_v24 = vld [vmem:[%s11393_s1 + $0x424] ss:$16 sps:$4 sm:$0xff]   ;;  %v7665_v25 = vld [vmem:[%s11393_s1 + $0x42c] ss:$16 sps:$4 sm:$0xff]  }
  0x4f   :  { %5085 = vmatpush1.bf16.msra.mxu0 %v7576_v26  ;;  %5618 = vmatpush1.bf16.msra.mxu1 %v7579_v27  ;;  %v9166_v26 = vrot.slane %v867_v20, %v8871_v49  ;;  %v7663_v27 = vld [vmem:[%s11393_s1 + $0x428] ss:$16 sps:$4 sm:$0xff]  }
  0x50   :  { %5086 = vmatprep.subr.bf16.mxu0 %v7584_v28  ;;  %5619 = vmatprep.subr.bf16.mxu1 %v7587_v29  ;;  %v7668_v28 = vld [vmem:[%s11393_s1 + $0x444] ss:$16 sps:$4 sm:$0xff]   ;;  %v7671_v29 = vld [vmem:[%s11393_s1 + $0x44c] ss:$16 sps:$4 sm:$0xff]   ;;  %v7741_v20 = vld [vmem:[%s11393_s1 + $0x5c8] ss:$16 sps:$4 sm:$0xff]  }
  0x53   :  { %5087 = vmatpush1.bf16.msra.mxu0 %v7582_v30  ;;  %5620 = vmatpush1.bf16.msra.mxu1 %v7585_v31  ;;  %v7666_v30 = vld [vmem:[%s11393_s1 + $0x440] ss:$16 sps:$4 sm:$0xff]   ;;  %v7669_v31 = vld [vmem:[%s11393_s1 + $0x448] ss:$16 sps:$4 sm:$0xff]  }
  0x54   :  { %5088 = vmatprep.subr.bf16.mxu0 %v7590_v32  ;;  %5621 = vmatprep.subr.bf16.mxu1 %v7593_v33  ;;  %v7674_v32 = vld [vmem:[%s11393_s1 + $0x464] ss:$16 sps:$4 sm:$0xff]   ;;  %v7677_v33 = vld [vmem:[%s11393_s1 + $0x46c] ss:$16 sps:$4 sm:$0xff]  }
  0x57   :  { %5089 = vmatpush1.bf16.msra.mxu0 %v7588_v34  ;;  %5622 = vmatpush1.bf16.msra.mxu1 %v7591_v35  ;;  %v7672_v34 = vld [vmem:[%s11393_s1 + $0x460] ss:$16 sps:$4 sm:$0xff]   ;;  %v7675_v35 = vld [vmem:[%s11393_s1 + $0x468] ss:$16 sps:$4 sm:$0xff]  }
  0x58   :  { %5090 = vmatprep.subr.bf16.mxu0 %v7596_v37  ;;  %5623 = vmatprep.subr.bf16.mxu1 %v7599_v38  ;;  %v7680_v37 = vld [vmem:[%s11393_s1 + $0x484] ss:$16 sps:$4 sm:$0xff]   ;;  %v7683_v38 = vld [vmem:[%s11393_s1 + $0x48c] ss:$16 sps:$4 sm:$0xff]  }
  0x5b   :  { %5091 = vmatpush1.bf16.msra.mxu0 %v7594_v39  ;;  %5624 = vmatpush1.bf16.msra.mxu1 %v7597_v40  ;;  %v7678_v39 = vld [vmem:[%s11393_s1 + $0x480] ss:$16 sps:$4 sm:$0xff]   ;;  %v7681_v40 = vld [vmem:[%s11393_s1 + $0x488] ss:$16 sps:$4 sm:$0xff]  }
  0x5c   :  { %5092 = vmatprep.subr.bf16.mxu0 %v7602_v41  ;;  %5625 = vmatprep.subr.bf16.mxu1 %v7605_v43  ;;  %v7686_v41 = vld [vmem:[%s11393_s1 + $0x4a4] ss:$16 sps:$4 sm:$0xff]   ;;  %v7689_v43 = vld [vmem:[%s11393_s1 + $0x4ac] ss:$16 sps:$4 sm:$0xff]  }
  0x5f   :  { %5093 = vmatpush1.bf16.msra.mxu0 %v7600_v44  ;;  %5626 = vmatpush1.bf16.msra.mxu1 %v7603_v45  ;;  %v7684_v44 = vld [vmem:[%s11393_s1 + $0x4a0] ss:$16 sps:$4 sm:$0xff]   ;;  %v7687_v45 = vld [vmem:[%s11393_s1 + $0x4a8] ss:$16 sps:$4 sm:$0xff]  }
  0x60   :  { %5094 = vmatprep.subr.bf16.mxu0 %v7608_v46  ;;  %5627 = vmatprep.subr.bf16.mxu1 %v7611_v47  ;;  %v7692_v46 = vld [vmem:[%s11393_s1 + $0x4c4] ss:$16 sps:$4 sm:$0xff]   ;;  %v7695_v47 = vld [vmem:[%s11393_s1 + $0x4cc] ss:$16 sps:$4 sm:$0xff]  }
  0x63   :  { %5095 = vmatpush1.bf16.msra.mxu0 %v7606_v48  ;;  %5628 = vmatpush1.bf16.msra.mxu1 %v7609_v50  ;;  %v7690_v48 = vld [vmem:[%s11393_s1 + $0x4c0] ss:$16 sps:$4 sm:$0xff]   ;;  %v7693_v50 = vld [vmem:[%s11393_s1 + $0x4c8] ss:$16 sps:$4 sm:$0xff]  }
  0x64   :  { %5096 = vmatprep.subr.bf16.mxu0 %v7614_v51  ;;  %5629 = vmatprep.subr.bf16.mxu1 %v7617_v53  ;;  %v7698_v51 = vld [vmem:[%s11393_s1 + $0x4e4] ss:$16 sps:$4 sm:$0xff]   ;;  %v7701_v53 = vld [vmem:[%s11393_s1 + $0x4ec] ss:$16 sps:$4 sm:$0xff]  }
  0x67   :  { %5097 = vmatpush1.bf16.msra.mxu0 %v7612_v54  ;;  %5630 = vmatpush1.bf16.msra.mxu1 %v7615_v55  ;;  %v7696_v54 = vld [vmem:[%s11393_s1 + $0x4e0] ss:$16 sps:$4 sm:$0xff]   ;;  %v7699_v55 = vld [vmem:[%s11393_s1 + $0x4e8] ss:$16 sps:$4 sm:$0xff]  }
  0x68   :  { %5098 = vmatprep.subr.bf16.mxu0 %v7620_v56  ;;  %5631 = vmatprep.subr.bf16.mxu1 %v7623_v57  ;;  %v7704_v56 = vld [vmem:[%s11393_s1 + $0x504] ss:$16 sps:$4 sm:$0xff]   ;;  %v7707_v57 = vld [vmem:[%s11393_s1 + $0x50c] ss:$16 sps:$4 sm:$0xff]  }
  0x6b   :  { %5099 = vmatpush1.bf16.msra.mxu0 %v7618_v58  ;;  %5632 = vmatpush1.bf16.msra.mxu1 %v7621_v59  ;;  %v7702_v58 = vld [vmem:[%s11393_s1 + $0x500] ss:$16 sps:$4 sm:$0xff]   ;;  %v7705_v59 = vld [vmem:[%s11393_s1 + $0x508] ss:$16 sps:$4 sm:$0xff]  }
  0x6c   :  { %5100 = vmatprep.subr.bf16.mxu0 %v7626_v60  ;;  %5633 = vmatprep.subr.bf16.mxu1 %v7629_v61  ;;  %v7710_v60 = vld [vmem:[%s11393_s1 + $0x524] ss:$16 sps:$4 sm:$0xff]   ;;  %v7713_v61 = vld [vmem:[%s11393_s1 + $0x52c] ss:$16 sps:$4 sm:$0xff]  }
  0x6f   :  { %5101 = vmatpush1.bf16.msra.mxu0 %v7624_v62  ;;  %5634 = vmatpush1.bf16.msra.mxu1 %v7627_v63  ;;  %v7708_v62 = vld [vmem:[%s11393_s1 + $0x520] ss:$16 sps:$4 sm:$0xff]   ;;  %v7711_v63 = vld [vmem:[%s11393_s1 + $0x528] ss:$16 sps:$4 sm:$0xff]  }
  0x70   :  { %5102 = vmatprep.subr.bf16.mxu0 %v7632_v0  ;;  %5635 = vmatprep.subr.bf16.mxu1 %v7635_v1  ;;  %v7716_v0 = vld [vmem:[%s11393_s1 + $0x544] ss:$16 sps:$4 sm:$0xff]   ;;  %v7719_v1 = vld [vmem:[%s11393_s1 + $0x54c] ss:$16 sps:$4 sm:$0xff]  }
  0x73   :  { %5103 = vmatpush1.bf16.msra.mxu0 %v7630_v2  ;;  %5636 = vmatpush1.bf16.msra.mxu1 %v7633_v3  ;;  %v7714_v2 = vld [vmem:[%s11393_s1 + $0x540] ss:$16 sps:$4 sm:$0xff]   ;;  %v7717_v3 = vld [vmem:[%s11393_s1 + $0x548] ss:$16 sps:$4 sm:$0xff]  }
  0x74   :  { %5104 = vmatprep.subr.bf16.mxu0 %v7638_v4  ;;  %5637 = vmatprep.subr.bf16.mxu1 %v7641_v5  ;;  %v7722_v4 = vld [vmem:[%s11393_s1 + $0x564] ss:$16 sps:$4 sm:$0xff]   ;;  %v7725_v5 = vld [vmem:[%s11393_s1 + $0x56c] ss:$16 sps:$4 sm:$0xff]  }
  0x77   :  { %5105 = vmatpush1.bf16.msra.mxu0 %v7636_v6  ;;  %5638 = vmatpush1.bf16.msra.mxu1 %v7639_v7  ;;  %v7720_v6 = vld [vmem:[%s11393_s1 + $0x560] ss:$16 sps:$4 sm:$0xff]   ;;  %v7723_v7 = vld [vmem:[%s11393_s1 + $0x568] ss:$16 sps:$4 sm:$0xff]  }
  0x78   :  { %5106 = vmatprep.subr.bf16.mxu0 %v7644_v8  ;;  %5639 = vmatprep.subr.bf16.mxu1 %v7647_v9  ;;  %v7728_v8 = vld [vmem:[%s11393_s1 + $0x584] ss:$16 sps:$4 sm:$0xff]   ;;  %v7731_v9 = vld [vmem:[%s11393_s1 + $0x58c] ss:$16 sps:$4 sm:$0xff]  }
  0x7b   :  { %5107 = vmatpush1.bf16.msra.mxu0 %v7642_v11  ;;  %5640 = vmatpush1.bf16.msra.mxu1 %v7645_v12  ;;  %v7729_v11 = vld [vmem:[%s11393_s1 + $0x588] ss:$16 sps:$4 sm:$0xff]   ;;  %v7734_v12 = vld [vmem:[%s11393_s1 + $0x5a4] ss:$16 sps:$4 sm:$0xff]  }
  0x7c   :  { %5108 = vmatprep.subr.bf16.mxu0 %v7650_v14  ;;  %5641 = vmatprep.subr.bf16.mxu1 %v7653_v52  ;;  %v7737_v14 = vld [vmem:[%s11393_s1 + $0x5ac] ss:$16 sps:$4 sm:$0xff]   ;;  %v7732_v52 = vld [vmem:[%s11393_s1 + $0x5a0] ss:$16 sps:$4 sm:$0xff]  }
  0x7f   :  { %5109 = vmatpush1.bf16.msra.mxu0 %v7648_v16  ;;  %5642 = vmatpush1.bf16.msra.mxu1 %v7651_v17  ;;  %v7735_v16 = vld [vmem:[%s11393_s1 + $0x5a8] ss:$16 sps:$4 sm:$0xff]   ;;  %v7740_v17 = vld [vmem:[%s11393_s1 + $0x5c4] ss:$16 sps:$4 sm:$0xff]  }
  0x80   :  { %5119 = vmatprep.subr.bf16.mxu0 %v7656_v18  ;;  %5652 = vmatprep.subr.bf16.mxu1 %v7659_v19  ;;  %v7743_v18 = vld [vmem:[%s11393_s1 + $0x5cc] ss:$16 sps:$4 sm:$0xff]   ;;  %v7738_v19 = vld [vmem:[%s11393_s1 + $0x5c0] ss:$16 sps:$4 sm:$0xff]  }
  0x82   :  { %5111 = vmatmul.mubr.bf16.vlgmr.msra.gmra.mrb[0].mxu0 %v896_v22  ;;  %5644 = vmatmul.mubr.bf16.vlgmr.msra.gmra.mrb[0].mxu1 %v896_v22  ;;  %v7749_v22 = vld [vmem:[%s11393_s1 + $0x5ec] ss:$16 sps:$4 sm:$0xff]  }
  0x83   :  { %5120 = vmatpush1.bf16.msra.mxu0 %v7654_v21  ;;  %5653 = vmatpush1.bf16.msra.mxu1 %v7657_v23  ;;  %v7746_v21 = vld [vmem:[%s11393_s1 + $0x5e4] ss:$16 sps:$4 sm:$0xff]   ;;  %v7744_v23 = vld [vmem:[%s11393_s1 + $0x5e0] ss:$16 sps:$4 sm:$0xff]  }
  0x84   :  { %5121 = vmatprep.subr.bf16.mxu0 %v7662_v24  ;;  %5654 = vmatprep.subr.bf16.mxu1 %v7665_v25  ;;  %v7747_v24 = vld [vmem:[%s11393_s1 + $0x5e8] ss:$16 sps:$4 sm:$0xff]   ;;  %v7753_v25 = vld [vmem:[%s11393_s1 + $0x604] ss:$16 sps:$4 sm:$0xff]  }
  0x85   :  { %5151 = vmatprep.mubr.bf16.mxu0 %v9166_v26  ;;  %5684 = vmatprep.mubr.bf16.mxu1 %v9166_v26 }
  0x87   :  { %5122 = vmatpush1.bf16.msra.mxu0 %v7660_v13  ;;  %5655 = vmatpush1.bf16.msra.mxu1 %v7663_v27  ;;  %v7756_v13 = vld [vmem:[%s11393_s1 + $0x60c] ss:$16 sps:$4 sm:$0xff]   ;;  %v7751_v27 = vld [vmem:[%s11393_s1 + $0x600] ss:$16 sps:$4 sm:$0xff]  }
  0x88   :  { %5123 = vmatprep.subr.bf16.mxu0 %v7668_v28  ;;  %5656 = vmatprep.subr.bf16.mxu1 %v7671_v29  ;;  %v9355_v28 = vrot.slane %v9135_v15, %v8871_v49  ;;  %v7754_v29 = vld [vmem:[%s11393_s1 + $0x608] ss:$16 sps:$4 sm:$0xff]   ;;  %v899_v15 = vcombine.high %v9166_v26, %v9166_v26  ;;  %v7765_v26 = vld [vmem:[%s11393_s1 + $0x644] ss:$16 sps:$4 sm:$0xff]  }
  0x8b   :  { %5124 = vmatpush1.bf16.msra.mxu0 %v7666_v30  ;;  %5657 = vmatpush1.bf16.msra.mxu1 %v7669_v31  ;;  %v7759_v30 = vld [vmem:[%s11393_s1 + $0x624] ss:$16 sps:$4 sm:$0xff]   ;;  %v7762_v31 = vld [vmem:[%s11393_s1 + $0x62c] ss:$16 sps:$4 sm:$0xff]  }
  0x8c   :  { %5125 = vmatprep.subr.bf16.mxu0 %v7674_v32  ;;  %5658 = vmatprep.subr.bf16.mxu1 %v7677_v33  ;;  %v7757_v32 = vld [vmem:[%s11393_s1 + $0x620] ss:$16 sps:$4 sm:$0xff]   ;;  %v7760_v33 = vld [vmem:[%s11393_s1 + $0x628] ss:$16 sps:$4 sm:$0xff]  }
  0x8f   :  { %5126 = vmatpush1.bf16.msra.mxu0 %v7672_v34  ;;  %5659 = vmatpush1.bf16.msra.mxu1 %v7675_v35  ;;  %v7768_v34 = vld [vmem:[%s11393_s1 + $0x64c] ss:$16 sps:$4 sm:$0xff]   ;;  %v7763_v35 = vld [vmem:[%s11393_s1 + $0x640] ss:$16 sps:$4 sm:$0xff]  }
  0x90   :  { %5127 = vmatprep.subr.bf16.mxu0 %v7680_v37  ;;  %5660 = vmatprep.subr.bf16.mxu1 %v7683_v38  ;;  %v7766_v37 = vld [vmem:[%s11393_s1 + $0x648] ss:$16 sps:$4 sm:$0xff]   ;;  %v7771_v38 = vld [vmem:[%s11393_s1 + $0x664] ss:$16 sps:$4 sm:$0xff]  }
  0x93   :  { %5128 = vmatpush1.bf16.msra.mxu0 %v7678_v39  ;;  %5661 = vmatpush1.bf16.msra.mxu1 %v7681_v40  ;;  %v7774_v39 = vld [vmem:[%s11393_s1 + $0x66c] ss:$16 sps:$4 sm:$0xff]   ;;  %v7769_v40 = vld [vmem:[%s11393_s1 + $0x660] ss:$16 sps:$4 sm:$0xff]  }
  0x94   :  { %5129 = vmatprep.subr.bf16.mxu0 %v7686_v41  ;;  %5662 = vmatprep.subr.bf16.mxu1 %v7689_v43  ;;  %v7772_v41 = vld [vmem:[%s11393_s1 + $0x668] ss:$16 sps:$4 sm:$0xff]   ;;  %v7777_v43 = vld [vmem:[%s11393_s1 + $0x684] ss:$16 sps:$4 sm:$0xff]  }
  0x97   :  { %5130 = vmatpush1.bf16.msra.mxu0 %v7684_v44  ;;  %5663 = vmatpush1.bf16.msra.mxu1 %v7687_v45  ;;  %v7780_v44 = vld [vmem:[%s11393_s1 + $0x68c] ss:$16 sps:$4 sm:$0xff]   ;;  %v7775_v45 = vld [vmem:[%s11393_s1 + $0x680] ss:$16 sps:$4 sm:$0xff]  }
  0x98   :  { %5131 = vmatprep.subr.bf16.mxu0 %v7692_v46  ;;  %5664 = vmatprep.subr.bf16.mxu1 %v7695_v47  ;;  %v7778_v46 = vld [vmem:[%s11393_s1 + $0x688] ss:$16 sps:$4 sm:$0xff]   ;;  %v7783_v47 = vld [vmem:[%s11393_s1 + $0x6a4] ss:$16 sps:$4 sm:$0xff]  }
  0x9b   :  { %5132 = vmatpush1.bf16.msra.mxu0 %v7690_v48  ;;  %5665 = vmatpush1.bf16.msra.mxu1 %v7693_v50  ;;  %v7786_v48 = vld [vmem:[%s11393_s1 + $0x6ac] ss:$16 sps:$4 sm:$0xff]   ;;  %v7781_v50 = vld [vmem:[%s11393_s1 + $0x6a0] ss:$16 sps:$4 sm:$0xff]  }
  0x9c   :  { %5133 = vmatprep.subr.bf16.mxu0 %v7698_v51  ;;  %5666 = vmatprep.subr.bf16.mxu1 %v7701_v53  ;;  %v7784_v51 = vld [vmem:[%s11393_s1 + $0x6a8] ss:$16 sps:$4 sm:$0xff]   ;;  %v7789_v53 = vld [vmem:[%s11393_s1 + $0x6c4] ss:$16 sps:$4 sm:$0xff]  }
  0x9f   :  { %5134 = vmatpush1.bf16.msra.mxu0 %v7696_v54  ;;  %5667 = vmatpush1.bf16.msra.mxu1 %v7699_v55  ;;  %v7792_v54 = vld [vmem:[%s11393_s1 + $0x6cc] ss:$16 sps:$4 sm:$0xff]   ;;  %v7787_v55 = vld [vmem:[%s11393_s1 + $0x6c0] ss:$16 sps:$4 sm:$0xff]  }
  0xa0   :  { %5135 = vmatprep.subr.bf16.mxu0 %v7704_v56  ;;  %5668 = vmatprep.subr.bf16.mxu1 %v7707_v57  ;;  %v7790_v56 = vld [vmem:[%s11393_s1 + $0x6c8] ss:$16 sps:$4 sm:$0xff]   ;;  %v7795_v57 = vld [vmem:[%s11393_s1 + $0x6e4] ss:$16 sps:$4 sm:$0xff]  }
  0xa3   :  { %5136 = vmatpush1.bf16.msra.mxu0 %v7702_v58  ;;  %5669 = vmatpush1.bf16.msra.mxu1 %v7705_v59  ;;  %v7798_v58 = vld [vmem:[%s11393_s1 + $0x6ec] ss:$16 sps:$4 sm:$0xff]   ;;  %v7793_v59 = vld [vmem:[%s11393_s1 + $0x6e0] ss:$16 sps:$4 sm:$0xff]  }
  0xa4   :  { %5137 = vmatprep.subr.bf16.mxu0 %v7710_v60  ;;  %5670 = vmatprep.subr.bf16.mxu1 %v7713_v61  ;;  %v7796_v60 = vld [vmem:[%s11393_s1 + $0x6e8] ss:$16 sps:$4 sm:$0xff]   ;;  %v7801_v61 = vld [vmem:[%s11393_s1 + $0x704] ss:$16 sps:$4 sm:$0xff]  }
  0xa7   :  { %5138 = vmatpush1.bf16.msra.mxu0 %v7708_v62  ;;  %5671 = vmatpush1.bf16.msra.mxu1 %v7711_v63  ;;  %v7804_v62 = vld [vmem:[%s11393_s1 + $0x70c] ss:$16 sps:$4 sm:$0xff]   ;;  %v7799_v63 = vld [vmem:[%s11393_s1 + $0x700] ss:$16 sps:$4 sm:$0xff]  }
  0xa8   :  { %5139 = vmatprep.subr.bf16.mxu0 %v7716_v0  ;;  %5672 = vmatprep.subr.bf16.mxu1 %v7719_v1  ;;  %v7802_v0 = vld [vmem:[%s11393_s1 + $0x708] ss:$16 sps:$4 sm:$0xff]   ;;  %v7807_v1 = vld [vmem:[%s11393_s1 + $0x724] ss:$16 sps:$4 sm:$0xff]  }
  0xab   :  { %5140 = vmatpush1.bf16.msra.mxu0 %v7714_v2  ;;  %5673 = vmatpush1.bf16.msra.mxu1 %v7717_v3  ;;  %v7810_v2 = vld [vmem:[%s11393_s1 + $0x72c] ss:$16 sps:$4 sm:$0xff]   ;;  %v7805_v3 = vld [vmem:[%s11393_s1 + $0x720] ss:$16 sps:$4 sm:$0xff]  }
  0xac   :  { %5141 = vmatprep.subr.bf16.mxu0 %v7722_v4  ;;  %5674 = vmatprep.subr.bf16.mxu1 %v7725_v5  ;;  %v7808_v4 = vld [vmem:[%s11393_s1 + $0x728] ss:$16 sps:$4 sm:$0xff]   ;;  %v7813_v5 = vld [vmem:[%s11393_s1 + $0x744] ss:$16 sps:$4 sm:$0xff]  }
  0xaf   :  { %5142 = vmatpush1.bf16.msra.mxu0 %v7720_v6  ;;  %5675 = vmatpush1.bf16.msra.mxu1 %v7723_v7  ;;  %v7816_v6 = vld [vmem:[%s11393_s1 + $0x74c] ss:$16 sps:$4 sm:$0xff]   ;;  %v7811_v7 = vld [vmem:[%s11393_s1 + $0x740] ss:$16 sps:$4 sm:$0xff]  }
  0xb0   :  { %5143 = vmatprep.subr.bf16.mxu0 %v7728_v8  ;;  %5676 = vmatprep.subr.bf16.mxu1 %v7731_v9  ;;  %v7814_v8 = vld [vmem:[%s11393_s1 + $0x748] ss:$16 sps:$4 sm:$0xff]   ;;  %v7819_v9 = vld [vmem:[%s11393_s1 + $0x764] ss:$16 sps:$4 sm:$0xff]  }
  0xb3   :  { %5144 = vmatpush1.bf16.msra.mxu0 %v7726_v10  ;;  %5677 = vmatpush1.bf16.msra.mxu1 %v7729_v11  ;;  %v7822_v10 = vld [vmem:[%s11393_s1 + $0x76c] ss:$16 sps:$4 sm:$0xff]   ;;  %v7817_v11 = vld [vmem:[%s11393_s1 + $0x760] ss:$16 sps:$4 sm:$0xff]  }
  0xb4   :  { %5145 = vmatprep.subr.bf16.mxu0 %v7734_v12  ;;  %5678 = vmatprep.subr.bf16.mxu1 %v7737_v14  ;;  %v7820_v12 = vld [vmem:[%s11393_s1 + $0x768] ss:$16 sps:$4 sm:$0xff]   ;;  %v7825_v14 = vld [vmem:[%s11393_s1 + $0x784] ss:$16 sps:$4 sm:$0xff]  }
  0xb7   :  { %5146 = vmatpush1.bf16.msra.mxu0 %v7732_v52  ;;  %5679 = vmatpush1.bf16.msra.mxu1 %v7735_v16  ;;  %v7828_v52 = vld [vmem:[%s11393_s1 + $0x78c] ss:$16 sps:$4 sm:$0xff]   ;;  %v7823_v16 = vld [vmem:[%s11393_s1 + $0x780] ss:$16 sps:$4 sm:$0xff]  }
  0xb8   :  { %5147 = vmatprep.subr.bf16.mxu0 %v7740_v17  ;;  %5680 = vmatprep.subr.bf16.mxu1 %v7743_v18  ;;  %v7826_v17 = vld [vmem:[%s11393_s1 + $0x788] ss:$16 sps:$4 sm:$0xff]   ;;  %v7831_v18 = vld [vmem:[%s11393_s1 + $0x7a4] ss:$16 sps:$4 sm:$0xff]  }
  0xbb   :  { %5148 = vmatpush1.bf16.msra.mxu0 %v7738_v19  ;;  %5681 = vmatpush1.bf16.msra.mxu1 %v7741_v20  ;;  %v7834_v19 = vld [vmem:[%s11393_s1 + $0x7ac] ss:$16 sps:$4 sm:$0xff]   ;;  %v7829_v20 = vld [vmem:[%s11393_s1 + $0x7a0] ss:$16 sps:$4 sm:$0xff]  }
  0xbc   :  { %5149 = vmatprep.subr.bf16.mxu0 %v7746_v21  ;;  %5682 = vmatprep.subr.bf16.mxu1 %v7749_v22  ;;  %v7832_v21 = vld [vmem:[%s11393_s1 + $0x7a8] ss:$16 sps:$4 sm:$0xff]   ;;  %v7837_v22 = vld [vmem:[%s11393_s1 + $0x7c4] ss:$16 sps:$4 sm:$0xff]  }
  0xbf   :  { %5150 = vmatpush1.bf16.msra.mxu0 %v7744_v23  ;;  %5683 = vmatpush1.bf16.msra.mxu1 %v7747_v24  ;;  %v7840_v23 = vld [vmem:[%s11393_s1 + $0x7cc] ss:$16 sps:$4 sm:$0xff]  }
  0xc0   :  { %5160 = vmatprep.subr.bf16.mxu0 %v7753_v25  ;;  %5693 = vmatprep.subr.bf16.mxu1 %v7756_v13  ;;  %v9529_v24 = vld.sshfl [vmem:[%s11394_s0 + $0x8] sm:$0xff pattern:$0x75316420]  ;;  %v7835_v25 = vld [vmem:[%s11393_s1 + $0x7c0] ss:$16 sps:$4 sm:$0xff]  }
  0xc1   :  { %v7838_v13 = vld [vmem:[%s11393_s1 + $0x7c8] ss:$16 sps:$4 sm:$0xff]  }
  0xc2   :  { %5152 = vmatmul.mubr.bf16.vlgmr.msra.gmra.mrb[0].mxu0 %v9355_v28  ;;  %5685 = vmatmul.mubr.bf16.vlgmr.msra.gmra.mrb[0].mxu1 %v9355_v28 }
  0xc3   :  { %5161 = vmatpush1.bf16.msra.mxu0 %v7751_v27  ;;  %5694 = vmatpush1.bf16.msra.mxu1 %v7754_v29  ;;  %v7843_v27 = vld [vmem:[%s11393_s1 + $0x7e4] ss:$16 sps:$4 sm:$0xff]   ;;  %v7846_v29 = vld [vmem:[%s11393_s1 + $0x7ec] ss:$16 sps:$4 sm:$0xff]  }
  0xc4   :  { %5162 = vmatprep.subr.bf16.mxu0 %v7759_v30  ;;  %5695 = vmatprep.subr.bf16.mxu1 %v7762_v31  ;;  %v7841_v30 = vld [vmem:[%s11393_s1 + $0x7e0] ss:$16 sps:$4 sm:$0xff]   ;;  %v7844_v31 = vld [vmem:[%s11393_s1 + $0x7e8] ss:$16 sps:$4 sm:$0xff]  }
  0xc5   :  { %5192 = vmatprep.mubr.bf16.mxu0 %v899_v15  ;;  %5725 = vmatprep.mubr.bf16.mxu1 %v899_v15  ;;  %v7849_v15 = vld [vmem:[%s11393_s1 + $0x804] ss:$16 sps:$4 sm:$0xff]  }
  0xc7   :  { %5163 = vmatpush1.bf16.msra.mxu0 %v7757_v32  ;;  %5696 = vmatpush1.bf16.msra.mxu1 %v7760_v33  ;;  %v7852_v32 = vld [vmem:[%s11393_s1 + $0x80c] ss:$16 sps:$4 sm:$0xff]   ;;  %v915_v33 = vcombine.high %v9529_v24, %v9529_v24 }
  0xc8   :  { %5164 = vmatprep.subr.bf16.mxu0 %v7765_v26  ;;  %5697 = vmatprep.subr.bf16.mxu1 %v7768_v34  ;;  %v897_v26 = vcombine.high %v9355_v28, %v9355_v28  ;;  %v7847_v34 = vld [vmem:[%s11393_s1 + $0x800] ss:$16 sps:$4 sm:$0xff]   ;;  %v7858_v28 = vld [vmem:[%s11393_s1 + $0x82c] ss:$16 sps:$4 sm:$0xff]  }
  0xcb   :  { %5165 = vmatpush1.bf16.msra.mxu0 %v7763_v35  ;;  %5698 = vmatpush1.bf16.msra.mxu1 %v7766_v37  ;;  %v7850_v35 = vld [vmem:[%s11393_s1 + $0x808] ss:$16 sps:$4 sm:$0xff]   ;;  %v7855_v37 = vld [vmem:[%s11393_s1 + $0x824] ss:$16 sps:$4 sm:$0xff]  }
  0xcc   :  { %5166 = vmatprep.subr.bf16.mxu0 %v7771_v38  ;;  %5699 = vmatprep.subr.bf16.mxu1 %v7774_v39  ;;  %v9572_v38 = vrot.slane %v915_v33, %v8871_v49  ;;  %v7853_v39 = vld [vmem:[%s11393_s1 + $0x820] ss:$16 sps:$4 sm:$0xff]   ;;  %v7934_v33 = vld [vmem:[%s11393_s1 + $0x9c8] ss:$16 sps:$4 sm:$0xff]  }
  0xcf   :  { %5167 = vmatpush1.bf16.msra.mxu0 %v7769_v40  ;;  %5700 = vmatpush1.bf16.msra.mxu1 %v7772_v41  ;;  %v7856_v40 = vld [vmem:[%s11393_s1 + $0x828] ss:$16 sps:$4 sm:$0xff]   ;;  %v7861_v41 = vld [vmem:[%s11393_s1 + $0x844] ss:$16 sps:$4 sm:$0xff]  }
  0xd0   :  { %5168 = vmatprep.subr.bf16.mxu0 %v7777_v43  ;;  %5701 = vmatprep.subr.bf16.mxu1 %v7780_v44  ;;  %v7864_v43 = vld [vmem:[%s11393_s1 + $0x84c] ss:$16 sps:$4 sm:$0xff]   ;;  %v7859_v44 = vld [vmem:[%s11393_s1 + $0x840] ss:$16 sps:$4 sm:$0xff]  }
  0xd3   :  { %5169 = vmatpush1.bf16.msra.mxu0 %v7775_v45  ;;  %5702 = vmatpush1.bf16.msra.mxu1 %v7778_v46  ;;  %v7862_v45 = vld [vmem:[%s11393_s1 + $0x848] ss:$16 sps:$4 sm:$0xff]   ;;  %v7867_v46 = vld [vmem:[%s11393_s1 + $0x864] ss:$16 sps:$4 sm:$0xff]  }
  0xd4   :  { %5170 = vmatprep.subr.bf16.mxu0 %v7783_v47  ;;  %5703 = vmatprep.subr.bf16.mxu1 %v7786_v48  ;;  %v7870_v47 = vld [vmem:[%s11393_s1 + $0x86c] ss:$16 sps:$4 sm:$0xff]   ;;  %v7865_v48 = vld [vmem:[%s11393_s1 + $0x860] ss:$16 sps:$4 sm:$0xff]  }
  0xd7   :  { %5171 = vmatpush1.bf16.msra.mxu0 %v7781_v50  ;;  %5704 = vmatpush1.bf16.msra.mxu1 %v7784_v51  ;;  %v7868_v50 = vld [vmem:[%s11393_s1 + $0x868] ss:$16 sps:$4 sm:$0xff]   ;;  %v7873_v51 = vld [vmem:[%s11393_s1 + $0x884] ss:$16 sps:$4 sm:$0xff]  }
  0xd8   :  { %5172 = vmatprep.subr.bf16.mxu0 %v7789_v53  ;;  %5705 = vmatprep.subr.bf16.mxu1 %v7792_v54  ;;  %v7876_v53 = vld [vmem:[%s11393_s1 + $0x88c] ss:$16 sps:$4 sm:$0xff]   ;;  %v7871_v54 = vld [vmem:[%s11393_s1 + $0x880] ss:$16 sps:$4 sm:$0xff]  }
  0xdb   :  { %5173 = vmatpush1.bf16.msra.mxu0 %v7787_v55  ;;  %5706 = vmatpush1.bf16.msra.mxu1 %v7790_v56  ;;  %v7874_v55 = vld [vmem:[%s11393_s1 + $0x888] ss:$16 sps:$4 sm:$0xff]   ;;  %v7879_v56 = vld [vmem:[%s11393_s1 + $0x8a4] ss:$16 sps:$4 sm:$0xff]  }
  0xdc   :  { %5174 = vmatprep.subr.bf16.mxu0 %v7795_v57  ;;  %5707 = vmatprep.subr.bf16.mxu1 %v7798_v58  ;;  %v7882_v57 = vld [vmem:[%s11393_s1 + $0x8ac] ss:$16 sps:$4 sm:$0xff]   ;;  %v7877_v58 = vld [vmem:[%s11393_s1 + $0x8a0] ss:$16 sps:$4 sm:$0xff]  }
  0xdf   :  { %5175 = vmatpush1.bf16.msra.mxu0 %v7793_v59  ;;  %5708 = vmatpush1.bf16.msra.mxu1 %v7796_v60  ;;  %v7880_v59 = vld [vmem:[%s11393_s1 + $0x8a8] ss:$16 sps:$4 sm:$0xff]   ;;  %v7885_v60 = vld [vmem:[%s11393_s1 + $0x8c4] ss:$16 sps:$4 sm:$0xff]  }
  0xe0   :  { %5176 = vmatprep.subr.bf16.mxu0 %v7801_v61  ;;  %5709 = vmatprep.subr.bf16.mxu1 %v7804_v62  ;;  %v7888_v61 = vld [vmem:[%s11393_s1 + $0x8cc] ss:$16 sps:$4 sm:$0xff]   ;;  %v7883_v62 = vld [vmem:[%s11393_s1 + $0x8c0] ss:$16 sps:$4 sm:$0xff]  }
  0xe3   :  { %5177 = vmatpush1.bf16.msra.mxu0 %v7799_v63  ;;  %5710 = vmatpush1.bf16.msra.mxu1 %v7802_v0  ;;  %v7886_v63 = vld [vmem:[%s11393_s1 + $0x8c8] ss:$16 sps:$4 sm:$0xff]   ;;  %v7891_v0 = vld [vmem:[%s11393_s1 + $0x8e4] ss:$16 sps:$4 sm:$0xff]  }
  0xe4   :  { %5178 = vmatprep.subr.bf16.mxu0 %v7807_v1  ;;  %5711 = vmatprep.subr.bf16.mxu1 %v7810_v2  ;;  %v7894_v1 = vld [vmem:[%s11393_s1 + $0x8ec] ss:$16 sps:$4 sm:$0xff]   ;;  %v7889_v2 = vld [vmem:[%s11393_s1 + $0x8e0] ss:$16 sps:$4 sm:$0xff]  }
  0xe7   :  { %5179 = vmatpush1.bf16.msra.mxu0 %v7805_v3  ;;  %5712 = vmatpush1.bf16.msra.mxu1 %v7808_v4  ;;  %v7892_v3 = vld [vmem:[%s11393_s1 + $0x8e8] ss:$16 sps:$4 sm:$0xff]   ;;  %v7897_v4 = vld [vmem:[%s11393_s1 + $0x904] ss:$16 sps:$4 sm:$0xff]  }
  0xe8   :  { %5180 = vmatprep.subr.bf16.mxu0 %v7813_v5  ;;  %5713 = vmatprep.subr.bf16.mxu1 %v7816_v6  ;;  %v7900_v5 = vld [vmem:[%s11393_s1 + $0x90c] ss:$16 sps:$4 sm:$0xff]   ;;  %v7895_v6 = vld [vmem:[%s11393_s1 + $0x900] ss:$16 sps:$4 sm:$0xff]  }
  0xeb   :  { %5181 = vmatpush1.bf16.msra.mxu0 %v7811_v7  ;;  %5714 = vmatpush1.bf16.msra.mxu1 %v7814_v8  ;;  %v7898_v7 = vld [vmem:[%s11393_s1 + $0x908] ss:$16 sps:$4 sm:$0xff]   ;;  %v7903_v8 = vld [vmem:[%s11393_s1 + $0x924] ss:$16 sps:$4 sm:$0xff]  }
  0xec   :  { %5182 = vmatprep.subr.bf16.mxu0 %v7819_v9  ;;  %5715 = vmatprep.subr.bf16.mxu1 %v7822_v10  ;;  %v7906_v9 = vld [vmem:[%s11393_s1 + $0x92c] ss:$16 sps:$4 sm:$0xff]   ;;  %v7901_v10 = vld [vmem:[%s11393_s1 + $0x920] ss:$16 sps:$4 sm:$0xff]  }
  0xef   :  { %5183 = vmatpush1.bf16.msra.mxu0 %v7817_v11  ;;  %5716 = vmatpush1.bf16.msra.mxu1 %v7820_v12  ;;  %v7904_v11 = vld [vmem:[%s11393_s1 + $0x928] ss:$16 sps:$4 sm:$0xff]   ;;  %v7909_v12 = vld [vmem:[%s11393_s1 + $0x944] ss:$16 sps:$4 sm:$0xff]  }
  0xf0   :  { %5184 = vmatprep.subr.bf16.mxu0 %v7825_v14  ;;  %5717 = vmatprep.subr.bf16.mxu1 %v7828_v52  ;;  %v7912_v14 = vld [vmem:[%s11393_s1 + $0x94c] ss:$16 sps:$4 sm:$0xff]   ;;  %v7907_v52 = vld [vmem:[%s11393_s1 + $0x940] ss:$16 sps:$4 sm:$0xff]  }
  0xf3   :  { %5185 = vmatpush1.bf16.msra.mxu0 %v7823_v16  ;;  %5718 = vmatpush1.bf16.msra.mxu1 %v7826_v17  ;;  %v7910_v16 = vld [vmem:[%s11393_s1 + $0x948] ss:$16 sps:$4 sm:$0xff]   ;;  %v7915_v17 = vld [vmem:[%s11393_s1 + $0x964] ss:$16 sps:$4 sm:$0xff]  }
  0xf4   :  { %5186 = vmatprep.subr.bf16.mxu0 %v7831_v18  ;;  %5719 = vmatprep.subr.bf16.mxu1 %v7834_v19  ;;  %v7918_v18 = vld [vmem:[%s11393_s1 + $0x96c] ss:$16 sps:$4 sm:$0xff]   ;;  %v7913_v19 = vld [vmem:[%s11393_s1 + $0x960] ss:$16 sps:$4 sm:$0xff]  }
  0xf7   :  { %5187 = vmatpush1.bf16.msra.mxu0 %v7829_v20  ;;  %5720 = vmatpush1.bf16.msra.mxu1 %v7832_v21  ;;  %v7916_v20 = vld [vmem:[%s11393_s1 + $0x968] ss:$16 sps:$4 sm:$0xff]   ;;  %v7921_v21 = vld [vmem:[%s11393_s1 + $0x984] ss:$16 sps:$4 sm:$0xff]  }
  0xf8   :  { %5188 = vmatprep.subr.bf16.mxu0 %v7837_v22  ;;  %5721 = vmatprep.subr.bf16.mxu1 %v7840_v23  ;;  %v7924_v22 = vld [vmem:[%s11393_s1 + $0x98c] ss:$16 sps:$4 sm:$0xff]   ;;  %v7919_v23 = vld [vmem:[%s11393_s1 + $0x980] ss:$16 sps:$4 sm:$0xff]  }
  0xfb   :  { %5189 = vmatpush1.bf16.msra.mxu0 %v7835_v25  ;;  %5722 = vmatpush1.bf16.msra.mxu1 %v7838_v13  ;;  %v7922_v25 = vld [vmem:[%s11393_s1 + $0x988] ss:$16 sps:$4 sm:$0xff]   ;;  %v7927_v13 = vld [vmem:[%s11393_s1 + $0x9a4] ss:$16 sps:$4 sm:$0xff]  }
  0xfc   :  { %5190 = vmatprep.subr.bf16.mxu0 %v7843_v27  ;;  %5723 = vmatprep.subr.bf16.mxu1 %v7846_v29  ;;  %v7930_v27 = vld [vmem:[%s11393_s1 + $0x9ac] ss:$16 sps:$4 sm:$0xff]   ;;  %v7925_v29 = vld [vmem:[%s11393_s1 + $0x9a0] ss:$16 sps:$4 sm:$0xff]  }
  0xff   :  { %5191 = vmatpush1.bf16.msra.mxu0 %v7841_v30  ;;  %5724 = vmatpush1.bf16.msra.mxu1 %v7844_v31  ;;  %v7928_v30 = vld [vmem:[%s11393_s1 + $0x9a8] ss:$16 sps:$4 sm:$0xff]   ;;  %v7933_v31 = vld [vmem:[%s11393_s1 + $0x9c4] ss:$16 sps:$4 sm:$0xff]  }
 0x100   :  { %5201 = vmatprep.subr.bf16.mxu0 %v7849_v15  ;;  %5734 = vmatprep.subr.bf16.mxu1 %v7852_v32  ;;  %v7936_v15 = vld [vmem:[%s11393_s1 + $0x9cc] ss:$16 sps:$4 sm:$0xff]   ;;  %v7931_v32 = vld [vmem:[%s11393_s1 + $0x9c0] ss:$16 sps:$4 sm:$0xff]  }
 0x102   :  { %5193 = vmatmul.mubr.bf16.vlgmr.msra.gmra.mrb[0].mxu0 %v897_v26  ;;  %5726 = vmatmul.mubr.bf16.vlgmr.msra.gmra.mrb[0].mxu1 %v897_v26  ;;  %v7939_v26 = vld [vmem:[%s11393_s1 + $0x9e4] ss:$16 sps:$4 sm:$0xff]  }
 0x103   :  { %5202 = vmatpush1.bf16.msra.mxu0 %v7847_v34  ;;  %5735 = vmatpush1.bf16.msra.mxu1 %v7850_v35  ;;  %v7942_v34 = vld [vmem:[%s11393_s1 + $0x9ec] ss:$16 sps:$4 sm:$0xff]   ;;  %v7937_v35 = vld [vmem:[%s11393_s1 + $0x9e0] ss:$16 sps:$4 sm:$0xff]  }
 0x104   :  { %5203 = vmatprep.subr.bf16.mxu0 %v7855_v37  ;;  %5736 = vmatprep.subr.bf16.mxu1 %v7858_v28  ;;  %v7940_v37 = vld [vmem:[%s11393_s1 + $0x9e8] ss:$16 sps:$4 sm:$0xff]   ;;  %v7945_v28 = vld [vmem:[%s11393_s1 + $0xa04] ss:$16 sps:$4 sm:$0xff]  }
 0x105   :  { %5233 = vmatprep.mubr.bf16.mxu0 %v9572_v38  ;;  %5766 = vmatprep.mubr.bf16.mxu1 %v9572_v38 }
 0x107   :  { %5204 = vmatpush1.bf16.msra.mxu0 %v7853_v39  ;;  %5737 = vmatpush1.bf16.msra.mxu1 %v7856_v40  ;;  %v7948_v39 = vld [vmem:[%s11393_s1 + $0xa0c] ss:$16 sps:$4 sm:$0xff]   ;;  %v9758_v40 = vrot.slane %v9529_v24, %v8871_v49 }
 0x108   :  { %5205 = vmatprep.subr.bf16.mxu0 %v7861_v41  ;;  %5738 = vmatprep.subr.bf16.mxu1 %v7864_v43  ;;  %v7943_v41 = vld [vmem:[%s11393_s1 + $0xa00] ss:$16 sps:$4 sm:$0xff]   ;;  %v7946_v43 = vld [vmem:[%s11393_s1 + $0xa08] ss:$16 sps:$4 sm:$0xff]   ;;  %v7954_v24 = vld [vmem:[%s11393_s1 + $0xa2c] ss:$16 sps:$4 sm:$0xff]  }
 0x10b   :  { %5206 = vmatpush1.bf16.msra.mxu0 %v7859_v44  ;;  %5739 = vmatpush1.bf16.msra.mxu1 %v7862_v45  ;;  %v7951_v44 = vld [vmem:[%s11393_s1 + $0xa24] ss:$16 sps:$4 sm:$0xff]   ;;  %v947_v45 = vcombine.high %v9572_v38, %v9572_v38 }
 0x10c   :  { %5207 = vmatprep.subr.bf16.mxu0 %v7867_v46  ;;  %5740 = vmatprep.subr.bf16.mxu1 %v7870_v47  ;;  %v7949_v46 = vld [vmem:[%s11393_s1 + $0xa20] ss:$16 sps:$4 sm:$0xff]   ;;  %v7952_v47 = vld [vmem:[%s11393_s1 + $0xa28] ss:$16 sps:$4 sm:$0xff]   ;;  %v7957_v38 = vld [vmem:[%s11393_s1 + $0xa44] ss:$16 sps:$4 sm:$0xff]  }
 0x10f   :  { %5208 = vmatpush1.bf16.msra.mxu0 %v7865_v48  ;;  %5741 = vmatpush1.bf16.msra.mxu1 %v7868_v50  ;;  %v7960_v48 = vld [vmem:[%s11393_s1 + $0xa4c] ss:$16 sps:$4 sm:$0xff]   ;;  %v7955_v50 = vld [vmem:[%s11393_s1 + $0xa40] ss:$16 sps:$4 sm:$0xff]  }
 0x110   :  { %5209 = vmatprep.subr.bf16.mxu0 %v7873_v51  ;;  %5742 = vmatprep.subr.bf16.mxu1 %v7876_v53  ;;  %v7958_v51 = vld [vmem:[%s11393_s1 + $0xa48] ss:$16 sps:$4 sm:$0xff]   ;;  %v7963_v53 = vld [vmem:[%s11393_s1 + $0xa64] ss:$16 sps:$4 sm:$0xff]  }
 0x113   :  { %5210 = vmatpush1.bf16.msra.mxu0 %v7871_v54  ;;  %5743 = vmatpush1.bf16.msra.mxu1 %v7874_v55  ;;  %v7966_v54 = vld [vmem:[%s11393_s1 + $0xa6c] ss:$16 sps:$4 sm:$0xff]   ;;  %v7961_v55 = vld [vmem:[%s11393_s1 + $0xa60] ss:$16 sps:$4 sm:$0xff]  }
 0x114   :  { %5211 = vmatprep.subr.bf16.mxu0 %v7879_v56  ;;  %5744 = vmatprep.subr.bf16.mxu1 %v7882_v57  ;;  %v7964_v56 = vld [vmem:[%s11393_s1 + $0xa68] ss:$16 sps:$4 sm:$0xff]   ;;  %v7969_v57 = vld [vmem:[%s11393_s1 + $0xa84] ss:$16 sps:$4 sm:$0xff]  }
 0x117   :  { %5212 = vmatpush1.bf16.msra.mxu0 %v7877_v58  ;;  %5745 = vmatpush1.bf16.msra.mxu1 %v7880_v59  ;;  %v7972_v58 = vld [vmem:[%s11393_s1 + $0xa8c] ss:$16 sps:$4 sm:$0xff]   ;;  %v7967_v59 = vld [vmem:[%s11393_s1 + $0xa80] ss:$16 sps:$4 sm:$0xff]  }
 0x118   :  { %5213 = vmatprep.subr.bf16.mxu0 %v7885_v60  ;;  %5746 = vmatprep.subr.bf16.mxu1 %v7888_v61  ;;  %v7970_v60 = vld [vmem:[%s11393_s1 + $0xa88] ss:$16 sps:$4 sm:$0xff]   ;;  %v7975_v61 = vld [vmem:[%s11393_s1 + $0xaa4] ss:$16 sps:$4 sm:$0xff]  }
 0x11b   :  { %5214 = vmatpush1.bf16.msra.mxu0 %v7883_v62  ;;  %5747 = vmatpush1.bf16.msra.mxu1 %v7886_v63  ;;  %v7978_v62 = vld [vmem:[%s11393_s1 + $0xaac] ss:$16 sps:$4 sm:$0xff]   ;;  %v7973_v63 = vld [vmem:[%s11393_s1 + $0xaa0] ss:$16 sps:$4 sm:$0xff]  }
 0x11c   :  { %5215 = vmatprep.subr.bf16.mxu0 %v7891_v0  ;;  %5748 = vmatprep.subr.bf16.mxu1 %v7894_v1  ;;  %v7976_v0 = vld [vmem:[%s11393_s1 + $0xaa8] ss:$16 sps:$4 sm:$0xff]   ;;  %v7981_v1 = vld [vmem:[%s11393_s1 + $0xac4] ss:$16 sps:$4 sm:$0xff]  }
 0x11f   :  { %5216 = vmatpush1.bf16.msra.mxu0 %v7889_v2  ;;  %5749 = vmatpush1.bf16.msra.mxu1 %v7892_v3  ;;  %v7984_v2 = vld [vmem:[%s11393_s1 + $0xacc] ss:$16 sps:$4 sm:$0xff]   ;;  %v7979_v3 = vld [vmem:[%s11393_s1 + $0xac0] ss:$16 sps:$4 sm:$0xff]  }
 0x120   :  { %5217 = vmatprep.subr.bf16.mxu0 %v7897_v4  ;;  %5750 = vmatprep.subr.bf16.mxu1 %v7900_v5  ;;  %v7982_v4 = vld [vmem:[%s11393_s1 + $0xac8] ss:$16 sps:$4 sm:$0xff]   ;;  %v7987_v5 = vld [vmem:[%s11393_s1 + $0xae4] ss:$16 sps:$4 sm:$0xff]  }
 0x123   :  { %5218 = vmatpush1.bf16.msra.mxu0 %v7895_v6  ;;  %5751 = vmatpush1.bf16.msra.mxu1 %v7898_v7  ;;  %v7990_v6 = vld [vmem:[%s11393_s1 + $0xaec] ss:$16 sps:$4 sm:$0xff]   ;;  %v7985_v7 = vld [vmem:[%s11393_s1 + $0xae0] ss:$16 sps:$4 sm:$0xff]  }
 0x124   :  { %5219 = vmatprep.subr.bf16.mxu0 %v7903_v8  ;;  %5752 = vmatprep.subr.bf16.mxu1 %v7906_v9  ;;  %v7988_v8 = vld [vmem:[%s11393_s1 + $0xae8] ss:$16 sps:$4 sm:$0xff]   ;;  %v7993_v9 = vld [vmem:[%s11393_s1 + $0xb04] ss:$16 sps:$4 sm:$0xff]  }
 0x127   :  { %5220 = vmatpush1.bf16.msra.mxu0 %v7901_v10  ;;  %5753 = vmatpush1.bf16.msra.mxu1 %v7904_v11  ;;  %v7996_v10 = vld [vmem:[%s11393_s1 + $0xb0c] ss:$16 sps:$4 sm:$0xff]   ;;  %v7991_v11 = vld [vmem:[%s11393_s1 + $0xb00] ss:$16 sps:$4 sm:$0xff]  }
 0x128   :  { %5221 = vmatprep.subr.bf16.mxu0 %v7909_v12  ;;  %5754 = vmatprep.subr.bf16.mxu1 %v7912_v14  ;;  %v7994_v12 = vld [vmem:[%s11393_s1 + $0xb08] ss:$16 sps:$4 sm:$0xff]   ;;  %v7999_v14 = vld [vmem:[%s11393_s1 + $0xb24] ss:$16 sps:$4 sm:$0xff]  }
 0x12b   :  { %5222 = vmatpush1.bf16.msra.mxu0 %v7907_v52  ;;  %5755 = vmatpush1.bf16.msra.mxu1 %v7910_v16  ;;  %v8002_v52 = vld [vmem:[%s11393_s1 + $0xb2c] ss:$16 sps:$4 sm:$0xff]   ;;  %v7997_v16 = vld [vmem:[%s11393_s1 + $0xb20] ss:$16 sps:$4 sm:$0xff]  }
 0x12c   :  { %5223 = vmatprep.subr.bf16.mxu0 %v7915_v17  ;;  %5756 = vmatprep.subr.bf16.mxu1 %v7918_v18  ;;  %v8000_v17 = vld [vmem:[%s11393_s1 + $0xb28] ss:$16 sps:$4 sm:$0xff]   ;;  %v8005_v18 = vld [vmem:[%s11393_s1 + $0xb44] ss:$16 sps:$4 sm:$0xff]  }
 0x12f   :  { %5224 = vmatpush1.bf16.msra.mxu0 %v7913_v19  ;;  %5757 = vmatpush1.bf16.msra.mxu1 %v7916_v20  ;;  %v8008_v19 = vld [vmem:[%s11393_s1 + $0xb4c] ss:$16 sps:$4 sm:$0xff]   ;;  %v8003_v20 = vld [vmem:[%s11393_s1 + $0xb40] ss:$16 sps:$4 sm:$0xff]  }
 0x130   :  { %5225 = vmatprep.subr.bf16.mxu0 %v7921_v21  ;;  %5758 = vmatprep.subr.bf16.mxu1 %v7924_v22  ;;  %v8006_v21 = vld [vmem:[%s11393_s1 + $0xb48] ss:$16 sps:$4 sm:$0xff]   ;;  %v8011_v22 = vld [vmem:[%s11393_s1 + $0xb64] ss:$16 sps:$4 sm:$0xff]  }
 0x133   :  { %5226 = vmatpush1.bf16.msra.mxu0 %v7919_v23  ;;  %5759 = vmatpush1.bf16.msra.mxu1 %v7922_v25  ;;  %v8014_v23 = vld [vmem:[%s11393_s1 + $0xb6c] ss:$16 sps:$4 sm:$0xff]   ;;  %v8009_v25 = vld [vmem:[%s11393_s1 + $0xb60] ss:$16 sps:$4 sm:$0xff]  }
 0x134   :  { %5227 = vmatprep.subr.bf16.mxu0 %v7927_v13  ;;  %5760 = vmatprep.subr.bf16.mxu1 %v7930_v27  ;;  %v8012_v13 = vld [vmem:[%s11393_s1 + $0xb68] ss:$16 sps:$4 sm:$0xff]   ;;  %v8017_v27 = vld [vmem:[%s11393_s1 + $0xb84] ss:$16 sps:$4 sm:$0xff]  }
 0x137   :  { %5228 = vmatpush1.bf16.msra.mxu0 %v7925_v29  ;;  %5761 = vmatpush1.bf16.msra.mxu1 %v7928_v30  ;;  %v8020_v29 = vld [vmem:[%s11393_s1 + $0xb8c] ss:$16 sps:$4 sm:$0xff]   ;;  %v8015_v30 = vld [vmem:[%s11393_s1 + $0xb80] ss:$16 sps:$4 sm:$0xff]  }
 0x138   :  { %5229 = vmatprep.subr.bf16.mxu0 %v7933_v31  ;;  %5762 = vmatprep.subr.bf16.mxu1 %v7936_v15  ;;  %v8018_v31 = vld [vmem:[%s11393_s1 + $0xb88] ss:$16 sps:$4 sm:$0xff]   ;;  %v8023_v15 = vld [vmem:[%s11393_s1 + $0xba4] ss:$16 sps:$4 sm:$0xff]  }
 0x13b   :  { %5230 = vmatpush1.bf16.msra.mxu0 %v7931_v32  ;;  %5763 = vmatpush1.bf16.msra.mxu1 %v7934_v33  ;;  %v8026_v32 = vld [vmem:[%s11393_s1 + $0xbac] ss:$16 sps:$4 sm:$0xff]   ;;  %v8021_v33 = vld [vmem:[%s11393_s1 + $0xba0] ss:$16 sps:$4 sm:$0xff]  }
 0x13c   :  { %5231 = vmatprep.subr.bf16.mxu0 %v7939_v26  ;;  %5764 = vmatprep.subr.bf16.mxu1 %v7942_v34  ;;  %v8024_v26 = vld [vmem:[%s11393_s1 + $0xba8] ss:$16 sps:$4 sm:$0xff]   ;;  %v8029_v34 = vld [vmem:[%s11393_s1 + $0xbc4] ss:$16 sps:$4 sm:$0xff]  }
 0x13f   :  { %5232 = vmatpush1.bf16.msra.mxu0 %v7937_v35  ;;  %5765 = vmatpush1.bf16.msra.mxu1 %v7940_v37  ;;  %v8032_v35 = vld [vmem:[%s11393_s1 + $0xbcc] ss:$16 sps:$4 sm:$0xff]  }
 0x140   :  { %5242 = vmatprep.subr.bf16.mxu0 %v7945_v28  ;;  %5775 = vmatprep.subr.bf16.mxu1 %v7948_v39  ;;  %v8701_v37 = vld [vmem:[%s11394_s0 + $0x8] sm:$0xff]  ;;  %v8027_v39 = vld [vmem:[%s11393_s1 + $0xbc0] ss:$16 sps:$4 sm:$0xff]  }
 0x141   :  { %v900_v28 = vcombine.high %v8701_v37, %v8701_v37  ;;  %v8116_v37 = vld [vmem:[%s11393_s1 + $0xd8c] ss:$16 sps:$4 sm:$0xff]  }
 0x142   :  { %5234 = vmatmul.mubr.bf16.vlgmr.msra.gmra.mrb[0].mxu0 %v9758_v40  ;;  %5767 = vmatmul.mubr.bf16.vlgmr.msra.gmra.mrb[0].mxu1 %v9758_v40 }
 0x143   :  { %5243 = vmatpush1.bf16.msra.mxu0 %v7943_v41  ;;  %5776 = vmatpush1.bf16.msra.mxu1 %v7946_v43  ;;  %v8030_v41 = vld [vmem:[%s11393_s1 + $0xbc8] ss:$16 sps:$4 sm:$0xff]   ;;  %v8035_v43 = vld [vmem:[%s11393_s1 + $0xbe4] ss:$16 sps:$4 sm:$0xff]  }
 0x144   :  { %5244 = vmatprep.subr.bf16.mxu0 %v7951_v44  ;;  %5777 = vmatprep.subr.bf16.mxu1 %v7954_v24  ;;  %v8038_v44 = vld [vmem:[%s11393_s1 + $0xbec] ss:$16 sps:$4 sm:$0xff]   ;;  %v9948_v24 = vrot.slane %v900_v28, %v8871_v49  ;;  %v8111_v28 = vld [vmem:[%s11393_s1 + $0xd80] ss:$16 sps:$4 sm:$0xff]  }
 0x145   :  { %5274 = vmatprep.mubr.bf16.mxu0 %v947_v45  ;;  %5807 = vmatprep.mubr.bf16.mxu1 %v947_v45  ;;  %v8033_v45 = vld [vmem:[%s11393_s1 + $0xbe0] ss:$16 sps:$4 sm:$0xff]  }
 0x147   :  { %5245 = vmatpush1.bf16.msra.mxu0 %v7949_v46  ;;  %5778 = vmatpush1.bf16.msra.mxu1 %v7952_v47  ;;  %v8036_v46 = vld [vmem:[%s11393_s1 + $0xbe8] ss:$16 sps:$4 sm:$0xff]   ;;  %v8041_v47 = vld [vmem:[%s11393_s1 + $0xc04] ss:$16 sps:$4 sm:$0xff]  }
 0x148   :  { %5246 = vmatprep.subr.bf16.mxu0 %v7957_v38  ;;  %5779 = vmatprep.subr.bf16.mxu1 %v7960_v48  ;;  %v8044_v38 = vld [vmem:[%s11393_s1 + $0xc0c] ss:$16 sps:$4 sm:$0xff]   ;;  %v916_v48 = vcombine.high %v9948_v24, %v9948_v24 }
 0x14b   :  { %5247 = vmatpush1.bf16.msra.mxu0 %v7955_v50  ;;  %5780 = vmatpush1.bf16.msra.mxu1 %v7958_v51  ;;  %v945_v50 = vcombine.high %v9758_v40, %v9758_v40  ;;  %v8039_v51 = vld [vmem:[%s11393_s1 + $0xc00] ss:$16 sps:$4 sm:$0xff]   ;;  %v8050_v40 = vld [vmem:[%s11393_s1 + $0xc2c] ss:$16 sps:$4 sm:$0xff]  }
 0x14c   :  { %5248 = vmatprep.subr.bf16.mxu0 %v7963_v53  ;;  %5781 = vmatprep.subr.bf16.mxu1 %v7966_v54  ;;  %v8042_v53 = vld [vmem:[%s11393_s1 + $0xc08] ss:$16 sps:$4 sm:$0xff]   ;;  %v8047_v54 = vld [vmem:[%s11393_s1 + $0xc24] ss:$16 sps:$4 sm:$0xff]  }
 0x14f   :  { %5249 = vmatpush1.bf16.msra.mxu0 %v7961_v55  ;;  %5782 = vmatpush1.bf16.msra.mxu1 %v7964_v56  ;;  %v9979_v55 = vrot.slane %v916_v48, %v8871_v49  ;;  %v8045_v56 = vld [vmem:[%s11393_s1 + $0xc20] ss:$16 sps:$4 sm:$0xff]   ;;  %v8126_v48 = vld [vmem:[%s11393_s1 + $0xdc8] ss:$16 sps:$4 sm:$0xff]  }
 0x150   :  { %5250 = vmatprep.subr.bf16.mxu0 %v7969_v57  ;;  %5783 = vmatprep.subr.bf16.mxu1 %v7972_v58  ;;  %v8048_v57 = vld [vmem:[%s11393_s1 + $0xc28] ss:$16 sps:$4 sm:$0xff]   ;;  %v8053_v58 = vld [vmem:[%s11393_s1 + $0xc44] ss:$16 sps:$4 sm:$0xff]  }
 0x153   :  { %5251 = vmatpush1.bf16.msra.mxu0 %v7967_v59  ;;  %5784 = vmatpush1.bf16.msra.mxu1 %v7970_v60  ;;  %v8056_v59 = vld [vmem:[%s11393_s1 + $0xc4c] ss:$16 sps:$4 sm:$0xff]   ;;  %v8051_v60 = vld [vmem:[%s11393_s1 + $0xc40] ss:$16 sps:$4 sm:$0xff]  }
 0x154   :  { %5252 = vmatprep.subr.bf16.mxu0 %v7975_v61  ;;  %5785 = vmatprep.subr.bf16.mxu1 %v7978_v62  ;;  %v8054_v61 = vld [vmem:[%s11393_s1 + $0xc48] ss:$16 sps:$4 sm:$0xff]   ;;  %v8059_v62 = vld [vmem:[%s11393_s1 + $0xc64] ss:$16 sps:$4 sm:$0xff]  }
 0x157   :  { %5253 = vmatpush1.bf16.msra.mxu0 %v7973_v63  ;;  %5786 = vmatpush1.bf16.msra.mxu1 %v7976_v0  ;;  %v8062_v63 = vld [vmem:[%s11393_s1 + $0xc6c] ss:$16 sps:$4 sm:$0xff]   ;;  %v8057_v0 = vld [vmem:[%s11393_s1 + $0xc60] ss:$16 sps:$4 sm:$0xff]  }
 0x158   :  { %5254 = vmatprep.subr.bf16.mxu0 %v7981_v1  ;;  %5787 = vmatprep.subr.bf16.mxu1 %v7984_v2  ;;  %v8060_v1 = vld [vmem:[%s11393_s1 + $0xc68] ss:$16 sps:$4 sm:$0xff]   ;;  %v8065_v2 = vld [vmem:[%s11393_s1 + $0xc84] ss:$16 sps:$4 sm:$0xff]  }
 0x15b   :  { %5255 = vmatpush1.bf16.msra.mxu0 %v7979_v3  ;;  %5788 = vmatpush1.bf16.msra.mxu1 %v7982_v4  ;;  %v8068_v3 = vld [vmem:[%s11393_s1 + $0xc8c] ss:$16 sps:$4 sm:$0xff]   ;;  %v8063_v4 = vld [vmem:[%s11393_s1 + $0xc80] ss:$16 sps:$4 sm:$0xff]  }
 0x15c   :  { %5256 = vmatprep.subr.bf16.mxu0 %v7987_v5  ;;  %5789 = vmatprep.subr.bf16.mxu1 %v7990_v6  ;;  %v8066_v5 = vld [vmem:[%s11393_s1 + $0xc88] ss:$16 sps:$4 sm:$0xff]   ;;  %v8071_v6 = vld [vmem:[%s11393_s1 + $0xca4] ss:$16 sps:$4 sm:$0xff]  }
 0x15f   :  { %5257 = vmatpush1.bf16.msra.mxu0 %v7985_v7  ;;  %5790 = vmatpush1.bf16.msra.mxu1 %v7988_v8  ;;  %v8074_v7 = vld [vmem:[%s11393_s1 + $0xcac] ss:$16 sps:$4 sm:$0xff]   ;;  %v8069_v8 = vld [vmem:[%s11393_s1 + $0xca0] ss:$16 sps:$4 sm:$0xff]  }
 0x160   :  { %5258 = vmatprep.subr.bf16.mxu0 %v7993_v9  ;;  %5791 = vmatprep.subr.bf16.mxu1 %v7996_v10  ;;  %v8072_v9 = vld [vmem:[%s11393_s1 + $0xca8] ss:$16 sps:$4 sm:$0xff]   ;;  %v8077_v10 = vld [vmem:[%s11393_s1 + $0xcc4] ss:$16 sps:$4 sm:$0xff]  }
 0x163   :  { %5259 = vmatpush1.bf16.msra.mxu0 %v7991_v11  ;;  %5792 = vmatpush1.bf16.msra.mxu1 %v7994_v12  ;;  %v8080_v11 = vld [vmem:[%s11393_s1 + $0xccc] ss:$16 sps:$4 sm:$0xff]   ;;  %v8075_v12 = vld [vmem:[%s11393_s1 + $0xcc0] ss:$16 sps:$4 sm:$0xff]  }
 0x164   :  { %5260 = vmatprep.subr.bf16.mxu0 %v7999_v14  ;;  %5793 = vmatprep.subr.bf16.mxu1 %v8002_v52  ;;  %v8078_v14 = vld [vmem:[%s11393_s1 + $0xcc8] ss:$16 sps:$4 sm:$0xff]   ;;  %v8083_v52 = vld [vmem:[%s11393_s1 + $0xce4] ss:$16 sps:$4 sm:$0xff]  }
 0x167   :  { %5261 = vmatpush1.bf16.msra.mxu0 %v7997_v16  ;;  %5794 = vmatpush1.bf16.msra.mxu1 %v8000_v17  ;;  %v8086_v16 = vld [vmem:[%s11393_s1 + $0xcec] ss:$16 sps:$4 sm:$0xff]   ;;  %v8081_v17 = vld [vmem:[%s11393_s1 + $0xce0] ss:$16 sps:$4 sm:$0xff]  }
 0x168   :  { %5262 = vmatprep.subr.bf16.mxu0 %v8005_v18  ;;  %5795 = vmatprep.subr.bf16.mxu1 %v8008_v19  ;;  %v8084_v18 = vld [vmem:[%s11393_s1 + $0xce8] ss:$16 sps:$4 sm:$0xff]   ;;  %v8089_v19 = vld [vmem:[%s11393_s1 + $0xd04] ss:$16 sps:$4 sm:$0xff]  }
 0x16b   :  { %5263 = vmatpush1.bf16.msra.mxu0 %v8003_v20  ;;  %5796 = vmatpush1.bf16.msra.mxu1 %v8006_v21  ;;  %v8092_v20 = vld [vmem:[%s11393_s1 + $0xd0c] ss:$16 sps:$4 sm:$0xff]   ;;  %v8087_v21 = vld [vmem:[%s11393_s1 + $0xd00] ss:$16 sps:$4 sm:$0xff]  }
 0x16c   :  { %5264 = vmatprep.subr.bf16.mxu0 %v8011_v22  ;;  %5797 = vmatprep.subr.bf16.mxu1 %v8014_v23  ;;  %v8090_v22 = vld [vmem:[%s11393_s1 + $0xd08] ss:$16 sps:$4 sm:$0xff]   ;;  %v8095_v23 = vld [vmem:[%s11393_s1 + $0xd24] ss:$16 sps:$4 sm:$0xff]  }
 0x16f   :  { %5265 = vmatpush1.bf16.msra.mxu0 %v8009_v25  ;;  %5798 = vmatpush1.bf16.msra.mxu1 %v8012_v13  ;;  %v8098_v25 = vld [vmem:[%s11393_s1 + $0xd2c] ss:$16 sps:$4 sm:$0xff]   ;;  %v8093_v13 = vld [vmem:[%s11393_s1 + $0xd20] ss:$16 sps:$4 sm:$0xff]  }
 0x170   :  { %5266 = vmatprep.subr.bf16.mxu0 %v8017_v27  ;;  %5799 = vmatprep.subr.bf16.mxu1 %v8020_v29  ;;  %v8096_v27 = vld [vmem:[%s11393_s1 + $0xd28] ss:$16 sps:$4 sm:$0xff]   ;;  %v8101_v29 = vld [vmem:[%s11393_s1 + $0xd44] ss:$16 sps:$4 sm:$0xff]  }
 0x173   :  { %5267 = vmatpush1.bf16.msra.mxu0 %v8015_v30  ;;  %5800 = vmatpush1.bf16.msra.mxu1 %v8018_v31  ;;  %v8104_v30 = vld [vmem:[%s11393_s1 + $0xd4c] ss:$16 sps:$4 sm:$0xff]   ;;  %v8099_v31 = vld [vmem:[%s11393_s1 + $0xd40] ss:$16 sps:$4 sm:$0xff]  }
 0x174   :  { %5268 = vmatprep.subr.bf16.mxu0 %v8023_v15  ;;  %5801 = vmatprep.subr.bf16.mxu1 %v8026_v32  ;;  %v8102_v15 = vld [vmem:[%s11393_s1 + $0xd48] ss:$16 sps:$4 sm:$0xff]   ;;  %v8107_v32 = vld [vmem:[%s11393_s1 + $0xd64] ss:$16 sps:$4 sm:$0xff]  }
 0x177   :  { %5269 = vmatpush1.bf16.msra.mxu0 %v8021_v33  ;;  %5802 = vmatpush1.bf16.msra.mxu1 %v8024_v26  ;;  %v8110_v33 = vld [vmem:[%s11393_s1 + $0xd6c] ss:$16 sps:$4 sm:$0xff]   ;;  %v8105_v26 = vld [vmem:[%s11393_s1 + $0xd60] ss:$16 sps:$4 sm:$0xff]  }
 0x178   :  { %5270 = vmatprep.subr.bf16.mxu0 %v8029_v34  ;;  %5803 = vmatprep.subr.bf16.mxu1 %v8032_v35  ;;  %v8108_v34 = vld [vmem:[%s11393_s1 + $0xd68] ss:$16 sps:$4 sm:$0xff]   ;;  %v8113_v35 = vld [vmem:[%s11393_s1 + $0xd84] ss:$16 sps:$4 sm:$0xff]  }
 0x17b   :  { %5271 = vmatpush1.bf16.msra.mxu0 %v8027_v39  ;;  %5804 = vmatpush1.bf16.msra.mxu1 %v8030_v41  ;;  %v8114_v39 = vld [vmem:[%s11393_s1 + $0xd88] ss:$16 sps:$4 sm:$0xff]   ;;  %v8119_v41 = vld [vmem:[%s11393_s1 + $0xda4] ss:$16 sps:$4 sm:$0xff]  }
 0x17c   :  { %5272 = vmatprep.subr.bf16.mxu0 %v8035_v43  ;;  %5805 = vmatprep.subr.bf16.mxu1 %v8038_v44  ;;  %v8122_v43 = vld [vmem:[%s11393_s1 + $0xdac] ss:$16 sps:$4 sm:$0xff]   ;;  %v8117_v44 = vld [vmem:[%s11393_s1 + $0xda0] ss:$16 sps:$4 sm:$0xff]  }
 0x17f   :  { %5273 = vmatpush1.bf16.msra.mxu0 %v8033_v45  ;;  %5806 = vmatpush1.bf16.msra.mxu1 %v8036_v46  ;;  %v8120_v45 = vld [vmem:[%s11393_s1 + $0xda8] ss:$16 sps:$4 sm:$0xff]   ;;  %v8125_v46 = vld [vmem:[%s11393_s1 + $0xdc4] ss:$16 sps:$4 sm:$0xff]  }
 0x180   :  { %5283 = vmatprep.subr.bf16.mxu0 %v8041_v47  ;;  %5816 = vmatprep.subr.bf16.mxu1 %v8044_v38  ;;  %v8128_v47 = vld [vmem:[%s11393_s1 + $0xdcc] ss:$16 sps:$4 sm:$0xff]   ;;  %v8123_v38 = vld [vmem:[%s11393_s1 + $0xdc0] ss:$16 sps:$4 sm:$0xff]  }
 0x182   :  { %5275 = vmatmul.mubr.bf16.vlgmr.msra.gmra.mrb[0].mxu0 %v945_v50  ;;  %5808 = vmatmul.mubr.bf16.vlgmr.msra.gmra.mrb[0].mxu1 %v945_v50  ;;  %v8131_v50 = vld [vmem:[%s11393_s1 + $0xde4] ss:$16 sps:$4 sm:$0xff]  }
 0x183   :  { %5284 = vmatpush1.bf16.msra.mxu0 %v8039_v51  ;;  %5817 = vmatpush1.bf16.msra.mxu1 %v8042_v53  ;;  %v8134_v51 = vld [vmem:[%s11393_s1 + $0xdec] ss:$16 sps:$4 sm:$0xff]   ;;  %v8129_v53 = vld [vmem:[%s11393_s1 + $0xde0] ss:$16 sps:$4 sm:$0xff]  }
 0x184   :  { %5285 = vmatprep.subr.bf16.mxu0 %v8047_v54  ;;  %5818 = vmatprep.subr.bf16.mxu1 %v8050_v40  ;;  %v8132_v54 = vld [vmem:[%s11393_s1 + $0xde8] ss:$16 sps:$4 sm:$0xff]   ;;  %v8138_v40 = vld [vmem:[%s11393_s1 + $0xe04] ss:$16 sps:$4 sm:$0xff]  }
 0x185   :  { %5315 = vmatprep.mubr.bf16.mxu0 %v9979_v55  ;;  %5848 = vmatprep.mubr.bf16.mxu1 %v9979_v55 }
 0x187   :  { %5286 = vmatpush1.bf16.msra.mxu0 %v8045_v56  ;;  %5819 = vmatpush1.bf16.msra.mxu1 %v8048_v57  ;;  %v8141_v56 = vld [vmem:[%s11393_s1 + $0xe0c] ss:$16 sps:$4 sm:$0xff]   ;;  %v10165_v57 = vrot.slane %v9948_v24, %v8871_v49 }
 0x188   :  { %5287 = vmatprep.subr.bf16.mxu0 %v8053_v58  ;;  %5820 = vmatprep.subr.bf16.mxu1 %v8056_v59  ;;  %v8136_v58 = vld [vmem:[%s11393_s1 + $0xe00] ss:$16 sps:$4 sm:$0xff]   ;;  %v8139_v59 = vld [vmem:[%s11393_s1 + $0xe08] ss:$16 sps:$4 sm:$0xff]   ;;  %v8147_v24 = vld [vmem:[%s11393_s1 + $0xe2c] ss:$16 sps:$4 sm:$0xff]  }
 0x18b   :  { %5288 = vmatpush1.bf16.msra.mxu0 %v8051_v60  ;;  %5821 = vmatpush1.bf16.msra.mxu1 %v8054_v61  ;;  %v8144_v60 = vld [vmem:[%s11393_s1 + $0xe24] ss:$16 sps:$4 sm:$0xff]   ;;  %v948_v61 = vcombine.high %v9979_v55, %v9979_v55 }
 0x18c   :  { %5289 = vmatprep.subr.bf16.mxu0 %v8059_v62  ;;  %5822 = vmatprep.subr.bf16.mxu1 %v8062_v63  ;;  %v8142_v62 = vld [vmem:[%s11393_s1 + $0xe20] ss:$16 sps:$4 sm:$0xff]   ;;  %v8145_v63 = vld [vmem:[%s11393_s1 + $0xe28] ss:$16 sps:$4 sm:$0xff]   ;;  %v8150_v55 = vld [vmem:[%s11393_s1 + $0xe44] ss:$16 sps:$4 sm:$0xff]  }
 0x18f   :  { %5290 = vmatpush1.bf16.msra.mxu0 %v8057_v0  ;;  %5823 = vmatpush1.bf16.msra.mxu1 %v8060_v1  ;;  %v8153_v0 = vld [vmem:[%s11393_s1 + $0xe4c] ss:$16 sps:$4 sm:$0xff]   ;;  %v8148_v1 = vld [vmem:[%s11393_s1 + $0xe40] ss:$16 sps:$4 sm:$0xff]  }
 0x190   :  { %5291 = vmatprep.subr.bf16.mxu0 %v8065_v2  ;;  %5824 = vmatprep.subr.bf16.mxu1 %v8068_v3  ;;  %v8151_v2 = vld [vmem:[%s11393_s1 + $0xe48] ss:$16 sps:$4 sm:$0xff]   ;;  %v8156_v3 = vld [vmem:[%s11393_s1 + $0xe64] ss:$16 sps:$4 sm:$0xff]  }
 0x193   :  { %5292 = vmatpush1.bf16.msra.mxu0 %v8063_v4  ;;  %5825 = vmatpush1.bf16.msra.mxu1 %v8066_v5  ;;  %v8159_v4 = vld [vmem:[%s11393_s1 + $0xe6c] ss:$16 sps:$4 sm:$0xff]   ;;  %v8154_v5 = vld [vmem:[%s11393_s1 + $0xe60] ss:$16 sps:$4 sm:$0xff]  }
 0x194   :  { %5293 = vmatprep.subr.bf16.mxu0 %v8071_v6  ;;  %5826 = vmatprep.subr.bf16.mxu1 %v8074_v7  ;;  %v8157_v6 = vld [vmem:[%s11393_s1 + $0xe68] ss:$16 sps:$4 sm:$0xff]   ;;  %v8162_v7 = vld [vmem:[%s11393_s1 + $0xe84] ss:$16 sps:$4 sm:$0xff]  }
 0x197   :  { %5294 = vmatpush1.bf16.msra.mxu0 %v8069_v8  ;;  %5827 = vmatpush1.bf16.msra.mxu1 %v8072_v9  ;;  %v8165_v8 = vld [vmem:[%s11393_s1 + $0xe8c] ss:$16 sps:$4 sm:$0xff]   ;;  %v8160_v9 = vld [vmem:[%s11393_s1 + $0xe80] ss:$16 sps:$4 sm:$0xff]  }
 0x198   :  { %5295 = vmatprep.subr.bf16.mxu0 %v8077_v10  ;;  %5828 = vmatprep.subr.bf16.mxu1 %v8080_v11  ;;  %v8163_v10 = vld [vmem:[%s11393_s1 + $0xe88] ss:$16 sps:$4 sm:$0xff]   ;;  %v8168_v11 = vld [vmem:[%s11393_s1 + $0xea4] ss:$16 sps:$4 sm:$0xff]  }
 0x19b   :  { %5296 = vmatpush1.bf16.msra.mxu0 %v8075_v12  ;;  %5829 = vmatpush1.bf16.msra.mxu1 %v8078_v14  ;;  %v8171_v12 = vld [vmem:[%s11393_s1 + $0xeac] ss:$16 sps:$4 sm:$0xff]   ;;  %v8166_v14 = vld [vmem:[%s11393_s1 + $0xea0] ss:$16 sps:$4 sm:$0xff]  }
 0x19c   :  { %5297 = vmatprep.subr.bf16.mxu0 %v8083_v52  ;;  %5830 = vmatprep.subr.bf16.mxu1 %v8086_v16  ;;  %v8169_v52 = vld [vmem:[%s11393_s1 + $0xea8] ss:$16 sps:$4 sm:$0xff]   ;;  %v8174_v16 = vld [vmem:[%s11393_s1 + $0xec4] ss:$16 sps:$4 sm:$0xff]  }
 0x19f   :  { %5298 = vmatpush1.bf16.msra.mxu0 %v8081_v17  ;;  %5831 = vmatpush1.bf16.msra.mxu1 %v8084_v18  ;;  %v8177_v17 = vld [vmem:[%s11393_s1 + $0xecc] ss:$16 sps:$4 sm:$0xff]   ;;  %v8172_v18 = vld [vmem:[%s11393_s1 + $0xec0] ss:$16 sps:$4 sm:$0xff]  }
 0x1a0   :  { %5299 = vmatprep.subr.bf16.mxu0 %v8089_v19  ;;  %5832 = vmatprep.subr.bf16.mxu1 %v8092_v20  ;;  %v8175_v19 = vld [vmem:[%s11393_s1 + $0xec8] ss:$16 sps:$4 sm:$0xff]   ;;  %v8180_v20 = vld [vmem:[%s11393_s1 + $0xee4] ss:$16 sps:$4 sm:$0xff]  }
 0x1a3   :  { %5300 = vmatpush1.bf16.msra.mxu0 %v8087_v21  ;;  %5833 = vmatpush1.bf16.msra.mxu1 %v8090_v22  ;;  %v8183_v21 = vld [vmem:[%s11393_s1 + $0xeec] ss:$16 sps:$4 sm:$0xff]   ;;  %v8178_v22 = vld [vmem:[%s11393_s1 + $0xee0] ss:$16 sps:$4 sm:$0xff]  }
 0x1a4   :  { %5301 = vmatprep.subr.bf16.mxu0 %v8095_v23  ;;  %5834 = vmatprep.subr.bf16.mxu1 %v8098_v25  ;;  %v8181_v23 = vld [vmem:[%s11393_s1 + $0xee8] ss:$16 sps:$4 sm:$0xff]   ;;  %v8186_v25 = vld [vmem:[%s11393_s1 + $0xf04] ss:$16 sps:$4 sm:$0xff]  }
 0x1a7   :  { %5302 = vmatpush1.bf16.msra.mxu0 %v8093_v13  ;;  %5835 = vmatpush1.bf16.msra.mxu1 %v8096_v27  ;;  %v8189_v13 = vld [vmem:[%s11393_s1 + $0xf0c] ss:$16 sps:$4 sm:$0xff]   ;;  %v8184_v27 = vld [vmem:[%s11393_s1 + $0xf00] ss:$16 sps:$4 sm:$0xff]  }
 0x1a8   :  { %5303 = vmatprep.subr.bf16.mxu0 %v8101_v29  ;;  %5836 = vmatprep.subr.bf16.mxu1 %v8104_v30  ;;  %v8187_v29 = vld [vmem:[%s11393_s1 + $0xf08] ss:$16 sps:$4 sm:$0xff]   ;;  %v8192_v30 = vld [vmem:[%s11393_s1 + $0xf24] ss:$16 sps:$4 sm:$0xff]  }
 0x1ab   :  { %5304 = vmatpush1.bf16.msra.mxu0 %v8099_v31  ;;  %5837 = vmatpush1.bf16.msra.mxu1 %v8102_v15  ;;  %v8195_v31 = vld [vmem:[%s11393_s1 + $0xf2c] ss:$16 sps:$4 sm:$0xff]   ;;  %v8190_v15 = vld [vmem:[%s11393_s1 + $0xf20] ss:$16 sps:$4 sm:$0xff]  }
 0x1ac   :  { %5305 = vmatprep.subr.bf16.mxu0 %v8107_v32  ;;  %5838 = vmatprep.subr.bf16.mxu1 %v8110_v33  ;;  %v8193_v32 = vld [vmem:[%s11393_s1 + $0xf28] ss:$16 sps:$4 sm:$0xff]   ;;  %v8198_v33 = vld [vmem:[%s11393_s1 + $0xf44] ss:$16 sps:$4 sm:$0xff]  }
 0x1af   :  { %5306 = vmatpush1.bf16.msra.mxu0 %v8105_v26  ;;  %5839 = vmatpush1.bf16.msra.mxu1 %v8108_v34  ;;  %v8201_v26 = vld [vmem:[%s11393_s1 + $0xf4c] ss:$16 sps:$4 sm:$0xff]   ;;  %v8196_v34 = vld [vmem:[%s11393_s1 + $0xf40] ss:$16 sps:$4 sm:$0xff]  }
 0x1b0   :  { %5307 = vmatprep.subr.bf16.mxu0 %v8113_v35  ;;  %5840 = vmatprep.subr.bf16.mxu1 %v8116_v37  ;;  %v8199_v35 = vld [vmem:[%s11393_s1 + $0xf48] ss:$16 sps:$4 sm:$0xff]   ;;  %v8204_v37 = vld [vmem:[%s11393_s1 + $0xf64] ss:$16 sps:$4 sm:$0xff]  }
 0x1b3   :  { %5308 = vmatpush1.bf16.msra.mxu0 %v8111_v28  ;;  %5841 = vmatpush1.bf16.msra.mxu1 %v8114_v39  ;;  %v8207_v28 = vld [vmem:[%s11393_s1 + $0xf6c] ss:$16 sps:$4 sm:$0xff]   ;;  %v8202_v39 = vld [vmem:[%s11393_s1 + $0xf60] ss:$16 sps:$4 sm:$0xff]  }
 0x1b4   :  { %5309 = vmatprep.subr.bf16.mxu0 %v8119_v41  ;;  %5842 = vmatprep.subr.bf16.mxu1 %v8122_v43  ;;  %v8205_v41 = vld [vmem:[%s11393_s1 + $0xf68] ss:$16 sps:$4 sm:$0xff]   ;;  %v8210_v43 = vld [vmem:[%s11393_s1 + $0xf84] ss:$16 sps:$4 sm:$0xff]  }
 0x1b7   :  { %5310 = vmatpush1.bf16.msra.mxu0 %v8117_v44  ;;  %5843 = vmatpush1.bf16.msra.mxu1 %v8120_v45  ;;  %v8213_v44 = vld [vmem:[%s11393_s1 + $0xf8c] ss:$16 sps:$4 sm:$0xff]   ;;  %v8208_v45 = vld [vmem:[%s11393_s1 + $0xf80] ss:$16 sps:$4 sm:$0xff]  }
 0x1b8   :  { %5311 = vmatprep.subr.bf16.mxu0 %v8125_v46  ;;  %5844 = vmatprep.subr.bf16.mxu1 %v8128_v47  ;;  %v8211_v46 = vld [vmem:[%s11393_s1 + $0xf88] ss:$16 sps:$4 sm:$0xff]   ;;  %v8216_v47 = vld [vmem:[%s11393_s1 + $0xfa4] ss:$16 sps:$4 sm:$0xff]  }
 0x1bb   :  { %5312 = vmatpush1.bf16.msra.mxu0 %v8123_v38  ;;  %5845 = vmatpush1.bf16.msra.mxu1 %v8126_v48  ;;  %v8219_v38 = vld [vmem:[%s11393_s1 + $0xfac] ss:$16 sps:$4 sm:$0xff]   ;;  %v8214_v48 = vld [vmem:[%s11393_s1 + $0xfa0] ss:$16 sps:$4 sm:$0xff]  }
 0x1bc   :  { %5313 = vmatprep.subr.bf16.mxu0 %v8131_v50  ;;  %5846 = vmatprep.subr.bf16.mxu1 %v8134_v51  ;;  %v8217_v50 = vld [vmem:[%s11393_s1 + $0xfa8] ss:$16 sps:$4 sm:$0xff]   ;;  %v8222_v51 = vld [vmem:[%s11393_s1 + $0xfc4] ss:$16 sps:$4 sm:$0xff]  }
 0x1bf   :  { %5314 = vmatpush1.bf16.msra.mxu0 %v8129_v53  ;;  %5847 = vmatpush1.bf16.msra.mxu1 %v8132_v54  ;;  %v8225_v53 = vld [vmem:[%s11393_s1 + $0xfcc] ss:$16 sps:$4 sm:$0xff]   ;;  %v10342_v54 = vld [vmem:[%s11394_s0 + $0x10] sm:$0xff] }
 0x1c0   :  { %5324 = vmatprep.subr.bf16.mxu0 %v8138_v40  ;;  %5857 = vmatprep.subr.bf16.mxu1 %v8141_v56  ;;  %v8220_v40 = vld [vmem:[%s11393_s1 + $0xfc0] ss:$16 sps:$4 sm:$0xff]   ;;  %v8223_v56 = vld [vmem:[%s11393_s1 + $0xfc8] ss:$16 sps:$4 sm:$0xff]  }
 0x1c2   :  { %5316 = vmatmul.mubr.bf16.vlgmr.msra.gmra.mrb[0].mxu0 %v10165_v57  ;;  %5849 = vmatmul.mubr.bf16.vlgmr.msra.gmra.mrb[0].mxu1 %v10165_v57 }
 0x1c3   :  { %5325 = vmatpush1.bf16.msra.mxu0 %v8136_v58  ;;  %5858 = vmatpush1.bf16.msra.mxu1 %v8139_v59  ;;  %v8228_v58 = vld [vmem:[%s11393_s1 + $0xfe4] ss:$16 sps:$4 sm:$0xff]   ;;  %v8231_v59 = vld [vmem:[%s11393_s1 + $0xfec] ss:$16 sps:$4 sm:$0xff]  }
 0x1c4   :  { %5326 = vmatprep.subr.bf16.mxu0 %v8144_v60  ;;  %5859 = vmatprep.subr.bf16.mxu1 %v8147_v24  ;;  %v10358_v60 = vrot.slane %v10342_v54, %v8871_v49  ;;  %v8226_v24 = vld [vmem:[%s11393_s1 + $0xfe0] ss:$16 sps:$4 sm:$0xff]  }
 0x1c5   :  { %5356 = vmatprep.mubr.bf16.mxu0 %v948_v61  ;;  %5889 = vmatprep.mubr.bf16.mxu1 %v948_v61  ;;  %v8229_v61 = vld [vmem:[%s11393_s1 + $0xfe8] ss:$16 sps:$4 sm:$0xff]  }
 0x1c7   :  { %5327 = vmatpush1.bf16.msra.mxu0 %v8142_v62  ;;  %5860 = vmatpush1.bf16.msra.mxu1 %v8145_v63  ;;  %v8234_v62 = vld [vmem:[%s11393_s1 + $0x1004] ss:$16 sps:$4 sm:$0xff]   ;;  %v8237_v63 = vld [vmem:[%s11393_s1 + $0x100c] ss:$16 sps:$4 sm:$0xff]  }
 0x1c8   :  { %5328 = vmatprep.subr.bf16.mxu0 %v8150_v55  ;;  %5861 = vmatprep.subr.bf16.mxu1 %v8153_v0  ;;  %v964_v55 = vcombine.high %v10358_v60, %v10358_v60  ;;  %v946_v0 = vcombine.high %v10165_v57, %v10165_v57  ;;  %v8243_v57 = vld [vmem:[%s11393_s1 + $0x102c] ss:$16 sps:$4 sm:$0xff]  }
 0x1cb   :  { %5329 = vmatpush1.bf16.msra.mxu0 %v8148_v1  ;;  %5862 = vmatpush1.bf16.msra.mxu1 %v8151_v2  ;;  %v8232_v1 = vld [vmem:[%s11393_s1 + $0x1000] ss:$16 sps:$4 sm:$0xff]   ;;  %v8235_v2 = vld [vmem:[%s11393_s1 + $0x1008] ss:$16 sps:$4 sm:$0xff]  }
 0x1cc   :  { %5330 = vmatprep.subr.bf16.mxu0 %v8156_v3  ;;  %5863 = vmatprep.subr.bf16.mxu1 %v8159_v4  ;;  %v8240_v3 = vld [vmem:[%s11393_s1 + $0x1024] ss:$16 sps:$4 sm:$0xff]   ;;  %v10389_v4 = vrot.slane %v964_v55, %v8871_v49  ;;  %v8316_v55 = vld [vmem:[%s11393_s1 + $0x11c0] ss:$16 sps:$4 sm:$0xff]  }
 0x1cf   :  { %5331 = vmatpush1.bf16.msra.mxu0 %v8154_v5  ;;  %5864 = vmatpush1.bf16.msra.mxu1 %v8157_v6  ;;  %v8238_v5 = vld [vmem:[%s11393_s1 + $0x1020] ss:$16 sps:$4 sm:$0xff]   ;;  %v8241_v6 = vld [vmem:[%s11393_s1 + $0x1028] ss:$16 sps:$4 sm:$0xff]  }
 0x1d0   :  { %5332 = vmatprep.subr.bf16.mxu0 %v8162_v7  ;;  %5865 = vmatprep.subr.bf16.mxu1 %v8165_v8  ;;  %v8246_v7 = vld [vmem:[%s11393_s1 + $0x1044] ss:$16 sps:$4 sm:$0xff]   ;;  %v8249_v8 = vld [vmem:[%s11393_s1 + $0x104c] ss:$16 sps:$4 sm:$0xff]  }
 0x1d3   :  { %5333 = vmatpush1.bf16.msra.mxu0 %v8160_v9  ;;  %5866 = vmatpush1.bf16.msra.mxu1 %v8163_v10  ;;  %v8244_v9 = vld [vmem:[%s11393_s1 + $0x1040] ss:$16 sps:$4 sm:$0xff]   ;;  %v8247_v10 = vld [vmem:[%s11393_s1 + $0x1048] ss:$16 sps:$4 sm:$0xff]  }
 0x1d4   :  { %5334 = vmatprep.subr.bf16.mxu0 %v8168_v11  ;;  %5867 = vmatprep.subr.bf16.mxu1 %v8171_v12  ;;  %v8252_v11 = vld [vmem:[%s11393_s1 + $0x1064] ss:$16 sps:$4 sm:$0xff]   ;;  %v8255_v12 = vld [vmem:[%s11393_s1 + $0x106c] ss:$16 sps:$4 sm:$0xff]  }
 0x1d7   :  { %5335 = vmatpush1.bf16.msra.mxu0 %v8166_v14  ;;  %5868 = vmatpush1.bf16.msra.mxu1 %v8169_v52  ;;  %v8250_v14 = vld [vmem:[%s11393_s1 + $0x1060] ss:$16 sps:$4 sm:$0xff]   ;;  %v8253_v52 = vld [vmem:[%s11393_s1 + $0x1068] ss:$16 sps:$4 sm:$0xff]  }
 0x1d8   :  { %5336 = vmatprep.subr.bf16.mxu0 %v8174_v16  ;;  %5869 = vmatprep.subr.bf16.mxu1 %v8177_v17  ;;  %v8258_v16 = vld [vmem:[%s11393_s1 + $0x1084] ss:$16 sps:$4 sm:$0xff]   ;;  %v8261_v17 = vld [vmem:[%s11393_s1 + $0x108c] ss:$16 sps:$4 sm:$0xff]  }
 0x1db   :  { %5337 = vmatpush1.bf16.msra.mxu0 %v8172_v18  ;;  %5870 = vmatpush1.bf16.msra.mxu1 %v8175_v19  ;;  %v8256_v18 = vld [vmem:[%s11393_s1 + $0x1080] ss:$16 sps:$4 sm:$0xff]   ;;  %v8259_v19 = vld [vmem:[%s11393_s1 + $0x1088] ss:$16 sps:$4 sm:$0xff]  }
 0x1dc   :  { %5338 = vmatprep.subr.bf16.mxu0 %v8180_v20  ;;  %5871 = vmatprep.subr.bf16.mxu1 %v8183_v21  ;;  %v8264_v20 = vld [vmem:[%s11393_s1 + $0x10a4] ss:$16 sps:$4 sm:$0xff]   ;;  %v8267_v21 = vld [vmem:[%s11393_s1 + $0x10ac] ss:$16 sps:$4 sm:$0xff]  }
 0x1df   :  { %5339 = vmatpush1.bf16.msra.mxu0 %v8178_v22  ;;  %5872 = vmatpush1.bf16.msra.mxu1 %v8181_v23  ;;  %v8262_v22 = vld [vmem:[%s11393_s1 + $0x10a0] ss:$16 sps:$4 sm:$0xff]   ;;  %v8265_v23 = vld [vmem:[%s11393_s1 + $0x10a8] ss:$16 sps:$4 sm:$0xff]  }
 0x1e0   :  { %5340 = vmatprep.subr.bf16.mxu0 %v8186_v25  ;;  %5873 = vmatprep.subr.bf16.mxu1 %v8189_v13  ;;  %v8270_v25 = vld [vmem:[%s11393_s1 + $0x10c4] ss:$16 sps:$4 sm:$0xff]   ;;  %v8273_v13 = vld [vmem:[%s11393_s1 + $0x10cc] ss:$16 sps:$4 sm:$0xff]  }
 0x1e3   :  { %5341 = vmatpush1.bf16.msra.mxu0 %v8184_v27  ;;  %5874 = vmatpush1.bf16.msra.mxu1 %v8187_v29  ;;  %v8268_v27 = vld [vmem:[%s11393_s1 + $0x10c0] ss:$16 sps:$4 sm:$0xff]   ;;  %v8271_v29 = vld [vmem:[%s11393_s1 + $0x10c8] ss:$16 sps:$4 sm:$0xff]  }
 0x1e4   :  { %5342 = vmatprep.subr.bf16.mxu0 %v8192_v30  ;;  %5875 = vmatprep.subr.bf16.mxu1 %v8195_v31  ;;  %v8276_v30 = vld [vmem:[%s11393_s1 + $0x10e4] ss:$16 sps:$4 sm:$0xff]   ;;  %v8279_v31 = vld [vmem:[%s11393_s1 + $0x10ec] ss:$16 sps:$4 sm:$0xff]  }
 0x1e7   :  { %5343 = vmatpush1.bf16.msra.mxu0 %v8190_v15  ;;  %5876 = vmatpush1.bf16.msra.mxu1 %v8193_v32  ;;  %v8274_v15 = vld [vmem:[%s11393_s1 + $0x10e0] ss:$16 sps:$4 sm:$0xff]   ;;  %v8277_v32 = vld [vmem:[%s11393_s1 + $0x10e8] ss:$16 sps:$4 sm:$0xff]  }
 0x1e8   :  { %5344 = vmatprep.subr.bf16.mxu0 %v8198_v33  ;;  %5877 = vmatprep.subr.bf16.mxu1 %v8201_v26  ;;  %v8282_v33 = vld [vmem:[%s11393_s1 + $0x1104] ss:$16 sps:$4 sm:$0xff]   ;;  %v8285_v26 = vld [vmem:[%s11393_s1 + $0x110c] ss:$16 sps:$4 sm:$0xff]  }
 0x1eb   :  { %5345 = vmatpush1.bf16.msra.mxu0 %v8196_v34  ;;  %5878 = vmatpush1.bf16.msra.mxu1 %v8199_v35  ;;  %v8280_v34 = vld [vmem:[%s11393_s1 + $0x1100] ss:$16 sps:$4 sm:$0xff]   ;;  %v8283_v35 = vld [vmem:[%s11393_s1 + $0x1108] ss:$16 sps:$4 sm:$0xff]  }
 0x1ec   :  { %5346 = vmatprep.subr.bf16.mxu0 %v8204_v37  ;;  %5879 = vmatprep.subr.bf16.mxu1 %v8207_v28  ;;  %v8288_v37 = vld [vmem:[%s11393_s1 + $0x1124] ss:$16 sps:$4 sm:$0xff]   ;;  %v8291_v28 = vld [vmem:[%s11393_s1 + $0x112c] ss:$16 sps:$4 sm:$0xff]  }
 0x1ef   :  { %5347 = vmatpush1.bf16.msra.mxu0 %v8202_v39  ;;  %5880 = vmatpush1.bf16.msra.mxu1 %v8205_v41  ;;  %v8286_v39 = vld [vmem:[%s11393_s1 + $0x1120] ss:$16 sps:$4 sm:$0xff]   ;;  %v8289_v41 = vld [vmem:[%s11393_s1 + $0x1128] ss:$16 sps:$4 sm:$0xff]  }
 0x1f0   :  { %5348 = vmatprep.subr.bf16.mxu0 %v8210_v43  ;;  %5881 = vmatprep.subr.bf16.mxu1 %v8213_v44  ;;  %v8294_v43 = vld [vmem:[%s11393_s1 + $0x1144] ss:$16 sps:$4 sm:$0xff]   ;;  %v8297_v44 = vld [vmem:[%s11393_s1 + $0x114c] ss:$16 sps:$4 sm:$0xff]  }
 0x1f3   :  { %5349 = vmatpush1.bf16.msra.mxu0 %v8208_v45  ;;  %5882 = vmatpush1.bf16.msra.mxu1 %v8211_v46  ;;  %v8292_v45 = vld [vmem:[%s11393_s1 + $0x1140] ss:$16 sps:$4 sm:$0xff]   ;;  %v8295_v46 = vld [vmem:[%s11393_s1 + $0x1148] ss:$16 sps:$4 sm:$0xff]  }
 0x1f4   :  { %5350 = vmatprep.subr.bf16.mxu0 %v8216_v47  ;;  %5883 = vmatprep.subr.bf16.mxu1 %v8219_v38  ;;  %v8300_v47 = vld [vmem:[%s11393_s1 + $0x1164] ss:$16 sps:$4 sm:$0xff]   ;;  %v8303_v38 = vld [vmem:[%s11393_s1 + $0x116c] ss:$16 sps:$4 sm:$0xff]  }
 0x1f7   :  { %5351 = vmatpush1.bf16.msra.mxu0 %v8214_v48  ;;  %5884 = vmatpush1.bf16.msra.mxu1 %v8217_v50  ;;  %v8298_v48 = vld [vmem:[%s11393_s1 + $0x1160] ss:$16 sps:$4 sm:$0xff]   ;;  %v8301_v50 = vld [vmem:[%s11393_s1 + $0x1168] ss:$16 sps:$4 sm:$0xff]  }
 0x1f8   :  { %5352 = vmatprep.subr.bf16.mxu0 %v8222_v51  ;;  %5885 = vmatprep.subr.bf16.mxu1 %v8225_v53  ;;  %v8306_v51 = vld [vmem:[%s11393_s1 + $0x1184] ss:$16 sps:$4 sm:$0xff]   ;;  %v8309_v53 = vld [vmem:[%s11393_s1 + $0x118c] ss:$16 sps:$4 sm:$0xff]  }
 0x1fb   :  { %5353 = vmatpush1.bf16.msra.mxu0 %v8220_v40  ;;  %5886 = vmatpush1.bf16.msra.mxu1 %v8223_v56  ;;  %v8304_v40 = vld [vmem:[%s11393_s1 + $0x1180] ss:$16 sps:$4 sm:$0xff]   ;;  %v8307_v56 = vld [vmem:[%s11393_s1 + $0x1188] ss:$16 sps:$4 sm:$0xff]  }
 0x1fc   :  { %5354 = vmatprep.subr.bf16.mxu0 %v8228_v58  ;;  %5887 = vmatprep.subr.bf16.mxu1 %v8231_v59  ;;  %v8312_v58 = vld [vmem:[%s11393_s1 + $0x11a4] ss:$16 sps:$4 sm:$0xff]   ;;  %v8315_v59 = vld [vmem:[%s11393_s1 + $0x11ac] ss:$16 sps:$4 sm:$0xff]  }
 0x1ff   :  { %5355 = vmatpush1.bf16.msra.mxu0 %v8226_v24  ;;  %5888 = vmatpush1.bf16.msra.mxu1 %v8229_v61  ;;  %v8310_v24 = vld [vmem:[%s11393_s1 + $0x11a0] ss:$16 sps:$4 sm:$0xff]   ;;  %v8313_v61 = vld [vmem:[%s11393_s1 + $0x11a8] ss:$16 sps:$4 sm:$0xff]  }
 0x200   :  { %5365 = vmatprep.subr.bf16.mxu0 %v8234_v62  ;;  %5898 = vmatprep.subr.bf16.mxu1 %v8237_v63  ;;  %v8318_v62 = vld [vmem:[%s11393_s1 + $0x11c4] ss:$16 sps:$4 sm:$0xff]   ;;  %v8321_v63 = vld [vmem:[%s11393_s1 + $0x11cc] ss:$16 sps:$4 sm:$0xff]  }
 0x202   :  { %5357 = vmatmul.mubr.bf16.vlgmr.msra.gmra.mrb[0].mxu0 %v946_v0  ;;  %5890 = vmatmul.mubr.bf16.vlgmr.msra.gmra.mrb[0].mxu1 %v946_v0  ;;  %v8319_v0 = vld [vmem:[%s11393_s1 + $0x11c8] ss:$16 sps:$4 sm:$0xff]  }
 0x203   :  { %5366 = vmatpush1.bf16.msra.mxu0 %v8232_v1  ;;  %5899 = vmatpush1.bf16.msra.mxu1 %v8235_v2  ;;  %v8324_v1 = vld [vmem:[%s11393_s1 + $0x11e4] ss:$16 sps:$4 sm:$0xff]   ;;  %v8327_v2 = vld [vmem:[%s11393_s1 + $0x11ec] ss:$16 sps:$4 sm:$0xff]  }
 0x204   :  { %5367 = vmatprep.subr.bf16.mxu0 %v8240_v3  ;;  %5900 = vmatprep.subr.bf16.mxu1 %v8243_v57  ;;  %v8322_v3 = vld [vmem:[%s11393_s1 + $0x11e0] ss:$16 sps:$4 sm:$0xff]   ;;  %v8325_v57 = vld [vmem:[%s11393_s1 + $0x11e8] ss:$16 sps:$4 sm:$0xff]  }
 0x205   :  { %5397 = vmatprep.mubr.bf16.mxu0 %v10389_v4  ;;  %5930 = vmatprep.mubr.bf16.mxu1 %v10389_v4 }
 0x207   :  { %5368 = vmatpush1.bf16.msra.mxu0 %v8238_v5  ;;  %5901 = vmatpush1.bf16.msra.mxu1 %v8241_v6  ;;  %v8330_v5 = vld [vmem:[%s11393_s1 + $0x1204] ss:$16 sps:$4 sm:$0xff]   ;;  %v8333_v6 = vld [vmem:[%s11393_s1 + $0x120c] ss:$16 sps:$4 sm:$0xff]  }
 0x208   :  { %5369 = vmatprep.subr.bf16.mxu0 %v8246_v7  ;;  %5902 = vmatprep.subr.bf16.mxu1 %v8249_v8  ;;  %v10575_v7 = vrot.slane %v10358_v60, %v8871_v49  ;;  %v8328_v8 = vld [vmem:[%s11393_s1 + $0x1200] ss:$16 sps:$4 sm:$0xff]   ;;  %v8339_v60 = vld [vmem:[%s11393_s1 + $0x122c] ss:$16 sps:$4 sm:$0xff]  }
 0x20b   :  { %5370 = vmatpush1.bf16.msra.mxu0 %v8244_v9  ;;  %5903 = vmatpush1.bf16.msra.mxu1 %v8247_v10  ;;  %v8331_v9 = vld [vmem:[%s11393_s1 + $0x1208] ss:$16 sps:$4 sm:$0xff]   ;;  %v8336_v10 = vld [vmem:[%s11393_s1 + $0x1224] ss:$16 sps:$4 sm:$0xff]  }
 0x20c   :  { %5371 = vmatprep.subr.bf16.mxu0 %v8252_v11  ;;  %5904 = vmatprep.subr.bf16.mxu1 %v8255_v12  ;;  %v996_v11 = vcombine.high %v10389_v4, %v10389_v4  ;;  %v8334_v12 = vld [vmem:[%s11393_s1 + $0x1220] ss:$16 sps:$4 sm:$0xff]   ;;  %v8342_v4 = vld [vmem:[%s11393_s1 + $0x1244] ss:$16 sps:$4 sm:$0xff]  }
 0x20f   :  { %5372 = vmatpush1.bf16.msra.mxu0 %v8250_v14  ;;  %5905 = vmatpush1.bf16.msra.mxu1 %v8253_v52  ;;  %v8337_v14 = vld [vmem:[%s11393_s1 + $0x1228] ss:$16 sps:$4 sm:$0xff]   ;;  %v8345_v52 = vld [vmem:[%s11393_s1 + $0x124c] ss:$16 sps:$4 sm:$0xff]  }
 0x210   :  { %5373 = vmatprep.subr.bf16.mxu0 %v8258_v16  ;;  %5906 = vmatprep.subr.bf16.mxu1 %v8261_v17  ;;  %v8340_v16 = vld [vmem:[%s11393_s1 + $0x1240] ss:$16 sps:$4 sm:$0xff]   ;;  %v8343_v17 = vld [vmem:[%s11393_s1 + $0x1248] ss:$16 sps:$4 sm:$0xff]  }
 0x213   :  { %5374 = vmatpush1.bf16.msra.mxu0 %v8256_v18  ;;  %5907 = vmatpush1.bf16.msra.mxu1 %v8259_v19  ;;  %v8348_v18 = vld [vmem:[%s11393_s1 + $0x1264] ss:$16 sps:$4 sm:$0xff]   ;;  %v8351_v19 = vld [vmem:[%s11393_s1 + $0x126c] ss:$16 sps:$4 sm:$0xff]  }
 0x214   :  { %5375 = vmatprep.subr.bf16.mxu0 %v8264_v20  ;;  %5908 = vmatprep.subr.bf16.mxu1 %v8267_v21  ;;  %v8346_v20 = vld [vmem:[%s11393_s1 + $0x1260] ss:$16 sps:$4 sm:$0xff]   ;;  %v8349_v21 = vld [vmem:[%s11393_s1 + $0x1268] ss:$16 sps:$4 sm:$0xff]  }
 0x217   :  { %5376 = vmatpush1.bf16.msra.mxu0 %v8262_v22  ;;  %5909 = vmatpush1.bf16.msra.mxu1 %v8265_v23  ;;  %v8354_v22 = vld [vmem:[%s11393_s1 + $0x1284] ss:$16 sps:$4 sm:$0xff]   ;;  %v8357_v23 = vld [vmem:[%s11393_s1 + $0x128c] ss:$16 sps:$4 sm:$0xff]  }
 0x218   :  { %5377 = vmatprep.subr.bf16.mxu0 %v8270_v25  ;;  %5910 = vmatprep.subr.bf16.mxu1 %v8273_v13  ;;  %v8352_v25 = vld [vmem:[%s11393_s1 + $0x1280] ss:$16 sps:$4 sm:$0xff]   ;;  %v8355_v13 = vld [vmem:[%s11393_s1 + $0x1288] ss:$16 sps:$4 sm:$0xff]  }
 0x21b   :  { %5378 = vmatpush1.bf16.msra.mxu0 %v8268_v27  ;;  %5911 = vmatpush1.bf16.msra.mxu1 %v8271_v29  ;;  %v8360_v27 = vld [vmem:[%s11393_s1 + $0x12a4] ss:$16 sps:$4 sm:$0xff]   ;;  %v8363_v29 = vld [vmem:[%s11393_s1 + $0x12ac] ss:$16 sps:$4 sm:$0xff]  }
 0x21c   :  { %5379 = vmatprep.subr.bf16.mxu0 %v8276_v30  ;;  %5912 = vmatprep.subr.bf16.mxu1 %v8279_v31  ;;  %v8358_v30 = vld [vmem:[%s11393_s1 + $0x12a0] ss:$16 sps:$4 sm:$0xff]   ;;  %v8361_v31 = vld [vmem:[%s11393_s1 + $0x12a8] ss:$16 sps:$4 sm:$0xff]  }
 0x21f   :  { %5380 = vmatpush1.bf16.msra.mxu0 %v8274_v15  ;;  %5913 = vmatpush1.bf16.msra.mxu1 %v8277_v32  ;;  %v8366_v15 = vld [vmem:[%s11393_s1 + $0x12c4] ss:$16 sps:$4 sm:$0xff]   ;;  %v8369_v32 = vld [vmem:[%s11393_s1 + $0x12cc] ss:$16 sps:$4 sm:$0xff]  }
 0x220   :  { %5381 = vmatprep.subr.bf16.mxu0 %v8282_v33  ;;  %5914 = vmatprep.subr.bf16.mxu1 %v8285_v26  ;;  %v8364_v33 = vld [vmem:[%s11393_s1 + $0x12c0] ss:$16 sps:$4 sm:$0xff]   ;;  %v8367_v26 = vld [vmem:[%s11393_s1 + $0x12c8] ss:$16 sps:$4 sm:$0xff]  }
 0x223   :  { %5382 = vmatpush1.bf16.msra.mxu0 %v8280_v34  ;;  %5915 = vmatpush1.bf16.msra.mxu1 %v8283_v35  ;;  %v8372_v34 = vld [vmem:[%s11393_s1 + $0x12e4] ss:$16 sps:$4 sm:$0xff]   ;;  %v8375_v35 = vld [vmem:[%s11393_s1 + $0x12ec] ss:$16 sps:$4 sm:$0xff]  }
 0x224   :  { %5383 = vmatprep.subr.bf16.mxu0 %v8288_v37  ;;  %5916 = vmatprep.subr.bf16.mxu1 %v8291_v28  ;;  %v8370_v37 = vld [vmem:[%s11393_s1 + $0x12e0] ss:$16 sps:$4 sm:$0xff]   ;;  %v8373_v28 = vld [vmem:[%s11393_s1 + $0x12e8] ss:$16 sps:$4 sm:$0xff]  }
 0x227   :  { %5384 = vmatpush1.bf16.msra.mxu0 %v8286_v39  ;;  %5917 = vmatpush1.bf16.msra.mxu1 %v8289_v41  ;;  %v8378_v39 = vld [vmem:[%s11393_s1 + $0x1304] ss:$16 sps:$4 sm:$0xff]   ;;  %v8381_v41 = vld [vmem:[%s11393_s1 + $0x130c] ss:$16 sps:$4 sm:$0xff]  }
 0x228   :  { %5385 = vmatprep.subr.bf16.mxu0 %v8294_v43  ;;  %5918 = vmatprep.subr.bf16.mxu1 %v8297_v44  ;;  %v8376_v43 = vld [vmem:[%s11393_s1 + $0x1300] ss:$16 sps:$4 sm:$0xff]   ;;  %v8379_v44 = vld [vmem:[%s11393_s1 + $0x1308] ss:$16 sps:$4 sm:$0xff]  }
 0x22b   :  { %5386 = vmatpush1.bf16.msra.mxu0 %v8292_v45  ;;  %5919 = vmatpush1.bf16.msra.mxu1 %v8295_v46  ;;  %v8384_v45 = vld [vmem:[%s11393_s1 + $0x1324] ss:$16 sps:$4 sm:$0xff]   ;;  %v8387_v46 = vld [vmem:[%s11393_s1 + $0x132c] ss:$16 sps:$4 sm:$0xff]  }
 0x22c   :  { %5387 = vmatprep.subr.bf16.mxu0 %v8300_v47  ;;  %5920 = vmatprep.subr.bf16.mxu1 %v8303_v38  ;;  %v8382_v47 = vld [vmem:[%s11393_s1 + $0x1320] ss:$16 sps:$4 sm:$0xff]   ;;  %v8385_v38 = vld [vmem:[%s11393_s1 + $0x1328] ss:$16 sps:$4 sm:$0xff]  }
 0x22f   :  { %5388 = vmatpush1.bf16.msra.mxu0 %v8298_v48  ;;  %5921 = vmatpush1.bf16.msra.mxu1 %v8301_v50  ;;  %v8390_v48 = vld [vmem:[%s11393_s1 + $0x1344] ss:$16 sps:$4 sm:$0xff]   ;;  %v8393_v50 = vld [vmem:[%s11393_s1 + $0x134c] ss:$16 sps:$4 sm:$0xff]  }
 0x230   :  { %5389 = vmatprep.subr.bf16.mxu0 %v8306_v51  ;;  %5922 = vmatprep.subr.bf16.mxu1 %v8309_v53  ;;  %v8388_v51 = vld [vmem:[%s11393_s1 + $0x1340] ss:$16 sps:$4 sm:$0xff]   ;;  %v8391_v53 = vld [vmem:[%s11393_s1 + $0x1348] ss:$16 sps:$4 sm:$0xff]  }
 0x233   :  { %5390 = vmatpush1.bf16.msra.mxu0 %v8304_v40  ;;  %5923 = vmatpush1.bf16.msra.mxu1 %v8307_v56  ;;  %v8396_v40 = vld [vmem:[%s11393_s1 + $0x1364] ss:$16 sps:$4 sm:$0xff]   ;;  %v8399_v56 = vld [vmem:[%s11393_s1 + $0x136c] ss:$16 sps:$4 sm:$0xff]  }
 0x234   :  { %5391 = vmatprep.subr.bf16.mxu0 %v8312_v58  ;;  %5924 = vmatprep.subr.bf16.mxu1 %v8315_v59  ;;  %v8394_v58 = vld [vmem:[%s11393_s1 + $0x1360] ss:$16 sps:$4 sm:$0xff]   ;;  %v8397_v59 = vld [vmem:[%s11393_s1 + $0x1368] ss:$16 sps:$4 sm:$0xff]  }
 0x237   :  { %5392 = vmatpush1.bf16.msra.mxu0 %v8310_v24  ;;  %5925 = vmatpush1.bf16.msra.mxu1 %v8313_v61  ;;  %v8402_v24 = vld [vmem:[%s11393_s1 + $0x1384] ss:$16 sps:$4 sm:$0xff]   ;;  %v8405_v61 = vld [vmem:[%s11393_s1 + $0x138c] ss:$16 sps:$4 sm:$0xff]  }
 0x238   :  { %5393 = vmatprep.subr.bf16.mxu0 %v8318_v62  ;;  %5926 = vmatprep.subr.bf16.mxu1 %v8321_v63  ;;  %v8400_v62 = vld [vmem:[%s11393_s1 + $0x1380] ss:$16 sps:$4 sm:$0xff]   ;;  %v8403_v63 = vld [vmem:[%s11393_s1 + $0x1388] ss:$16 sps:$4 sm:$0xff]  }
 0x23b   :  { %5394 = vmatpush1.bf16.msra.mxu0 %v8316_v55  ;;  %5927 = vmatpush1.bf16.msra.mxu1 %v8319_v0  ;;  %v8408_v55 = vld [vmem:[%s11393_s1 + $0x13a4] ss:$16 sps:$4 sm:$0xff]   ;;  %v8411_v0 = vld [vmem:[%s11393_s1 + $0x13ac] ss:$16 sps:$4 sm:$0xff]  }
 0x23c   :  { %5395 = vmatprep.subr.bf16.mxu0 %v8324_v1  ;;  %5928 = vmatprep.subr.bf16.mxu1 %v8327_v2  ;;  %v8406_v1 = vld [vmem:[%s11393_s1 + $0x13a0] ss:$16 sps:$4 sm:$0xff]   ;;  %v8409_v2 = vld [vmem:[%s11393_s1 + $0x13a8] ss:$16 sps:$4 sm:$0xff]  }
 0x23f   :  { %5396 = vmatpush1.bf16.msra.mxu0 %v8322_v3  ;;  %5929 = vmatpush1.bf16.msra.mxu1 %v8325_v57  ;;  %v8414_v3 = vld [vmem:[%s11393_s1 + $0x13c4] ss:$16 sps:$4 sm:$0xff]   ;;  %v8417_v57 = vld [vmem:[%s11393_s1 + $0x13cc] ss:$16 sps:$4 sm:$0xff]  }
 0x240   :  { %5406 = vmatprep.subr.bf16.mxu0 %v8330_v5  ;;  %5939 = vmatprep.subr.bf16.mxu1 %v8333_v6  ;;  %v949_v5 = vcombine.high %v10342_v54, %v10342_v54  ;;  %v8412_v6 = vld [vmem:[%s11393_s1 + $0x13c0] ss:$16 sps:$4 sm:$0xff]   ;;  %v8423_v54 = vld [vmem:[%s11393_s1 + $0x13ec] ss:$16 sps:$4 sm:$0xff]  }
 0x242   :  { %5398 = vmatmul.mubr.bf16.vlgmr.msra.gmra.mrb[0].mxu0 %v10575_v7  ;;  %5931 = vmatmul.mubr.bf16.vlgmr.msra.gmra.mrb[0].mxu1 %v10575_v7 }
 0x243   :  { %5407 = vmatpush1.bf16.msra.mxu0 %v8328_v8  ;;  %5940 = vmatpush1.bf16.msra.mxu1 %v8331_v9  ;;  %v8415_v8 = vld [vmem:[%s11393_s1 + $0x13c8] ss:$16 sps:$4 sm:$0xff]   ;;  %v8420_v9 = vld [vmem:[%s11393_s1 + $0x13e4] ss:$16 sps:$4 sm:$0xff]  }
 0x244   :  { %5408 = vmatprep.subr.bf16.mxu0 %v8336_v10  ;;  %5941 = vmatprep.subr.bf16.mxu1 %v8339_v60  ;;  %v10764_v10 = vrot.slane %v949_v5, %v8871_v49  ;;  %v8418_v60 = vld [vmem:[%s11393_s1 + $0x13e0] ss:$16 sps:$4 sm:$0xff]  }
 0x245   :  { %5438 = vmatprep.mubr.bf16.mxu0 %v996_v11  ;;  %5971 = vmatprep.mubr.bf16.mxu1 %v996_v11  ;;  %v8421_v11 = vld [vmem:[%s11393_s1 + $0x13e8] ss:$16 sps:$4 sm:$0xff]   ;;  %v8496_v5 = vld [vmem:[%s11393_s1 + $0x1580] ss:$16 sps:$4 sm:$0xff]  }
 0x247   :  { %5409 = vmatpush1.bf16.msra.mxu0 %v8334_v12  ;;  %5942 = vmatpush1.bf16.msra.mxu1 %v8337_v14  ;;  %v8426_v12 = vld [vmem:[%s11393_s1 + $0x1404] ss:$16 sps:$4 sm:$0xff]   ;;  %v8429_v14 = vld [vmem:[%s11393_s1 + $0x140c] ss:$16 sps:$4 sm:$0xff]  }
 0x248   :  { %5410 = vmatprep.subr.bf16.mxu0 %v8342_v4  ;;  %5943 = vmatprep.subr.bf16.mxu1 %v8345_v52  ;;  %v965_v4 = vcombine.high %v10764_v10, %v10764_v10  ;;  %v994_v52 = vcombine.high %v10575_v7, %v10575_v7  ;;  %v8435_v7 = vld [vmem:[%s11393_s1 + $0x142c] ss:$16 sps:$4 sm:$0xff]  }
 0x24b   :  { %5411 = vmatpush1.bf16.msra.mxu0 %v8340_v16  ;;  %5944 = vmatpush1.bf16.msra.mxu1 %v8343_v17  ;;  %v8424_v16 = vld [vmem:[%s11393_s1 + $0x1400] ss:$16 sps:$4 sm:$0xff]   ;;  %v8427_v17 = vld [vmem:[%s11393_s1 + $0x1408] ss:$16 sps:$4 sm:$0xff]  }
 0x24c   :  { %5412 = vmatprep.subr.bf16.mxu0 %v8348_v18  ;;  %5945 = vmatprep.subr.bf16.mxu1 %v8351_v19  ;;  %v8432_v18 = vld [vmem:[%s11393_s1 + $0x1424] ss:$16 sps:$4 sm:$0xff]   ;;  %v10795_v19 = vrot.slane %v965_v4, %v8871_v49  ;;  %v8511_v4 = vld [vmem:[%s11393_s1 + $0x15c8] ss:$16 sps:$4 sm:$0xff]  }
 0x24f   :  { %5413 = vmatpush1.bf16.msra.mxu0 %v8346_v20  ;;  %5946 = vmatpush1.bf16.msra.mxu1 %v8349_v21  ;;  %v8430_v20 = vld [vmem:[%s11393_s1 + $0x1420] ss:$16 sps:$4 sm:$0xff]   ;;  %v8433_v21 = vld [vmem:[%s11393_s1 + $0x1428] ss:$16 sps:$4 sm:$0xff]  }
 0x250   :  { %5414 = vmatprep.subr.bf16.mxu0 %v8354_v22  ;;  %5947 = vmatprep.subr.bf16.mxu1 %v8357_v23  ;;  %v8438_v22 = vld [vmem:[%s11393_s1 + $0x1444] ss:$16 sps:$4 sm:$0xff]   ;;  %v8441_v23 = vld [vmem:[%s11393_s1 + $0x144c] ss:$16 sps:$4 sm:$0xff]  }
 0x253   :  { %5415 = vmatpush1.bf16.msra.mxu0 %v8352_v25  ;;  %5948 = vmatpush1.bf16.msra.mxu1 %v8355_v13  ;;  %v8436_v25 = vld [vmem:[%s11393_s1 + $0x1440] ss:$16 sps:$4 sm:$0xff]   ;;  %v8439_v13 = vld [vmem:[%s11393_s1 + $0x1448] ss:$16 sps:$4 sm:$0xff]  }
 0x254   :  { %5416 = vmatprep.subr.bf16.mxu0 %v8360_v27  ;;  %5949 = vmatprep.subr.bf16.mxu1 %v8363_v29  ;;  %v8444_v27 = vld [vmem:[%s11393_s1 + $0x1464] ss:$16 sps:$4 sm:$0xff]   ;;  %v8447_v29 = vld [vmem:[%s11393_s1 + $0x146c] ss:$16 sps:$4 sm:$0xff]  }
 0x257   :  { %5417 = vmatpush1.bf16.msra.mxu0 %v8358_v30  ;;  %5950 = vmatpush1.bf16.msra.mxu1 %v8361_v31  ;;  %v8442_v30 = vld [vmem:[%s11393_s1 + $0x1460] ss:$16 sps:$4 sm:$0xff]   ;;  %v8445_v31 = vld [vmem:[%s11393_s1 + $0x1468] ss:$16 sps:$4 sm:$0xff]  }
 0x258   :  { %5418 = vmatprep.subr.bf16.mxu0 %v8366_v15  ;;  %5951 = vmatprep.subr.bf16.mxu1 %v8369_v32  ;;  %v8450_v15 = vld [vmem:[%s11393_s1 + $0x1484] ss:$16 sps:$4 sm:$0xff]   ;;  %v8453_v32 = vld [vmem:[%s11393_s1 + $0x148c] ss:$16 sps:$4 sm:$0xff]  }
 0x25b   :  { %5419 = vmatpush1.bf16.msra.mxu0 %v8364_v33  ;;  %5952 = vmatpush1.bf16.msra.mxu1 %v8367_v26  ;;  %v8448_v33 = vld [vmem:[%s11393_s1 + $0x1480] ss:$16 sps:$4 sm:$0xff]   ;;  %v8451_v26 = vld [vmem:[%s11393_s1 + $0x1488] ss:$16 sps:$4 sm:$0xff]  }
 0x25c   :  { %5420 = vmatprep.subr.bf16.mxu0 %v8372_v34  ;;  %5953 = vmatprep.subr.bf16.mxu1 %v8375_v35  ;;  %v8456_v34 = vld [vmem:[%s11393_s1 + $0x14a4] ss:$16 sps:$4 sm:$0xff]   ;;  %v8459_v35 = vld [vmem:[%s11393_s1 + $0x14ac] ss:$16 sps:$4 sm:$0xff]  }
 0x25f   :  { %5421 = vmatpush1.bf16.msra.mxu0 %v8370_v37  ;;  %5954 = vmatpush1.bf16.msra.mxu1 %v8373_v28  ;;  %v8454_v37 = vld [vmem:[%s11393_s1 + $0x14a0] ss:$16 sps:$4 sm:$0xff]   ;;  %v8457_v28 = vld [vmem:[%s11393_s1 + $0x14a8] ss:$16 sps:$4 sm:$0xff]  }
 0x260   :  { %5422 = vmatprep.subr.bf16.mxu0 %v8378_v39  ;;  %5955 = vmatprep.subr.bf16.mxu1 %v8381_v41  ;;  %v8462_v39 = vld [vmem:[%s11393_s1 + $0x14c4] ss:$16 sps:$4 sm:$0xff]   ;;  %v8465_v41 = vld [vmem:[%s11393_s1 + $0x14cc] ss:$16 sps:$4 sm:$0xff]  }
 0x263   :  { %5423 = vmatpush1.bf16.msra.mxu0 %v8376_v43  ;;  %5956 = vmatpush1.bf16.msra.mxu1 %v8379_v44  ;;  %v8460_v43 = vld [vmem:[%s11393_s1 + $0x14c0] ss:$16 sps:$4 sm:$0xff]   ;;  %v8463_v44 = vld [vmem:[%s11393_s1 + $0x14c8] ss:$16 sps:$4 sm:$0xff]  }
 0x264   :  { %5424 = vmatprep.subr.bf16.mxu0 %v8384_v45  ;;  %5957 = vmatprep.subr.bf16.mxu1 %v8387_v46  ;;  %v8468_v45 = vld [vmem:[%s11393_s1 + $0x14e4] ss:$16 sps:$4 sm:$0xff]   ;;  %v8471_v46 = vld [vmem:[%s11393_s1 + $0x14ec] ss:$16 sps:$4 sm:$0xff]  }
 0x267   :  { %5425 = vmatpush1.bf16.msra.mxu0 %v8382_v47  ;;  %5958 = vmatpush1.bf16.msra.mxu1 %v8385_v38  ;;  %v8466_v47 = vld [vmem:[%s11393_s1 + $0x14e0] ss:$16 sps:$4 sm:$0xff]   ;;  %v8469_v38 = vld [vmem:[%s11393_s1 + $0x14e8] ss:$16 sps:$4 sm:$0xff]  }
 0x268   :  { %5426 = vmatprep.subr.bf16.mxu0 %v8390_v48  ;;  %5959 = vmatprep.subr.bf16.mxu1 %v8393_v50  ;;  %v8474_v48 = vld [vmem:[%s11393_s1 + $0x1504] ss:$16 sps:$4 sm:$0xff]   ;;  %v8477_v50 = vld [vmem:[%s11393_s1 + $0x150c] ss:$16 sps:$4 sm:$0xff]  }
 0x26b   :  { %5427 = vmatpush1.bf16.msra.mxu0 %v8388_v51  ;;  %5960 = vmatpush1.bf16.msra.mxu1 %v8391_v53  ;;  %v8472_v51 = vld [vmem:[%s11393_s1 + $0x1500] ss:$16 sps:$4 sm:$0xff]   ;;  %v8475_v53 = vld [vmem:[%s11393_s1 + $0x1508] ss:$16 sps:$4 sm:$0xff]  }
 0x26c   :  { %5428 = vmatprep.subr.bf16.mxu0 %v8396_v40  ;;  %5961 = vmatprep.subr.bf16.mxu1 %v8399_v56  ;;  %v8480_v40 = vld [vmem:[%s11393_s1 + $0x1524] ss:$16 sps:$4 sm:$0xff]   ;;  %v8483_v56 = vld [vmem:[%s11393_s1 + $0x152c] ss:$16 sps:$4 sm:$0xff]  }
 0x26f   :  { %5429 = vmatpush1.bf16.msra.mxu0 %v8394_v58  ;;  %5962 = vmatpush1.bf16.msra.mxu1 %v8397_v59  ;;  %v8478_v58 = vld [vmem:[%s11393_s1 + $0x1520] ss:$16 sps:$4 sm:$0xff]   ;;  %v8481_v59 = vld [vmem:[%s11393_s1 + $0x1528] ss:$16 sps:$4 sm:$0xff]  }
 0x270   :  { %5430 = vmatprep.subr.bf16.mxu0 %v8402_v24  ;;  %5963 = vmatprep.subr.bf16.mxu1 %v8405_v61  ;;  %v8486_v24 = vld [vmem:[%s11393_s1 + $0x1544] ss:$16 sps:$4 sm:$0xff]   ;;  %v8489_v61 = vld [vmem:[%s11393_s1 + $0x154c] ss:$16 sps:$4 sm:$0xff]  }
 0x273   :  { %5431 = vmatpush1.bf16.msra.mxu0 %v8400_v62  ;;  %5964 = vmatpush1.bf16.msra.mxu1 %v8403_v63  ;;  %v8484_v62 = vld [vmem:[%s11393_s1 + $0x1540] ss:$16 sps:$4 sm:$0xff]   ;;  %v8487_v63 = vld [vmem:[%s11393_s1 + $0x1548] ss:$16 sps:$4 sm:$0xff]  }
 0x274   :  { %5432 = vmatprep.subr.bf16.mxu0 %v8408_v55  ;;  %5965 = vmatprep.subr.bf16.mxu1 %v8411_v0  ;;  %v8492_v55 = vld [vmem:[%s11393_s1 + $0x1564] ss:$16 sps:$4 sm:$0xff]   ;;  %v8495_v0 = vld [vmem:[%s11393_s1 + $0x156c] ss:$16 sps:$4 sm:$0xff]  }
 0x277   :  { %5433 = vmatpush1.bf16.msra.mxu0 %v8406_v1  ;;  %5966 = vmatpush1.bf16.msra.mxu1 %v8409_v2  ;;  %v8490_v1 = vld [vmem:[%s11393_s1 + $0x1560] ss:$16 sps:$4 sm:$0xff]   ;;  %v8493_v2 = vld [vmem:[%s11393_s1 + $0x1568] ss:$16 sps:$4 sm:$0xff]  }
 0x278   :  { %5434 = vmatprep.subr.bf16.mxu0 %v8414_v3  ;;  %5967 = vmatprep.subr.bf16.mxu1 %v8417_v57  ;;  %v8498_v3 = vld [vmem:[%s11393_s1 + $0x1584] ss:$16 sps:$4 sm:$0xff]   ;;  %v8501_v57 = vld [vmem:[%s11393_s1 + $0x158c] ss:$16 sps:$4 sm:$0xff]  }
 0x27b   :  { %5435 = vmatpush1.bf16.msra.mxu0 %v8412_v6  ;;  %5968 = vmatpush1.bf16.msra.mxu1 %v8415_v8  ;;  %v8499_v6 = vld [vmem:[%s11393_s1 + $0x1588] ss:$16 sps:$4 sm:$0xff]   ;;  %v8504_v8 = vld [vmem:[%s11393_s1 + $0x15a4] ss:$16 sps:$4 sm:$0xff]  }
 0x27c   :  { %5436 = vmatprep.subr.bf16.mxu0 %v8420_v9  ;;  %5969 = vmatprep.subr.bf16.mxu1 %v8423_v54  ;;  %v8507_v9 = vld [vmem:[%s11393_s1 + $0x15ac] ss:$16 sps:$4 sm:$0xff]   ;;  %v8502_v54 = vld [vmem:[%s11393_s1 + $0x15a0] ss:$16 sps:$4 sm:$0xff]  }
 0x27f   :  { %5437 = vmatpush1.bf16.msra.mxu0 %v8418_v60  ;;  %5970 = vmatpush1.bf16.msra.mxu1 %v8421_v11  ;;  %v8505_v60 = vld [vmem:[%s11393_s1 + $0x15a8] ss:$16 sps:$4 sm:$0xff]   ;;  %v8510_v11 = vld [vmem:[%s11393_s1 + $0x15c4] ss:$16 sps:$4 sm:$0xff]  }
 0x280   :  { %5447 = vmatprep.subr.bf16.mxu0 %v8426_v12  ;;  %5980 = vmatprep.subr.bf16.mxu1 %v8429_v14  ;;  %v8513_v12 = vld [vmem:[%s11393_s1 + $0x15cc] ss:$16 sps:$4 sm:$0xff]   ;;  %v8508_v14 = vld [vmem:[%s11393_s1 + $0x15c0] ss:$16 sps:$4 sm:$0xff]  }
 0x282   :  { %5439 = vmatmul.mubr.bf16.vlgmr.msra.gmra.mrb[0].mxu0 %v994_v52  ;;  %5972 = vmatmul.mubr.bf16.vlgmr.msra.gmra.mrb[0].mxu1 %v994_v52  ;;  %v8516_v52 = vld [vmem:[%s11393_s1 + $0x15e4] ss:$16 sps:$4 sm:$0xff]  }
 0x283   :  { %5448 = vmatpush1.bf16.msra.mxu0 %v8424_v16  ;;  %5981 = vmatpush1.bf16.msra.mxu1 %v8427_v17  ;;  %v8519_v16 = vld [vmem:[%s11393_s1 + $0x15ec] ss:$16 sps:$4 sm:$0xff]   ;;  %v8514_v17 = vld [vmem:[%s11393_s1 + $0x15e0] ss:$16 sps:$4 sm:$0xff]  }
 0x284   :  { %5449 = vmatprep.subr.bf16.mxu0 %v8432_v18  ;;  %5982 = vmatprep.subr.bf16.mxu1 %v8435_v7  ;;  %v8517_v18 = vld [vmem:[%s11393_s1 + $0x15e8] ss:$16 sps:$4 sm:$0xff]   ;;  %v8523_v7 = vld [vmem:[%s11393_s1 + $0x1604] ss:$16 sps:$4 sm:$0xff]  }
 0x285   :  { %5479 = vmatprep.mubr.bf16.mxu0 %v10795_v19  ;;  %6012 = vmatprep.mubr.bf16.mxu1 %v10795_v19 }
 0x287   :  { %5450 = vmatpush1.bf16.msra.mxu0 %v8430_v20  ;;  %5983 = vmatpush1.bf16.msra.mxu1 %v8433_v21  ;;  %v8526_v20 = vld [vmem:[%s11393_s1 + $0x160c] ss:$16 sps:$4 sm:$0xff]   ;;  %v8521_v21 = vld [vmem:[%s11393_s1 + $0x1600] ss:$16 sps:$4 sm:$0xff]  }
 0x288   :  { %5451 = vmatprep.subr.bf16.mxu0 %v8438_v22  ;;  %5984 = vmatprep.subr.bf16.mxu1 %v8441_v23  ;;  %v8524_v22 = vld [vmem:[%s11393_s1 + $0x1608] ss:$16 sps:$4 sm:$0xff]   ;;  %v10987_v23 = vrot.slane %v10764_v10, %v8871_v49  ;;  %v8527_v10 = vld [vmem:[%s11393_s1 + $0x1620] ss:$16 sps:$4 sm:$0xff]  }
 0x28b   :  { %5452 = vmatpush1.bf16.msra.mxu0 %v8436_v25  ;;  %5985 = vmatpush1.bf16.msra.mxu1 %v8439_v13  ;;  %v8529_v25 = vld [vmem:[%s11393_s1 + $0x1624] ss:$16 sps:$4 sm:$0xff]   ;;  %v8532_v13 = vld [vmem:[%s11393_s1 + $0x162c] ss:$16 sps:$4 sm:$0xff]  }
 0x28c   :  { %5453 = vmatprep.subr.bf16.mxu0 %v8444_v27  ;;  %5986 = vmatprep.subr.bf16.mxu1 %v8447_v29  ;;  %v997_v27 = vcombine.high %v10795_v19, %v10795_v19  ;;  %v8530_v29 = vld [vmem:[%s11393_s1 + $0x1628] ss:$16 sps:$4 sm:$0xff]   ;;  %v8535_v19 = vld [vmem:[%s11393_s1 + $0x1644] ss:$16 sps:$4 sm:$0xff]  }
 0x28f   :  { %5454 = vmatpush1.bf16.msra.mxu0 %v8442_v30  ;;  %5987 = vmatpush1.bf16.msra.mxu1 %v8445_v31  ;;  %v8538_v30 = vld [vmem:[%s11393_s1 + $0x164c] ss:$16 sps:$4 sm:$0xff]   ;;  %v8533_v31 = vld [vmem:[%s11393_s1 + $0x1640] ss:$16 sps:$4 sm:$0xff]  }
 0x290   :  { %5455 = vmatprep.subr.bf16.mxu0 %v8450_v15  ;;  %5988 = vmatprep.subr.bf16.mxu1 %v8453_v32  ;;  %v8536_v15 = vld [vmem:[%s11393_s1 + $0x1648] ss:$16 sps:$4 sm:$0xff]   ;;  %v8541_v32 = vld [vmem:[%s11393_s1 + $0x1664] ss:$16 sps:$4 sm:$0xff]  }
 0x293   :  { %5456 = vmatpush1.bf16.msra.mxu0 %v8448_v33  ;;  %5989 = vmatpush1.bf16.msra.mxu1 %v8451_v26  ;;  %v8544_v33 = vld [vmem:[%s11393_s1 + $0x166c] ss:$16 sps:$4 sm:$0xff]   ;;  %v8539_v26 = vld [vmem:[%s11393_s1 + $0x1660] ss:$16 sps:$4 sm:$0xff]  }
 0x294   :  { %5457 = vmatprep.subr.bf16.mxu0 %v8456_v34  ;;  %5990 = vmatprep.subr.bf16.mxu1 %v8459_v35  ;;  %v8542_v34 = vld [vmem:[%s11393_s1 + $0x1668] ss:$16 sps:$4 sm:$0xff]   ;;  %v8547_v35 = vld [vmem:[%s11393_s1 + $0x1684] ss:$16 sps:$4 sm:$0xff]  }
 0x297   :  { %5458 = vmatpush1.bf16.msra.mxu0 %v8454_v37  ;;  %5991 = vmatpush1.bf16.msra.mxu1 %v8457_v28  ;;  %v8550_v37 = vld [vmem:[%s11393_s1 + $0x168c] ss:$16 sps:$4 sm:$0xff]   ;;  %v8545_v28 = vld [vmem:[%s11393_s1 + $0x1680] ss:$16 sps:$4 sm:$0xff]  }
 0x298   :  { %5459 = vmatprep.subr.bf16.mxu0 %v8462_v39  ;;  %5992 = vmatprep.subr.bf16.mxu1 %v8465_v41  ;;  %v8548_v39 = vld [vmem:[%s11393_s1 + $0x1688] ss:$16 sps:$4 sm:$0xff]   ;;  %v8553_v41 = vld [vmem:[%s11393_s1 + $0x16a4] ss:$16 sps:$4 sm:$0xff]  }
 0x29b   :  { %5460 = vmatpush1.bf16.msra.mxu0 %v8460_v43  ;;  %5993 = vmatpush1.bf16.msra.mxu1 %v8463_v44  ;;  %v8556_v43 = vld [vmem:[%s11393_s1 + $0x16ac] ss:$16 sps:$4 sm:$0xff]   ;;  %v8551_v44 = vld [vmem:[%s11393_s1 + $0x16a0] ss:$16 sps:$4 sm:$0xff]  }
 0x29c   :  { %5461 = vmatprep.subr.bf16.mxu0 %v8468_v45  ;;  %5994 = vmatprep.subr.bf16.mxu1 %v8471_v46  ;;  %v8554_v45 = vld [vmem:[%s11393_s1 + $0x16a8] ss:$16 sps:$4 sm:$0xff]   ;;  %v8559_v46 = vld [vmem:[%s11393_s1 + $0x16c4] ss:$16 sps:$4 sm:$0xff]  }
 0x29f   :  { %5462 = vmatpush1.bf16.msra.mxu0 %v8466_v47  ;;  %5995 = vmatpush1.bf16.msra.mxu1 %v8469_v38  ;;  %v8562_v47 = vld [vmem:[%s11393_s1 + $0x16cc] ss:$16 sps:$4 sm:$0xff]   ;;  %v8557_v38 = vld [vmem:[%s11393_s1 + $0x16c0] ss:$16 sps:$4 sm:$0xff]  }
 0x2a0   :  { %5463 = vmatprep.subr.bf16.mxu0 %v8474_v48  ;;  %5996 = vmatprep.subr.bf16.mxu1 %v8477_v50  ;;  %v8560_v48 = vld [vmem:[%s11393_s1 + $0x16c8] ss:$16 sps:$4 sm:$0xff]   ;;  %v8565_v50 = vld [vmem:[%s11393_s1 + $0x16e4] ss:$16 sps:$4 sm:$0xff]  }
 0x2a3   :  { %5464 = vmatpush1.bf16.msra.mxu0 %v8472_v51  ;;  %5997 = vmatpush1.bf16.msra.mxu1 %v8475_v53  ;;  %v8568_v51 = vld [vmem:[%s11393_s1 + $0x16ec] ss:$16 sps:$4 sm:$0xff]   ;;  %v8563_v53 = vld [vmem:[%s11393_s1 + $0x16e0] ss:$16 sps:$4 sm:$0xff]  }
 0x2a4   :  { %5465 = vmatprep.subr.bf16.mxu0 %v8480_v40  ;;  %5998 = vmatprep.subr.bf16.mxu1 %v8483_v56  ;;  %v8566_v40 = vld [vmem:[%s11393_s1 + $0x16e8] ss:$16 sps:$4 sm:$0xff]   ;;  %v8571_v56 = vld [vmem:[%s11393_s1 + $0x1704] ss:$16 sps:$4 sm:$0xff]  }
 0x2a7   :  { %5466 = vmatpush1.bf16.msra.mxu0 %v8478_v58  ;;  %5999 = vmatpush1.bf16.msra.mxu1 %v8481_v59  ;;  %v8574_v58 = vld [vmem:[%s11393_s1 + $0x170c] ss:$16 sps:$4 sm:$0xff]   ;;  %v8569_v59 = vld [vmem:[%s11393_s1 + $0x1700] ss:$16 sps:$4 sm:$0xff]  }
 0x2a8   :  { %5467 = vmatprep.subr.bf16.mxu0 %v8486_v24  ;;  %6000 = vmatprep.subr.bf16.mxu1 %v8489_v61  ;;  %v8572_v24 = vld [vmem:[%s11393_s1 + $0x1708] ss:$16 sps:$4 sm:$0xff]   ;;  %v8577_v61 = vld [vmem:[%s11393_s1 + $0x1724] ss:$16 sps:$4 sm:$0xff]  }
 0x2ab   :  { %5468 = vmatpush1.bf16.msra.mxu0 %v8484_v62  ;;  %6001 = vmatpush1.bf16.msra.mxu1 %v8487_v63  ;;  %v8580_v62 = vld [vmem:[%s11393_s1 + $0x172c] ss:$16 sps:$4 sm:$0xff]   ;;  %v8575_v63 = vld [vmem:[%s11393_s1 + $0x1720] ss:$16 sps:$4 sm:$0xff]  }
 0x2ac   :  { %5469 = vmatprep.subr.bf16.mxu0 %v8492_v55  ;;  %6002 = vmatprep.subr.bf16.mxu1 %v8495_v0  ;;  %v8578_v55 = vld [vmem:[%s11393_s1 + $0x1728] ss:$16 sps:$4 sm:$0xff]   ;;  %v8583_v0 = vld [vmem:[%s11393_s1 + $0x1744] ss:$16 sps:$4 sm:$0xff]  }
 0x2af   :  { %5470 = vmatpush1.bf16.msra.mxu0 %v8490_v1  ;;  %6003 = vmatpush1.bf16.msra.mxu1 %v8493_v2  ;;  %v8586_v1 = vld [vmem:[%s11393_s1 + $0x174c] ss:$16 sps:$4 sm:$0xff]   ;;  %v8581_v2 = vld [vmem:[%s11393_s1 + $0x1740] ss:$16 sps:$4 sm:$0xff]  }
 0x2b0   :  { %5471 = vmatprep.subr.bf16.mxu0 %v8498_v3  ;;  %6004 = vmatprep.subr.bf16.mxu1 %v8501_v57  ;;  %v8584_v3 = vld [vmem:[%s11393_s1 + $0x1748] ss:$16 sps:$4 sm:$0xff]   ;;  %v8589_v57 = vld [vmem:[%s11393_s1 + $0x1764] ss:$16 sps:$4 sm:$0xff]  }
 0x2b3   :  { %5472 = vmatpush1.bf16.msra.mxu0 %v8496_v5  ;;  %6005 = vmatpush1.bf16.msra.mxu1 %v8499_v6  ;;  %v8592_v5 = vld [vmem:[%s11393_s1 + $0x176c] ss:$16 sps:$4 sm:$0xff]   ;;  %v8587_v6 = vld [vmem:[%s11393_s1 + $0x1760] ss:$16 sps:$4 sm:$0xff]  }
 0x2b4   :  { %5473 = vmatprep.subr.bf16.mxu0 %v8504_v8  ;;  %6006 = vmatprep.subr.bf16.mxu1 %v8507_v9  ;;  %v8590_v8 = vld [vmem:[%s11393_s1 + $0x1768] ss:$16 sps:$4 sm:$0xff]   ;;  %v8595_v9 = vld [vmem:[%s11393_s1 + $0x1784] ss:$16 sps:$4 sm:$0xff]  }
 0x2b7   :  { %5474 = vmatpush1.bf16.msra.mxu0 %v8502_v54  ;;  %6007 = vmatpush1.bf16.msra.mxu1 %v8505_v60  ;;  %v8598_v54 = vld [vmem:[%s11393_s1 + $0x178c] ss:$16 sps:$4 sm:$0xff]   ;;  %v8593_v60 = vld [vmem:[%s11393_s1 + $0x1780] ss:$16 sps:$4 sm:$0xff]  }
 0x2b8   :  { %5475 = vmatprep.subr.bf16.mxu0 %v8510_v11  ;;  %6008 = vmatprep.subr.bf16.mxu1 %v8513_v12  ;;  %v8596_v11 = vld [vmem:[%s11393_s1 + $0x1788] ss:$16 sps:$4 sm:$0xff]   ;;  %v8601_v12 = vld [vmem:[%s11393_s1 + $0x17a4] ss:$16 sps:$4 sm:$0xff]  }
 0x2bb   :  { %5476 = vmatpush1.bf16.msra.mxu0 %v8508_v14  ;;  %6009 = vmatpush1.bf16.msra.mxu1 %v8511_v4  ;;  %v8604_v14 = vld [vmem:[%s11393_s1 + $0x17ac] ss:$16 sps:$4 sm:$0xff]   ;;  %v8599_v4 = vld [vmem:[%s11393_s1 + $0x17a0] ss:$16 sps:$4 sm:$0xff]  }
 0x2bc   :  { %5477 = vmatprep.subr.bf16.mxu0 %v8516_v52  ;;  %6010 = vmatprep.subr.bf16.mxu1 %v8519_v16  ;;  %v8602_v52 = vld [vmem:[%s11393_s1 + $0x17a8] ss:$16 sps:$4 sm:$0xff]   ;;  %v8607_v16 = vld [vmem:[%s11393_s1 + $0x17c4] ss:$16 sps:$4 sm:$0xff]  }
 0x2bf   :  { %5478 = vmatpush1.bf16.msra.mxu0 %v8514_v17  ;;  %6011 = vmatpush1.bf16.msra.mxu1 %v8517_v18  ;;  %v8610_v17 = vld [vmem:[%s11393_s1 + $0x17cc] ss:$16 sps:$4 sm:$0xff]   ;;  %v8605_v18 = vld [vmem:[%s11393_s1 + $0x17c0] ss:$16 sps:$4 sm:$0xff]  }
 0x2c0   :  { %5488 = vmatprep.subr.bf16.mxu0 %v8523_v7  ;;  %6021 = vmatprep.subr.bf16.mxu1 %v8526_v20  ;;  %v8608_v7 = vld [vmem:[%s11393_s1 + $0x17c8] ss:$16 sps:$4 sm:$0xff]   ;;  %v8613_v20 = vld [vmem:[%s11393_s1 + $0x17e4] ss:$16 sps:$4 sm:$0xff]  }
 0x2c2   :  { %5480 = vmatmul.mubr.bf16.vlgmr.msra.gmra.mrb[0].mxu0 %v10987_v23  ;;  %6013 = vmatmul.mubr.bf16.vlgmr.msra.gmra.mrb[0].mxu1 %v10987_v23 }
 0x2c3   :  { %5489 = vmatpush1.bf16.msra.mxu0 %v8521_v21  ;;  %6022 = vmatpush1.bf16.msra.mxu1 %v8524_v22  ;;  %v8616_v21 = vld [vmem:[%s11393_s1 + $0x17ec] ss:$16 sps:$4 sm:$0xff]   ;;  %v8611_v22 = vld [vmem:[%s11393_s1 + $0x17e0] ss:$16 sps:$4 sm:$0xff]  }
 0x2c4   :  { %5490 = vmatprep.subr.bf16.mxu0 %v8529_v25  ;;  %6023 = vmatprep.subr.bf16.mxu1 %v8532_v13  ;;  %v8614_v25 = vld [vmem:[%s11393_s1 + $0x17e8] ss:$16 sps:$4 sm:$0xff]   ;;  %v8619_v13 = vld [vmem:[%s11393_s1 + $0x1804] ss:$16 sps:$4 sm:$0xff]  }
 0x2c5   :  { %5520 = vmatprep.mubr.bf16.mxu0 %v997_v27  ;;  %6053 = vmatprep.mubr.bf16.mxu1 %v997_v27  ;;  %v8622_v27 = vld [vmem:[%s11393_s1 + $0x180c] ss:$16 sps:$4 sm:$0xff]  }
 0x2c7   :  { %5491 = vmatpush1.bf16.msra.mxu0 %v8527_v10  ;;  %6024 = vmatpush1.bf16.msra.mxu1 %v8530_v29  ;;  %v995_v10 = vcombine.high %v10987_v23, %v10987_v23  ;;  %v8617_v29 = vld [vmem:[%s11393_s1 + $0x1800] ss:$16 sps:$4 sm:$0xff]   ;;  %v8628_v23 = vld [vmem:[%s11393_s1 + $0x182c] ss:$16 sps:$4 sm:$0xff]  }
 0x2c8   :  { %5492 = vmatprep.subr.bf16.mxu0 %v8535_v19  ;;  %6025 = vmatprep.subr.bf16.mxu1 %v8538_v30  ;;  %v8620_v19 = vld [vmem:[%s11393_s1 + $0x1808] ss:$16 sps:$4 sm:$0xff]   ;;  %v8625_v30 = vld [vmem:[%s11393_s1 + $0x1824] ss:$16 sps:$4 sm:$0xff]  }
 0x2cb   :  { %5493 = vmatpush1.bf16.msra.mxu0 %v8533_v31  ;;  %6026 = vmatpush1.bf16.msra.mxu1 %v8536_v15  ;;  %v8623_v31 = vld [vmem:[%s11393_s1 + $0x1820] ss:$16 sps:$4 sm:$0xff]   ;;  %v8626_v15 = vld [vmem:[%s11393_s1 + $0x1828] ss:$16 sps:$4 sm:$0xff]  }
 0x2cc   :  { %5494 = vmatprep.subr.bf16.mxu0 %v8541_v32  ;;  %6027 = vmatprep.subr.bf16.mxu1 %v8544_v33  ;;  %v8631_v32 = vld [vmem:[%s11393_s1 + $0x1844] ss:$16 sps:$4 sm:$0xff]   ;;  %v8634_v33 = vld [vmem:[%s11393_s1 + $0x184c] ss:$16 sps:$4 sm:$0xff]  }
 0x2cf   :  { %5495 = vmatpush1.bf16.msra.mxu0 %v8539_v26  ;;  %6028 = vmatpush1.bf16.msra.mxu1 %v8542_v34  ;;  %v8704_v26 = vmov 0   ;;  %v8629_v34 = vld [vmem:[%s11393_s1 + $0x1840] ss:$16 sps:$4 sm:$0xff]  }
 0x2d0   :  { %5496 = vmatprep.subr.bf16.mxu0 %v8547_v35  ;;  %6029 = vmatprep.subr.bf16.mxu1 %v8550_v37  ;;  %v8632_v35 = vld [vmem:[%s11393_s1 + $0x1848] ss:$16 sps:$4 sm:$0xff]   ;;  %v8637_v37 = vld [vmem:[%s11393_s1 + $0x1864] ss:$16 sps:$4 sm:$0xff]  }
 0x2d3   :  { %5497 = vmatpush1.bf16.msra.mxu0 %v8545_v28  ;;  %6030 = vmatpush1.bf16.msra.mxu1 %v8548_v39  ;;  %v8640_v28 = vld [vmem:[%s11393_s1 + $0x186c] ss:$16 sps:$4 sm:$0xff]   ;;  %v8635_v39 = vld [vmem:[%s11393_s1 + $0x1860] ss:$16 sps:$4 sm:$0xff]  }
 0x2d4   :  { %5498 = vmatprep.subr.bf16.mxu0 %v8553_v41  ;;  %6031 = vmatprep.subr.bf16.mxu1 %v8556_v43  ;;  %v8638_v41 = vld [vmem:[%s11393_s1 + $0x1868] ss:$16 sps:$4 sm:$0xff]   ;;  %v8643_v43 = vld [vmem:[%s11393_s1 + $0x1884] ss:$16 sps:$4 sm:$0xff]  }
 0x2d7   :  { %5499 = vmatpush1.bf16.msra.mxu0 %v8551_v44  ;;  %6032 = vmatpush1.bf16.msra.mxu1 %v8554_v45  ;;  %v8646_v44 = vld [vmem:[%s11393_s1 + $0x188c] ss:$16 sps:$4 sm:$0xff]   ;;  %v8641_v45 = vld [vmem:[%s11393_s1 + $0x1880] ss:$16 sps:$4 sm:$0xff]  }
 0x2d8   :  { %5500 = vmatprep.subr.bf16.mxu0 %v8559_v46  ;;  %6033 = vmatprep.subr.bf16.mxu1 %v8562_v47  ;;  %v8644_v46 = vld [vmem:[%s11393_s1 + $0x1888] ss:$16 sps:$4 sm:$0xff]   ;;  %v8649_v47 = vld [vmem:[%s11393_s1 + $0x18a4] ss:$16 sps:$4 sm:$0xff]  }
 0x2db   :  { %5501 = vmatpush1.bf16.msra.mxu0 %v8557_v38  ;;  %6034 = vmatpush1.bf16.msra.mxu1 %v8560_v48  ;;  %v8652_v38 = vld [vmem:[%s11393_s1 + $0x18ac] ss:$16 sps:$4 sm:$0xff]   ;;  %v8647_v48 = vld [vmem:[%s11393_s1 + $0x18a0] ss:$16 sps:$4 sm:$0xff]  }
 0x2dc   :  { %5502 = vmatprep.subr.bf16.mxu0 %v8565_v50  ;;  %6035 = vmatprep.subr.bf16.mxu1 %v8568_v51  ;;  %v8650_v50 = vld [vmem:[%s11393_s1 + $0x18a8] ss:$16 sps:$4 sm:$0xff]   ;;  %v8655_v51 = vld [vmem:[%s11393_s1 + $0x18c4] ss:$16 sps:$4 sm:$0xff]  }
 0x2df   :  { %5503 = vmatpush1.bf16.msra.mxu0 %v8563_v53  ;;  %6036 = vmatpush1.bf16.msra.mxu1 %v8566_v40  ;;  %v8658_v53 = vld [vmem:[%s11393_s1 + $0x18cc] ss:$16 sps:$4 sm:$0xff]   ;;  %v8653_v40 = vld [vmem:[%s11393_s1 + $0x18c0] ss:$16 sps:$4 sm:$0xff]  }
 0x2e0   :  { %5504 = vmatprep.subr.bf16.mxu0 %v8571_v56  ;;  %6037 = vmatprep.subr.bf16.mxu1 %v8574_v58  ;;  %v8656_v56 = vld [vmem:[%s11393_s1 + $0x18c8] ss:$16 sps:$4 sm:$0xff]   ;;  %v8661_v58 = vld [vmem:[%s11393_s1 + $0x18e4] ss:$16 sps:$4 sm:$0xff]  }
 0x2e3   :  { %5505 = vmatpush1.bf16.msra.mxu0 %v8569_v59  ;;  %6038 = vmatpush1.bf16.msra.mxu1 %v8572_v24  ;;  %v8664_v59 = vld [vmem:[%s11393_s1 + $0x18ec] ss:$16 sps:$4 sm:$0xff]   ;;  %v8659_v24 = vld [vmem:[%s11393_s1 + $0x18e0] ss:$16 sps:$4 sm:$0xff]  }
 0x2e4   :  { %5506 = vmatprep.subr.bf16.mxu0 %v8577_v61  ;;  %6039 = vmatprep.subr.bf16.mxu1 %v8580_v62  ;;  %v8662_v61 = vld [vmem:[%s11393_s1 + $0x18e8] ss:$16 sps:$4 sm:$0xff]  }
 0x2e5   :  { %v6482_v62 = vld.sshfl [vmem:[%s11394_s0 + $0x18] sm:$0x1 pattern:$0x75316420] }
 0x2e7   :  { %5507 = vmatpush1.bf16.msra.mxu0 %v8575_v63  ;;  %6040 = vmatpush1.bf16.msra.mxu1 %v8578_v55  ;;  %v8665_v63 = vld [vmem:[%s11395_s3 + $0x40] sm:$0xff]  }
 0x2e8   :  { %5508 = vmatprep.subr.bf16.mxu0 %v8583_v0  ;;  %6041 = vmatprep.subr.bf16.mxu1 %v8586_v1  ;;  %v8666_v55 = vld [vmem:[%s11395_s3 + $0xc0] sm:$0xff]   ;;  %v1011_v0 = vrot.slane %v6482_v62, %v8871_v49  ;;  %v8670_v49 = vld [vmem:[%s11395_s3 + $0xc8] sm:$0xff]   ;;  %v6455_v62 = vand.u32 127, %v827_v36 }
 0x2e9   :  { %v8667_v1 = vld [vmem:[%s11395_s3] sm:$0xff]  }
 0x2ea   :  { %vm6456_vm0 = vcmp.ge.s32.totalorder %v6455_v62, 1  ;;  %vm6457_vm1 = vcmp.le.s32.totalorder %v6455_v62, 4  ;;  %vm6474_vm4 = vcmp.eq.s32.totalorder %v6455_v62, 0 }
 0x2eb   :  { %5509 = vmatpush1.bf16.msra.mxu0 %v8581_v2  ;;  %6042 = vmatpush1.bf16.msra.mxu1 %v8584_v3  ;;  %v8668_v2 = vld [vmem:[%s11395_s3 + $0x80] sm:$0xff]   ;;  %v8669_v3 = vld [vmem:[%s11395_s3 + $0x48] sm:$0xff]   ;;  %vm11382_vm2 = vmand %vm6456_vm0, %vm6457_vm1 }
 0x2ec   :  { %5510 = vmatprep.subr.bf16.mxu0 %v8589_v57  ;;  %6043 = vmatprep.subr.bf16.mxu1 %v8592_v5  ;;  %v8671_v57 = vld [vmem:[%s11395_s3 + $0x8] sm:$0xff]  }
 0x2ed   :  { %v8672_v5 = vld [vmem:[%s11395_s3 + $0x88] sm:$0xff]  }
 0x2ef   :  { %5511 = vmatpush1.bf16.msra.mxu0 %v8587_v6  ;;  %6044 = vmatpush1.bf16.msra.mxu1 %v8590_v8  ;;  %v8673_v6 = vld [vmem:[%s11395_s3 + $0x50] sm:$0xff]  }
 0x2f0   :  { %5512 = vmatprep.subr.bf16.mxu0 %v8595_v9  ;;  %6045 = vmatprep.subr.bf16.mxu1 %v8598_v54  ;;  %v8674_v8 = vld [vmem:[%s11395_s3 + $0xd0] sm:$0xff]  }
 0x2f1   :  { %v8675_v9 = vld [vmem:[%s11395_s3 + $0x10] sm:$0xff]  }
 0x2f2   :  { %v8676_v54 = vld [vmem:[%s11395_s3 + $0x90] sm:$0xff]  }
 0x2f3   :  { %5513 = vmatpush1.bf16.msra.mxu0 %v8593_v60  ;;  %6046 = vmatpush1.bf16.msra.mxu1 %v8596_v11  ;;  %v8677_v60 = vld [vmem:[%s11395_s3 + $0x58] sm:$0xff]  }
 0x2f4   :  { %5514 = vmatprep.subr.bf16.mxu0 %v8601_v12  ;;  %6047 = vmatprep.subr.bf16.mxu1 %v8604_v14  ;;  %v8678_v11 = vld [vmem:[%s11395_s3 + $0xd8] sm:$0xff]  }
 0x2f5   :  { %v8679_v12 = vld [vmem:[%s11395_s3 + $0x18] sm:$0xff]  }
 0x2f6   :  { %v8680_v14 = vld [vmem:[%s11395_s3 + $0x98] sm:$0xff]  }
 0x2f7   :  { %5515 = vmatpush1.bf16.msra.mxu0 %v8599_v4  ;;  %6048 = vmatpush1.bf16.msra.mxu1 %v8602_v52  ;;  %v8681_v4 = vld [vmem:[%s11395_s3 + $0x60] sm:$0xff]  }
 0x2f8   :  { %5516 = vmatprep.subr.bf16.mxu0 %v8607_v16  ;;  %6049 = vmatprep.subr.bf16.mxu1 %v8610_v17  ;;  %v8682_v52 = vld [vmem:[%s11395_s3 + $0xe0] sm:$0xff]  }
 0x2f9   :  { %v8683_v16 = vld [vmem:[%s11395_s3 + $0x20] sm:$0xff]  }
 0x2fa   :  { %v8684_v17 = vld [vmem:[%s11395_s3 + $0xa0] sm:$0xff]  }
 0x2fb   :  { %5517 = vmatpush1.bf16.msra.mxu0 %v8605_v18  ;;  %6050 = vmatpush1.bf16.msra.mxu1 %v8608_v7  ;;  %v8685_v18 = vld [vmem:[%s11395_s3 + $0x68] sm:$0xff]  }
 0x2fc   :  { %5518 = vmatprep.subr.bf16.mxu0 %v8613_v20  ;;  %6051 = vmatprep.subr.bf16.mxu1 %v8616_v21  ;;  %v8686_v7 = vld [vmem:[%s11395_s3 + $0xe8] sm:$0xff]  }
 0x2fd   :  { %v8687_v20 = vld [vmem:[%s11395_s3 + $0x28] sm:$0xff]  }
 0x2fe   :  { %v8688_v21 = vld [vmem:[%s11395_s3 + $0xa8] sm:$0xff]  }
 0x2ff   :  { %5519 = vmatpush1.bf16.msra.mxu0 %v8611_v22  ;;  %6052 = vmatpush1.bf16.msra.mxu1 %v8614_v25  ;;  %v8689_v22 = vld [vmem:[%s11395_s3 + $0x70] sm:$0xff]  }
 0x300   :  { %5529 = vmatprep.subr.bf16.mxu0 %v8619_v13  ;;  %6062 = vmatprep.subr.bf16.mxu1 %v8622_v27  ;;  %v8690_v25 = vld [vmem:[%s11395_s3 + $0xf0] sm:$0xff]  }
 0x301   :  { %v8691_v13 = vld [vmem:[%s11395_s3 + $0x30] sm:$0xff]  }
 0x302   :  { %5521 = vmatmul.mubr.bf16.vlgmr.msra.gmra.mrb[0].mxu0 %v995_v10  ;;  %6054 = vmatmul.mubr.bf16.vlgmr.msra.gmra.mrb[0].mxu1 %v995_v10  ;;  %v8692_v27 = vld [vmem:[%s11395_s3 + $0xb0] sm:$0xff]   ;;  %v8693_v10 = vld [vmem:[%s11395_s3 + $0x78] sm:$0xff]  }
 0x303   :  { %5530 = vmatpush1.bf16.msra.mxu0 %v8617_v29  ;;  %6063 = vmatpush1.bf16.msra.mxu1 %v8620_v19  ;;  %v8694_v29 = vld [vmem:[%s11395_s3 + $0xf8] sm:$0xff]  }
 0x304   :  { %5531 = vmatprep.subr.bf16.mxu0 %v8625_v30  ;;  %6064 = vmatprep.subr.bf16.mxu1 %v8628_v23  ;;  %v8695_v19 = vld [vmem:[%s11395_s3 + $0x38] sm:$0xff]   ;;  %v829_v23 = vsub.s32 0, %v8853_v42 }
 0x305   :  { %5561 = vmatprep.mubr.bf16.mxu0 %v8704_v26  ;;  %6094 = vmatprep.mubr.bf16.mxu1 %v8704_v26  ;;  %v8696_v30 = vld [vmem:[%s11395_s3 + $0xb8] sm:$0xff]  }
 0x307   :  { %5532 = vmatpush1.bf16.msra.mxu0 %v8623_v31  ;;  %6065 = vmatpush1.bf16.msra.mxu1 %v8626_v15  ;;  %v837_v31 = vsub.s32 2, %v8853_v42  ;;  %v825_v15 = vld [vmem:[%s11396_s2] sm:$0xf] }
 0x308   :  { %5533 = vmatprep.subr.bf16.mxu0 %v8631_v32  ;;  %6066 = vmatprep.subr.bf16.mxu1 %v8634_v33  ;;  %v833_v32 = vsub.s32 1, %v8853_v42  ;;  %v841_v33 = vsub.s32 3, %v8853_v42  ;;  %v830_v26 = vrot.slane %v825_v15, %v829_v23 }
 0x30b   :  { %5534 = vmatpush1.bf16.msra.mxu0 %v8629_v34  ;;  %6067 = vmatpush1.bf16.msra.mxu1 %v8632_v35  ;;  %v838_v34 = vrot.slane %v825_v15, %v837_v31  ;;  %v834_v35 = vrot.slane %v825_v15, %v833_v32 }
 0x30c   :  { %5535 = vmatprep.subr.bf16.mxu0 %v8637_v37  ;;  %6068 = vmatprep.subr.bf16.mxu1 %v8640_v28  ;;  %v842_v37 = vrot.slane %v825_v15, %v841_v33 }
 0x30f   :  { %5536 = vmatpush1.bf16.msra.mxu0 %v8635_v39  ;;  %6069 = vmatpush1.bf16.msra.mxu1 %v8638_v41 }
 0x310   :  { %5537 = vmatprep.subr.bf16.mxu0 %v8643_v43  ;;  %6070 = vmatprep.subr.bf16.mxu1 %v8646_v44 }
 0x313   :  { %5538 = vmatpush1.bf16.msra.mxu0 %v8641_v45  ;;  %6071 = vmatpush1.bf16.msra.mxu1 %v8644_v46 }
 0x314   :  { %5539 = vmatprep.subr.bf16.mxu0 %v8649_v47  ;;  %6072 = vmatprep.subr.bf16.mxu1 %v8652_v38 }
 0x317   :  { %5540 = vmatpush1.bf16.msra.mxu0 %v8647_v48  ;;  %6073 = vmatpush1.bf16.msra.mxu1 %v8650_v50 }
 0x318   :  { %5541 = vmatprep.subr.bf16.mxu0 %v8655_v51  ;;  %6074 = vmatprep.subr.bf16.mxu1 %v8658_v53 }
 0x31b   :  { %5542 = vmatpush1.bf16.msra.mxu0 %v8653_v40  ;;  %6075 = vmatpush1.bf16.msra.mxu1 %v8656_v56 }
 0x31c   :  { %5543 = vmatprep.subr.bf16.mxu0 %v8661_v58  ;;  %6076 = vmatprep.subr.bf16.mxu1 %v8664_v59 }
 0x31f   :  { %5544 = vmatpush1.bf16.msra.mxu0 %v8659_v24  ;;  %6077 = vmatpush1.bf16.msra.mxu1 %v8662_v61 }
 0x320   :  { %7316 = vmatprep.subr.bf16.mxu0 %v8665_v63  ;;  %7338 = vmatprep.subr.bf16.mxu1 %v8666_v55 }
 0x322   :  { %5562 = vmatmul.mubr.bf16.vlgmr.msra.gmra.mrb[0].mxu0 %v1011_v0  ;;  %6095 = vmatmul.mubr.bf16.vlgmr.msra.gmra.mrb[0].mxu1 %v1011_v0  ;;  %v7283_v0 = vld [vmem:[%s11397_s4] ss:$0 sm:$0xff] }
 0x323   :  { %7317 = vmatpush3.bf16.msra.mxu0 %v8667_v1  ;;  %7339 = vmatpush3.bf16.msra.mxu1 %v8668_v2 }
 0x324   :  { %7318 = vmatprep.subr.bf16.mxu0 %v8669_v3  ;;  %7340 = vmatprep.subr.bf16.mxu1 %v8670_v49 }
 0x327   :  { %7319 = vmatpush3.bf16.msra.mxu0 %v8671_v57  ;;  %7341 = vmatpush3.bf16.msra.mxu1 %v8672_v5 }
 0x328   :  { %7320 = vmatprep.subr.bf16.mxu0 %v8673_v6  ;;  %7342 = vmatprep.subr.bf16.mxu1 %v8674_v8 }
 0x32b   :  { %7321 = vmatpush3.bf16.msra.mxu0 %v8675_v9  ;;  %7343 = vmatpush3.bf16.msra.mxu1 %v8676_v54 }
 0x32c   :  { %7322 = vmatprep.subr.bf16.mxu0 %v8677_v60  ;;  %7344 = vmatprep.subr.bf16.mxu1 %v8678_v11 }
 0x32f   :  { %7323 = vmatpush3.bf16.msra.mxu0 %v8679_v12  ;;  %7345 = vmatpush3.bf16.msra.mxu1 %v8680_v14 }
 0x330   :  { %7324 = vmatprep.subr.bf16.mxu0 %v8681_v4  ;;  %7346 = vmatprep.subr.bf16.mxu1 %v8682_v52 }
 0x333   :  { %7325 = vmatpush3.bf16.msra.mxu0 %v8683_v16  ;;  %7347 = vmatpush3.bf16.msra.mxu1 %v8684_v17 }
 0x334   :  { %7326 = vmatprep.subr.bf16.mxu0 %v8685_v18  ;;  %7348 = vmatprep.subr.bf16.mxu1 %v8686_v7 }
 0x337   :  { %7327 = vmatpush3.bf16.msra.mxu0 %v8687_v20  ;;  %7349 = vmatpush3.bf16.msra.mxu1 %v8688_v21 }
 0x338   :  { %7328 = vmatprep.subr.bf16.mxu0 %v8689_v22  ;;  %7350 = vmatprep.subr.bf16.mxu1 %v8690_v25 }
 0x33b   :  { %7329 = vmatpush3.bf16.msra.mxu0 %v8691_v13  ;;  %7351 = vmatpush3.bf16.msra.mxu1 %v8692_v27 }
 0x33c   :  { %7330 = vmatprep.subr.bf16.mxu0 %v8693_v10  ;;  %7352 = vmatprep.subr.bf16.mxu1 %v8694_v29 }
 0x33f   :  { %7331 = vmatpush3.bf16.msra.mxu0 %v8695_v19  ;;  %7353 = vmatpush3.bf16.msra.mxu1 %v8696_v30 }
 0x3f5   :  { %v5563_v28 = vpop.f32.mrb[0].mxu0  ;;  %v6096_v39 = vpop.f32.mrb[0].mxu1 }
 0x3f6   :  { %v7360_v41 = vadd.f32 %v5563_v28, %v830_v26  ;;  %v7362_v43 = vadd.f32 %v6096_v39, %v838_v34  ;;  %v5565_v44 = vpop.f32.mrb[1].mxu0  ;;  %v6098_v45 = vpop.f32.mrb[1].mxu1 }
 0x3f7   :  { %v7361_v46 = vadd.f32 %v5565_v44, %v834_v35  ;;  %v7363_v47 = vadd.f32 %v6098_v45, %v842_v37  ;;  %v5567_v38 = vpop.f32.mrb[2].mxu0  ;;  %v6100_v48 = vpop.f32.mrb[2].mxu1 }
 0x3f8   :  { %v6103_v50 = vmax.f32 %v7360_v41, 0.0  ;;  %v6105_v51 = vmax.f32 %v7362_v43, 0.0  ;;  %v5568_v53 = vpop.f32.mrb[3].mxu0  ;;  %v6101_v40 = vpop.f32.mrb[3].mxu1 }
 0x3f9   :  { %v6104_v56 = vmax.f32 %v7361_v46, 0.0  ;;  %v6106_v42 = vmax.f32 %v7363_v47, 0.0 }
 0x3fa   :  { %v6107_v24 = vpack.c.bf16 %v6103_v50, %v6103_v50  ;;  %v6109_v61 = vpack.c.bf16 %v6105_v51, %v6105_v51 }
 0x3fb   :  { %v6108_v58 = vpack.c.bf16 %v6104_v56, %v6104_v56  ;;  %v6110_v59 = vpack.c.bf16 %v6106_v42, %v6106_v42 }
 0x3fd   :  { %6406 = vmatprep.mubr.bf16.mxu0 %v6108_v58  ;;  %6446 = vmatprep.mubr.bf16.mxu1 %v6110_v59 }
 0x3fe   :  { %6407 = vmatmul.mubr.bf16.vlgmr.msra.gmra.mrb[4].mxu0 %v6107_v24  ;;  %6447 = vmatmul.mubr.bf16.vlgmr.msra.gmra.mrb[4].mxu1 %v6109_v61 }
 0x4d1   :  { %v7332_v63 = vpop.f32.mrb[4].mxu0  ;;  %v7354_v55 = vpop.f32.mrb[4].mxu1 }
 0x4d2   :  { %v7333_v1 = vpop.f32.mrb[5].mxu0  ;;  %v7355_v2 = vpop.f32.mrb[5].mxu1 }
 0x4d3   :  { %v7334_v3 = vadd.f32 %v7333_v1, %v7332_v63  ;;  %v7356_v49 = vadd.f32 %v7355_v2, %v7354_v55  ;;  %v7335_v57 = vpop.f32.mrb[6].mxu0  ;;  %v7357_v5 = vpop.f32.mrb[6].mxu1 }
 0x4d4   :  { %v7336_v6 = vpop.f32.mrb[7].mxu0  ;;  %v7358_v8 = vpop.f32.mrb[7].mxu1 }
 0x4d5   :  { %v6409_v9 = vadd.f32 %v7334_v3, %v7283_v0 }
 0x4d7   :  { %v6449_v36 = vadd.f32 %v7356_v49, %v6409_v9 }
 0x4d9   :  { %v6459_v60 = vsel %vm11382_vm2, %v6449_v36, -1e+30  ;;  %v6475_v22 = vsel %vm6474_vm4, %v6449_v36, 0.0 }
 0x4da   :  { %v6461_v11 = vsel %vm6460_vm3, %v6459_v60, -inf }
 0x4db   :  { %6462 = vmax.xlane.f32.xlu0 %v6461_v11 }
 0x568   :  { %v6463_v12 = vpop.xlane.xlu0 %6462 }
 0x569   :  { %v6464_v14 = vsub.f32 %v6459_v60, %v6463_v12  ;;  %v6470_v7 = vsub.f32 %v6449_v36, %v6463_v12 }
 0x56b   :  { %v6465_v4 = vmul.f32 1.442695, %v6464_v14 }
 0x56d   :  { %8697 = vpow2.f32 %v6465_v4 }
 0x577   :  { %v8698_v52 = vpop.eup %8697 }
 0x578   :  { %v6467_v16 = vsel %vm6460_vm3, %v8698_v52, 0.0 }
 0x579   :  { %6468 = vadd.xlane.f32.xlu0 %v6467_v16 }
 0x606   :  { %v6469_v17 = vpop.xlane.xlu0 %6468 }
 0x607   :  { %8699 = vlog2.f32 %v6469_v17 }
 0x611   :  { %v8700_v18 = vpop.eup %8699 }
 0x612   :  { %v6472_v20 = vmul.f32 0.6931472, %v8700_v18 }
 0x614   :  { %v6473_v21 = vsub.f32 %v6470_v7, %v6472_v20 }
 0x616   :  { %v6476_v25 = vsel %vm11382_vm2, %v6473_v21, %v6475_v22 }
 0x617   :  { %6477 = vst [vmem:[%s11398_s5] sm:$0x3] %v6476_v25 }

</bundles_post_ra>
